<compile_context>
chip_gen: v7x
topology: tpu7x:2x2x1
jax: 0.10.0
libtpu: 0.0.40
codegen_flags: <defaults>
</compile_context>

<pallas_src>
import functools

import jax
import jax.numpy as jnp
from jax.experimental import pallas as pl
from jax.experimental.pallas import tpu as pltpu

N_BGN = 16
N_END = 4
LEAK = 0.01       # nn.LeakyReLU default negative_slope
EPS = 1e-5        # BatchNorm1d default eps
TB = 8            # samples per grid step (review: 8-16 safe on v5e, >=2 steps for v7x)
OUT_PAD = 128     # lane-dense output width


def _leaky(x):
    # LeakyReLU(x) == max(x, a*x) for 0 < a < 1.
    return jnp.maximum(x, LEAK * x)


# -----------------------------------------------------------------------------
# Kernel
# -----------------------------------------------------------------------------
def utilfunc_kernel(x_ref, w00_ref, blin_ref, wconv_ref, w01_ref, w02_ref,
                    w03_ref, out_ref, flat_ref):
    f32 = jnp.float32
    tb = x_ref.shape[0]

    # ---- lin00 (batched): (TB, n_bgn) @ (n_bgn, 64) --------------------------
    h0 = _leaky(jnp.dot(x_ref[...], w00_ref[...], preferred_element_type=f32)
                + blin_ref[0:1, 0:64])                              # (TB, 64)

    # ---- conv weights / BN affine, hoisted out of the per-sample loop --------
    w1a = wconv_ref[0:4, 62:63]                                     # (4, 1)
    w1b = wconv_ref[0:4, 63:64]                                     # (4, 1)
    b1 = wconv_ref[0:4, 61:62]                                      # (4, 1)
    w2a = wconv_ref[0:8, 48:52]                                     # (8, 4)
    w2b = wconv_ref[0:8, 52:56]                                     # (8, 4)
    b2 = wconv_ref[0:8, 60:61]                                      # (8, 1)
    w3cat = wconv_ref[0:16, 32:48]                                  # (16, 16)
    b3 = wconv_ref[0:16, 59:60]                                     # (16, 1)
    w4cat = wconv_ref[:, 0:32]                                      # (32, 32)
    b4 = wconv_ref[:, 56:57]                                        # (32, 1)
    gamma = wconv_ref[:, 57:58]                                     # (32, 1)
    beta = wconv_ref[:, 58:59]                                      # (32, 1)
    zpad = jnp.zeros((32, 4), f32)

    # ---- conv1..conv4 + BN, per sample (statically unrolled over TB) ---------
    # TODO(synk): conv3/conv4 could be batched into one wide-N matmul per grid
    # step via a lane-concatenated activation scratch; kept per-sample here.
    for j in range(tb):
        h0j = h0[j:j + 1, :]                                        # (1, 64)

        # conv1 (C_in=1, k=2): VPU broadcast.
        c1 = _leaky(w1a * h0j[:, 0:63] + w1b * h0j[:, 1:64] + b1)   # (4, 63)

        # conv2 (C_in=4, k=2): VPU broadcast multiply-adds.
        c1a = c1[:, 0:62]
        c1b = c1[:, 1:63]
        acc2 = jnp.zeros((8, 62), f32)
        for i in range(4):
            acc2 = acc2 + w2a[:, i:i + 1] * c1a[i:i + 1, :] \
                        + w2b[:, i:i + 1] * c1b[i:i + 1, :]
        c2 = _leaky(acc2 + b2)                                      # (8, 62)

        # conv3 (C_in=8): fused-tap single matmul.
        s2 = jnp.concatenate([c2[:, 0:61], c2[:, 1:62]], axis=0)    # (16, 61)
        c3 = _leaky(jnp.dot(w3cat, s2, preferred_element_type=f32) + b3)

        # conv4 (C_in=16): fused-tap single matmul.
        s3 = jnp.concatenate([c3[:, 0:60], c3[:, 1:61]], axis=0)    # (32, 60)
        c4 = _leaky(jnp.dot(w4cat, s3, preferred_element_type=f32) + b4)

        # BatchNorm1d(32), training-mode stats (batch of 1 -> stats over L=60).
        mean = jnp.mean(c4, axis=1, keepdims=True)                  # (32, 1)
        var = jnp.mean((c4 - mean) ** 2, axis=1, keepdims=True)     # (32, 1)
        bn = (c4 - mean) * jax.lax.rsqrt(var + EPS) * gamma + beta  # (32, 60)

        # Flatten into the padded flat row: flat index = c*64 + l.  Pad lanes
        # 60..63 are explicitly zero and hit all-zero rows of w01p.  These 32
        # stores fully cover flat_ref[j], so no per-step memset is needed.
        bn_pad = jnp.concatenate([bn, zpad], axis=1)                # (32, 64)
        for c in range(32):
            flat_ref[j:j + 1, c * 64:(c + 1) * 64] = bn_pad[c:c + 1, :]

    # ---- lin01 / lin02 / lin03 (batched single matmuls) ----------------------
    h1 = _leaky(jnp.dot(flat_ref[...], w01_ref[...], preferred_element_type=f32)
                + blin_ref[1:2, 0:64])                              # (TB, 64)
    h2 = _leaky(jnp.dot(h1, w02_ref[...], preferred_element_type=f32)
                + blin_ref[2:3, 0:32])                              # (TB, 32)
    h3 = _leaky(jnp.dot(h2, w03_ref[...], preferred_element_type=f32)
                + blin_ref[3:4, :])                                 # (TB, 128)
    out_ref[...] = h3                                               # lane-dense


# -----------------------------------------------------------------------------
# Parameters (raw PyTorch-layout tensors) and packing into 6 kernel inputs
# -----------------------------------------------------------------------------
def make_raw_params(key, n_bgn=N_BGN, n_end=N_END):
    ks = iter(jax.random.split(key, 24))

    def xavier(shape, fan_in, fan_out):
        bound = (6.0 / (fan_in + fan_out)) ** 0.5
        return jax.random.uniform(next(ks), shape, jnp.float32, -bound, bound)

    def uniform_bias(shape, fan_in):
        bound = 1.0 / (fan_in ** 0.5)
        return jax.random.uniform(next(ks), shape, jnp.float32, -bound, bound)

    def conv(c_in, c_out, k=2):
        w = xavier((c_out, c_in, k), c_in * k, c_out * k)    # PyTorch Conv1d layout
        b = uniform_bias((c_out,), c_in * k)
        return w, b

    raw = {}
    raw["w00"] = xavier((64, n_bgn), n_bgn, 64)              # PyTorch Linear layout
    raw["b00"] = uniform_bias((64,), n_bgn)
    raw["w1"], raw["b1"] = conv(1, 4)
    raw["w2"], raw["b2"] = conv(4, 8)
    raw["w3"], raw["b3"] = conv(8, 16)
    raw["w4"], raw["b4"] = conv(16, 32)
    raw["gamma"] = jnp.ones((32,), jnp.float32)
    raw["beta"] = jnp.zeros((32,), jnp.float32)
    raw["w01"] = xavier((64, 1920), 1920, 64)
    raw["b01"] = uniform_bias((64,), 1920)
    raw["w02"] = xavier((32, 64), 64, 32)
    raw["b02"] = uniform_bias((32,), 64)
    raw["w03"] = xavier((n_end, 32), 32, n_end)
    raw["b03"] = uniform_bias((n_end,), 32)
    return raw


def pack_params(raw, n_end=N_END):
    assert n_end <= OUT_PAD
    f32 = jnp.float32
    w00t = raw["w00"].T.astype(f32)                          # (n_bgn, 64)

    # All linear biases in one (4, 128) slab (row 3 zero-padded to OUT_PAD).
    blin = jnp.zeros((4, OUT_PAD), f32)
    blin = blin.at[0, 0:64].set(raw["b00"])
    blin = blin.at[1, 0:64].set(raw["b01"])
    blin = blin.at[2, 0:32].set(raw["b02"])
    blin = blin.at[3, 0:n_end].set(raw["b03"])

    # All conv weights/biases + BN affine in one (32, 64) slab.
    wconv = jnp.zeros((32, 64), f32)
    wconv = wconv.at[:, 0:16].set(raw["w4"][:, :, 0])        # conv4 tap0
    wconv = wconv.at[:, 16:32].set(raw["w4"][:, :, 1])       # conv4 tap1
    wconv = wconv.at[0:16, 32:40].set(raw["w3"][:, :, 0])    # conv3 tap0
    wconv = wconv.at[0:16, 40:48].set(raw["w3"][:, :, 1])    # conv3 tap1
    wconv = wconv.at[0:8, 48:52].set(raw["w2"][:, :, 0])     # conv2 tap0
    wconv = wconv.at[0:8, 52:56].set(raw["w2"][:, :, 1])     # conv2 tap1
    wconv = wconv.at[:, 56].set(raw["b4"])
    wconv = wconv.at[:, 57].set(raw["gamma"])
    wconv = wconv.at[:, 58].set(raw["beta"])
    wconv = wconv.at[0:16, 59].set(raw["b3"])
    wconv = wconv.at[0:8, 60].set(raw["b2"])
    wconv = wconv.at[0:4, 61].set(raw["b1"])
    wconv = wconv.at[0:4, 62].set(raw["w1"][:, 0, 0])
    wconv = wconv.at[0:4, 63].set(raw["w1"][:, 0, 1])

    # lin01 weight transposed and padded so padded flat index = c*64 + l
    # (PyTorch flatten index = c*60 + l); pad rows are zero.
    w01t = raw["w01"].T.reshape(32, 60, 64)                  # row c*60+l -> [c, l, :]
    w01p = jnp.zeros((32, 64, 64), f32).at[:, 0:60, :].set(w01t).reshape(2048, 64)

    w02t = raw["w02"].T.astype(f32)                          # (64, 32)
    # lin03 weight transposed and zero-padded to OUT_PAD lanes (lane-dense out).
    w03p = jnp.zeros((32, OUT_PAD), f32).at[:, 0:n_end].set(raw["w03"].T)
    return (w00t, blin, wconv, w01p, w02t, w03p)


# -----------------------------------------------------------------------------
# Host wrapper
# -----------------------------------------------------------------------------
@functools.partial(jax.jit, static_argnames=("n_end",))
def util_func_forward(x, packed, n_end=N_END):
    w00t, blin, wconv, w01p, w02t, w03p = packed
    xb = x.reshape(-1, x.shape[-1]).astype(jnp.float32)      # (B, n_bgn)
    batch, n_bgn = xb.shape
    b_pad = ((batch + TB - 1) // TB) * TB
    if b_pad != batch:
        xb = jnp.pad(xb, ((0, b_pad - batch), (0, 0)))

    macs = (n_bgn * 64 + 4 * 2 * 63 + 8 * 4 * 2 * 62 + 16 * 8 * 2 * 61
            + 32 * 16 * 2 * 60 + 1920 * 64 + 64 * 32 + 32 * n_end)
    param_bytes = sum(int(p.size) * 4 for p in packed)
    cost = pl.CostEstimate(
        flops=2 * macs * b_pad,
        transcendentals=32 * b_pad,
        bytes_accessed=param_bytes + 4 * b_pad * (n_bgn + OUT_PAD))

    const2 = lambda b: (0, 0)
    out = pl.pallas_call(
        utilfunc_kernel,
        grid=(b_pad // TB,),
        in_specs=[
            pl.BlockSpec((TB, n_bgn), lambda b: (b, 0)),
            pl.BlockSpec(w00t.shape, const2),    # weights resident across steps
            pl.BlockSpec(blin.shape, const2),
            pl.BlockSpec(wconv.shape, const2),
            pl.BlockSpec(w01p.shape, const2),
            pl.BlockSpec(w02t.shape, const2),
            pl.BlockSpec(w03p.shape, const2),
        ],
        out_specs=pl.BlockSpec((TB, OUT_PAD), lambda b: (b, 0)),
        out_shape=jax.ShapeDtypeStruct((b_pad, OUT_PAD), jnp.float32),
        scratch_shapes=[pltpu.VMEM((TB, 32 * 64), jnp.float32)],
        compiler_params=pltpu.CompilerParams(
            dimension_semantics=("parallel",)),
        cost_estimate=cost,
    )(xb, w00t, blin, wconv, w01p, w02t, w03p)
    return out[:batch, :n_end]


# -----------------------------------------------------------------------------
# Pure-JAX reference (uses raw PyTorch-layout params; mirrors the nn.Module)
# -----------------------------------------------------------------------------
def reference_forward(x, raw):
    xb = x.reshape(-1, x.shape[-1]).astype(jnp.float32)

    def conv(a, w, b):   # a: (C_in, L), w: (C_out, C_in, 2)
        return _leaky(jnp.dot(w[:, :, 0], a[:, :-1]) + jnp.dot(w[:, :, 1], a[:, 1:])
                      + b[:, None])

    def one(xv):
        h0 = _leaky(raw["w00"] @ xv + raw["b00"])            # (64,)
        a = h0[None, :]                                       # (1, 64)
        c1 = conv(a, raw["w1"], raw["b1"])
        c2 = conv(c1, raw["w2"], raw["b2"])
        c3 = conv(c2, raw["w3"], raw["b3"])
        c4 = conv(c3, raw["w4"], raw["b4"])                   # (32, 60)
        mean = jnp.mean(c4, axis=1, keepdims=True)
        var = jnp.mean((c4 - mean) ** 2, axis=1, keepdims=True)
        bn = ((c4 - mean) * jax.lax.rsqrt(var + EPS)
              * raw["gamma"][:, None] + raw["beta"][:, None])
        flat = bn.reshape(-1)                                 # (1920,), index c*60+l
        h1 = _leaky(raw["w01"] @ flat + raw["b01"])
        h2 = _leaky(raw["w02"] @ h1 + raw["b02"])
        h3 = _leaky(raw["w03"] @ h2 + raw["b03"])
        return h3

    return jax.vmap(one)(xb)


if __name__ == "__main__":
    key = jax.random.PRNGKey(0)
    k_x, k_p = jax.random.split(key)
    batch = 16   # 2 grid steps of TB=8 -> both v7x TensorCores get work
    # Each sample is the PyTorch module's (1, 1, n_bgn) input.
    x = jax.random.normal(k_x, (batch, 1, N_BGN), jnp.float32)

    raw = make_raw_params(k_p)
    packed = pack_params(raw)

    y = util_func_forward(x, packed)
    jax.block_until_ready(y)
    assert y.shape == (batch, N_END) and y.dtype == jnp.float32

    y_ref = reference_forward(x, raw)
    err = float(jnp.max(jnp.abs(y - y_ref)))
    assert err < 1e-3, f"mismatch vs reference: max abs err {err}"
    print("KERNEL_OK")
</pallas_src>

<mosaic_0001>
module attributes {stable_mosaic.version = 11 : i64} {
  func.func @utilfunc_kernel(%arg0: i32, %arg1: memref<8x16xf32, #tpu.memory_space<vmem>>, %arg2: memref<16x64xf32, #tpu.memory_space<vmem>>, %arg3: memref<4x128xf32, #tpu.memory_space<vmem>>, %arg4: memref<32x64xf32, #tpu.memory_space<vmem>>, %arg5: memref<2048x64xf32, #tpu.memory_space<vmem>>, %arg6: memref<64x32xf32, #tpu.memory_space<vmem>>, %arg7: memref<32x128xf32, #tpu.memory_space<vmem>>, %arg8: memref<8x128xf32, #tpu.memory_space<vmem>>, %arg9: memref<8x2048xf32, #tpu.memory_space<vmem>>) attributes {dimension_semantics = [#tpu.dimension_semantics<parallel>], iteration_bounds = array<i64: 2>, scalar_prefetch = 0 : i64, scratch_operands = 1 : i64, tpu.core_type = #tpu.core_type<tc>, window_params = [{transform_indices = @transform_0, window_bounds = array<i64: 8, 16>}, {pipeline_mode = #tpu.pipeline_mode<synchronous>, transform_indices = @transform_1, window_bounds = array<i64: 16, 64>}, {pipeline_mode = #tpu.pipeline_mode<synchronous>, transform_indices = @transform_2, window_bounds = array<i64: 4, 128>}, {pipeline_mode = #tpu.pipeline_mode<synchronous>, transform_indices = @transform_3, window_bounds = array<i64: 32, 64>}, {pipeline_mode = #tpu.pipeline_mode<synchronous>, transform_indices = @transform_4, window_bounds = array<i64: 2048, 64>}, {pipeline_mode = #tpu.pipeline_mode<synchronous>, transform_indices = @transform_5, window_bounds = array<i64: 64, 32>}, {pipeline_mode = #tpu.pipeline_mode<synchronous>, transform_indices = @transform_6, window_bounds = array<i64: 32, 128>}, {transform_indices = @transform_7, window_bounds = array<i64: 8, 128>}]} {
    %c0 = arith.constant 0 : index
    %c0_0 = arith.constant 0 : index
    %0 = vector.load %arg1[%c0, %c0_0] : memref<8x16xf32, #tpu.memory_space<vmem>>, vector<8x16xf32>
    %c0_1 = arith.constant 0 : index
    %c0_2 = arith.constant 0 : index
    %1 = vector.load %arg2[%c0_1, %c0_2] : memref<16x64xf32, #tpu.memory_space<vmem>>, vector<16x64xf32>
    %cst = arith.constant dense<0.000000e+00> : vector<8x64xf32>
    %2 = tpu.matmul %0, %1, %cst {dimension_numbers = #tpu.dot_dimension_numbers<[1], [0], [0], [1], [0, 0, 1, 1], [], []>} : vector<8x16xf32>, vector<16x64xf32>, vector<8x64xf32> -> vector<8x64xf32>
    %c0_3 = arith.constant 0 : index
    %c0_4 = arith.constant 0 : index
    %3 = vector.load %arg3[%c0_3, %c0_4] : memref<4x128xf32, #tpu.memory_space<vmem>>, vector<1x64xf32>
    %4 = vector.broadcast %3 : vector<1x64xf32> to vector<8x64xf32>
    %5 = arith.addf %2, %4 : vector<8x64xf32>
    %cst_5 = arith.constant 0.00999999977 : f32
    %6 = vector.broadcast %cst_5 : f32 to vector<8x64xf32>
    %7 = arith.mulf %6, %5 : vector<8x64xf32>
    %8 = arith.maximumf %5, %7 : vector<8x64xf32>
    %c0_6 = arith.constant 0 : index
    %c62 = arith.constant 62 : index
    %9 = vector.load %arg4[%c0_6, %c62] : memref<32x64xf32, #tpu.memory_space<vmem>>, vector<4x1xf32>
    %c0_7 = arith.constant 0 : index
    %c63 = arith.constant 63 : index
    %10 = vector.load %arg4[%c0_7, %c63] : memref<32x64xf32, #tpu.memory_space<vmem>>, vector<4x1xf32>
    %c0_8 = arith.constant 0 : index
    %c61 = arith.constant 61 : index
    %11 = vector.load %arg4[%c0_8, %c61] : memref<32x64xf32, #tpu.memory_space<vmem>>, vector<4x1xf32>
    %c0_9 = arith.constant 0 : index
    %c48 = arith.constant 48 : index
    %12 = vector.load %arg4[%c0_9, %c48] : memref<32x64xf32, #tpu.memory_space<vmem>>, vector<8x4xf32>
    %c0_10 = arith.constant 0 : index
    %c52 = arith.constant 52 : index
    %13 = vector.load %arg4[%c0_10, %c52] : memref<32x64xf32, #tpu.memory_space<vmem>>, vector<8x4xf32>
    %c0_11 = arith.constant 0 : index
    %c60 = arith.constant 60 : index
    %14 = vector.load %arg4[%c0_11, %c60] : memref<32x64xf32, #tpu.memory_space<vmem>>, vector<8x1xf32>
    %c0_12 = arith.constant 0 : index
    %c32 = arith.constant 32 : index
    %15 = vector.load %arg4[%c0_12, %c32] : memref<32x64xf32, #tpu.memory_space<vmem>>, vector<16x16xf32>
    %c0_13 = arith.constant 0 : index
    %c59 = arith.constant 59 : index
    %16 = vector.load %arg4[%c0_13, %c59] : memref<32x64xf32, #tpu.memory_space<vmem>>, vector<16x1xf32>
    %c0_14 = arith.constant 0 : index
    %c0_15 = arith.constant 0 : index
    %17 = vector.load %arg4[%c0_14, %c0_15] : memref<32x64xf32, #tpu.memory_space<vmem>>, vector<32x32xf32>
    %c0_16 = arith.constant 0 : index
    %c56 = arith.constant 56 : index
    %18 = vector.load %arg4[%c0_16, %c56] : memref<32x64xf32, #tpu.memory_space<vmem>>, vector<32x1xf32>
    %c0_17 = arith.constant 0 : index
    %c57 = arith.constant 57 : index
    %19 = vector.load %arg4[%c0_17, %c57] : memref<32x64xf32, #tpu.memory_space<vmem>>, vector<32x1xf32>
    %c0_18 = arith.constant 0 : index
    %c58 = arith.constant 58 : index
    %20 = vector.load %arg4[%c0_18, %c58] : memref<32x64xf32, #tpu.memory_space<vmem>>, vector<32x1xf32>
    %cst_19 = arith.constant 0.000000e+00 : f32
    %21 = vector.broadcast %cst_19 : f32 to vector<32x4xf32>
    %22 = vector.extract_strided_slice %8 {offsets = [0, 0], sizes = [1, 64], strides = [1, 1]} : vector<8x64xf32> to vector<1x64xf32>
    %23 = vector.extract_strided_slice %22 {offsets = [0, 0], sizes = [1, 63], strides = [1, 1]} : vector<1x64xf32> to vector<1x63xf32>
    %24 = vector.broadcast %9 : vector<4x1xf32> to vector<4x63xf32>
    %25 = vector.broadcast %23 : vector<1x63xf32> to vector<4x63xf32>
    %26 = arith.mulf %24, %25 : vector<4x63xf32>
    %27 = vector.extract_strided_slice %22 {offsets = [0, 1], sizes = [1, 63], strides = [1, 1]} : vector<1x64xf32> to vector<1x63xf32>
    %28 = vector.broadcast %10 : vector<4x1xf32> to vector<4x63xf32>
    %29 = vector.broadcast %27 : vector<1x63xf32> to vector<4x63xf32>
    %30 = arith.mulf %28, %29 : vector<4x63xf32>
    %31 = arith.addf %26, %30 : vector<4x63xf32>
    %32 = vector.broadcast %11 : vector<4x1xf32> to vector<4x63xf32>
    %33 = arith.addf %31, %32 : vector<4x63xf32>
    %cst_20 = arith.constant 0.00999999977 : f32
    %34 = vector.broadcast %cst_20 : f32 to vector<4x63xf32>
    %35 = arith.mulf %34, %33 : vector<4x63xf32>
    %36 = arith.maximumf %33, %35 : vector<4x63xf32>
    %37 = vector.extract_strided_slice %36 {offsets = [0, 0], sizes = [4, 62], strides = [1, 1]} : vector<4x63xf32> to vector<4x62xf32>
    %38 = vector.extract_strided_slice %36 {offsets = [0, 1], sizes = [4, 62], strides = [1, 1]} : vector<4x63xf32> to vector<4x62xf32>
    %cst_21 = arith.constant 0.000000e+00 : f32
    %39 = vector.broadcast %cst_21 : f32 to vector<8x62xf32>
    %40 = vector.extract_strided_slice %12 {offsets = [0, 0], sizes = [8, 1], strides = [1, 1]} : vector<8x4xf32> to vector<8x1xf32>
    %41 = vector.extract_strided_slice %37 {offsets = [0, 0], sizes = [1, 62], strides = [1, 1]} : vector<4x62xf32> to vector<1x62xf32>
    %42 = vector.broadcast %40 : vector<8x1xf32> to vector<8x62xf32>
    %43 = vector.broadcast %41 : vector<1x62xf32> to vector<8x62xf32>
    %44 = arith.mulf %42, %43 : vector<8x62xf32>
    %45 = arith.addf %39, %44 : vector<8x62xf32>
    %46 = vector.extract_strided_slice %13 {offsets = [0, 0], sizes = [8, 1], strides = [1, 1]} : vector<8x4xf32> to vector<8x1xf32>
    %47 = vector.extract_strided_slice %38 {offsets = [0, 0], sizes = [1, 62], strides = [1, 1]} : vector<4x62xf32> to vector<1x62xf32>
    %48 = vector.broadcast %46 : vector<8x1xf32> to vector<8x62xf32>
    %49 = vector.broadcast %47 : vector<1x62xf32> to vector<8x62xf32>
    %50 = arith.mulf %48, %49 : vector<8x62xf32>
    %51 = arith.addf %45, %50 : vector<8x62xf32>
    %52 = vector.extract_strided_slice %12 {offsets = [0, 1], sizes = [8, 1], strides = [1, 1]} : vector<8x4xf32> to vector<8x1xf32>
    %53 = vector.extract_strided_slice %37 {offsets = [1, 0], sizes = [1, 62], strides = [1, 1]} : vector<4x62xf32> to vector<1x62xf32>
    %54 = vector.broadcast %52 : vector<8x1xf32> to vector<8x62xf32>
    %55 = vector.broadcast %53 : vector<1x62xf32> to vector<8x62xf32>
    %56 = arith.mulf %54, %55 : vector<8x62xf32>
    %57 = arith.addf %51, %56 : vector<8x62xf32>
    %58 = vector.extract_strided_slice %13 {offsets = [0, 1], sizes = [8, 1], strides = [1, 1]} : vector<8x4xf32> to vector<8x1xf32>
    %59 = vector.extract_strided_slice %38 {offsets = [1, 0], sizes = [1, 62], strides = [1, 1]} : vector<4x62xf32> to vector<1x62xf32>
    %60 = vector.broadcast %58 : vector<8x1xf32> to vector<8x62xf32>
    %61 = vector.broadcast %59 : vector<1x62xf32> to vector<8x62xf32>
    %62 = arith.mulf %60, %61 : vector<8x62xf32>
    %63 = arith.addf %57, %62 : vector<8x62xf32>
    %64 = vector.extract_strided_slice %12 {offsets = [0, 2], sizes = [8, 1], strides = [1, 1]} : vector<8x4xf32> to vector<8x1xf32>
    %65 = vector.extract_strided_slice %37 {offsets = [2, 0], sizes = [1, 62], strides = [1, 1]} : vector<4x62xf32> to vector<1x62xf32>
    %66 = vector.broadcast %64 : vector<8x1xf32> to vector<8x62xf32>
    %67 = vector.broadcast %65 : vector<1x62xf32> to vector<8x62xf32>
    %68 = arith.mulf %66, %67 : vector<8x62xf32>
    %69 = arith.addf %63, %68 : vector<8x62xf32>
    %70 = vector.extract_strided_slice %13 {offsets = [0, 2], sizes = [8, 1], strides = [1, 1]} : vector<8x4xf32> to vector<8x1xf32>
    %71 = vector.extract_strided_slice %38 {offsets = [2, 0], sizes = [1, 62], strides = [1, 1]} : vector<4x62xf32> to vector<1x62xf32>
    %72 = vector.broadcast %70 : vector<8x1xf32> to vector<8x62xf32>
    %73 = vector.broadcast %71 : vector<1x62xf32> to vector<8x62xf32>
    %74 = arith.mulf %72, %73 : vector<8x62xf32>
    %75 = arith.addf %69, %74 : vector<8x62xf32>
    %76 = vector.extract_strided_slice %12 {offsets = [0, 3], sizes = [8, 1], strides = [1, 1]} : vector<8x4xf32> to vector<8x1xf32>
    %77 = vector.extract_strided_slice %37 {offsets = [3, 0], sizes = [1, 62], strides = [1, 1]} : vector<4x62xf32> to vector<1x62xf32>
    %78 = vector.broadcast %76 : vector<8x1xf32> to vector<8x62xf32>
    %79 = vector.broadcast %77 : vector<1x62xf32> to vector<8x62xf32>
    %80 = arith.mulf %78, %79 : vector<8x62xf32>
    %81 = arith.addf %75, %80 : vector<8x62xf32>
    %82 = vector.extract_strided_slice %13 {offsets = [0, 3], sizes = [8, 1], strides = [1, 1]} : vector<8x4xf32> to vector<8x1xf32>
    %83 = vector.extract_strided_slice %38 {offsets = [3, 0], sizes = [1, 62], strides = [1, 1]} : vector<4x62xf32> to vector<1x62xf32>
    %84 = vector.broadcast %82 : vector<8x1xf32> to vector<8x62xf32>
    %85 = vector.broadcast %83 : vector<1x62xf32> to vector<8x62xf32>
    %86 = arith.mulf %84, %85 : vector<8x62xf32>
    %87 = arith.addf %81, %86 : vector<8x62xf32>
    %88 = vector.broadcast %14 : vector<8x1xf32> to vector<8x62xf32>
    %89 = arith.addf %87, %88 : vector<8x62xf32>
    %cst_22 = arith.constant 0.00999999977 : f32
    %90 = vector.broadcast %cst_22 : f32 to vector<8x62xf32>
    %91 = arith.mulf %90, %89 : vector<8x62xf32>
    %92 = arith.maximumf %89, %91 : vector<8x62xf32>
    %93 = vector.extract_strided_slice %92 {offsets = [0, 0], sizes = [8, 61], strides = [1, 1]} : vector<8x62xf32> to vector<8x61xf32>
    %94 = vector.extract_strided_slice %92 {offsets = [0, 1], sizes = [8, 61], strides = [1, 1]} : vector<8x62xf32> to vector<8x61xf32>
    %95 = tpu.concatenate %93, %94 in 0 : vector<8x61xf32>, vector<8x61xf32> -> vector<16x61xf32>
    %cst_23 = arith.constant dense<0.000000e+00> : vector<16x61xf32>
    %96 = tpu.matmul %15, %95, %cst_23 {dimension_numbers = #tpu.dot_dimension_numbers<[1], [0], [0], [1], [0, 0, 1, 1], [], []>} : vector<16x16xf32>, vector<16x61xf32>, vector<16x61xf32> -> vector<16x61xf32>
    %97 = vector.broadcast %16 : vector<16x1xf32> to vector<16x61xf32>
    %98 = arith.addf %96, %97 : vector<16x61xf32>
    %cst_24 = arith.constant 0.00999999977 : f32
    %99 = vector.broadcast %cst_24 : f32 to vector<16x61xf32>
    %100 = arith.mulf %99, %98 : vector<16x61xf32>
    %101 = arith.maximumf %98, %100 : vector<16x61xf32>
    %102 = vector.extract_strided_slice %101 {offsets = [0, 0], sizes = [16, 60], strides = [1, 1]} : vector<16x61xf32> to vector<16x60xf32>
    %103 = vector.extract_strided_slice %101 {offsets = [0, 1], sizes = [16, 60], strides = [1, 1]} : vector<16x61xf32> to vector<16x60xf32>
    %104 = tpu.concatenate %102, %103 in 0 : vector<16x60xf32>, vector<16x60xf32> -> vector<32x60xf32>
    %cst_25 = arith.constant dense<0.000000e+00> : vector<32x60xf32>
    %105 = tpu.matmul %17, %104, %cst_25 {dimension_numbers = #tpu.dot_dimension_numbers<[1], [0], [0], [1], [0, 0, 1, 1], [], []>} : vector<32x32xf32>, vector<32x60xf32>, vector<32x60xf32> -> vector<32x60xf32>
    %106 = vector.broadcast %18 : vector<32x1xf32> to vector<32x60xf32>
    %107 = arith.addf %105, %106 : vector<32x60xf32>
    %cst_26 = arith.constant 0.00999999977 : f32
    %108 = vector.broadcast %cst_26 : f32 to vector<32x60xf32>
    %109 = arith.mulf %108, %107 : vector<32x60xf32>
    %110 = arith.maximumf %107, %109 : vector<32x60xf32>
    %cst_27 = arith.constant dense<0.000000e+00> : vector<32xf32>
    %111 = vector.multi_reduction <add>, %110, %cst_27 [1] : vector<32x60xf32> to vector<32xf32>
    %112 = vector.shape_cast %111 : vector<32xf32> to vector<32x1xf32>
    %cst_28 = arith.constant 6.000000e+01 : f32
    %113 = vector.broadcast %cst_28 : f32 to vector<32x1xf32>
    %114 = arith.divf %112, %113 : vector<32x1xf32>
    %115 = vector.broadcast %114 : vector<32x1xf32> to vector<32x60xf32>
    %116 = arith.subf %110, %115 : vector<32x60xf32>
    %117 = arith.mulf %116, %116 : vector<32x60xf32>
    %cst_29 = arith.constant dense<0.000000e+00> : vector<32xf32>
    %118 = vector.multi_reduction <add>, %117, %cst_29 [1] : vector<32x60xf32> to vector<32xf32>
    %119 = vector.shape_cast %118 : vector<32xf32> to vector<32x1xf32>
    %cst_30 = arith.constant 6.000000e+01 : f32
    %120 = vector.broadcast %cst_30 : f32 to vector<32x1xf32>
    %121 = arith.divf %119, %120 : vector<32x1xf32>
    %122 = vector.broadcast %114 : vector<32x1xf32> to vector<32x60xf32>
    %123 = arith.subf %110, %122 : vector<32x60xf32>
    %cst_31 = arith.constant 9.99999974E-6 : f32
    %124 = vector.broadcast %cst_31 : f32 to vector<32x1xf32>
    %125 = arith.addf %121, %124 : vector<32x1xf32>
    %126 = math.rsqrt %125 : vector<32x1xf32>
    %127 = vector.broadcast %126 : vector<32x1xf32> to vector<32x60xf32>
    %128 = arith.mulf %123, %127 : vector<32x60xf32>
    %129 = vector.broadcast %19 : vector<32x1xf32> to vector<32x60xf32>
    %130 = arith.mulf %128, %129 : vector<32x60xf32>
    %131 = vector.broadcast %20 : vector<32x1xf32> to vector<32x60xf32>
    %132 = arith.addf %130, %131 : vector<32x60xf32>
    %133 = tpu.concatenate %132, %21 in 1 : vector<32x60xf32>, vector<32x4xf32> -> vector<32x64xf32>
    %134 = vector.extract_strided_slice %133 {offsets = [0, 0], sizes = [1, 64], strides = [1, 1]} : vector<32x64xf32> to vector<1x64xf32>
    %c0_32 = arith.constant 0 : index
    %c0_33 = arith.constant 0 : index
    %135 = vector.load %arg9[%c0_32, %c0_33] : memref<8x2048xf32, #tpu.memory_space<vmem>>, vector<1x64xf32>
    tpu.vector_store %arg9[%c0_32, %c0_33], %134 {strides = array<i32>} : memref<8x2048xf32, #tpu.memory_space<vmem>>, vector<1x64xf32>,
    %136 = vector.extract_strided_slice %133 {offsets = [1, 0], sizes = [1, 64], strides = [1, 1]} : vector<32x64xf32> to vector<1x64xf32>
    %c0_34 = arith.constant 0 : index
    %c64 = arith.constant 64 : index
    %137 = vector.load %arg9[%c0_34, %c64] : memref<8x2048xf32, #tpu.memory_space<vmem>>, vector<1x64xf32>
    tpu.vector_store %arg9[%c0_34, %c64], %136 {strides = array<i32>} : memref<8x2048xf32, #tpu.memory_space<vmem>>, vector<1x64xf32>,
    %138 = vector.extract_strided_slice %133 {offsets = [2, 0], sizes = [1, 64], strides = [1, 1]} : vector<32x64xf32> to vector<1x64xf32>
    %c0_35 = arith.constant 0 : index
    %c128 = arith.constant 128 : index
    %139 = vector.load %arg9[%c0_35, %c128] : memref<8x2048xf32, #tpu.memory_space<vmem>>, vector<1x64xf32>
    tpu.vector_store %arg9[%c0_35, %c128], %138 {strides = array<i32>} : memref<8x2048xf32, #tpu.memory_space<vmem>>, vector<1x64xf32>,
    %140 = vector.extract_strided_slice %133 {offsets = [3, 0], sizes = [1, 64], strides = [1, 1]} : vector<32x64xf32> to vector<1x64xf32>
    %c0_36 = arith.constant 0 : index
    %c192 = arith.constant 192 : index
    %141 = vector.load %arg9[%c0_36, %c192] : memref<8x2048xf32, #tpu.memory_space<vmem>>, vector<1x64xf32>
    tpu.vector_store %arg9[%c0_36, %c192], %140 {strides = array<i32>} : memref<8x2048xf32, #tpu.memory_space<vmem>>, vector<1x64xf32>,
    %142 = vector.extract_strided_slice %133 {offsets = [4, 0], sizes = [1, 64], strides = [1, 1]} : vector<32x64xf32> to vector<1x64xf32>
    %c0_37 = arith.constant 0 : index
    %c256 = arith.constant 256 : index
    %143 = vector.load %arg9[%c0_37, %c256] : memref<8x2048xf32, #tpu.memory_space<vmem>>, vector<1x64xf32>
    tpu.vector_store %arg9[%c0_37, %c256], %142 {strides = array<i32>} : memref<8x2048xf32, #tpu.memory_space<vmem>>, vector<1x64xf32>,
    %144 = vector.extract_strided_slice %133 {offsets = [5, 0], sizes = [1, 64], strides = [1, 1]} : vector<32x64xf32> to vector<1x64xf32>
    %c0_38 = arith.constant 0 : index
    %c320 = arith.constant 320 : index
    %145 = vector.load %arg9[%c0_38, %c320] : memref<8x2048xf32, #tpu.memory_space<vmem>>, vector<1x64xf32>
    tpu.vector_store %arg9[%c0_38, %c320], %144 {strides = array<i32>} : memref<8x2048xf32, #tpu.memory_space<vmem>>, vector<1x64xf32>,
    %146 = vector.extract_strided_slice %133 {offsets = [6, 0], sizes = [1, 64], strides = [1, 1]} : vector<32x64xf32> to vector<1x64xf32>
    %c0_39 = arith.constant 0 : index
    %c384 = arith.constant 384 : index
    %147 = vector.load %arg9[%c0_39, %c384] : memref<8x2048xf32, #tpu.memory_space<vmem>>, vector<1x64xf32>
    tpu.vector_store %arg9[%c0_39, %c384], %146 {strides = array<i32>} : memref<8x2048xf32, #tpu.memory_space<vmem>>, vector<1x64xf32>,
    %148 = vector.extract_strided_slice %133 {offsets = [7, 0], sizes = [1, 64], strides = [1, 1]} : vector<32x64xf32> to vector<1x64xf32>
    %c0_40 = arith.constant 0 : index
    %c448 = arith.constant 448 : index
    %149 = vector.load %arg9[%c0_40, %c448] : memref<8x2048xf32, #tpu.memory_space<vmem>>, vector<1x64xf32>
    tpu.vector_store %arg9[%c0_40, %c448], %148 {strides = array<i32>} : memref<8x2048xf32, #tpu.memory_space<vmem>>, vector<1x64xf32>,
    %150 = vector.extract_strided_slice %133 {offsets = [8, 0], sizes = [1, 64], strides = [1, 1]} : vector<32x64xf32> to vector<1x64xf32>
    %c0_41 = arith.constant 0 : index
    %c512 = arith.constant 512 : index
    %151 = vector.load %arg9[%c0_41, %c512] : memref<8x2048xf32, #tpu.memory_space<vmem>>, vector<1x64xf32>
    tpu.vector_store %arg9[%c0_41, %c512], %150 {strides = array<i32>} : memref<8x2048xf32, #tpu.memory_space<vmem>>, vector<1x64xf32>,
    %152 = vector.extract_strided_slice %133 {offsets = [9, 0], sizes = [1, 64], strides = [1, 1]} : vector<32x64xf32> to vector<1x64xf32>
    %c0_42 = arith.constant 0 : index
    %c576 = arith.constant 576 : index
    %153 = vector.load %arg9[%c0_42, %c576] : memref<8x2048xf32, #tpu.memory_space<vmem>>, vector<1x64xf32>
    tpu.vector_store %arg9[%c0_42, %c576], %152 {strides = array<i32>} : memref<8x2048xf32, #tpu.memory_space<vmem>>, vector<1x64xf32>,
    %154 = vector.extract_strided_slice %133 {offsets = [10, 0], sizes = [1, 64], strides = [1, 1]} : vector<32x64xf32> to vector<1x64xf32>
    %c0_43 = arith.constant 0 : index
    %c640 = arith.constant 640 : index
    %155 = vector.load %arg9[%c0_43, %c640] : memref<8x2048xf32, #tpu.memory_space<vmem>>, vector<1x64xf32>
    tpu.vector_store %arg9[%c0_43, %c640], %154 {strides = array<i32>} : memref<8x2048xf32, #tpu.memory_space<vmem>>, vector<1x64xf32>,
    %156 = vector.extract_strided_slice %133 {offsets = [11, 0], sizes = [1, 64], strides = [1, 1]} : vector<32x64xf32> to vector<1x64xf32>
    %c0_44 = arith.constant 0 : index
    %c704 = arith.constant 704 : index
    %157 = vector.load %arg9[%c0_44, %c704] : memref<8x2048xf32, #tpu.memory_space<vmem>>, vector<1x64xf32>
    tpu.vector_store %arg9[%c0_44, %c704], %156 {strides = array<i32>} : memref<8x2048xf32, #tpu.memory_space<vmem>>, vector<1x64xf32>,
    %158 = vector.extract_strided_slice %133 {offsets = [12, 0], sizes = [1, 64], strides = [1, 1]} : vector<32x64xf32> to vector<1x64xf32>
    %c0_45 = arith.constant 0 : index
    %c768 = arith.constant 768 : index
    %159 = vector.load %arg9[%c0_45, %c768] : memref<8x2048xf32, #tpu.memory_space<vmem>>, vector<1x64xf32>
    tpu.vector_store %arg9[%c0_45, %c768], %158 {strides = array<i32>} : memref<8x2048xf32, #tpu.memory_space<vmem>>, vector<1x64xf32>,
    %160 = vector.extract_strided_slice %133 {offsets = [13, 0], sizes = [1, 64], strides = [1, 1]} : vector<32x64xf32> to vector<1x64xf32>
    %c0_46 = arith.constant 0 : index
    %c832 = arith.constant 832 : index
    %161 = vector.load %arg9[%c0_46, %c832] : memref<8x2048xf32, #tpu.memory_space<vmem>>, vector<1x64xf32>
    tpu.vector_store %arg9[%c0_46, %c832], %160 {strides = array<i32>} : memref<8x2048xf32, #tpu.memory_space<vmem>>, vector<1x64xf32>,
    %162 = vector.extract_strided_slice %133 {offsets = [14, 0], sizes = [1, 64], strides = [1, 1]} : vector<32x64xf32> to vector<1x64xf32>
    %c0_47 = arith.constant 0 : index
    %c896 = arith.constant 896 : index
    %163 = vector.load %arg9[%c0_47, %c896] : memref<8x2048xf32, #tpu.memory_space<vmem>>, vector<1x64xf32>
    tpu.vector_store %arg9[%c0_47, %c896], %162 {strides = array<i32>} : memref<8x2048xf32, #tpu.memory_space<vmem>>, vector<1x64xf32>,
    %164 = vector.extract_strided_slice %133 {offsets = [15, 0], sizes = [1, 64], strides = [1, 1]} : vector<32x64xf32> to vector<1x64xf32>
    %c0_48 = arith.constant 0 : index
    %c960 = arith.constant 960 : index
    %165 = vector.load %arg9[%c0_48, %c960] : memref<8x2048xf32, #tpu.memory_space<vmem>>, vector<1x64xf32>
    tpu.vector_store %arg9[%c0_48, %c960], %164 {strides = array<i32>} : memref<8x2048xf32, #tpu.memory_space<vmem>>, vector<1x64xf32>,
    %166 = vector.extract_strided_slice %133 {offsets = [16, 0], sizes = [1, 64], strides = [1, 1]} : vector<32x64xf32> to vector<1x64xf32>
    %c0_49 = arith.constant 0 : index
    %c1024 = arith.constant 1024 : index
    %167 = vector.load %arg9[%c0_49, %c1024] : memref<8x2048xf32, #tpu.memory_space<vmem>>, vector<1x64xf32>
    tpu.vector_store %arg9[%c0_49, %c1024], %166 {strides = array<i32>} : memref<8x2048xf32, #tpu.memory_space<vmem>>, vector<1x64xf32>,
    %168 = vector.extract_strided_slice %133 {offsets = [17, 0], sizes = [1, 64], strides = [1, 1]} : vector<32x64xf32> to vector<1x64xf32>
    %c0_50 = arith.constant 0 : index
    %c1088 = arith.constant 1088 : index
    %169 = vector.load %arg9[%c0_50, %c1088] : memref<8x2048xf32, #tpu.memory_space<vmem>>, vector<1x64xf32>
    tpu.vector_store %arg9[%c0_50, %c1088], %168 {strides = array<i32>} : memref<8x2048xf32, #tpu.memory_space<vmem>>, vector<1x64xf32>,
    %170 = vector.extract_strided_slice %133 {offsets = [18, 0], sizes = [1, 64], strides = [1, 1]} : vector<32x64xf32> to vector<1x64xf32>
    %c0_51 = arith.constant 0 : index
    %c1152 = arith.constant 1152 : index
    %171 = vector.load %arg9[%c0_51, %c1152] : memref<8x2048xf32, #tpu.memory_space<vmem>>, vector<1x64xf32>
    tpu.vector_store %arg9[%c0_51, %c1152], %170 {strides = array<i32>} : memref<8x2048xf32, #tpu.memory_space<vmem>>, vector<1x64xf32>,
    %172 = vector.extract_strided_slice %133 {offsets = [19, 0], sizes = [1, 64], strides = [1, 1]} : vector<32x64xf32> to vector<1x64xf32>
    %c0_52 = arith.constant 0 : index
    %c1216 = arith.constant 1216 : index
    %173 = vector.load %arg9[%c0_52, %c1216] : memref<8x2048xf32, #tpu.memory_space<vmem>>, vector<1x64xf32>
    tpu.vector_store %arg9[%c0_52, %c1216], %172 {strides = array<i32>} : memref<8x2048xf32, #tpu.memory_space<vmem>>, vector<1x64xf32>,
    %174 = vector.extract_strided_slice %133 {offsets = [20, 0], sizes = [1, 64], strides = [1, 1]} : vector<32x64xf32> to vector<1x64xf32>
    %c0_53 = arith.constant 0 : index
    %c1280 = arith.constant 1280 : index
    %175 = vector.load %arg9[%c0_53, %c1280] : memref<8x2048xf32, #tpu.memory_space<vmem>>, vector<1x64xf32>
    tpu.vector_store %arg9[%c0_53, %c1280], %174 {strides = array<i32>} : memref<8x2048xf32, #tpu.memory_space<vmem>>, vector<1x64xf32>,
    %176 = vector.extract_strided_slice %133 {offsets = [21, 0], sizes = [1, 64], strides = [1, 1]} : vector<32x64xf32> to vector<1x64xf32>
    %c0_54 = arith.constant 0 : index
    %c1344 = arith.constant 1344 : index
    %177 = vector.load %arg9[%c0_54, %c1344] : memref<8x2048xf32, #tpu.memory_space<vmem>>, vector<1x64xf32>
    tpu.vector_store %arg9[%c0_54, %c1344], %176 {strides = array<i32>} : memref<8x2048xf32, #tpu.memory_space<vmem>>, vector<1x64xf32>,
    %178 = vector.extract_strided_slice %133 {offsets = [22, 0], sizes = [1, 64], strides = [1, 1]} : vector<32x64xf32> to vector<1x64xf32>
    %c0_55 = arith.constant 0 : index
    %c1408 = arith.constant 1408 : index
    %179 = vector.load %arg9[%c0_55, %c1408] : memref<8x2048xf32, #tpu.memory_space<vmem>>, vector<1x64xf32>
    tpu.vector_store %arg9[%c0_55, %c1408], %178 {strides = array<i32>} : memref<8x2048xf32, #tpu.memory_space<vmem>>, vector<1x64xf32>,
    %180 = vector.extract_strided_slice %133 {offsets = [23, 0], sizes = [1, 64], strides = [1, 1]} : vector<32x64xf32> to vector<1x64xf32>
    %c0_56 = arith.constant 0 : index
    %c1472 = arith.constant 1472 : index
    %181 = vector.load %arg9[%c0_56, %c1472] : memref<8x2048xf32, #tpu.memory_space<vmem>>, vector<1x64xf32>
    tpu.vector_store %arg9[%c0_56, %c1472], %180 {strides = array<i32>} : memref<8x2048xf32, #tpu.memory_space<vmem>>, vector<1x64xf32>,
    %182 = vector.extract_strided_slice %133 {offsets = [24, 0], sizes = [1, 64], strides = [1, 1]} : vector<32x64xf32> to vector<1x64xf32>
    %c0_57 = arith.constant 0 : index
    %c1536 = arith.constant 1536 : index
    %183 = vector.load %arg9[%c0_57, %c1536] : memref<8x2048xf32, #tpu.memory_space<vmem>>, vector<1x64xf32>
    tpu.vector_store %arg9[%c0_57, %c1536], %182 {strides = array<i32>} : memref<8x2048xf32, #tpu.memory_space<vmem>>, vector<1x64xf32>,
    %184 = vector.extract_strided_slice %133 {offsets = [25, 0], sizes = [1, 64], strides = [1, 1]} : vector<32x64xf32> to vector<1x64xf32>
    %c0_58 = arith.constant 0 : index
    %c1600 = arith.constant 1600 : index
    %185 = vector.load %arg9[%c0_58, %c1600] : memref<8x2048xf32, #tpu.memory_space<vmem>>, vector<1x64xf32>
    tpu.vector_store %arg9[%c0_58, %c1600], %184 {strides = array<i32>} : memref<8x2048xf32, #tpu.memory_space<vmem>>, vector<1x64xf32>,
    %186 = vector.extract_strided_slice %133 {offsets = [26, 0], sizes = [1, 64], strides = [1, 1]} : vector<32x64xf32> to vector<1x64xf32>
    %c0_59 = arith.constant 0 : index
    %c1664 = arith.constant 1664 : index
    %187 = vector.load %arg9[%c0_59, %c1664] : memref<8x2048xf32, #tpu.memory_space<vmem>>, vector<1x64xf32>
    tpu.vector_store %arg9[%c0_59, %c1664], %186 {strides = array<i32>} : memref<8x2048xf32, #tpu.memory_space<vmem>>, vector<1x64xf32>,
    %188 = vector.extract_strided_slice %133 {offsets = [27, 0], sizes = [1, 64], strides = [1, 1]} : vector<32x64xf32> to vector<1x64xf32>
    %c0_60 = arith.constant 0 : index
    %c1728 = arith.constant 1728 : index
    %189 = vector.load %arg9[%c0_60, %c1728] : memref<8x2048xf32, #tpu.memory_space<vmem>>, vector<1x64xf32>
    tpu.vector_store %arg9[%c0_60, %c1728], %188 {strides = array<i32>} : memref<8x2048xf32, #tpu.memory_space<vmem>>, vector<1x64xf32>,
    %190 = vector.extract_strided_slice %133 {offsets = [28, 0], sizes = [1, 64], strides = [1, 1]} : vector<32x64xf32> to vector<1x64xf32>
    %c0_61 = arith.constant 0 : index
    %c1792 = arith.constant 1792 : index
    %191 = vector.load %arg9[%c0_61, %c1792] : memref<8x2048xf32, #tpu.memory_space<vmem>>, vector<1x64xf32>
    tpu.vector_store %arg9[%c0_61, %c1792], %190 {strides = array<i32>} : memref<8x2048xf32, #tpu.memory_space<vmem>>, vector<1x64xf32>,
    %192 = vector.extract_strided_slice %133 {offsets = [29, 0], sizes = [1, 64], strides = [1, 1]} : vector<32x64xf32> to vector<1x64xf32>
    %c0_62 = arith.constant 0 : index
    %c1856 = arith.constant 1856 : index
    %193 = vector.load %arg9[%c0_62, %c1856] : memref<8x2048xf32, #tpu.memory_space<vmem>>, vector<1x64xf32>
    tpu.vector_store %arg9[%c0_62, %c1856], %192 {strides = array<i32>} : memref<8x2048xf32, #tpu.memory_space<vmem>>, vector<1x64xf32>,
    %194 = vector.extract_strided_slice %133 {offsets = [30, 0], sizes = [1, 64], strides = [1, 1]} : vector<32x64xf32> to vector<1x64xf32>
    %c0_63 = arith.constant 0 : index
    %c1920 = arith.constant 1920 : index
    %195 = vector.load %arg9[%c0_63, %c1920] : memref<8x2048xf32, #tpu.memory_space<vmem>>, vector<1x64xf32>
    tpu.vector_store %arg9[%c0_63, %c1920], %194 {strides = array<i32>} : memref<8x2048xf32, #tpu.memory_space<vmem>>, vector<1x64xf32>,
    %196 = vector.extract_strided_slice %133 {offsets = [31, 0], sizes = [1, 64], strides = [1, 1]} : vector<32x64xf32> to vector<1x64xf32>
    %c0_64 = arith.constant 0 : index
    %c1984 = arith.constant 1984 : index
    %197 = vector.load %arg9[%c0_64, %c1984] : memref<8x2048xf32, #tpu.memory_space<vmem>>, vector<1x64xf32>
    tpu.vector_store %arg9[%c0_64, %c1984], %196 {strides = array<i32>} : memref<8x2048xf32, #tpu.memory_space<vmem>>, vector<1x64xf32>,
    %198 = vector.extract_strided_slice %8 {offsets = [1, 0], sizes = [1, 64], strides = [1, 1]} : vector<8x64xf32> to vector<1x64xf32>
    %199 = vector.extract_strided_slice %198 {offsets = [0, 0], sizes = [1, 63], strides = [1, 1]} : vector<1x64xf32> to vector<1x63xf32>
    %200 = vector.broadcast %9 : vector<4x1xf32> to vector<4x63xf32>
    %201 = vector.broadcast %199 : vector<1x63xf32> to vector<4x63xf32>
    %202 = arith.mulf %200, %201 : vector<4x63xf32>
    %203 = vector.extract_strided_slice %198 {offsets = [0, 1], sizes = [1, 63], strides = [1, 1]} : vector<1x64xf32> to vector<1x63xf32>
    %204 = vector.broadcast %10 : vector<4x1xf32> to vector<4x63xf32>
    %205 = vector.broadcast %203 : vector<1x63xf32> to vector<4x63xf32>
    %206 = arith.mulf %204, %205 : vector<4x63xf32>
    %207 = arith.addf %202, %206 : vector<4x63xf32>
    %208 = vector.broadcast %11 : vector<4x1xf32> to vector<4x63xf32>
    %209 = arith.addf %207, %208 : vector<4x63xf32>
    %cst_65 = arith.constant 0.00999999977 : f32
    %210 = vector.broadcast %cst_65 : f32 to vector<4x63xf32>
    %211 = arith.mulf %210, %209 : vector<4x63xf32>
    %212 = arith.maximumf %209, %211 : vector<4x63xf32>
    %213 = vector.extract_strided_slice %212 {offsets = [0, 0], sizes = [4, 62], strides = [1, 1]} : vector<4x63xf32> to vector<4x62xf32>
    %214 = vector.extract_strided_slice %212 {offsets = [0, 1], sizes = [4, 62], strides = [1, 1]} : vector<4x63xf32> to vector<4x62xf32>
    %cst_66 = arith.constant 0.000000e+00 : f32
    %215 = vector.broadcast %cst_66 : f32 to vector<8x62xf32>
    %216 = vector.extract_strided_slice %12 {offsets = [0, 0], sizes = [8, 1], strides = [1, 1]} : vector<8x4xf32> to vector<8x1xf32>
    %217 = vector.extract_strided_slice %213 {offsets = [0, 0], sizes = [1, 62], strides = [1, 1]} : vector<4x62xf32> to vector<1x62xf32>
    %218 = vector.broadcast %216 : vector<8x1xf32> to vector<8x62xf32>
    %219 = vector.broadcast %217 : vector<1x62xf32> to vector<8x62xf32>
    %220 = arith.mulf %218, %219 : vector<8x62xf32>
    %221 = arith.addf %215, %220 : vector<8x62xf32>
    %222 = vector.extract_strided_slice %13 {offsets = [0, 0], sizes = [8, 1], strides = [1, 1]} : vector<8x4xf32> to vector<8x1xf32>
    %223 = vector.extract_strided_slice %214 {offsets = [0, 0], sizes = [1, 62], strides = [1, 1]} : vector<4x62xf32> to vector<1x62xf32>
    %224 = vector.broadcast %222 : vector<8x1xf32> to vector<8x62xf32>
    %225 = vector.broadcast %223 : vector<1x62xf32> to vector<8x62xf32>
    %226 = arith.mulf %224, %225 : vector<8x62xf32>
    %227 = arith.addf %221, %226 : vector<8x62xf32>
    %228 = vector.extract_strided_slice %12 {offsets = [0, 1], sizes = [8, 1], strides = [1, 1]} : vector<8x4xf32> to vector<8x1xf32>
    %229 = vector.extract_strided_slice %213 {offsets = [1, 0], sizes = [1, 62], strides = [1, 1]} : vector<4x62xf32> to vector<1x62xf32>
    %230 = vector.broadcast %228 : vector<8x1xf32> to vector<8x62xf32>
    %231 = vector.broadcast %229 : vector<1x62xf32> to vector<8x62xf32>
    %232 = arith.mulf %230, %231 : vector<8x62xf32>
    %233 = arith.addf %227, %232 : vector<8x62xf32>
    %234 = vector.extract_strided_slice %13 {offsets = [0, 1], sizes = [8, 1], strides = [1, 1]} : vector<8x4xf32> to vector<8x1xf32>
    %235 = vector.extract_strided_slice %214 {offsets = [1, 0], sizes = [1, 62], strides = [1, 1]} : vector<4x62xf32> to vector<1x62xf32>
    %236 = vector.broadcast %234 : vector<8x1xf32> to vector<8x62xf32>
    %237 = vector.broadcast %235 : vector<1x62xf32> to vector<8x62xf32>
    %238 = arith.mulf %236, %237 : vector<8x62xf32>
    %239 = arith.addf %233, %238 : vector<8x62xf32>
    %240 = vector.extract_strided_slice %12 {offsets = [0, 2], sizes = [8, 1], strides = [1, 1]} : vector<8x4xf32> to vector<8x1xf32>
    %241 = vector.extract_strided_slice %213 {offsets = [2, 0], sizes = [1, 62], strides = [1, 1]} : vector<4x62xf32> to vector<1x62xf32>
    %242 = vector.broadcast %240 : vector<8x1xf32> to vector<8x62xf32>
    %243 = vector.broadcast %241 : vector<1x62xf32> to vector<8x62xf32>
    %244 = arith.mulf %242, %243 : vector<8x62xf32>
    %245 = arith.addf %239, %244 : vector<8x62xf32>
    %246 = vector.extract_strided_slice %13 {offsets = [0, 2], sizes = [8, 1], strides = [1, 1]} : vector<8x4xf32> to vector<8x1xf32>
    %247 = vector.extract_strided_slice %214 {offsets = [2, 0], sizes = [1, 62], strides = [1, 1]} : vector<4x62xf32> to vector<1x62xf32>
    %248 = vector.broadcast %246 : vector<8x1xf32> to vector<8x62xf32>
    %249 = vector.broadcast %247 : vector<1x62xf32> to vector<8x62xf32>
    %250 = arith.mulf %248, %249 : vector<8x62xf32>
    %251 = arith.addf %245, %250 : vector<8x62xf32>
    %252 = vector.extract_strided_slice %12 {offsets = [0, 3], sizes = [8, 1], strides = [1, 1]} : vector<8x4xf32> to vector<8x1xf32>
    %253 = vector.extract_strided_slice %213 {offsets = [3, 0], sizes = [1, 62], strides = [1, 1]} : vector<4x62xf32> to vector<1x62xf32>
    %254 = vector.broadcast %252 : vector<8x1xf32> to vector<8x62xf32>
    %255 = vector.broadcast %253 : vector<1x62xf32> to vector<8x62xf32>
    %256 = arith.mulf %254, %255 : vector<8x62xf32>
    %257 = arith.addf %251, %256 : vector<8x62xf32>
    %258 = vector.extract_strided_slice %13 {offsets = [0, 3], sizes = [8, 1], strides = [1, 1]} : vector<8x4xf32> to vector<8x1xf32>
    %259 = vector.extract_strided_slice %214 {offsets = [3, 0], sizes = [1, 62], strides = [1, 1]} : vector<4x62xf32> to vector<1x62xf32>
    %260 = vector.broadcast %258 : vector<8x1xf32> to vector<8x62xf32>
    %261 = vector.broadcast %259 : vector<1x62xf32> to vector<8x62xf32>
    %262 = arith.mulf %260, %261 : vector<8x62xf32>
    %263 = arith.addf %257, %262 : vector<8x62xf32>
    %264 = vector.broadcast %14 : vector<8x1xf32> to vector<8x62xf32>
    %265 = arith.addf %263, %264 : vector<8x62xf32>
    %cst_67 = arith.constant 0.00999999977 : f32
    %266 = vector.broadcast %cst_67 : f32 to vector<8x62xf32>
    %267 = arith.mulf %266, %265 : vector<8x62xf32>
    %268 = arith.maximumf %265, %267 : vector<8x62xf32>
    %269 = vector.extract_strided_slice %268 {offsets = [0, 0], sizes = [8, 61], strides = [1, 1]} : vector<8x62xf32> to vector<8x61xf32>
    %270 = vector.extract_strided_slice %268 {offsets = [0, 1], sizes = [8, 61], strides = [1, 1]} : vector<8x62xf32> to vector<8x61xf32>
    %271 = tpu.concatenate %269, %270 in 0 : vector<8x61xf32>, vector<8x61xf32> -> vector<16x61xf32>
    %cst_68 = arith.constant dense<0.000000e+00> : vector<16x61xf32>
    %272 = tpu.matmul %15, %271, %cst_68 {dimension_numbers = #tpu.dot_dimension_numbers<[1], [0], [0], [1], [0, 0, 1, 1], [], []>} : vector<16x16xf32>, vector<16x61xf32>, vector<16x61xf32> -> vector<16x61xf32>
    %273 = vector.broadcast %16 : vector<16x1xf32> to vector<16x61xf32>
    %274 = arith.addf %272, %273 : vector<16x61xf32>
    %cst_69 = arith.constant 0.00999999977 : f32
    %275 = vector.broadcast %cst_69 : f32 to vector<16x61xf32>
    %276 = arith.mulf %275, %274 : vector<16x61xf32>
    %277 = arith.maximumf %274, %276 : vector<16x61xf32>
    %278 = vector.extract_strided_slice %277 {offsets = [0, 0], sizes = [16, 60], strides = [1, 1]} : vector<16x61xf32> to vector<16x60xf32>
    %279 = vector.extract_strided_slice %277 {offsets = [0, 1], sizes = [16, 60], strides = [1, 1]} : vector<16x61xf32> to vector<16x60xf32>
    %280 = tpu.concatenate %278, %279 in 0 : vector<16x60xf32>, vector<16x60xf32> -> vector<32x60xf32>
    %cst_70 = arith.constant dense<0.000000e+00> : vector<32x60xf32>
    %281 = tpu.matmul %17, %280, %cst_70 {dimension_numbers = #tpu.dot_dimension_numbers<[1], [0], [0], [1], [0, 0, 1, 1], [], []>} : vector<32x32xf32>, vector<32x60xf32>, vector<32x60xf32> -> vector<32x60xf32>
    %282 = vector.broadcast %18 : vector<32x1xf32> to vector<32x60xf32>
    %283 = arith.addf %281, %282 : vector<32x60xf32>
    %cst_71 = arith.constant 0.00999999977 : f32
    %284 = vector.broadcast %cst_71 : f32 to vector<32x60xf32>
    %285 = arith.mulf %284, %283 : vector<32x60xf32>
    %286 = arith.maximumf %283, %285 : vector<32x60xf32>
    %cst_72 = arith.constant dense<0.000000e+00> : vector<32xf32>
    %287 = vector.multi_reduction <add>, %286, %cst_72 [1] : vector<32x60xf32> to vector<32xf32>
    %288 = vector.shape_cast %287 : vector<32xf32> to vector<32x1xf32>
    %cst_73 = arith.constant 6.000000e+01 : f32
    %289 = vector.broadcast %cst_73 : f32 to vector<32x1xf32>
    %290 = arith.divf %288, %289 : vector<32x1xf32>
    %291 = vector.broadcast %290 : vector<32x1xf32> to vector<32x60xf32>
    %292 = arith.subf %286, %291 : vector<32x60xf32>
    %293 = arith.mulf %292, %292 : vector<32x60xf32>
    %cst_74 = arith.constant dense<0.000000e+00> : vector<32xf32>
    %294 = vector.multi_reduction <add>, %293, %cst_74 [1] : vector<32x60xf32> to vector<32xf32>
    %295 = vector.shape_cast %294 : vector<32xf32> to vector<32x1xf32>
    %cst_75 = arith.constant 6.000000e+01 : f32
    %296 = vector.broadcast %cst_75 : f32 to vector<32x1xf32>
    %297 = arith.divf %295, %296 : vector<32x1xf32>
    %298 = vector.broadcast %290 : vector<32x1xf32> to vector<32x60xf32>
    %299 = arith.subf %286, %298 : vector<32x60xf32>
    %cst_76 = arith.constant 9.99999974E-6 : f32
    %300 = vector.broadcast %cst_76 : f32 to vector<32x1xf32>
    %301 = arith.addf %297, %300 : vector<32x1xf32>
    %302 = math.rsqrt %301 : vector<32x1xf32>
    %303 = vector.broadcast %302 : vector<32x1xf32> to vector<32x60xf32>
    %304 = arith.mulf %299, %303 : vector<32x60xf32>
    %305 = vector.broadcast %19 : vector<32x1xf32> to vector<32x60xf32>
    %306 = arith.mulf %304, %305 : vector<32x60xf32>
    %307 = vector.broadcast %20 : vector<32x1xf32> to vector<32x60xf32>
    %308 = arith.addf %306, %307 : vector<32x60xf32>
    %309 = tpu.concatenate %308, %21 in 1 : vector<32x60xf32>, vector<32x4xf32> -> vector<32x64xf32>
    %310 = vector.extract_strided_slice %309 {offsets = [0, 0], sizes = [1, 64], strides = [1, 1]} : vector<32x64xf32> to vector<1x64xf32>
    %c1 = arith.constant 1 : index
    %c0_77 = arith.constant 0 : index
    %311 = vector.load %arg9[%c1, %c0_77] : memref<8x2048xf32, #tpu.memory_space<vmem>>, vector<1x64xf32>
    tpu.vector_store %arg9[%c1, %c0_77], %310 {strides = array<i32>} : memref<8x2048xf32, #tpu.memory_space<vmem>>, vector<1x64xf32>,
    %312 = vector.extract_strided_slice %309 {offsets = [1, 0], sizes = [1, 64], strides = [1, 1]} : vector<32x64xf32> to vector<1x64xf32>
    %c1_78 = arith.constant 1 : index
    %c64_79 = arith.constant 64 : index
    %313 = vector.load %arg9[%c1_78, %c64_79] : memref<8x2048xf32, #tpu.memory_space<vmem>>, vector<1x64xf32>
    tpu.vector_store %arg9[%c1_78, %c64_79], %312 {strides = array<i32>} : memref<8x2048xf32, #tpu.memory_space<vmem>>, vector<1x64xf32>,
    %314 = vector.extract_strided_slice %309 {offsets = [2, 0], sizes = [1, 64], strides = [1, 1]} : vector<32x64xf32> to vector<1x64xf32>
    %c1_80 = arith.constant 1 : index
    %c128_81 = arith.constant 128 : index
    %315 = vector.load %arg9[%c1_80, %c128_81] : memref<8x2048xf32, #tpu.memory_space<vmem>>, vector<1x64xf32>
    tpu.vector_store %arg9[%c1_80, %c128_81], %314 {strides = array<i32>} : memref<8x2048xf32, #tpu.memory_space<vmem>>, vector<1x64xf32>,
    %316 = vector.extract_strided_slice %309 {offsets = [3, 0], sizes = [1, 64], strides = [1, 1]} : vector<32x64xf32> to vector<1x64xf32>
    %c1_82 = arith.constant 1 : index
    %c192_83 = arith.constant 192 : index
    %317 = vector.load %arg9[%c1_82, %c192_83] : memref<8x2048xf32, #tpu.memory_space<vmem>>, vector<1x64xf32>
    tpu.vector_store %arg9[%c1_82, %c192_83], %316 {strides = array<i32>} : memref<8x2048xf32, #tpu.memory_space<vmem>>, vector<1x64xf32>,
    %318 = vector.extract_strided_slice %309 {offsets = [4, 0], sizes = [1, 64], strides = [1, 1]} : vector<32x64xf32> to vector<1x64xf32>
    %c1_84 = arith.constant 1 : index
    %c256_85 = arith.constant 256 : index
    %319 = vector.load %arg9[%c1_84, %c256_85] : memref<8x2048xf32, #tpu.memory_space<vmem>>, vector<1x64xf32>
    tpu.vector_store %arg9[%c1_84, %c256_85], %318 {strides = array<i32>} : memref<8x2048xf32, #tpu.memory_space<vmem>>, vector<1x64xf32>,
    %320 = vector.extract_strided_slice %309 {offsets = [5, 0], sizes = [1, 64], strides = [1, 1]} : vector<32x64xf32> to vector<1x64xf32>
    %c1_86 = arith.constant 1 : index
    %c320_87 = arith.constant 320 : index
    %321 = vector.load %arg9[%c1_86, %c320_87] : memref<8x2048xf32, #tpu.memory_space<vmem>>, vector<1x64xf32>
    tpu.vector_store %arg9[%c1_86, %c320_87], %320 {strides = array<i32>} : memref<8x2048xf32, #tpu.memory_space<vmem>>, vector<1x64xf32>,
    %322 = vector.extract_strided_slice %309 {offsets = [6, 0], sizes = [1, 64], strides = [1, 1]} : vector<32x64xf32> to vector<1x64xf32>
    %c1_88 = arith.constant 1 : index
    %c384_89 = arith.constant 384 : index
    %323 = vector.load %arg9[%c1_88, %c384_89] : memref<8x2048xf32, #tpu.memory_space<vmem>>, vector<1x64xf32>
    tpu.vector_store %arg9[%c1_88, %c384_89], %322 {strides = array<i32>} : memref<8x2048xf32, #tpu.memory_space<vmem>>, vector<1x64xf32>,
    %324 = vector.extract_strided_slice %309 {offsets = [7, 0], sizes = [1, 64], strides = [1, 1]} : vector<32x64xf32> to vector<1x64xf32>
    %c1_90 = arith.constant 1 : index
    %c448_91 = arith.constant 448 : index
    %325 = vector.load %arg9[%c1_90, %c448_91] : memref<8x2048xf32, #tpu.memory_space<vmem>>, vector<1x64xf32>
    tpu.vector_store %arg9[%c1_90, %c448_91], %324 {strides = array<i32>} : memref<8x2048xf32, #tpu.memory_space<vmem>>, vector<1x64xf32>,
    %326 = vector.extract_strided_slice %309 {offsets = [8, 0], sizes = [1, 64], strides = [1, 1]} : vector<32x64xf32> to vector<1x64xf32>
    %c1_92 = arith.constant 1 : index
    %c512_93 = arith.constant 512 : index
    %327 = vector.load %arg9[%c1_92, %c512_93] : memref<8x2048xf32, #tpu.memory_space<vmem>>, vector<1x64xf32>
    tpu.vector_store %arg9[%c1_92, %c512_93], %326 {strides = array<i32>} : memref<8x2048xf32, #tpu.memory_space<vmem>>, vector<1x64xf32>,
    %328 = vector.extract_strided_slice %309 {offsets = [9, 0], sizes = [1, 64], strides = [1, 1]} : vector<32x64xf32> to vector<1x64xf32>
    %c1_94 = arith.constant 1 : index
    %c576_95 = arith.constant 576 : index
    %329 = vector.load %arg9[%c1_94, %c576_95] : memref<8x2048xf32, #tpu.memory_space<vmem>>, vector<1x64xf32>
    tpu.vector_store %arg9[%c1_94, %c576_95], %328 {strides = array<i32>} : memref<8x2048xf32, #tpu.memory_space<vmem>>, vector<1x64xf32>,
    %330 = vector.extract_strided_slice %309 {offsets = [10, 0], sizes = [1, 64], strides = [1, 1]} : vector<32x64xf32> to vector<1x64xf32>
    %c1_96 = arith.constant 1 : index
    %c640_97 = arith.constant 640 : index
    %331 = vector.load %arg9[%c1_96, %c640_97] : memref<8x2048xf32, #tpu.memory_space<vmem>>, vector<1x64xf32>
    tpu.vector_store %arg9[%c1_96, %c640_97], %330 {strides = array<i32>} : memref<8x2048xf32, #tpu.memory_space<vmem>>, vector<1x64xf32>,
    %332 = vector.extract_strided_slice %309 {offsets = [11, 0], sizes = [1, 64], strides = [1, 1]} : vector<32x64xf32> to vector<1x64xf32>
    %c1_98 = arith.constant 1 : index
    %c704_99 = arith.constant 704 : index
    %333 = vector.load %arg9[%c1_98, %c704_99] : memref<8x2048xf32, #tpu.memory_space<vmem>>, vector<1x64xf32>
    tpu.vector_store %arg9[%c1_98, %c704_99], %332 {strides = array<i32>} : memref<8x2048xf32, #tpu.memory_space<vmem>>, vector<1x64xf32>,
    %334 = vector.extract_strided_slice %309 {offsets = [12, 0], sizes = [1, 64], strides = [1, 1]} : vector<32x64xf32> to vector<1x64xf32>
    %c1_100 = arith.constant 1 : index
    %c768_101 = arith.constant 768 : index
    %335 = vector.load %arg9[%c1_100, %c768_101] : memref<8x2048xf32, #tpu.memory_space<vmem>>, vector<1x64xf32>
    tpu.vector_store %arg9[%c1_100, %c768_101], %334 {strides = array<i32>} : memref<8x2048xf32, #tpu.memory_space<vmem>>, vector<1x64xf32>,
    %336 = vector.extract_strided_slice %309 {offsets = [13, 0], sizes = [1, 64], strides = [1, 1]} : vector<32x64xf32> to vector<1x64xf32>
    %c1_102 = arith.constant 1 : index
    %c832_103 = arith.constant 832 : index
    %337 = vector.load %arg9[%c1_102, %c832_103] : memref<8x2048xf32, #tpu.memory_space<vmem>>, vector<1x64xf32>
    tpu.vector_store %arg9[%c1_102, %c832_103], %336 {strides = array<i32>} : memref<8x2048xf32, #tpu.memory_space<vmem>>, vector<1x64xf32>,
    %338 = vector.extract_strided_slice %309 {offsets = [14, 0], sizes = [1, 64], strides = [1, 1]} : vector<32x64xf32> to vector<1x64xf32>
    %c1_104 = arith.constant 1 : index
    %c896_105 = arith.constant 896 : index
    %339 = vector.load %arg9[%c1_104, %c896_105] : memref<8x2048xf32, #tpu.memory_space<vmem>>, vector<1x64xf32>
    tpu.vector_store %arg9[%c1_104, %c896_105], %338 {strides = array<i32>} : memref<8x2048xf32, #tpu.memory_space<vmem>>, vector<1x64xf32>,
    %340 = vector.extract_strided_slice %309 {offsets = [15, 0], sizes = [1, 64], strides = [1, 1]} : vector<32x64xf32> to vector<1x64xf32>
    %c1_106 = arith.constant 1 : index
    %c960_107 = arith.constant 960 : index
    %341 = vector.load %arg9[%c1_106, %c960_107] : memref<8x2048xf32, #tpu.memory_space<vmem>>, vector<1x64xf32>
    tpu.vector_store %arg9[%c1_106, %c960_107], %340 {strides = array<i32>} : memref<8x2048xf32, #tpu.memory_space<vmem>>, vector<1x64xf32>,
    %342 = vector.extract_strided_slice %309 {offsets = [16, 0], sizes = [1, 64], strides = [1, 1]} : vector<32x64xf32> to vector<1x64xf32>
    %c1_108 = arith.constant 1 : index
    %c1024_109 = arith.constant 1024 : index
    %343 = vector.load %arg9[%c1_108, %c1024_109] : memref<8x2048xf32, #tpu.memory_space<vmem>>, vector<1x64xf32>
    tpu.vector_store %arg9[%c1_108, %c1024_109], %342 {strides = array<i32>} : memref<8x2048xf32, #tpu.memory_space<vmem>>, vector<1x64xf32>,
    %344 = vector.extract_strided_slice %309 {offsets = [17, 0], sizes = [1, 64], strides = [1, 1]} : vector<32x64xf32> to vector<1x64xf32>
    %c1_110 = arith.constant 1 : index
    %c1088_111 = arith.constant 1088 : index
    %345 = vector.load %arg9[%c1_110, %c1088_111] : memref<8x2048xf32, #tpu.memory_space<vmem>>, vector<1x64xf32>
    tpu.vector_store %arg9[%c1_110, %c1088_111], %344 {strides = array<i32>} : memref<8x2048xf32, #tpu.memory_space<vmem>>, vector<1x64xf32>,
    %346 = vector.extract_strided_slice %309 {offsets = [18, 0], sizes = [1, 64], strides = [1, 1]} : vector<32x64xf32> to vector<1x64xf32>
    %c1_112 = arith.constant 1 : index
    %c1152_113 = arith.constant 1152 : index
    %347 = vector.load %arg9[%c1_112, %c1152_113] : memref<8x2048xf32, #tpu.memory_space<vmem>>, vector<1x64xf32>
    tpu.vector_store %arg9[%c1_112, %c1152_113], %346 {strides = array<i32>} : memref<8x2048xf32, #tpu.memory_space<vmem>>, vector<1x64xf32>,
    %348 = vector.extract_strided_slice %309 {offsets = [19, 0], sizes = [1, 64], strides = [1, 1]} : vector<32x64xf32> to vector<1x64xf32>
    %c1_114 = arith.constant 1 : index
    %c1216_115 = arith.constant 1216 : index
    %349 = vector.load %arg9[%c1_114, %c1216_115] : memref<8x2048xf32, #tpu.memory_space<vmem>>, vector<1x64xf32>
    tpu.vector_store %arg9[%c1_114, %c1216_115], %348 {strides = array<i32>} : memref<8x2048xf32, #tpu.memory_space<vmem>>, vector<1x64xf32>,
    %350 = vector.extract_strided_slice %309 {offsets = [20, 0], sizes = [1, 64], strides = [1, 1]} : vector<32x64xf32> to vector<1x64xf32>
    %c1_116 = arith.constant 1 : index
    %c1280_117 = arith.constant 1280 : index
    %351 = vector.load %arg9[%c1_116, %c1280_117] : memref<8x2048xf32, #tpu.memory_space<vmem>>, vector<1x64xf32>
    tpu.vector_store %arg9[%c1_116, %c1280_117], %350 {strides = array<i32>} : memref<8x2048xf32, #tpu.memory_space<vmem>>, vector<1x64xf32>,
    %352 = vector.extract_strided_slice %309 {offsets = [21, 0], sizes = [1, 64], strides = [1, 1]} : vector<32x64xf32> to vector<1x64xf32>
    %c1_118 = arith.constant 1 : index
    %c1344_119 = arith.constant 1344 : index
    %353 = vector.load %arg9[%c1_118, %c1344_119] : memref<8x2048xf32, #tpu.memory_space<vmem>>, vector<1x64xf32>
    tpu.vector_store %arg9[%c1_118, %c1344_119], %352 {strides = array<i32>} : memref<8x2048xf32, #tpu.memory_space<vmem>>, vector<1x64xf32>,
    %354 = vector.extract_strided_slice %309 {offsets = [22, 0], sizes = [1, 64], strides = [1, 1]} : vector<32x64xf32> to vector<1x64xf32>
    %c1_120 = arith.constant 1 : index
    %c1408_121 = arith.constant 1408 : index
    %355 = vector.load %arg9[%c1_120, %c1408_121] : memref<8x2048xf32, #tpu.memory_space<vmem>>, vector<1x64xf32>
    tpu.vector_store %arg9[%c1_120, %c1408_121], %354 {strides = array<i32>} : memref<8x2048xf32, #tpu.memory_space<vmem>>, vector<1x64xf32>,
    %356 = vector.extract_strided_slice %309 {offsets = [23, 0], sizes = [1, 64], strides = [1, 1]} : vector<32x64xf32> to vector<1x64xf32>
    %c1_122 = arith.constant 1 : index
    %c1472_123 = arith.constant 1472 : index
    %357 = vector.load %arg9[%c1_122, %c1472_123] : memref<8x2048xf32, #tpu.memory_space<vmem>>, vector<1x64xf32>
    tpu.vector_store %arg9[%c1_122, %c1472_123], %356 {strides = array<i32>} : memref<8x2048xf32, #tpu.memory_space<vmem>>, vector<1x64xf32>,
    %358 = vector.extract_strided_slice %309 {offsets = [24, 0], sizes = [1, 64], strides = [1, 1]} : vector<32x64xf32> to vector<1x64xf32>
    %c1_124 = arith.constant 1 : index
    %c1536_125 = arith.constant 1536 : index
    %359 = vector.load %arg9[%c1_124, %c1536_125] : memref<8x2048xf32, #tpu.memory_space<vmem>>, vector<1x64xf32>
    tpu.vector_store %arg9[%c1_124, %c1536_125], %358 {strides = array<i32>} : memref<8x2048xf32, #tpu.memory_space<vmem>>, vector<1x64xf32>,
    %360 = vector.extract_strided_slice %309 {offsets = [25, 0], sizes = [1, 64], strides = [1, 1]} : vector<32x64xf32> to vector<1x64xf32>
    %c1_126 = arith.constant 1 : index
    %c1600_127 = arith.constant 1600 : index
    %361 = vector.load %arg9[%c1_126, %c1600_127] : memref<8x2048xf32, #tpu.memory_space<vmem>>, vector<1x64xf32>
    tpu.vector_store %arg9[%c1_126, %c1600_127], %360 {strides = array<i32>} : memref<8x2048xf32, #tpu.memory_space<vmem>>, vector<1x64xf32>,
    %362 = vector.extract_strided_slice %309 {offsets = [26, 0], sizes = [1, 64], strides = [1, 1]} : vector<32x64xf32> to vector<1x64xf32>
    %c1_128 = arith.constant 1 : index
    %c1664_129 = arith.constant 1664 : index
    %363 = vector.load %arg9[%c1_128, %c1664_129] : memref<8x2048xf32, #tpu.memory_space<vmem>>, vector<1x64xf32>
    tpu.vector_store %arg9[%c1_128, %c1664_129], %362 {strides = array<i32>} : memref<8x2048xf32, #tpu.memory_space<vmem>>, vector<1x64xf32>,
    %364 = vector.extract_strided_slice %309 {offsets = [27, 0], sizes = [1, 64], strides = [1, 1]} : vector<32x64xf32> to vector<1x64xf32>
    %c1_130 = arith.constant 1 : index
    %c1728_131 = arith.constant 1728 : index
    %365 = vector.load %arg9[%c1_130, %c1728_131] : memref<8x2048xf32, #tpu.memory_space<vmem>>, vector<1x64xf32>
    tpu.vector_store %arg9[%c1_130, %c1728_131], %364 {strides = array<i32>} : memref<8x2048xf32, #tpu.memory_space<vmem>>, vector<1x64xf32>,
    %366 = vector.extract_strided_slice %309 {offsets = [28, 0], sizes = [1, 64], strides = [1, 1]} : vector<32x64xf32> to vector<1x64xf32>
    %c1_132 = arith.constant 1 : index
    %c1792_133 = arith.constant 1792 : index
    %367 = vector.load %arg9[%c1_132, %c1792_133] : memref<8x2048xf32, #tpu.memory_space<vmem>>, vector<1x64xf32>
    tpu.vector_store %arg9[%c1_132, %c1792_133], %366 {strides = array<i32>} : memref<8x2048xf32, #tpu.memory_space<vmem>>, vector<1x64xf32>,
    %368 = vector.extract_strided_slice %309 {offsets = [29, 0], sizes = [1, 64], strides = [1, 1]} : vector<32x64xf32> to vector<1x64xf32>
    %c1_134 = arith.constant 1 : index
    %c1856_135 = arith.constant 1856 : index
    %369 = vector.load %arg9[%c1_134, %c1856_135] : memref<8x2048xf32, #tpu.memory_space<vmem>>, vector<1x64xf32>
    tpu.vector_store %arg9[%c1_134, %c1856_135], %368 {strides = array<i32>} : memref<8x2048xf32, #tpu.memory_space<vmem>>, vector<1x64xf32>,
    %370 = vector.extract_strided_slice %309 {offsets = [30, 0], sizes = [1, 64], strides = [1, 1]} : vector<32x64xf32> to vector<1x64xf32>
    %c1_136 = arith.constant 1 : index
    %c1920_137 = arith.constant 1920 : index
    %371 = vector.load %arg9[%c1_136, %c1920_137] : memref<8x2048xf32, #tpu.memory_space<vmem>>, vector<1x64xf32>
    tpu.vector_store %arg9[%c1_136, %c1920_137], %370 {strides = array<i32>} : memref<8x2048xf32, #tpu.memory_space<vmem>>, vector<1x64xf32>,
    %372 = vector.extract_strided_slice %309 {offsets = [31, 0], sizes = [1, 64], strides = [1, 1]} : vector<32x64xf32> to vector<1x64xf32>
    %c1_138 = arith.constant 1 : index
    %c1984_139 = arith.constant 1984 : index
    %373 = vector.load %arg9[%c1_138, %c1984_139] : memref<8x2048xf32, #tpu.memory_space<vmem>>, vector<1x64xf32>
    tpu.vector_store %arg9[%c1_138, %c1984_139], %372 {strides = array<i32>} : memref<8x2048xf32, #tpu.memory_space<vmem>>, vector<1x64xf32>,
    %374 = vector.extract_strided_slice %8 {offsets = [2, 0], sizes = [1, 64], strides = [1, 1]} : vector<8x64xf32> to vector<1x64xf32>
    %375 = vector.extract_strided_slice %374 {offsets = [0, 0], sizes = [1, 63], strides = [1, 1]} : vector<1x64xf32> to vector<1x63xf32>
    %376 = vector.broadcast %9 : vector<4x1xf32> to vector<4x63xf32>
    %377 = vector.broadcast %375 : vector<1x63xf32> to vector<4x63xf32>
    %378 = arith.mulf %376, %377 : vector<4x63xf32>
    %379 = vector.extract_strided_slice %374 {offsets = [0, 1], sizes = [1, 63], strides = [1, 1]} : vector<1x64xf32> to vector<1x63xf32>
    %380 = vector.broadcast %10 : vector<4x1xf32> to vector<4x63xf32>
    %381 = vector.broadcast %379 : vector<1x63xf32> to vector<4x63xf32>
    %382 = arith.mulf %380, %381 : vector<4x63xf32>
    %383 = arith.addf %378, %382 : vector<4x63xf32>
    %384 = vector.broadcast %11 : vector<4x1xf32> to vector<4x63xf32>
    %385 = arith.addf %383, %384 : vector<4x63xf32>
    %cst_140 = arith.constant 0.00999999977 : f32
    %386 = vector.broadcast %cst_140 : f32 to vector<4x63xf32>
    %387 = arith.mulf %386, %385 : vector<4x63xf32>
    %388 = arith.maximumf %385, %387 : vector<4x63xf32>
    %389 = vector.extract_strided_slice %388 {offsets = [0, 0], sizes = [4, 62], strides = [1, 1]} : vector<4x63xf32> to vector<4x62xf32>
    %390 = vector.extract_strided_slice %388 {offsets = [0, 1], sizes = [4, 62], strides = [1, 1]} : vector<4x63xf32> to vector<4x62xf32>
    %cst_141 = arith.constant 0.000000e+00 : f32
    %391 = vector.broadcast %cst_141 : f32 to vector<8x62xf32>
    %392 = vector.extract_strided_slice %12 {offsets = [0, 0], sizes = [8, 1], strides = [1, 1]} : vector<8x4xf32> to vector<8x1xf32>
    %393 = vector.extract_strided_slice %389 {offsets = [0, 0], sizes = [1, 62], strides = [1, 1]} : vector<4x62xf32> to vector<1x62xf32>
    %394 = vector.broadcast %392 : vector<8x1xf32> to vector<8x62xf32>
    %395 = vector.broadcast %393 : vector<1x62xf32> to vector<8x62xf32>
    %396 = arith.mulf %394, %395 : vector<8x62xf32>
    %397 = arith.addf %391, %396 : vector<8x62xf32>
    %398 = vector.extract_strided_slice %13 {offsets = [0, 0], sizes = [8, 1], strides = [1, 1]} : vector<8x4xf32> to vector<8x1xf32>
    %399 = vector.extract_strided_slice %390 {offsets = [0, 0], sizes = [1, 62], strides = [1, 1]} : vector<4x62xf32> to vector<1x62xf32>
    %400 = vector.broadcast %398 : vector<8x1xf32> to vector<8x62xf32>
    %401 = vector.broadcast %399 : vector<1x62xf32> to vector<8x62xf32>
    %402 = arith.mulf %400, %401 : vector<8x62xf32>
    %403 = arith.addf %397, %402 : vector<8x62xf32>
    %404 = vector.extract_strided_slice %12 {offsets = [0, 1], sizes = [8, 1], strides = [1, 1]} : vector<8x4xf32> to vector<8x1xf32>
    %405 = vector.extract_strided_slice %389 {offsets = [1, 0], sizes = [1, 62], strides = [1, 1]} : vector<4x62xf32> to vector<1x62xf32>
    %406 = vector.broadcast %404 : vector<8x1xf32> to vector<8x62xf32>
    %407 = vector.broadcast %405 : vector<1x62xf32> to vector<8x62xf32>
    %408 = arith.mulf %406, %407 : vector<8x62xf32>
    %409 = arith.addf %403, %408 : vector<8x62xf32>
    %410 = vector.extract_strided_slice %13 {offsets = [0, 1], sizes = [8, 1], strides = [1, 1]} : vector<8x4xf32> to vector<8x1xf32>
    %411 = vector.extract_strided_slice %390 {offsets = [1, 0], sizes = [1, 62], strides = [1, 1]} : vector<4x62xf32> to vector<1x62xf32>
    %412 = vector.broadcast %410 : vector<8x1xf32> to vector<8x62xf32>
    %413 = vector.broadcast %411 : vector<1x62xf32> to vector<8x62xf32>
    %414 = arith.mulf %412, %413 : vector<8x62xf32>
    %415 = arith.addf %409, %414 : vector<8x62xf32>
    %416 = vector.extract_strided_slice %12 {offsets = [0, 2], sizes = [8, 1], strides = [1, 1]} : vector<8x4xf32> to vector<8x1xf32>
    %417 = vector.extract_strided_slice %389 {offsets = [2, 0], sizes = [1, 62], strides = [1, 1]} : vector<4x62xf32> to vector<1x62xf32>
    %418 = vector.broadcast %416 : vector<8x1xf32> to vector<8x62xf32>
    %419 = vector.broadcast %417 : vector<1x62xf32> to vector<8x62xf32>
    %420 = arith.mulf %418, %419 : vector<8x62xf32>
    %421 = arith.addf %415, %420 : vector<8x62xf32>
    %422 = vector.extract_strided_slice %13 {offsets = [0, 2], sizes = [8, 1], strides = [1, 1]} : vector<8x4xf32> to vector<8x1xf32>
    %423 = vector.extract_strided_slice %390 {offsets = [2, 0], sizes = [1, 62], strides = [1, 1]} : vector<4x62xf32> to vector<1x62xf32>
    %424 = vector.broadcast %422 : vector<8x1xf32> to vector<8x62xf32>
    %425 = vector.broadcast %423 : vector<1x62xf32> to vector<8x62xf32>
    %426 = arith.mulf %424, %425 : vector<8x62xf32>
    %427 = arith.addf %421, %426 : vector<8x62xf32>
    %428 = vector.extract_strided_slice %12 {offsets = [0, 3], sizes = [8, 1], strides = [1, 1]} : vector<8x4xf32> to vector<8x1xf32>
    %429 = vector.extract_strided_slice %389 {offsets = [3, 0], sizes = [1, 62], strides = [1, 1]} : vector<4x62xf32> to vector<1x62xf32>
    %430 = vector.broadcast %428 : vector<8x1xf32> to vector<8x62xf32>
    %431 = vector.broadcast %429 : vector<1x62xf32> to vector<8x62xf32>
    %432 = arith.mulf %430, %431 : vector<8x62xf32>
    %433 = arith.addf %427, %432 : vector<8x62xf32>
    %434 = vector.extract_strided_slice %13 {offsets = [0, 3], sizes = [8, 1], strides = [1, 1]} : vector<8x4xf32> to vector<8x1xf32>
    %435 = vector.extract_strided_slice %390 {offsets = [3, 0], sizes = [1, 62], strides = [1, 1]} : vector<4x62xf32> to vector<1x62xf32>
    %436 = vector.broadcast %434 : vector<8x1xf32> to vector<8x62xf32>
    %437 = vector.broadcast %435 : vector<1x62xf32> to vector<8x62xf32>
    %438 = arith.mulf %436, %437 : vector<8x62xf32>
    %439 = arith.addf %433, %438 : vector<8x62xf32>
    %440 = vector.broadcast %14 : vector<8x1xf32> to vector<8x62xf32>
    %441 = arith.addf %439, %440 : vector<8x62xf32>
    %cst_142 = arith.constant 0.00999999977 : f32
    %442 = vector.broadcast %cst_142 : f32 to vector<8x62xf32>
    %443 = arith.mulf %442, %441 : vector<8x62xf32>
    %444 = arith.maximumf %441, %443 : vector<8x62xf32>
    %445 = vector.extract_strided_slice %444 {offsets = [0, 0], sizes = [8, 61], strides = [1, 1]} : vector<8x62xf32> to vector<8x61xf32>
    %446 = vector.extract_strided_slice %444 {offsets = [0, 1], sizes = [8, 61], strides = [1, 1]} : vector<8x62xf32> to vector<8x61xf32>
    %447 = tpu.concatenate %445, %446 in 0 : vector<8x61xf32>, vector<8x61xf32> -> vector<16x61xf32>
    %cst_143 = arith.constant dense<0.000000e+00> : vector<16x61xf32>
    %448 = tpu.matmul %15, %447, %cst_143 {dimension_numbers = #tpu.dot_dimension_numbers<[1], [0], [0], [1], [0, 0, 1, 1], [], []>} : vector<16x16xf32>, vector<16x61xf32>, vector<16x61xf32> -> vector<16x61xf32>
    %449 = vector.broadcast %16 : vector<16x1xf32> to vector<16x61xf32>
    %450 = arith.addf %448, %449 : vector<16x61xf32>
    %cst_144 = arith.constant 0.00999999977 : f32
    %451 = vector.broadcast %cst_144 : f32 to vector<16x61xf32>
    %452 = arith.mulf %451, %450 : vector<16x61xf32>
    %453 = arith.maximumf %450, %452 : vector<16x61xf32>
    %454 = vector.extract_strided_slice %453 {offsets = [0, 0], sizes = [16, 60], strides = [1, 1]} : vector<16x61xf32> to vector<16x60xf32>
    %455 = vector.extract_strided_slice %453 {offsets = [0, 1], sizes = [16, 60], strides = [1, 1]} : vector<16x61xf32> to vector<16x60xf32>
    %456 = tpu.concatenate %454, %455 in 0 : vector<16x60xf32>, vector<16x60xf32> -> vector<32x60xf32>
    %cst_145 = arith.constant dense<0.000000e+00> : vector<32x60xf32>
    %457 = tpu.matmul %17, %456, %cst_145 {dimension_numbers = #tpu.dot_dimension_numbers<[1], [0], [0], [1], [0, 0, 1, 1], [], []>} : vector<32x32xf32>, vector<32x60xf32>, vector<32x60xf32> -> vector<32x60xf32>
    %458 = vector.broadcast %18 : vector<32x1xf32> to vector<32x60xf32>
    %459 = arith.addf %457, %458 : vector<32x60xf32>
    %cst_146 = arith.constant 0.00999999977 : f32
    %460 = vector.broadcast %cst_146 : f32 to vector<32x60xf32>
    %461 = arith.mulf %460, %459 : vector<32x60xf32>
    %462 = arith.maximumf %459, %461 : vector<32x60xf32>
    %cst_147 = arith.constant dense<0.000000e+00> : vector<32xf32>
    %463 = vector.multi_reduction <add>, %462, %cst_147 [1] : vector<32x60xf32> to vector<32xf32>
    %464 = vector.shape_cast %463 : vector<32xf32> to vector<32x1xf32>
    %cst_148 = arith.constant 6.000000e+01 : f32
    %465 = vector.broadcast %cst_148 : f32 to vector<32x1xf32>
    %466 = arith.divf %464, %465 : vector<32x1xf32>
    %467 = vector.broadcast %466 : vector<32x1xf32> to vector<32x60xf32>
    %468 = arith.subf %462, %467 : vector<32x60xf32>
    %469 = arith.mulf %468, %468 : vector<32x60xf32>
    %cst_149 = arith.constant dense<0.000000e+00> : vector<32xf32>
    %470 = vector.multi_reduction <add>, %469, %cst_149 [1] : vector<32x60xf32> to vector<32xf32>
    %471 = vector.shape_cast %470 : vector<32xf32> to vector<32x1xf32>
    %cst_150 = arith.constant 6.000000e+01 : f32
    %472 = vector.broadcast %cst_150 : f32 to vector<32x1xf32>
    %473 = arith.divf %471, %472 : vector<32x1xf32>
    %474 = vector.broadcast %466 : vector<32x1xf32> to vector<32x60xf32>
    %475 = arith.subf %462, %474 : vector<32x60xf32>
    %cst_151 = arith.constant 9.99999974E-6 : f32
    %476 = vector.broadcast %cst_151 : f32 to vector<32x1xf32>
    %477 = arith.addf %473, %476 : vector<32x1xf32>
    %478 = math.rsqrt %477 : vector<32x1xf32>
    %479 = vector.broadcast %478 : vector<32x1xf32> to vector<32x60xf32>
    %480 = arith.mulf %475, %479 : vector<32x60xf32>
    %481 = vector.broadcast %19 : vector<32x1xf32> to vector<32x60xf32>
    %482 = arith.mulf %480, %481 : vector<32x60xf32>
    %483 = vector.broadcast %20 : vector<32x1xf32> to vector<32x60xf32>
    %484 = arith.addf %482, %483 : vector<32x60xf32>
    %485 = tpu.concatenate %484, %21 in 1 : vector<32x60xf32>, vector<32x4xf32> -> vector<32x64xf32>
    %486 = vector.extract_strided_slice %485 {offsets = [0, 0], sizes = [1, 64], strides = [1, 1]} : vector<32x64xf32> to vector<1x64xf32>
    %c2 = arith.constant 2 : index
    %c0_152 = arith.constant 0 : index
    %487 = vector.load %arg9[%c2, %c0_152] : memref<8x2048xf32, #tpu.memory_space<vmem>>, vector<1x64xf32>
    tpu.vector_store %arg9[%c2, %c0_152], %486 {strides = array<i32>} : memref<8x2048xf32, #tpu.memory_space<vmem>>, vector<1x64xf32>,
    %488 = vector.extract_strided_slice %485 {offsets = [1, 0], sizes = [1, 64], strides = [1, 1]} : vector<32x64xf32> to vector<1x64xf32>
    %c2_153 = arith.constant 2 : index
    %c64_154 = arith.constant 64 : index
    %489 = vector.load %arg9[%c2_153, %c64_154] : memref<8x2048xf32, #tpu.memory_space<vmem>>, vector<1x64xf32>
    tpu.vector_store %arg9[%c2_153, %c64_154], %488 {strides = array<i32>} : memref<8x2048xf32, #tpu.memory_space<vmem>>, vector<1x64xf32>,
    %490 = vector.extract_strided_slice %485 {offsets = [2, 0], sizes = [1, 64], strides = [1, 1]} : vector<32x64xf32> to vector<1x64xf32>
    %c2_155 = arith.constant 2 : index
    %c128_156 = arith.constant 128 : index
    %491 = vector.load %arg9[%c2_155, %c128_156] : memref<8x2048xf32, #tpu.memory_space<vmem>>, vector<1x64xf32>
    tpu.vector_store %arg9[%c2_155, %c128_156], %490 {strides = array<i32>} : memref<8x2048xf32, #tpu.memory_space<vmem>>, vector<1x64xf32>,
    %492 = vector.extract_strided_slice %485 {offsets = [3, 0], sizes = [1, 64], strides = [1, 1]} : vector<32x64xf32> to vector<1x64xf32>
    %c2_157 = arith.constant 2 : index
    %c192_158 = arith.constant 192 : index
    %493 = vector.load %arg9[%c2_157, %c192_158] : memref<8x2048xf32, #tpu.memory_space<vmem>>, vector<1x64xf32>
    tpu.vector_store %arg9[%c2_157, %c192_158], %492 {strides = array<i32>} : memref<8x2048xf32, #tpu.memory_space<vmem>>, vector<1x64xf32>,
    %494 = vector.extract_strided_slice %485 {offsets = [4, 0], sizes = [1, 64], strides = [1, 1]} : vector<32x64xf32> to vector<1x64xf32>
    %c2_159 = arith.constant 2 : index
    %c256_160 = arith.constant 256 : index
    %495 = vector.load %arg9[%c2_159, %c256_160] : memref<8x2048xf32, #tpu.memory_space<vmem>>, vector<1x64xf32>
    tpu.vector_store %arg9[%c2_159, %c256_160], %494 {strides = array<i32>} : memref<8x2048xf32, #tpu.memory_space<vmem>>, vector<1x64xf32>,
    %496 = vector.extract_strided_slice %485 {offsets = [5, 0], sizes = [1, 64], strides = [1, 1]} : vector<32x64xf32> to vector<1x64xf32>
    %c2_161 = arith.constant 2 : index
    %c320_162 = arith.constant 320 : index
    %497 = vector.load %arg9[%c2_161, %c320_162] : memref<8x2048xf32, #tpu.memory_space<vmem>>, vector<1x64xf32>
    tpu.vector_store %arg9[%c2_161, %c320_162], %496 {strides = array<i32>} : memref<8x2048xf32, #tpu.memory_space<vmem>>, vector<1x64xf32>,
    %498 = vector.extract_strided_slice %485 {offsets = [6, 0], sizes = [1, 64], strides = [1, 1]} : vector<32x64xf32> to vector<1x64xf32>
    %c2_163 = arith.constant 2 : index
    %c384_164 = arith.constant 384 : index
    %499 = vector.load %arg9[%c2_163, %c384_164] : memref<8x2048xf32, #tpu.memory_space<vmem>>, vector<1x64xf32>
    tpu.vector_store %arg9[%c2_163, %c384_164], %498 {strides = array<i32>} : memref<8x2048xf32, #tpu.memory_space<vmem>>, vector<1x64xf32>,
    %500 = vector.extract_strided_slice %485 {offsets = [7, 0], sizes = [1, 64], strides = [1, 1]} : vector<32x64xf32> to vector<1x64xf32>
    %c2_165 = arith.constant 2 : index
    %c448_166 = arith.constant 448 : index
    %501 = vector.load %arg9[%c2_165, %c448_166] : memref<8x2048xf32, #tpu.memory_space<vmem>>, vector<1x64xf32>
    tpu.vector_store %arg9[%c2_165, %c448_166], %500 {strides = array<i32>} : memref<8x2048xf32, #tpu.memory_space<vmem>>, vector<1x64xf32>,
    %502 = vector.extract_strided_slice %485 {offsets = [8, 0], sizes = [1, 64], strides = [1, 1]} : vector<32x64xf32> to vector<1x64xf32>
    %c2_167 = arith.constant 2 : index
    %c512_168 = arith.constant 512 : index
    %503 = vector.load %arg9[%c2_167, %c512_168] : memref<8x2048xf32, #tpu.memory_space<vmem>>, vector<1x64xf32>
    tpu.vector_store %arg9[%c2_167, %c512_168], %502 {strides = array<i32>} : memref<8x2048xf32, #tpu.memory_space<vmem>>, vector<1x64xf32>,
    %504 = vector.extract_strided_slice %485 {offsets = [9, 0], sizes = [1, 64], strides = [1, 1]} : vector<32x64xf32> to vector<1x64xf32>
    %c2_169 = arith.constant 2 : index
    %c576_170 = arith.constant 576 : index
    %505 = vector.load %arg9[%c2_169, %c576_170] : memref<8x2048xf32, #tpu.memory_space<vmem>>, vector<1x64xf32>
    tpu.vector_store %arg9[%c2_169, %c576_170], %504 {strides = array<i32>} : memref<8x2048xf32, #tpu.memory_space<vmem>>, vector<1x64xf32>,
    %506 = vector.extract_strided_slice %485 {offsets = [10, 0], sizes = [1, 64], strides = [1, 1]} : vector<32x64xf32> to vector<1x64xf32>
    %c2_171 = arith.constant 2 : index
    %c640_172 = arith.constant 640 : index
    %507 = vector.load %arg9[%c2_171, %c640_172] : memref<8x2048xf32, #tpu.memory_space<vmem>>, vector<1x64xf32>
    tpu.vector_store %arg9[%c2_171, %c640_172], %506 {strides = array<i32>} : memref<8x2048xf32, #tpu.memory_space<vmem>>, vector<1x64xf32>,
    %508 = vector.extract_strided_slice %485 {offsets = [11, 0], sizes = [1, 64], strides = [1, 1]} : vector<32x64xf32> to vector<1x64xf32>
    %c2_173 = arith.constant 2 : index
    %c704_174 = arith.constant 704 : index
    %509 = vector.load %arg9[%c2_173, %c704_174] : memref<8x2048xf32, #tpu.memory_space<vmem>>, vector<1x64xf32>
    tpu.vector_store %arg9[%c2_173, %c704_174], %508 {strides = array<i32>} : memref<8x2048xf32, #tpu.memory_space<vmem>>, vector<1x64xf32>,
    %510 = vector.extract_strided_slice %485 {offsets = [12, 0], sizes = [1, 64], strides = [1, 1]} : vector<32x64xf32> to vector<1x64xf32>
    %c2_175 = arith.constant 2 : index
    %c768_176 = arith.constant 768 : index
    %511 = vector.load %arg9[%c2_175, %c768_176] : memref<8x2048xf32, #tpu.memory_space<vmem>>, vector<1x64xf32>
    tpu.vector_store %arg9[%c2_175, %c768_176], %510 {strides = array<i32>} : memref<8x2048xf32, #tpu.memory_space<vmem>>, vector<1x64xf32>,
    %512 = vector.extract_strided_slice %485 {offsets = [13, 0], sizes = [1, 64], strides = [1, 1]} : vector<32x64xf32> to vector<1x64xf32>
    %c2_177 = arith.constant 2 : index
    %c832_178 = arith.constant 832 : index
    %513 = vector.load %arg9[%c2_177, %c832_178] : memref<8x2048xf32, #tpu.memory_space<vmem>>, vector<1x64xf32>
    tpu.vector_store %arg9[%c2_177, %c832_178], %512 {strides = array<i32>} : memref<8x2048xf32, #tpu.memory_space<vmem>>, vector<1x64xf32>,
    %514 = vector.extract_strided_slice %485 {offsets = [14, 0], sizes = [1, 64], strides = [1, 1]} : vector<32x64xf32> to vector<1x64xf32>
    %c2_179 = arith.constant 2 : index
    %c896_180 = arith.constant 896 : index
    %515 = vector.load %arg9[%c2_179, %c896_180] : memref<8x2048xf32, #tpu.memory_space<vmem>>, vector<1x64xf32>
    tpu.vector_store %arg9[%c2_179, %c896_180], %514 {strides = array<i32>} : memref<8x2048xf32, #tpu.memory_space<vmem>>, vector<1x64xf32>,
    %516 = vector.extract_strided_slice %485 {offsets = [15, 0], sizes = [1, 64], strides = [1, 1]} : vector<32x64xf32> to vector<1x64xf32>
    %c2_181 = arith.constant 2 : index
    %c960_182 = arith.constant 960 : index
    %517 = vector.load %arg9[%c2_181, %c960_182] : memref<8x2048xf32, #tpu.memory_space<vmem>>, vector<1x64xf32>
    tpu.vector_store %arg9[%c2_181, %c960_182], %516 {strides = array<i32>} : memref<8x2048xf32, #tpu.memory_space<vmem>>, vector<1x64xf32>,
    %518 = vector.extract_strided_slice %485 {offsets = [16, 0], sizes = [1, 64], strides = [1, 1]} : vector<32x64xf32> to vector<1x64xf32>
    %c2_183 = arith.constant 2 : index
    %c1024_184 = arith.constant 1024 : index
    %519 = vector.load %arg9[%c2_183, %c1024_184] : memref<8x2048xf32, #tpu.memory_space<vmem>>, vector<1x64xf32>
    tpu.vector_store %arg9[%c2_183, %c1024_184], %518 {strides = array<i32>} : memref<8x2048xf32, #tpu.memory_space<vmem>>, vector<1x64xf32>,
    %520 = vector.extract_strided_slice %485 {offsets = [17, 0], sizes = [1, 64], strides = [1, 1]} : vector<32x64xf32> to vector<1x64xf32>
    %c2_185 = arith.constant 2 : index
    %c1088_186 = arith.constant 1088 : index
    %521 = vector.load %arg9[%c2_185, %c1088_186] : memref<8x2048xf32, #tpu.memory_space<vmem>>, vector<1x64xf32>
    tpu.vector_store %arg9[%c2_185, %c1088_186], %520 {strides = array<i32>} : memref<8x2048xf32, #tpu.memory_space<vmem>>, vector<1x64xf32>,
    %522 = vector.extract_strided_slice %485 {offsets = [18, 0], sizes = [1, 64], strides = [1, 1]} : vector<32x64xf32> to vector<1x64xf32>
    %c2_187 = arith.constant 2 : index
    %c1152_188 = arith.constant 1152 : index
    %523 = vector.load %arg9[%c2_187, %c1152_188] : memref<8x2048xf32, #tpu.memory_space<vmem>>, vector<1x64xf32>
    tpu.vector_store %arg9[%c2_187, %c1152_188], %522 {strides = array<i32>} : memref<8x2048xf32, #tpu.memory_space<vmem>>, vector<1x64xf32>,
    %524 = vector.extract_strided_slice %485 {offsets = [19, 0], sizes = [1, 64], strides = [1, 1]} : vector<32x64xf32> to vector<1x64xf32>
    %c2_189 = arith.constant 2 : index
    %c1216_190 = arith.constant 1216 : index
    %525 = vector.load %arg9[%c2_189, %c1216_190] : memref<8x2048xf32, #tpu.memory_space<vmem>>, vector<1x64xf32>
    tpu.vector_store %arg9[%c2_189, %c1216_190], %524 {strides = array<i32>} : memref<8x2048xf32, #tpu.memory_space<vmem>>, vector<1x64xf32>,
    %526 = vector.extract_strided_slice %485 {offsets = [20, 0], sizes = [1, 64], strides = [1, 1]} : vector<32x64xf32> to vector<1x64xf32>
    %c2_191 = arith.constant 2 : index
    %c1280_192 = arith.constant 1280 : index
    %527 = vector.load %arg9[%c2_191, %c1280_192] : memref<8x2048xf32, #tpu.memory_space<vmem>>, vector<1x64xf32>
    tpu.vector_store %arg9[%c2_191, %c1280_192], %526 {strides = array<i32>} : memref<8x2048xf32, #tpu.memory_space<vmem>>, vector<1x64xf32>,
    %528 = vector.extract_strided_slice %485 {offsets = [21, 0], sizes = [1, 64], strides = [1, 1]} : vector<32x64xf32> to vector<1x64xf32>
    %c2_193 = arith.constant 2 : index
    %c1344_194 = arith.constant 1344 : index
    %529 = vector.load %arg9[%c2_193, %c1344_194] : memref<8x2048xf32, #tpu.memory_space<vmem>>, vector<1x64xf32>
    tpu.vector_store %arg9[%c2_193, %c1344_194], %528 {strides = array<i32>} : memref<8x2048xf32, #tpu.memory_space<vmem>>, vector<1x64xf32>,
    %530 = vector.extract_strided_slice %485 {offsets = [22, 0], sizes = [1, 64], strides = [1, 1]} : vector<32x64xf32> to vector<1x64xf32>
    %c2_195 = arith.constant 2 : index
    %c1408_196 = arith.constant 1408 : index
    %531 = vector.load %arg9[%c2_195, %c1408_196] : memref<8x2048xf32, #tpu.memory_space<vmem>>, vector<1x64xf32>
    tpu.vector_store %arg9[%c2_195, %c1408_196], %530 {strides = array<i32>} : memref<8x2048xf32, #tpu.memory_space<vmem>>, vector<1x64xf32>,
    %532 = vector.extract_strided_slice %485 {offsets = [23, 0], sizes = [1, 64], strides = [1, 1]} : vector<32x64xf32> to vector<1x64xf32>
    %c2_197 = arith.constant 2 : index
    %c1472_198 = arith.constant 1472 : index
    %533 = vector.load %arg9[%c2_197, %c1472_198] : memref<8x2048xf32, #tpu.memory_space<vmem>>, vector<1x64xf32>
    tpu.vector_store %arg9[%c2_197, %c1472_198], %532 {strides = array<i32>} : memref<8x2048xf32, #tpu.memory_space<vmem>>, vector<1x64xf32>,
    %534 = vector.extract_strided_slice %485 {offsets = [24, 0], sizes = [1, 64], strides = [1, 1]} : vector<32x64xf32> to vector<1x64xf32>
    %c2_199 = arith.constant 2 : index
    %c1536_200 = arith.constant 1536 : index
    %535 = vector.load %arg9[%c2_199, %c1536_200] : memref<8x2048xf32, #tpu.memory_space<vmem>>, vector<1x64xf32>
    tpu.vector_store %arg9[%c2_199, %c1536_200], %534 {strides = array<i32>} : memref<8x2048xf32, #tpu.memory_space<vmem>>, vector<1x64xf32>,
    %536 = vector.extract_strided_slice %485 {offsets = [25, 0], sizes = [1, 64], strides = [1, 1]} : vector<32x64xf32> to vector<1x64xf32>
    %c2_201 = arith.constant 2 : index
    %c1600_202 = arith.constant 1600 : index
    %537 = vector.load %arg9[%c2_201, %c1600_202] : memref<8x2048xf32, #tpu.memory_space<vmem>>, vector<1x64xf32>
    tpu.vector_store %arg9[%c2_201, %c1600_202], %536 {strides = array<i32>} : memref<8x2048xf32, #tpu.memory_space<vmem>>, vector<1x64xf32>,
    %538 = vector.extract_strided_slice %485 {offsets = [26, 0], sizes = [1, 64], strides = [1, 1]} : vector<32x64xf32> to vector<1x64xf32>
    %c2_203 = arith.constant 2 : index
    %c1664_204 = arith.constant 1664 : index
    %539 = vector.load %arg9[%c2_203, %c1664_204] : memref<8x2048xf32, #tpu.memory_space<vmem>>, vector<1x64xf32>
    tpu.vector_store %arg9[%c2_203, %c1664_204], %538 {strides = array<i32>} : memref<8x2048xf32, #tpu.memory_space<vmem>>, vector<1x64xf32>,
    %540 = vector.extract_strided_slice %485 {offsets = [27, 0], sizes = [1, 64], strides = [1, 1]} : vector<32x64xf32> to vector<1x64xf32>
    %c2_205 = arith.constant 2 : index
    %c1728_206 = arith.constant 1728 : index
    %541 = vector.load %arg9[%c2_205, %c1728_206] : memref<8x2048xf32, #tpu.memory_space<vmem>>, vector<1x64xf32>
    tpu.vector_store %arg9[%c2_205, %c1728_206], %540 {strides = array<i32>} : memref<8x2048xf32, #tpu.memory_space<vmem>>, vector<1x64xf32>,
    %542 = vector.extract_strided_slice %485 {offsets = [28, 0], sizes = [1, 64], strides = [1, 1]} : vector<32x64xf32> to vector<1x64xf32>
    %c2_207 = arith.constant 2 : index
    %c1792_208 = arith.constant 1792 : index
    %543 = vector.load %arg9[%c2_207, %c1792_208] : memref<8x2048xf32, #tpu.memory_space<vmem>>, vector<1x64xf32>
    tpu.vector_store %arg9[%c2_207, %c1792_208], %542 {strides = array<i32>} : memref<8x2048xf32, #tpu.memory_space<vmem>>, vector<1x64xf32>,
    %544 = vector.extract_strided_slice %485 {offsets = [29, 0], sizes = [1, 64], strides = [1, 1]} : vector<32x64xf32> to vector<1x64xf32>
    %c2_209 = arith.constant 2 : index
    %c1856_210 = arith.constant 1856 : index
    %545 = vector.load %arg9[%c2_209, %c1856_210] : memref<8x2048xf32, #tpu.memory_space<vmem>>, vector<1x64xf32>
    tpu.vector_store %arg9[%c2_209, %c1856_210], %544 {strides = array<i32>} : memref<8x2048xf32, #tpu.memory_space<vmem>>, vector<1x64xf32>,
    %546 = vector.extract_strided_slice %485 {offsets = [30, 0], sizes = [1, 64], strides = [1, 1]} : vector<32x64xf32> to vector<1x64xf32>
    %c2_211 = arith.constant 2 : index
    %c1920_212 = arith.constant 1920 : index
    %547 = vector.load %arg9[%c2_211, %c1920_212] : memref<8x2048xf32, #tpu.memory_space<vmem>>, vector<1x64xf32>
    tpu.vector_store %arg9[%c2_211, %c1920_212], %546 {strides = array<i32>} : memref<8x2048xf32, #tpu.memory_space<vmem>>, vector<1x64xf32>,
    %548 = vector.extract_strided_slice %485 {offsets = [31, 0], sizes = [1, 64], strides = [1, 1]} : vector<32x64xf32> to vector<1x64xf32>
    %c2_213 = arith.constant 2 : index
    %c1984_214 = arith.constant 1984 : index
    %549 = vector.load %arg9[%c2_213, %c1984_214] : memref<8x2048xf32, #tpu.memory_space<vmem>>, vector<1x64xf32>
    tpu.vector_store %arg9[%c2_213, %c1984_214], %548 {strides = array<i32>} : memref<8x2048xf32, #tpu.memory_space<vmem>>, vector<1x64xf32>,
    %550 = vector.extract_strided_slice %8 {offsets = [3, 0], sizes = [1, 64], strides = [1, 1]} : vector<8x64xf32> to vector<1x64xf32>
    %551 = vector.extract_strided_slice %550 {offsets = [0, 0], sizes = [1, 63], strides = [1, 1]} : vector<1x64xf32> to vector<1x63xf32>
    %552 = vector.broadcast %9 : vector<4x1xf32> to vector<4x63xf32>
    %553 = vector.broadcast %551 : vector<1x63xf32> to vector<4x63xf32>
    %554 = arith.mulf %552, %553 : vector<4x63xf32>
    %555 = vector.extract_strided_slice %550 {offsets = [0, 1], sizes = [1, 63], strides = [1, 1]} : vector<1x64xf32> to vector<1x63xf32>
    %556 = vector.broadcast %10 : vector<4x1xf32> to vector<4x63xf32>
    %557 = vector.broadcast %555 : vector<1x63xf32> to vector<4x63xf32>
    %558 = arith.mulf %556, %557 : vector<4x63xf32>
    %559 = arith.addf %554, %558 : vector<4x63xf32>
    %560 = vector.broadcast %11 : vector<4x1xf32> to vector<4x63xf32>
    %561 = arith.addf %559, %560 : vector<4x63xf32>
    %cst_215 = arith.constant 0.00999999977 : f32
    %562 = vector.broadcast %cst_215 : f32 to vector<4x63xf32>
    %563 = arith.mulf %562, %561 : vector<4x63xf32>
    %564 = arith.maximumf %561, %563 : vector<4x63xf32>
    %565 = vector.extract_strided_slice %564 {offsets = [0, 0], sizes = [4, 62], strides = [1, 1]} : vector<4x63xf32> to vector<4x62xf32>
    %566 = vector.extract_strided_slice %564 {offsets = [0, 1], sizes = [4, 62], strides = [1, 1]} : vector<4x63xf32> to vector<4x62xf32>
    %cst_216 = arith.constant 0.000000e+00 : f32
    %567 = vector.broadcast %cst_216 : f32 to vector<8x62xf32>
    %568 = vector.extract_strided_slice %12 {offsets = [0, 0], sizes = [8, 1], strides = [1, 1]} : vector<8x4xf32> to vector<8x1xf32>
    %569 = vector.extract_strided_slice %565 {offsets = [0, 0], sizes = [1, 62], strides = [1, 1]} : vector<4x62xf32> to vector<1x62xf32>
    %570 = vector.broadcast %568 : vector<8x1xf32> to vector<8x62xf32>
    %571 = vector.broadcast %569 : vector<1x62xf32> to vector<8x62xf32>
    %572 = arith.mulf %570, %571 : vector<8x62xf32>
    %573 = arith.addf %567, %572 : vector<8x62xf32>
    %574 = vector.extract_strided_slice %13 {offsets = [0, 0], sizes = [8, 1], strides = [1, 1]} : vector<8x4xf32> to vector<8x1xf32>
    %575 = vector.extract_strided_slice %566 {offsets = [0, 0], sizes = [1, 62], strides = [1, 1]} : vector<4x62xf32> to vector<1x62xf32>
    %576 = vector.broadcast %574 : vector<8x1xf32> to vector<8x62xf32>
    %577 = vector.broadcast %575 : vector<1x62xf32> to vector<8x62xf32>
    %578 = arith.mulf %576, %577 : vector<8x62xf32>
    %579 = arith.addf %573, %578 : vector<8x62xf32>
    %580 = vector.extract_strided_slice %12 {offsets = [0, 1], sizes = [8, 1], strides = [1, 1]} : vector<8x4xf32> to vector<8x1xf32>
    %581 = vector.extract_strided_slice %565 {offsets = [1, 0], sizes = [1, 62], strides = [1, 1]} : vector<4x62xf32> to vector<1x62xf32>
    %582 = vector.broadcast %580 : vector<8x1xf32> to vector<8x62xf32>
    %583 = vector.broadcast %581 : vector<1x62xf32> to vector<8x62xf32>
    %584 = arith.mulf %582, %583 : vector<8x62xf32>
    %585 = arith.addf %579, %584 : vector<8x62xf32>
    %586 = vector.extract_strided_slice %13 {offsets = [0, 1], sizes = [8, 1], strides = [1, 1]} : vector<8x4xf32> to vector<8x1xf32>
    %587 = vector.extract_strided_slice %566 {offsets = [1, 0], sizes = [1, 62], strides = [1, 1]} : vector<4x62xf32> to vector<1x62xf32>
    %588 = vector.broadcast %586 : vector<8x1xf32> to vector<8x62xf32>
    %589 = vector.broadcast %587 : vector<1x62xf32> to vector<8x62xf32>
    %590 = arith.mulf %588, %589 : vector<8x62xf32>
    %591 = arith.addf %585, %590 : vector<8x62xf32>
    %592 = vector.extract_strided_slice %12 {offsets = [0, 2], sizes = [8, 1], strides = [1, 1]} : vector<8x4xf32> to vector<8x1xf32>
    %593 = vector.extract_strided_slice %565 {offsets = [2, 0], sizes = [1, 62], strides = [1, 1]} : vector<4x62xf32> to vector<1x62xf32>
    %594 = vector.broadcast %592 : vector<8x1xf32> to vector<8x62xf32>
    %595 = vector.broadcast %593 : vector<1x62xf32> to vector<8x62xf32>
    %596 = arith.mulf %594, %595 : vector<8x62xf32>
    %597 = arith.addf %591, %596 : vector<8x62xf32>
    %598 = vector.extract_strided_slice %13 {offsets = [0, 2], sizes = [8, 1], strides = [1, 1]} : vector<8x4xf32> to vector<8x1xf32>
    %599 = vector.extract_strided_slice %566 {offsets = [2, 0], sizes = [1, 62], strides = [1, 1]} : vector<4x62xf32> to vector<1x62xf32>
    %600 = vector.broadcast %598 : vector<8x1xf32> to vector<8x62xf32>
    %601 = vector.broadcast %599 : vector<1x62xf32> to vector<8x62xf32>
    %602 = arith.mulf %600, %601 : vector<8x62xf32>
    %603 = arith.addf %597, %602 : vector<8x62xf32>
    %604 = vector.extract_strided_slice %12 {offsets = [0, 3], sizes = [8, 1], strides = [1, 1]} : vector<8x4xf32> to vector<8x1xf32>
    %605 = vector.extract_strided_slice %565 {offsets = [3, 0], sizes = [1, 62], strides = [1, 1]} : vector<4x62xf32> to vector<1x62xf32>
    %606 = vector.broadcast %604 : vector<8x1xf32> to vector<8x62xf32>
    %607 = vector.broadcast %605 : vector<1x62xf32> to vector<8x62xf32>
    %608 = arith.mulf %606, %607 : vector<8x62xf32>
    %609 = arith.addf %603, %608 : vector<8x62xf32>
    %610 = vector.extract_strided_slice %13 {offsets = [0, 3], sizes = [8, 1], strides = [1, 1]} : vector<8x4xf32> to vector<8x1xf32>
    %611 = vector.extract_strided_slice %566 {offsets = [3, 0], sizes = [1, 62], strides = [1, 1]} : vector<4x62xf32> to vector<1x62xf32>
    %612 = vector.broadcast %610 : vector<8x1xf32> to vector<8x62xf32>
    %613 = vector.broadcast %611 : vector<1x62xf32> to vector<8x62xf32>
    %614 = arith.mulf %612, %613 : vector<8x62xf32>
    %615 = arith.addf %609, %614 : vector<8x62xf32>
    %616 = vector.broadcast %14 : vector<8x1xf32> to vector<8x62xf32>
    %617 = arith.addf %615, %616 : vector<8x62xf32>
    %cst_217 = arith.constant 0.00999999977 : f32
    %618 = vector.broadcast %cst_217 : f32 to vector<8x62xf32>
    %619 = arith.mulf %618, %617 : vector<8x62xf32>
    %620 = arith.maximumf %617, %619 : vector<8x62xf32>
    %621 = vector.extract_strided_slice %620 {offsets = [0, 0], sizes = [8, 61], strides = [1, 1]} : vector<8x62xf32> to vector<8x61xf32>
    %622 = vector.extract_strided_slice %620 {offsets = [0, 1], sizes = [8, 61], strides = [1, 1]} : vector<8x62xf32> to vector<8x61xf32>
    %623 = tpu.concatenate %621, %622 in 0 : vector<8x61xf32>, vector<8x61xf32> -> vector<16x61xf32>
    %cst_218 = arith.constant dense<0.000000e+00> : vector<16x61xf32>
    %624 = tpu.matmul %15, %623, %cst_218 {dimension_numbers = #tpu.dot_dimension_numbers<[1], [0], [0], [1], [0, 0, 1, 1], [], []>} : vector<16x16xf32>, vector<16x61xf32>, vector<16x61xf32> -> vector<16x61xf32>
    %625 = vector.broadcast %16 : vector<16x1xf32> to vector<16x61xf32>
    %626 = arith.addf %624, %625 : vector<16x61xf32>
    %cst_219 = arith.constant 0.00999999977 : f32
    %627 = vector.broadcast %cst_219 : f32 to vector<16x61xf32>
    %628 = arith.mulf %627, %626 : vector<16x61xf32>
    %629 = arith.maximumf %626, %628 : vector<16x61xf32>
    %630 = vector.extract_strided_slice %629 {offsets = [0, 0], sizes = [16, 60], strides = [1, 1]} : vector<16x61xf32> to vector<16x60xf32>
    %631 = vector.extract_strided_slice %629 {offsets = [0, 1], sizes = [16, 60], strides = [1, 1]} : vector<16x61xf32> to vector<16x60xf32>
    %632 = tpu.concatenate %630, %631 in 0 : vector<16x60xf32>, vector<16x60xf32> -> vector<32x60xf32>
    %cst_220 = arith.constant dense<0.000000e+00> : vector<32x60xf32>
    %633 = tpu.matmul %17, %632, %cst_220 {dimension_numbers = #tpu.dot_dimension_numbers<[1], [0], [0], [1], [0, 0, 1, 1], [], []>} : vector<32x32xf32>, vector<32x60xf32>, vector<32x60xf32> -> vector<32x60xf32>
    %634 = vector.broadcast %18 : vector<32x1xf32> to vector<32x60xf32>
    %635 = arith.addf %633, %634 : vector<32x60xf32>
    %cst_221 = arith.constant 0.00999999977 : f32
    %636 = vector.broadcast %cst_221 : f32 to vector<32x60xf32>
    %637 = arith.mulf %636, %635 : vector<32x60xf32>
    %638 = arith.maximumf %635, %637 : vector<32x60xf32>
    %cst_222 = arith.constant dense<0.000000e+00> : vector<32xf32>
    %639 = vector.multi_reduction <add>, %638, %cst_222 [1] : vector<32x60xf32> to vector<32xf32>
    %640 = vector.shape_cast %639 : vector<32xf32> to vector<32x1xf32>
    %cst_223 = arith.constant 6.000000e+01 : f32
    %641 = vector.broadcast %cst_223 : f32 to vector<32x1xf32>
    %642 = arith.divf %640, %641 : vector<32x1xf32>
    %643 = vector.broadcast %642 : vector<32x1xf32> to vector<32x60xf32>
    %644 = arith.subf %638, %643 : vector<32x60xf32>
    %645 = arith.mulf %644, %644 : vector<32x60xf32>
    %cst_224 = arith.constant dense<0.000000e+00> : vector<32xf32>
    %646 = vector.multi_reduction <add>, %645, %cst_224 [1] : vector<32x60xf32> to vector<32xf32>
    %647 = vector.shape_cast %646 : vector<32xf32> to vector<32x1xf32>
    %cst_225 = arith.constant 6.000000e+01 : f32
    %648 = vector.broadcast %cst_225 : f32 to vector<32x1xf32>
    %649 = arith.divf %647, %648 : vector<32x1xf32>
    %650 = vector.broadcast %642 : vector<32x1xf32> to vector<32x60xf32>
    %651 = arith.subf %638, %650 : vector<32x60xf32>
    %cst_226 = arith.constant 9.99999974E-6 : f32
    %652 = vector.broadcast %cst_226 : f32 to vector<32x1xf32>
    %653 = arith.addf %649, %652 : vector<32x1xf32>
    %654 = math.rsqrt %653 : vector<32x1xf32>
    %655 = vector.broadcast %654 : vector<32x1xf32> to vector<32x60xf32>
    %656 = arith.mulf %651, %655 : vector<32x60xf32>
    %657 = vector.broadcast %19 : vector<32x1xf32> to vector<32x60xf32>
    %658 = arith.mulf %656, %657 : vector<32x60xf32>
    %659 = vector.broadcast %20 : vector<32x1xf32> to vector<32x60xf32>
    %660 = arith.addf %658, %659 : vector<32x60xf32>
    %661 = tpu.concatenate %660, %21 in 1 : vector<32x60xf32>, vector<32x4xf32> -> vector<32x64xf32>
    %662 = vector.extract_strided_slice %661 {offsets = [0, 0], sizes = [1, 64], strides = [1, 1]} : vector<32x64xf32> to vector<1x64xf32>
    %c3 = arith.constant 3 : index
    %c0_227 = arith.constant 0 : index
    %663 = vector.load %arg9[%c3, %c0_227] : memref<8x2048xf32, #tpu.memory_space<vmem>>, vector<1x64xf32>
    tpu.vector_store %arg9[%c3, %c0_227], %662 {strides = array<i32>} : memref<8x2048xf32, #tpu.memory_space<vmem>>, vector<1x64xf32>,
    %664 = vector.extract_strided_slice %661 {offsets = [1, 0], sizes = [1, 64], strides = [1, 1]} : vector<32x64xf32> to vector<1x64xf32>
    %c3_228 = arith.constant 3 : index
    %c64_229 = arith.constant 64 : index
    %665 = vector.load %arg9[%c3_228, %c64_229] : memref<8x2048xf32, #tpu.memory_space<vmem>>, vector<1x64xf32>
    tpu.vector_store %arg9[%c3_228, %c64_229], %664 {strides = array<i32>} : memref<8x2048xf32, #tpu.memory_space<vmem>>, vector<1x64xf32>,
    %666 = vector.extract_strided_slice %661 {offsets = [2, 0], sizes = [1, 64], strides = [1, 1]} : vector<32x64xf32> to vector<1x64xf32>
    %c3_230 = arith.constant 3 : index
    %c128_231 = arith.constant 128 : index
    %667 = vector.load %arg9[%c3_230, %c128_231] : memref<8x2048xf32, #tpu.memory_space<vmem>>, vector<1x64xf32>
    tpu.vector_store %arg9[%c3_230, %c128_231], %666 {strides = array<i32>} : memref<8x2048xf32, #tpu.memory_space<vmem>>, vector<1x64xf32>,
    %668 = vector.extract_strided_slice %661 {offsets = [3, 0], sizes = [1, 64], strides = [1, 1]} : vector<32x64xf32> to vector<1x64xf32>
    %c3_232 = arith.constant 3 : index
    %c192_233 = arith.constant 192 : index
    %669 = vector.load %arg9[%c3_232, %c192_233] : memref<8x2048xf32, #tpu.memory_space<vmem>>, vector<1x64xf32>
    tpu.vector_store %arg9[%c3_232, %c192_233], %668 {strides = array<i32>} : memref<8x2048xf32, #tpu.memory_space<vmem>>, vector<1x64xf32>,
    %670 = vector.extract_strided_slice %661 {offsets = [4, 0], sizes = [1, 64], strides = [1, 1]} : vector<32x64xf32> to vector<1x64xf32>
    %c3_234 = arith.constant 3 : index
    %c256_235 = arith.constant 256 : index
    %671 = vector.load %arg9[%c3_234, %c256_235] : memref<8x2048xf32, #tpu.memory_space<vmem>>, vector<1x64xf32>
    tpu.vector_store %arg9[%c3_234, %c256_235], %670 {strides = array<i32>} : memref<8x2048xf32, #tpu.memory_space<vmem>>, vector<1x64xf32>,
    %672 = vector.extract_strided_slice %661 {offsets = [5, 0], sizes = [1, 64], strides = [1, 1]} : vector<32x64xf32> to vector<1x64xf32>
    %c3_236 = arith.constant 3 : index
    %c320_237 = arith.constant 320 : index
    %673 = vector.load %arg9[%c3_236, %c320_237] : memref<8x2048xf32, #tpu.memory_space<vmem>>, vector<1x64xf32>
    tpu.vector_store %arg9[%c3_236, %c320_237], %672 {strides = array<i32>} : memref<8x2048xf32, #tpu.memory_space<vmem>>, vector<1x64xf32>,
    %674 = vector.extract_strided_slice %661 {offsets = [6, 0], sizes = [1, 64], strides = [1, 1]} : vector<32x64xf32> to vector<1x64xf32>
    %c3_238 = arith.constant 3 : index
    %c384_239 = arith.constant 384 : index
    %675 = vector.load %arg9[%c3_238, %c384_239] : memref<8x2048xf32, #tpu.memory_space<vmem>>, vector<1x64xf32>
    tpu.vector_store %arg9[%c3_238, %c384_239], %674 {strides = array<i32>} : memref<8x2048xf32, #tpu.memory_space<vmem>>, vector<1x64xf32>,
    %676 = vector.extract_strided_slice %661 {offsets = [7, 0], sizes = [1, 64], strides = [1, 1]} : vector<32x64xf32> to vector<1x64xf32>
    %c3_240 = arith.constant 3 : index
    %c448_241 = arith.constant 448 : index
    %677 = vector.load %arg9[%c3_240, %c448_241] : memref<8x2048xf32, #tpu.memory_space<vmem>>, vector<1x64xf32>
    tpu.vector_store %arg9[%c3_240, %c448_241], %676 {strides = array<i32>} : memref<8x2048xf32, #tpu.memory_space<vmem>>, vector<1x64xf32>,
    %678 = vector.extract_strided_slice %661 {offsets = [8, 0], sizes = [1, 64], strides = [1, 1]} : vector<32x64xf32> to vector<1x64xf32>
    %c3_242 = arith.constant 3 : index
    %c512_243 = arith.constant 512 : index
    %679 = vector.load %arg9[%c3_242, %c512_243] : memref<8x2048xf32, #tpu.memory_space<vmem>>, vector<1x64xf32>
    tpu.vector_store %arg9[%c3_242, %c512_243], %678 {strides = array<i32>} : memref<8x2048xf32, #tpu.memory_space<vmem>>, vector<1x64xf32>,
    %680 = vector.extract_strided_slice %661 {offsets = [9, 0], sizes = [1, 64], strides = [1, 1]} : vector<32x64xf32> to vector<1x64xf32>
    %c3_244 = arith.constant 3 : index
    %c576_245 = arith.constant 576 : index
    %681 = vector.load %arg9[%c3_244, %c576_245] : memref<8x2048xf32, #tpu.memory_space<vmem>>, vector<1x64xf32>
    tpu.vector_store %arg9[%c3_244, %c576_245], %680 {strides = array<i32>} : memref<8x2048xf32, #tpu.memory_space<vmem>>, vector<1x64xf32>,
    %682 = vector.extract_strided_slice %661 {offsets = [10, 0], sizes = [1, 64], strides = [1, 1]} : vector<32x64xf32> to vector<1x64xf32>
    %c3_246 = arith.constant 3 : index
    %c640_247 = arith.constant 640 : index
    %683 = vector.load %arg9[%c3_246, %c640_247] : memref<8x2048xf32, #tpu.memory_space<vmem>>, vector<1x64xf32>
    tpu.vector_store %arg9[%c3_246, %c640_247], %682 {strides = array<i32>} : memref<8x2048xf32, #tpu.memory_space<vmem>>, vector<1x64xf32>,
    %684 = vector.extract_strided_slice %661 {offsets = [11, 0], sizes = [1, 64], strides = [1, 1]} : vector<32x64xf32> to vector<1x64xf32>
    %c3_248 = arith.constant 3 : index
    %c704_249 = arith.constant 704 : index
    %685 = vector.load %arg9[%c3_248, %c704_249] : memref<8x2048xf32, #tpu.memory_space<vmem>>, vector<1x64xf32>
    tpu.vector_store %arg9[%c3_248, %c704_249], %684 {strides = array<i32>} : memref<8x2048xf32, #tpu.memory_space<vmem>>, vector<1x64xf32>,
    %686 = vector.extract_strided_slice %661 {offsets = [12, 0], sizes = [1, 64], strides = [1, 1]} : vector<32x64xf32> to vector<1x64xf32>
    %c3_250 = arith.constant 3 : index
    %c768_251 = arith.constant 768 : index
    %687 = vector.load %arg9[%c3_250, %c768_251] : memref<8x2048xf32, #tpu.memory_space<vmem>>, vector<1x64xf32>
    tpu.vector_store %arg9[%c3_250, %c768_251], %686 {strides = array<i32>} : memref<8x2048xf32, #tpu.memory_space<vmem>>, vector<1x64xf32>,
    %688 = vector.extract_strided_slice %661 {offsets = [13, 0], sizes = [1, 64], strides = [1, 1]} : vector<32x64xf32> to vector<1x64xf32>
    %c3_252 = arith.constant 3 : index
    %c832_253 = arith.constant 832 : index
    %689 = vector.load %arg9[%c3_252, %c832_253] : memref<8x2048xf32, #tpu.memory_space<vmem>>, vector<1x64xf32>
    tpu.vector_store %arg9[%c3_252, %c832_253], %688 {strides = array<i32>} : memref<8x2048xf32, #tpu.memory_space<vmem>>, vector<1x64xf32>,
    %690 = vector.extract_strided_slice %661 {offsets = [14, 0], sizes = [1, 64], strides = [1, 1]} : vector<32x64xf32> to vector<1x64xf32>
    %c3_254 = arith.constant 3 : index
    %c896_255 = arith.constant 896 : index
    %691 = vector.load %arg9[%c3_254, %c896_255] : memref<8x2048xf32, #tpu.memory_space<vmem>>, vector<1x64xf32>
    tpu.vector_store %arg9[%c3_254, %c896_255], %690 {strides = array<i32>} : memref<8x2048xf32, #tpu.memory_space<vmem>>, vector<1x64xf32>,
    %692 = vector.extract_strided_slice %661 {offsets = [15, 0], sizes = [1, 64], strides = [1, 1]} : vector<32x64xf32> to vector<1x64xf32>
    %c3_256 = arith.constant 3 : index
    %c960_257 = arith.constant 960 : index
    %693 = vector.load %arg9[%c3_256, %c960_257] : memref<8x2048xf32, #tpu.memory_space<vmem>>, vector<1x64xf32>
    tpu.vector_store %arg9[%c3_256, %c960_257], %692 {strides = array<i32>} : memref<8x2048xf32, #tpu.memory_space<vmem>>, vector<1x64xf32>,
    %694 = vector.extract_strided_slice %661 {offsets = [16, 0], sizes = [1, 64], strides = [1, 1]} : vector<32x64xf32> to vector<1x64xf32>
    %c3_258 = arith.constant 3 : index
    %c1024_259 = arith.constant 1024 : index
    %695 = vector.load %arg9[%c3_258, %c1024_259] : memref<8x2048xf32, #tpu.memory_space<vmem>>, vector<1x64xf32>
    tpu.vector_store %arg9[%c3_258, %c1024_259], %694 {strides = array<i32>} : memref<8x2048xf32, #tpu.memory_space<vmem>>, vector<1x64xf32>,
    %696 = vector.extract_strided_slice %661 {offsets = [17, 0], sizes = [1, 64], strides = [1, 1]} : vector<32x64xf32> to vector<1x64xf32>
    %c3_260 = arith.constant 3 : index
    %c1088_261 = arith.constant 1088 : index
    %697 = vector.load %arg9[%c3_260, %c1088_261] : memref<8x2048xf32, #tpu.memory_space<vmem>>, vector<1x64xf32>
    tpu.vector_store %arg9[%c3_260, %c1088_261], %696 {strides = array<i32>} : memref<8x2048xf32, #tpu.memory_space<vmem>>, vector<1x64xf32>,
    %698 = vector.extract_strided_slice %661 {offsets = [18, 0], sizes = [1, 64], strides = [1, 1]} : vector<32x64xf32> to vector<1x64xf32>
    %c3_262 = arith.constant 3 : index
    %c1152_263 = arith.constant 1152 : index
    %699 = vector.load %arg9[%c3_262, %c1152_263] : memref<8x2048xf32, #tpu.memory_space<vmem>>, vector<1x64xf32>
    tpu.vector_store %arg9[%c3_262, %c1152_263], %698 {strides = array<i32>} : memref<8x2048xf32, #tpu.memory_space<vmem>>, vector<1x64xf32>,
    %700 = vector.extract_strided_slice %661 {offsets = [19, 0], sizes = [1, 64], strides = [1, 1]} : vector<32x64xf32> to vector<1x64xf32>
    %c3_264 = arith.constant 3 : index
    %c1216_265 = arith.constant 1216 : index
    %701 = vector.load %arg9[%c3_264, %c1216_265] : memref<8x2048xf32, #tpu.memory_space<vmem>>, vector<1x64xf32>
    tpu.vector_store %arg9[%c3_264, %c1216_265], %700 {strides = array<i32>} : memref<8x2048xf32, #tpu.memory_space<vmem>>, vector<1x64xf32>,
    %702 = vector.extract_strided_slice %661 {offsets = [20, 0], sizes = [1, 64], strides = [1, 1]} : vector<32x64xf32> to vector<1x64xf32>
    %c3_266 = arith.constant 3 : index
    %c1280_267 = arith.constant 1280 : index
    %703 = vector.load %arg9[%c3_266, %c1280_267] : memref<8x2048xf32, #tpu.memory_space<vmem>>, vector<1x64xf32>
    tpu.vector_store %arg9[%c3_266, %c1280_267], %702 {strides = array<i32>} : memref<8x2048xf32, #tpu.memory_space<vmem>>, vector<1x64xf32>,
    %704 = vector.extract_strided_slice %661 {offsets = [21, 0], sizes = [1, 64], strides = [1, 1]} : vector<32x64xf32> to vector<1x64xf32>
    %c3_268 = arith.constant 3 : index
    %c1344_269 = arith.constant 1344 : index
    %705 = vector.load %arg9[%c3_268, %c1344_269] : memref<8x2048xf32, #tpu.memory_space<vmem>>, vector<1x64xf32>
    tpu.vector_store %arg9[%c3_268, %c1344_269], %704 {strides = array<i32>} : memref<8x2048xf32, #tpu.memory_space<vmem>>, vector<1x64xf32>,
    %706 = vector.extract_strided_slice %661 {offsets = [22, 0], sizes = [1, 64], strides = [1, 1]} : vector<32x64xf32> to vector<1x64xf32>
    %c3_270 = arith.constant 3 : index
    %c1408_271 = arith.constant 1408 : index
    %707 = vector.load %arg9[%c3_270, %c1408_271] : memref<8x2048xf32, #tpu.memory_space<vmem>>, vector<1x64xf32>
    tpu.vector_store %arg9[%c3_270, %c1408_271], %706 {strides = array<i32>} : memref<8x2048xf32, #tpu.memory_space<vmem>>, vector<1x64xf32>,
    %708 = vector.extract_strided_slice %661 {offsets = [23, 0], sizes = [1, 64], strides = [1, 1]} : vector<32x64xf32> to vector<1x64xf32>
    %c3_272 = arith.constant 3 : index
    %c1472_273 = arith.constant 1472 : index
    %709 = vector.load %arg9[%c3_272, %c1472_273] : memref<8x2048xf32, #tpu.memory_space<vmem>>, vector<1x64xf32>
    tpu.vector_store %arg9[%c3_272, %c1472_273], %708 {strides = array<i32>} : memref<8x2048xf32, #tpu.memory_space<vmem>>, vector<1x64xf32>,
    %710 = vector.extract_strided_slice %661 {offsets = [24, 0], sizes = [1, 64], strides = [1, 1]} : vector<32x64xf32> to vector<1x64xf32>
    %c3_274 = arith.constant 3 : index
    %c1536_275 = arith.constant 1536 : index
    %711 = vector.load %arg9[%c3_274, %c1536_275] : memref<8x2048xf32, #tpu.memory_space<vmem>>, vector<1x64xf32>
    tpu.vector_store %arg9[%c3_274, %c1536_275], %710 {strides = array<i32>} : memref<8x2048xf32, #tpu.memory_space<vmem>>, vector<1x64xf32>,
    %712 = vector.extract_strided_slice %661 {offsets = [25, 0], sizes = [1, 64], strides = [1, 1]} : vector<32x64xf32> to vector<1x64xf32>
    %c3_276 = arith.constant 3 : index
    %c1600_277 = arith.constant 1600 : index
    %713 = vector.load %arg9[%c3_276, %c1600_277] : memref<8x2048xf32, #tpu.memory_space<vmem>>, vector<1x64xf32>
    tpu.vector_store %arg9[%c3_276, %c1600_277], %712 {strides = array<i32>} : memref<8x2048xf32, #tpu.memory_space<vmem>>, vector<1x64xf32>,
    %714 = vector.extract_strided_slice %661 {offsets = [26, 0], sizes = [1, 64], strides = [1, 1]} : vector<32x64xf32> to vector<1x64xf32>
    %c3_278 = arith.constant 3 : index
    %c1664_279 = arith.constant 1664 : index
    %715 = vector.load %arg9[%c3_278, %c1664_279] : memref<8x2048xf32, #tpu.memory_space<vmem>>, vector<1x64xf32>
    tpu.vector_store %arg9[%c3_278, %c1664_279], %714 {strides = array<i32>} : memref<8x2048xf32, #tpu.memory_space<vmem>>, vector<1x64xf32>,
    %716 = vector.extract_strided_slice %661 {offsets = [27, 0], sizes = [1, 64], strides = [1, 1]} : vector<32x64xf32> to vector<1x64xf32>
    %c3_280 = arith.constant 3 : index
    %c1728_281 = arith.constant 1728 : index
    %717 = vector.load %arg9[%c3_280, %c1728_281] : memref<8x2048xf32, #tpu.memory_space<vmem>>, vector<1x64xf32>
    tpu.vector_store %arg9[%c3_280, %c1728_281], %716 {strides = array<i32>} : memref<8x2048xf32, #tpu.memory_space<vmem>>, vector<1x64xf32>,
    %718 = vector.extract_strided_slice %661 {offsets = [28, 0], sizes = [1, 64], strides = [1, 1]} : vector<32x64xf32> to vector<1x64xf32>
    %c3_282 = arith.constant 3 : index
    %c1792_283 = arith.constant 1792 : index
    %719 = vector.load %arg9[%c3_282, %c1792_283] : memref<8x2048xf32, #tpu.memory_space<vmem>>, vector<1x64xf32>
    tpu.vector_store %arg9[%c3_282, %c1792_283], %718 {strides = array<i32>} : memref<8x2048xf32, #tpu.memory_space<vmem>>, vector<1x64xf32>,
    %720 = vector.extract_strided_slice %661 {offsets = [29, 0], sizes = [1, 64], strides = [1, 1]} : vector<32x64xf32> to vector<1x64xf32>
    %c3_284 = arith.constant 3 : index
    %c1856_285 = arith.constant 1856 : index
    %721 = vector.load %arg9[%c3_284, %c1856_285] : memref<8x2048xf32, #tpu.memory_space<vmem>>, vector<1x64xf32>
    tpu.vector_store %arg9[%c3_284, %c1856_285], %720 {strides = array<i32>} : memref<8x2048xf32, #tpu.memory_space<vmem>>, vector<1x64xf32>,
    %722 = vector.extract_strided_slice %661 {offsets = [30, 0], sizes = [1, 64], strides = [1, 1]} : vector<32x64xf32> to vector<1x64xf32>
    %c3_286 = arith.constant 3 : index
    %c1920_287 = arith.constant 1920 : index
    %723 = vector.load %arg9[%c3_286, %c1920_287] : memref<8x2048xf32, #tpu.memory_space<vmem>>, vector<1x64xf32>
    tpu.vector_store %arg9[%c3_286, %c1920_287], %722 {strides = array<i32>} : memref<8x2048xf32, #tpu.memory_space<vmem>>, vector<1x64xf32>,
    %724 = vector.extract_strided_slice %661 {offsets = [31, 0], sizes = [1, 64], strides = [1, 1]} : vector<32x64xf32> to vector<1x64xf32>
    %c3_288 = arith.constant 3 : index
    %c1984_289 = arith.constant 1984 : index
    %725 = vector.load %arg9[%c3_288, %c1984_289] : memref<8x2048xf32, #tpu.memory_space<vmem>>, vector<1x64xf32>
    tpu.vector_store %arg9[%c3_288, %c1984_289], %724 {strides = array<i32>} : memref<8x2048xf32, #tpu.memory_space<vmem>>, vector<1x64xf32>,
    %726 = vector.extract_strided_slice %8 {offsets = [4, 0], sizes = [1, 64], strides = [1, 1]} : vector<8x64xf32> to vector<1x64xf32>
    %727 = vector.extract_strided_slice %726 {offsets = [0, 0], sizes = [1, 63], strides = [1, 1]} : vector<1x64xf32> to vector<1x63xf32>
    %728 = vector.broadcast %9 : vector<4x1xf32> to vector<4x63xf32>
    %729 = vector.broadcast %727 : vector<1x63xf32> to vector<4x63xf32>
    %730 = arith.mulf %728, %729 : vector<4x63xf32>
    %731 = vector.extract_strided_slice %726 {offsets = [0, 1], sizes = [1, 63], strides = [1, 1]} : vector<1x64xf32> to vector<1x63xf32>
    %732 = vector.broadcast %10 : vector<4x1xf32> to vector<4x63xf32>
    %733 = vector.broadcast %731 : vector<1x63xf32> to vector<4x63xf32>
    %734 = arith.mulf %732, %733 : vector<4x63xf32>
    %735 = arith.addf %730, %734 : vector<4x63xf32>
    %736 = vector.broadcast %11 : vector<4x1xf32> to vector<4x63xf32>
    %737 = arith.addf %735, %736 : vector<4x63xf32>
    %cst_290 = arith.constant 0.00999999977 : f32
    %738 = vector.broadcast %cst_290 : f32 to vector<4x63xf32>
    %739 = arith.mulf %738, %737 : vector<4x63xf32>
    %740 = arith.maximumf %737, %739 : vector<4x63xf32>
    %741 = vector.extract_strided_slice %740 {offsets = [0, 0], sizes = [4, 62], strides = [1, 1]} : vector<4x63xf32> to vector<4x62xf32>
    %742 = vector.extract_strided_slice %740 {offsets = [0, 1], sizes = [4, 62], strides = [1, 1]} : vector<4x63xf32> to vector<4x62xf32>
    %cst_291 = arith.constant 0.000000e+00 : f32
    %743 = vector.broadcast %cst_291 : f32 to vector<8x62xf32>
    %744 = vector.extract_strided_slice %12 {offsets = [0, 0], sizes = [8, 1], strides = [1, 1]} : vector<8x4xf32> to vector<8x1xf32>
    %745 = vector.extract_strided_slice %741 {offsets = [0, 0], sizes = [1, 62], strides = [1, 1]} : vector<4x62xf32> to vector<1x62xf32>
    %746 = vector.broadcast %744 : vector<8x1xf32> to vector<8x62xf32>
    %747 = vector.broadcast %745 : vector<1x62xf32> to vector<8x62xf32>
    %748 = arith.mulf %746, %747 : vector<8x62xf32>
    %749 = arith.addf %743, %748 : vector<8x62xf32>
    %750 = vector.extract_strided_slice %13 {offsets = [0, 0], sizes = [8, 1], strides = [1, 1]} : vector<8x4xf32> to vector<8x1xf32>
    %751 = vector.extract_strided_slice %742 {offsets = [0, 0], sizes = [1, 62], strides = [1, 1]} : vector<4x62xf32> to vector<1x62xf32>
    %752 = vector.broadcast %750 : vector<8x1xf32> to vector<8x62xf32>
    %753 = vector.broadcast %751 : vector<1x62xf32> to vector<8x62xf32>
    %754 = arith.mulf %752, %753 : vector<8x62xf32>
    %755 = arith.addf %749, %754 : vector<8x62xf32>
    %756 = vector.extract_strided_slice %12 {offsets = [0, 1], sizes = [8, 1], strides = [1, 1]} : vector<8x4xf32> to vector<8x1xf32>
    %757 = vector.extract_strided_slice %741 {offsets = [1, 0], sizes = [1, 62], strides = [1, 1]} : vector<4x62xf32> to vector<1x62xf32>
    %758 = vector.broadcast %756 : vector<8x1xf32> to vector<8x62xf32>
    %759 = vector.broadcast %757 : vector<1x62xf32> to vector<8x62xf32>
    %760 = arith.mulf %758, %759 : vector<8x62xf32>
    %761 = arith.addf %755, %760 : vector<8x62xf32>
    %762 = vector.extract_strided_slice %13 {offsets = [0, 1], sizes = [8, 1], strides = [1, 1]} : vector<8x4xf32> to vector<8x1xf32>
    %763 = vector.extract_strided_slice %742 {offsets = [1, 0], sizes = [1, 62], strides = [1, 1]} : vector<4x62xf32> to vector<1x62xf32>
    %764 = vector.broadcast %762 : vector<8x1xf32> to vector<8x62xf32>
    %765 = vector.broadcast %763 : vector<1x62xf32> to vector<8x62xf32>
    %766 = arith.mulf %764, %765 : vector<8x62xf32>
    %767 = arith.addf %761, %766 : vector<8x62xf32>
    %768 = vector.extract_strided_slice %12 {offsets = [0, 2], sizes = [8, 1], strides = [1, 1]} : vector<8x4xf32> to vector<8x1xf32>
    %769 = vector.extract_strided_slice %741 {offsets = [2, 0], sizes = [1, 62], strides = [1, 1]} : vector<4x62xf32> to vector<1x62xf32>
    %770 = vector.broadcast %768 : vector<8x1xf32> to vector<8x62xf32>
    %771 = vector.broadcast %769 : vector<1x62xf32> to vector<8x62xf32>
    %772 = arith.mulf %770, %771 : vector<8x62xf32>
    %773 = arith.addf %767, %772 : vector<8x62xf32>
    %774 = vector.extract_strided_slice %13 {offsets = [0, 2], sizes = [8, 1], strides = [1, 1]} : vector<8x4xf32> to vector<8x1xf32>
    %775 = vector.extract_strided_slice %742 {offsets = [2, 0], sizes = [1, 62], strides = [1, 1]} : vector<4x62xf32> to vector<1x62xf32>
    %776 = vector.broadcast %774 : vector<8x1xf32> to vector<8x62xf32>
    %777 = vector.broadcast %775 : vector<1x62xf32> to vector<8x62xf32>
    %778 = arith.mulf %776, %777 : vector<8x62xf32>
    %779 = arith.addf %773, %778 : vector<8x62xf32>
    %780 = vector.extract_strided_slice %12 {offsets = [0, 3], sizes = [8, 1], strides = [1, 1]} : vector<8x4xf32> to vector<8x1xf32>
    %781 = vector.extract_strided_slice %741 {offsets = [3, 0], sizes = [1, 62], strides = [1, 1]} : vector<4x62xf32> to vector<1x62xf32>
    %782 = vector.broadcast %780 : vector<8x1xf32> to vector<8x62xf32>
    %783 = vector.broadcast %781 : vector<1x62xf32> to vector<8x62xf32>
    %784 = arith.mulf %782, %783 : vector<8x62xf32>
    %785 = arith.addf %779, %784 : vector<8x62xf32>
    %786 = vector.extract_strided_slice %13 {offsets = [0, 3], sizes = [8, 1], strides = [1, 1]} : vector<8x4xf32> to vector<8x1xf32>
    %787 = vector.extract_strided_slice %742 {offsets = [3, 0], sizes = [1, 62], strides = [1, 1]} : vector<4x62xf32> to vector<1x62xf32>
    %788 = vector.broadcast %786 : vector<8x1xf32> to vector<8x62xf32>
    %789 = vector.broadcast %787 : vector<1x62xf32> to vector<8x62xf32>
    %790 = arith.mulf %788, %789 : vector<8x62xf32>
    %791 = arith.addf %785, %790 : vector<8x62xf32>
    %792 = vector.broadcast %14 : vector<8x1xf32> to vector<8x62xf32>
    %793 = arith.addf %791, %792 : vector<8x62xf32>
    %cst_292 = arith.constant 0.00999999977 : f32
    %794 = vector.broadcast %cst_292 : f32 to vector<8x62xf32>
    %795 = arith.mulf %794, %793 : vector<8x62xf32>
    %796 = arith.maximumf %793, %795 : vector<8x62xf32>
    %797 = vector.extract_strided_slice %796 {offsets = [0, 0], sizes = [8, 61], strides = [1, 1]} : vector<8x62xf32> to vector<8x61xf32>
    %798 = vector.extract_strided_slice %796 {offsets = [0, 1], sizes = [8, 61], strides = [1, 1]} : vector<8x62xf32> to vector<8x61xf32>
    %799 = tpu.concatenate %797, %798 in 0 : vector<8x61xf32>, vector<8x61xf32> -> vector<16x61xf32>
    %cst_293 = arith.constant dense<0.000000e+00> : vector<16x61xf32>
    %800 = tpu.matmul %15, %799, %cst_293 {dimension_numbers = #tpu.dot_dimension_numbers<[1], [0], [0], [1], [0, 0, 1, 1], [], []>} : vector<16x16xf32>, vector<16x61xf32>, vector<16x61xf32> -> vector<16x61xf32>
    %801 = vector.broadcast %16 : vector<16x1xf32> to vector<16x61xf32>
    %802 = arith.addf %800, %801 : vector<16x61xf32>
    %cst_294 = arith.constant 0.00999999977 : f32
    %803 = vector.broadcast %cst_294 : f32 to vector<16x61xf32>
    %804 = arith.mulf %803, %802 : vector<16x61xf32>
    %805 = arith.maximumf %802, %804 : vector<16x61xf32>
    %806 = vector.extract_strided_slice %805 {offsets = [0, 0], sizes = [16, 60], strides = [1, 1]} : vector<16x61xf32> to vector<16x60xf32>
    %807 = vector.extract_strided_slice %805 {offsets = [0, 1], sizes = [16, 60], strides = [1, 1]} : vector<16x61xf32> to vector<16x60xf32>
    %808 = tpu.concatenate %806, %807 in 0 : vector<16x60xf32>, vector<16x60xf32> -> vector<32x60xf32>
    %cst_295 = arith.constant dense<0.000000e+00> : vector<32x60xf32>
    %809 = tpu.matmul %17, %808, %cst_295 {dimension_numbers = #tpu.dot_dimension_numbers<[1], [0], [0], [1], [0, 0, 1, 1], [], []>} : vector<32x32xf32>, vector<32x60xf32>, vector<32x60xf32> -> vector<32x60xf32>
    %810 = vector.broadcast %18 : vector<32x1xf32> to vector<32x60xf32>
    %811 = arith.addf %809, %810 : vector<32x60xf32>
    %cst_296 = arith.constant 0.00999999977 : f32
    %812 = vector.broadcast %cst_296 : f32 to vector<32x60xf32>
    %813 = arith.mulf %812, %811 : vector<32x60xf32>
    %814 = arith.maximumf %811, %813 : vector<32x60xf32>
    %cst_297 = arith.constant dense<0.000000e+00> : vector<32xf32>
    %815 = vector.multi_reduction <add>, %814, %cst_297 [1] : vector<32x60xf32> to vector<32xf32>
    %816 = vector.shape_cast %815 : vector<32xf32> to vector<32x1xf32>
    %cst_298 = arith.constant 6.000000e+01 : f32
    %817 = vector.broadcast %cst_298 : f32 to vector<32x1xf32>
    %818 = arith.divf %816, %817 : vector<32x1xf32>
    %819 = vector.broadcast %818 : vector<32x1xf32> to vector<32x60xf32>
    %820 = arith.subf %814, %819 : vector<32x60xf32>
    %821 = arith.mulf %820, %820 : vector<32x60xf32>
    %cst_299 = arith.constant dense<0.000000e+00> : vector<32xf32>
    %822 = vector.multi_reduction <add>, %821, %cst_299 [1] : vector<32x60xf32> to vector<32xf32>
    %823 = vector.shape_cast %822 : vector<32xf32> to vector<32x1xf32>
    %cst_300 = arith.constant 6.000000e+01 : f32
    %824 = vector.broadcast %cst_300 : f32 to vector<32x1xf32>
    %825 = arith.divf %823, %824 : vector<32x1xf32>
    %826 = vector.broadcast %818 : vector<32x1xf32> to vector<32x60xf32>
    %827 = arith.subf %814, %826 : vector<32x60xf32>
    %cst_301 = arith.constant 9.99999974E-6 : f32
    %828 = vector.broadcast %cst_301 : f32 to vector<32x1xf32>
    %829 = arith.addf %825, %828 : vector<32x1xf32>
    %830 = math.rsqrt %829 : vector<32x1xf32>
    %831 = vector.broadcast %830 : vector<32x1xf32> to vector<32x60xf32>
    %832 = arith.mulf %827, %831 : vector<32x60xf32>
    %833 = vector.broadcast %19 : vector<32x1xf32> to vector<32x60xf32>
    %834 = arith.mulf %832, %833 : vector<32x60xf32>
    %835 = vector.broadcast %20 : vector<32x1xf32> to vector<32x60xf32>
    %836 = arith.addf %834, %835 : vector<32x60xf32>
    %837 = tpu.concatenate %836, %21 in 1 : vector<32x60xf32>, vector<32x4xf32> -> vector<32x64xf32>
    %838 = vector.extract_strided_slice %837 {offsets = [0, 0], sizes = [1, 64], strides = [1, 1]} : vector<32x64xf32> to vector<1x64xf32>
    %c4 = arith.constant 4 : index
    %c0_302 = arith.constant 0 : index
    %839 = vector.load %arg9[%c4, %c0_302] : memref<8x2048xf32, #tpu.memory_space<vmem>>, vector<1x64xf32>
    tpu.vector_store %arg9[%c4, %c0_302], %838 {strides = array<i32>} : memref<8x2048xf32, #tpu.memory_space<vmem>>, vector<1x64xf32>,
    %840 = vector.extract_strided_slice %837 {offsets = [1, 0], sizes = [1, 64], strides = [1, 1]} : vector<32x64xf32> to vector<1x64xf32>
    %c4_303 = arith.constant 4 : index
    %c64_304 = arith.constant 64 : index
    %841 = vector.load %arg9[%c4_303, %c64_304] : memref<8x2048xf32, #tpu.memory_space<vmem>>, vector<1x64xf32>
    tpu.vector_store %arg9[%c4_303, %c64_304], %840 {strides = array<i32>} : memref<8x2048xf32, #tpu.memory_space<vmem>>, vector<1x64xf32>,
    %842 = vector.extract_strided_slice %837 {offsets = [2, 0], sizes = [1, 64], strides = [1, 1]} : vector<32x64xf32> to vector<1x64xf32>
    %c4_305 = arith.constant 4 : index
    %c128_306 = arith.constant 128 : index
    %843 = vector.load %arg9[%c4_305, %c128_306] : memref<8x2048xf32, #tpu.memory_space<vmem>>, vector<1x64xf32>
    tpu.vector_store %arg9[%c4_305, %c128_306], %842 {strides = array<i32>} : memref<8x2048xf32, #tpu.memory_space<vmem>>, vector<1x64xf32>,
    %844 = vector.extract_strided_slice %837 {offsets = [3, 0], sizes = [1, 64], strides = [1, 1]} : vector<32x64xf32> to vector<1x64xf32>
    %c4_307 = arith.constant 4 : index
    %c192_308 = arith.constant 192 : index
    %845 = vector.load %arg9[%c4_307, %c192_308] : memref<8x2048xf32, #tpu.memory_space<vmem>>, vector<1x64xf32>
    tpu.vector_store %arg9[%c4_307, %c192_308], %844 {strides = array<i32>} : memref<8x2048xf32, #tpu.memory_space<vmem>>, vector<1x64xf32>,
    %846 = vector.extract_strided_slice %837 {offsets = [4, 0], sizes = [1, 64], strides = [1, 1]} : vector<32x64xf32> to vector<1x64xf32>
    %c4_309 = arith.constant 4 : index
    %c256_310 = arith.constant 256 : index
    %847 = vector.load %arg9[%c4_309, %c256_310] : memref<8x2048xf32, #tpu.memory_space<vmem>>, vector<1x64xf32>
    tpu.vector_store %arg9[%c4_309, %c256_310], %846 {strides = array<i32>} : memref<8x2048xf32, #tpu.memory_space<vmem>>, vector<1x64xf32>,
    %848 = vector.extract_strided_slice %837 {offsets = [5, 0], sizes = [1, 64], strides = [1, 1]} : vector<32x64xf32> to vector<1x64xf32>
    %c4_311 = arith.constant 4 : index
    %c320_312 = arith.constant 320 : index
    %849 = vector.load %arg9[%c4_311, %c320_312] : memref<8x2048xf32, #tpu.memory_space<vmem>>, vector<1x64xf32>
    tpu.vector_store %arg9[%c4_311, %c320_312], %848 {strides = array<i32>} : memref<8x2048xf32, #tpu.memory_space<vmem>>, vector<1x64xf32>,
    %850 = vector.extract_strided_slice %837 {offsets = [6, 0], sizes = [1, 64], strides = [1, 1]} : vector<32x64xf32> to vector<1x64xf32>
    %c4_313 = arith.constant 4 : index
    %c384_314 = arith.constant 384 : index
    %851 = vector.load %arg9[%c4_313, %c384_314] : memref<8x2048xf32, #tpu.memory_space<vmem>>, vector<1x64xf32>
    tpu.vector_store %arg9[%c4_313, %c384_314], %850 {strides = array<i32>} : memref<8x2048xf32, #tpu.memory_space<vmem>>, vector<1x64xf32>,
    %852 = vector.extract_strided_slice %837 {offsets = [7, 0], sizes = [1, 64], strides = [1, 1]} : vector<32x64xf32> to vector<1x64xf32>
    %c4_315 = arith.constant 4 : index
    %c448_316 = arith.constant 448 : index
    %853 = vector.load %arg9[%c4_315, %c448_316] : memref<8x2048xf32, #tpu.memory_space<vmem>>, vector<1x64xf32>
    tpu.vector_store %arg9[%c4_315, %c448_316], %852 {strides = array<i32>} : memref<8x2048xf32, #tpu.memory_space<vmem>>, vector<1x64xf32>,
    %854 = vector.extract_strided_slice %837 {offsets = [8, 0], sizes = [1, 64], strides = [1, 1]} : vector<32x64xf32> to vector<1x64xf32>
    %c4_317 = arith.constant 4 : index
    %c512_318 = arith.constant 512 : index
    %855 = vector.load %arg9[%c4_317, %c512_318] : memref<8x2048xf32, #tpu.memory_space<vmem>>, vector<1x64xf32>
    tpu.vector_store %arg9[%c4_317, %c512_318], %854 {strides = array<i32>} : memref<8x2048xf32, #tpu.memory_space<vmem>>, vector<1x64xf32>,
    %856 = vector.extract_strided_slice %837 {offsets = [9, 0], sizes = [1, 64], strides = [1, 1]} : vector<32x64xf32> to vector<1x64xf32>
    %c4_319 = arith.constant 4 : index
    %c576_320 = arith.constant 576 : index
    %857 = vector.load %arg9[%c4_319, %c576_320] : memref<8x2048xf32, #tpu.memory_space<vmem>>, vector<1x64xf32>
    tpu.vector_store %arg9[%c4_319, %c576_320], %856 {strides = array<i32>} : memref<8x2048xf32, #tpu.memory_space<vmem>>, vector<1x64xf32>,
    %858 = vector.extract_strided_slice %837 {offsets = [10, 0], sizes = [1, 64], strides = [1, 1]} : vector<32x64xf32> to vector<1x64xf32>
    %c4_321 = arith.constant 4 : index
    %c640_322 = arith.constant 640 : index
    %859 = vector.load %arg9[%c4_321, %c640_322] : memref<8x2048xf32, #tpu.memory_space<vmem>>, vector<1x64xf32>
    tpu.vector_store %arg9[%c4_321, %c640_322], %858 {strides = array<i32>} : memref<8x2048xf32, #tpu.memory_space<vmem>>, vector<1x64xf32>,
    %860 = vector.extract_strided_slice %837 {offsets = [11, 0], sizes = [1, 64], strides = [1, 1]} : vector<32x64xf32> to vector<1x64xf32>
    %c4_323 = arith.constant 4 : index
    %c704_324 = arith.constant 704 : index
    %861 = vector.load %arg9[%c4_323, %c704_324] : memref<8x2048xf32, #tpu.memory_space<vmem>>, vector<1x64xf32>
    tpu.vector_store %arg9[%c4_323, %c704_324], %860 {strides = array<i32>} : memref<8x2048xf32, #tpu.memory_space<vmem>>, vector<1x64xf32>,
    %862 = vector.extract_strided_slice %837 {offsets = [12, 0], sizes = [1, 64], strides = [1, 1]} : vector<32x64xf32> to vector<1x64xf32>
    %c4_325 = arith.constant 4 : index
    %c768_326 = arith.constant 768 : index
    %863 = vector.load %arg9[%c4_325, %c768_326] : memref<8x2048xf32, #tpu.memory_space<vmem>>, vector<1x64xf32>
    tpu.vector_store %arg9[%c4_325, %c768_326], %862 {strides = array<i32>} : memref<8x2048xf32, #tpu.memory_space<vmem>>, vector<1x64xf32>,
    %864 = vector.extract_strided_slice %837 {offsets = [13, 0], sizes = [1, 64], strides = [1, 1]} : vector<32x64xf32> to vector<1x64xf32>
    %c4_327 = arith.constant 4 : index
    %c832_328 = arith.constant 832 : index
    %865 = vector.load %arg9[%c4_327, %c832_328] : memref<8x2048xf32, #tpu.memory_space<vmem>>, vector<1x64xf32>
    tpu.vector_store %arg9[%c4_327, %c832_328], %864 {strides = array<i32>} : memref<8x2048xf32, #tpu.memory_space<vmem>>, vector<1x64xf32>,
    %866 = vector.extract_strided_slice %837 {offsets = [14, 0], sizes = [1, 64], strides = [1, 1]} : vector<32x64xf32> to vector<1x64xf32>
    %c4_329 = arith.constant 4 : index
    %c896_330 = arith.constant 896 : index
    %867 = vector.load %arg9[%c4_329, %c896_330] : memref<8x2048xf32, #tpu.memory_space<vmem>>, vector<1x64xf32>
    tpu.vector_store %arg9[%c4_329, %c896_330], %866 {strides = array<i32>} : memref<8x2048xf32, #tpu.memory_space<vmem>>, vector<1x64xf32>,
    %868 = vector.extract_strided_slice %837 {offsets = [15, 0], sizes = [1, 64], strides = [1, 1]} : vector<32x64xf32> to vector<1x64xf32>
    %c4_331 = arith.constant 4 : index
    %c960_332 = arith.constant 960 : index
    %869 = vector.load %arg9[%c4_331, %c960_332] : memref<8x2048xf32, #tpu.memory_space<vmem>>, vector<1x64xf32>
    tpu.vector_store %arg9[%c4_331, %c960_332], %868 {strides = array<i32>} : memref<8x2048xf32, #tpu.memory_space<vmem>>, vector<1x64xf32>,
    %870 = vector.extract_strided_slice %837 {offsets = [16, 0], sizes = [1, 64], strides = [1, 1]} : vector<32x64xf32> to vector<1x64xf32>
    %c4_333 = arith.constant 4 : index
    %c1024_334 = arith.constant 1024 : index
    %871 = vector.load %arg9[%c4_333, %c1024_334] : memref<8x2048xf32, #tpu.memory_space<vmem>>, vector<1x64xf32>
    tpu.vector_store %arg9[%c4_333, %c1024_334], %870 {strides = array<i32>} : memref<8x2048xf32, #tpu.memory_space<vmem>>, vector<1x64xf32>,
    %872 = vector.extract_strided_slice %837 {offsets = [17, 0], sizes = [1, 64], strides = [1, 1]} : vector<32x64xf32> to vector<1x64xf32>
    %c4_335 = arith.constant 4 : index
    %c1088_336 = arith.constant 1088 : index
    %873 = vector.load %arg9[%c4_335, %c1088_336] : memref<8x2048xf32, #tpu.memory_space<vmem>>, vector<1x64xf32>
    tpu.vector_store %arg9[%c4_335, %c1088_336], %872 {strides = array<i32>} : memref<8x2048xf32, #tpu.memory_space<vmem>>, vector<1x64xf32>,
    %874 = vector.extract_strided_slice %837 {offsets = [18, 0], sizes = [1, 64], strides = [1, 1]} : vector<32x64xf32> to vector<1x64xf32>
    %c4_337 = arith.constant 4 : index
    %c1152_338 = arith.constant 1152 : index
    %875 = vector.load %arg9[%c4_337, %c1152_338] : memref<8x2048xf32, #tpu.memory_space<vmem>>, vector<1x64xf32>
    tpu.vector_store %arg9[%c4_337, %c1152_338], %874 {strides = array<i32>} : memref<8x2048xf32, #tpu.memory_space<vmem>>, vector<1x64xf32>,
    %876 = vector.extract_strided_slice %837 {offsets = [19, 0], sizes = [1, 64], strides = [1, 1]} : vector<32x64xf32> to vector<1x64xf32>
    %c4_339 = arith.constant 4 : index
    %c1216_340 = arith.constant 1216 : index
    %877 = vector.load %arg9[%c4_339, %c1216_340] : memref<8x2048xf32, #tpu.memory_space<vmem>>, vector<1x64xf32>
    tpu.vector_store %arg9[%c4_339, %c1216_340], %876 {strides = array<i32>} : memref<8x2048xf32, #tpu.memory_space<vmem>>, vector<1x64xf32>,
    %878 = vector.extract_strided_slice %837 {offsets = [20, 0], sizes = [1, 64], strides = [1, 1]} : vector<32x64xf32> to vector<1x64xf32>
    %c4_341 = arith.constant 4 : index
    %c1280_342 = arith.constant 1280 : index
    %879 = vector.load %arg9[%c4_341, %c1280_342] : memref<8x2048xf32, #tpu.memory_space<vmem>>, vector<1x64xf32>
    tpu.vector_store %arg9[%c4_341, %c1280_342], %878 {strides = array<i32>} : memref<8x2048xf32, #tpu.memory_space<vmem>>, vector<1x64xf32>,
    %880 = vector.extract_strided_slice %837 {offsets = [21, 0], sizes = [1, 64], strides = [1, 1]} : vector<32x64xf32> to vector<1x64xf32>
    %c4_343 = arith.constant 4 : index
    %c1344_344 = arith.constant 1344 : index
    %881 = vector.load %arg9[%c4_343, %c1344_344] : memref<8x2048xf32, #tpu.memory_space<vmem>>, vector<1x64xf32>
    tpu.vector_store %arg9[%c4_343, %c1344_344], %880 {strides = array<i32>} : memref<8x2048xf32, #tpu.memory_space<vmem>>, vector<1x64xf32>,
    %882 = vector.extract_strided_slice %837 {offsets = [22, 0], sizes = [1, 64], strides = [1, 1]} : vector<32x64xf32> to vector<1x64xf32>
    %c4_345 = arith.constant 4 : index
    %c1408_346 = arith.constant 1408 : index
    %883 = vector.load %arg9[%c4_345, %c1408_346] : memref<8x2048xf32, #tpu.memory_space<vmem>>, vector<1x64xf32>
    tpu.vector_store %arg9[%c4_345, %c1408_346], %882 {strides = array<i32>} : memref<8x2048xf32, #tpu.memory_space<vmem>>, vector<1x64xf32>,
    %884 = vector.extract_strided_slice %837 {offsets = [23, 0], sizes = [1, 64], strides = [1, 1]} : vector<32x64xf32> to vector<1x64xf32>
    %c4_347 = arith.constant 4 : index
    %c1472_348 = arith.constant 1472 : index
    %885 = vector.load %arg9[%c4_347, %c1472_348] : memref<8x2048xf32, #tpu.memory_space<vmem>>, vector<1x64xf32>
    tpu.vector_store %arg9[%c4_347, %c1472_348], %884 {strides = array<i32>} : memref<8x2048xf32, #tpu.memory_space<vmem>>, vector<1x64xf32>,
    %886 = vector.extract_strided_slice %837 {offsets = [24, 0], sizes = [1, 64], strides = [1, 1]} : vector<32x64xf32> to vector<1x64xf32>
    %c4_349 = arith.constant 4 : index
    %c1536_350 = arith.constant 1536 : index
    %887 = vector.load %arg9[%c4_349, %c1536_350] : memref<8x2048xf32, #tpu.memory_space<vmem>>, vector<1x64xf32>
    tpu.vector_store %arg9[%c4_349, %c1536_350], %886 {strides = array<i32>} : memref<8x2048xf32, #tpu.memory_space<vmem>>, vector<1x64xf32>,
    %888 = vector.extract_strided_slice %837 {offsets = [25, 0], sizes = [1, 64], strides = [1, 1]} : vector<32x64xf32> to vector<1x64xf32>
    %c4_351 = arith.constant 4 : index
    %c1600_352 = arith.constant 1600 : index
    %889 = vector.load %arg9[%c4_351, %c1600_352] : memref<8x2048xf32, #tpu.memory_space<vmem>>, vector<1x64xf32>
    tpu.vector_store %arg9[%c4_351, %c1600_352], %888 {strides = array<i32>} : memref<8x2048xf32, #tpu.memory_space<vmem>>, vector<1x64xf32>,
    %890 = vector.extract_strided_slice %837 {offsets = [26, 0], sizes = [1, 64], strides = [1, 1]} : vector<32x64xf32> to vector<1x64xf32>
    %c4_353 = arith.constant 4 : index
    %c1664_354 = arith.constant 1664 : index
    %891 = vector.load %arg9[%c4_353, %c1664_354] : memref<8x2048xf32, #tpu.memory_space<vmem>>, vector<1x64xf32>
    tpu.vector_store %arg9[%c4_353, %c1664_354], %890 {strides = array<i32>} : memref<8x2048xf32, #tpu.memory_space<vmem>>, vector<1x64xf32>,
    %892 = vector.extract_strided_slice %837 {offsets = [27, 0], sizes = [1, 64], strides = [1, 1]} : vector<32x64xf32> to vector<1x64xf32>
    %c4_355 = arith.constant 4 : index
    %c1728_356 = arith.constant 1728 : index
    %893 = vector.load %arg9[%c4_355, %c1728_356] : memref<8x2048xf32, #tpu.memory_space<vmem>>, vector<1x64xf32>
    tpu.vector_store %arg9[%c4_355, %c1728_356], %892 {strides = array<i32>} : memref<8x2048xf32, #tpu.memory_space<vmem>>, vector<1x64xf32>,
    %894 = vector.extract_strided_slice %837 {offsets = [28, 0], sizes = [1, 64], strides = [1, 1]} : vector<32x64xf32> to vector<1x64xf32>
    %c4_357 = arith.constant 4 : index
    %c1792_358 = arith.constant 1792 : index
    %895 = vector.load %arg9[%c4_357, %c1792_358] : memref<8x2048xf32, #tpu.memory_space<vmem>>, vector<1x64xf32>
    tpu.vector_store %arg9[%c4_357, %c1792_358], %894 {strides = array<i32>} : memref<8x2048xf32, #tpu.memory_space<vmem>>, vector<1x64xf32>,
    %896 = vector.extract_strided_slice %837 {offsets = [29, 0], sizes = [1, 64], strides = [1, 1]} : vector<32x64xf32> to vector<1x64xf32>
    %c4_359 = arith.constant 4 : index
    %c1856_360 = arith.constant 1856 : index
    %897 = vector.load %arg9[%c4_359, %c1856_360] : memref<8x2048xf32, #tpu.memory_space<vmem>>, vector<1x64xf32>
    tpu.vector_store %arg9[%c4_359, %c1856_360], %896 {strides = array<i32>} : memref<8x2048xf32, #tpu.memory_space<vmem>>, vector<1x64xf32>,
    %898 = vector.extract_strided_slice %837 {offsets = [30, 0], sizes = [1, 64], strides = [1, 1]} : vector<32x64xf32> to vector<1x64xf32>
    %c4_361 = arith.constant 4 : index
    %c1920_362 = arith.constant 1920 : index
    %899 = vector.load %arg9[%c4_361, %c1920_362] : memref<8x2048xf32, #tpu.memory_space<vmem>>, vector<1x64xf32>
    tpu.vector_store %arg9[%c4_361, %c1920_362], %898 {strides = array<i32>} : memref<8x2048xf32, #tpu.memory_space<vmem>>, vector<1x64xf32>,
    %900 = vector.extract_strided_slice %837 {offsets = [31, 0], sizes = [1, 64], strides = [1, 1]} : vector<32x64xf32> to vector<1x64xf32>
    %c4_363 = arith.constant 4 : index
    %c1984_364 = arith.constant 1984 : index
    %901 = vector.load %arg9[%c4_363, %c1984_364] : memref<8x2048xf32, #tpu.memory_space<vmem>>, vector<1x64xf32>
    tpu.vector_store %arg9[%c4_363, %c1984_364], %900 {strides = array<i32>} : memref<8x2048xf32, #tpu.memory_space<vmem>>, vector<1x64xf32>,
    %902 = vector.extract_strided_slice %8 {offsets = [5, 0], sizes = [1, 64], strides = [1, 1]} : vector<8x64xf32> to vector<1x64xf32>
    %903 = vector.extract_strided_slice %902 {offsets = [0, 0], sizes = [1, 63], strides = [1, 1]} : vector<1x64xf32> to vector<1x63xf32>
    %904 = vector.broadcast %9 : vector<4x1xf32> to vector<4x63xf32>
    %905 = vector.broadcast %903 : vector<1x63xf32> to vector<4x63xf32>
    %906 = arith.mulf %904, %905 : vector<4x63xf32>
    %907 = vector.extract_strided_slice %902 {offsets = [0, 1], sizes = [1, 63], strides = [1, 1]} : vector<1x64xf32> to vector<1x63xf32>
    %908 = vector.broadcast %10 : vector<4x1xf32> to vector<4x63xf32>
    %909 = vector.broadcast %907 : vector<1x63xf32> to vector<4x63xf32>
    %910 = arith.mulf %908, %909 : vector<4x63xf32>
    %911 = arith.addf %906, %910 : vector<4x63xf32>
    %912 = vector.broadcast %11 : vector<4x1xf32> to vector<4x63xf32>
    %913 = arith.addf %911, %912 : vector<4x63xf32>
    %cst_365 = arith.constant 0.00999999977 : f32
    %914 = vector.broadcast %cst_365 : f32 to vector<4x63xf32>
    %915 = arith.mulf %914, %913 : vector<4x63xf32>
    %916 = arith.maximumf %913, %915 : vector<4x63xf32>
    %917 = vector.extract_strided_slice %916 {offsets = [0, 0], sizes = [4, 62], strides = [1, 1]} : vector<4x63xf32> to vector<4x62xf32>
    %918 = vector.extract_strided_slice %916 {offsets = [0, 1], sizes = [4, 62], strides = [1, 1]} : vector<4x63xf32> to vector<4x62xf32>
    %cst_366 = arith.constant 0.000000e+00 : f32
    %919 = vector.broadcast %cst_366 : f32 to vector<8x62xf32>
    %920 = vector.extract_strided_slice %12 {offsets = [0, 0], sizes = [8, 1], strides = [1, 1]} : vector<8x4xf32> to vector<8x1xf32>
    %921 = vector.extract_strided_slice %917 {offsets = [0, 0], sizes = [1, 62], strides = [1, 1]} : vector<4x62xf32> to vector<1x62xf32>
    %922 = vector.broadcast %920 : vector<8x1xf32> to vector<8x62xf32>
    %923 = vector.broadcast %921 : vector<1x62xf32> to vector<8x62xf32>
    %924 = arith.mulf %922, %923 : vector<8x62xf32>
    %925 = arith.addf %919, %924 : vector<8x62xf32>
    %926 = vector.extract_strided_slice %13 {offsets = [0, 0], sizes = [8, 1], strides = [1, 1]} : vector<8x4xf32> to vector<8x1xf32>
    %927 = vector.extract_strided_slice %918 {offsets = [0, 0], sizes = [1, 62], strides = [1, 1]} : vector<4x62xf32> to vector<1x62xf32>
    %928 = vector.broadcast %926 : vector<8x1xf32> to vector<8x62xf32>
    %929 = vector.broadcast %927 : vector<1x62xf32> to vector<8x62xf32>
    %930 = arith.mulf %928, %929 : vector<8x62xf32>
    %931 = arith.addf %925, %930 : vector<8x62xf32>
    %932 = vector.extract_strided_slice %12 {offsets = [0, 1], sizes = [8, 1], strides = [1, 1]} : vector<8x4xf32> to vector<8x1xf32>
    %933 = vector.extract_strided_slice %917 {offsets = [1, 0], sizes = [1, 62], strides = [1, 1]} : vector<4x62xf32> to vector<1x62xf32>
    %934 = vector.broadcast %932 : vector<8x1xf32> to vector<8x62xf32>
    %935 = vector.broadcast %933 : vector<1x62xf32> to vector<8x62xf32>
    %936 = arith.mulf %934, %935 : vector<8x62xf32>
    %937 = arith.addf %931, %936 : vector<8x62xf32>
    %938 = vector.extract_strided_slice %13 {offsets = [0, 1], sizes = [8, 1], strides = [1, 1]} : vector<8x4xf32> to vector<8x1xf32>
    %939 = vector.extract_strided_slice %918 {offsets = [1, 0], sizes = [1, 62], strides = [1, 1]} : vector<4x62xf32> to vector<1x62xf32>
    %940 = vector.broadcast %938 : vector<8x1xf32> to vector<8x62xf32>
    %941 = vector.broadcast %939 : vector<1x62xf32> to vector<8x62xf32>
    %942 = arith.mulf %940, %941 : vector<8x62xf32>
    %943 = arith.addf %937, %942 : vector<8x62xf32>
    %944 = vector.extract_strided_slice %12 {offsets = [0, 2], sizes = [8, 1], strides = [1, 1]} : vector<8x4xf32> to vector<8x1xf32>
    %945 = vector.extract_strided_slice %917 {offsets = [2, 0], sizes = [1, 62], strides = [1, 1]} : vector<4x62xf32> to vector<1x62xf32>
    %946 = vector.broadcast %944 : vector<8x1xf32> to vector<8x62xf32>
    %947 = vector.broadcast %945 : vector<1x62xf32> to vector<8x62xf32>
    %948 = arith.mulf %946, %947 : vector<8x62xf32>
    %949 = arith.addf %943, %948 : vector<8x62xf32>
    %950 = vector.extract_strided_slice %13 {offsets = [0, 2], sizes = [8, 1], strides = [1, 1]} : vector<8x4xf32> to vector<8x1xf32>
    %951 = vector.extract_strided_slice %918 {offsets = [2, 0], sizes = [1, 62], strides = [1, 1]} : vector<4x62xf32> to vector<1x62xf32>
    %952 = vector.broadcast %950 : vector<8x1xf32> to vector<8x62xf32>
    %953 = vector.broadcast %951 : vector<1x62xf32> to vector<8x62xf32>
    %954 = arith.mulf %952, %953 : vector<8x62xf32>
    %955 = arith.addf %949, %954 : vector<8x62xf32>
    %956 = vector.extract_strided_slice %12 {offsets = [0, 3], sizes = [8, 1], strides = [1, 1]} : vector<8x4xf32> to vector<8x1xf32>
    %957 = vector.extract_strided_slice %917 {offsets = [3, 0], sizes = [1, 62], strides = [1, 1]} : vector<4x62xf32> to vector<1x62xf32>
    %958 = vector.broadcast %956 : vector<8x1xf32> to vector<8x62xf32>
    %959 = vector.broadcast %957 : vector<1x62xf32> to vector<8x62xf32>
    %960 = arith.mulf %958, %959 : vector<8x62xf32>
    %961 = arith.addf %955, %960 : vector<8x62xf32>
    %962 = vector.extract_strided_slice %13 {offsets = [0, 3], sizes = [8, 1], strides = [1, 1]} : vector<8x4xf32> to vector<8x1xf32>
    %963 = vector.extract_strided_slice %918 {offsets = [3, 0], sizes = [1, 62], strides = [1, 1]} : vector<4x62xf32> to vector<1x62xf32>
    %964 = vector.broadcast %962 : vector<8x1xf32> to vector<8x62xf32>
    %965 = vector.broadcast %963 : vector<1x62xf32> to vector<8x62xf32>
    %966 = arith.mulf %964, %965 : vector<8x62xf32>
    %967 = arith.addf %961, %966 : vector<8x62xf32>
    %968 = vector.broadcast %14 : vector<8x1xf32> to vector<8x62xf32>
    %969 = arith.addf %967, %968 : vector<8x62xf32>
    %cst_367 = arith.constant 0.00999999977 : f32
    %970 = vector.broadcast %cst_367 : f32 to vector<8x62xf32>
    %971 = arith.mulf %970, %969 : vector<8x62xf32>
    %972 = arith.maximumf %969, %971 : vector<8x62xf32>
    %973 = vector.extract_strided_slice %972 {offsets = [0, 0], sizes = [8, 61], strides = [1, 1]} : vector<8x62xf32> to vector<8x61xf32>
    %974 = vector.extract_strided_slice %972 {offsets = [0, 1], sizes = [8, 61], strides = [1, 1]} : vector<8x62xf32> to vector<8x61xf32>
    %975 = tpu.concatenate %973, %974 in 0 : vector<8x61xf32>, vector<8x61xf32> -> vector<16x61xf32>
    %cst_368 = arith.constant dense<0.000000e+00> : vector<16x61xf32>
    %976 = tpu.matmul %15, %975, %cst_368 {dimension_numbers = #tpu.dot_dimension_numbers<[1], [0], [0], [1], [0, 0, 1, 1], [], []>} : vector<16x16xf32>, vector<16x61xf32>, vector<16x61xf32> -> vector<16x61xf32>
    %977 = vector.broadcast %16 : vector<16x1xf32> to vector<16x61xf32>
    %978 = arith.addf %976, %977 : vector<16x61xf32>
    %cst_369 = arith.constant 0.00999999977 : f32
    %979 = vector.broadcast %cst_369 : f32 to vector<16x61xf32>
    %980 = arith.mulf %979, %978 : vector<16x61xf32>
    %981 = arith.maximumf %978, %980 : vector<16x61xf32>
    %982 = vector.extract_strided_slice %981 {offsets = [0, 0], sizes = [16, 60], strides = [1, 1]} : vector<16x61xf32> to vector<16x60xf32>
    %983 = vector.extract_strided_slice %981 {offsets = [0, 1], sizes = [16, 60], strides = [1, 1]} : vector<16x61xf32> to vector<16x60xf32>
    %984 = tpu.concatenate %982, %983 in 0 : vector<16x60xf32>, vector<16x60xf32> -> vector<32x60xf32>
    %cst_370 = arith.constant dense<0.000000e+00> : vector<32x60xf32>
    %985 = tpu.matmul %17, %984, %cst_370 {dimension_numbers = #tpu.dot_dimension_numbers<[1], [0], [0], [1], [0, 0, 1, 1], [], []>} : vector<32x32xf32>, vector<32x60xf32>, vector<32x60xf32> -> vector<32x60xf32>
    %986 = vector.broadcast %18 : vector<32x1xf32> to vector<32x60xf32>
    %987 = arith.addf %985, %986 : vector<32x60xf32>
    %cst_371 = arith.constant 0.00999999977 : f32
    %988 = vector.broadcast %cst_371 : f32 to vector<32x60xf32>
    %989 = arith.mulf %988, %987 : vector<32x60xf32>
    %990 = arith.maximumf %987, %989 : vector<32x60xf32>
    %cst_372 = arith.constant dense<0.000000e+00> : vector<32xf32>
    %991 = vector.multi_reduction <add>, %990, %cst_372 [1] : vector<32x60xf32> to vector<32xf32>
    %992 = vector.shape_cast %991 : vector<32xf32> to vector<32x1xf32>
    %cst_373 = arith.constant 6.000000e+01 : f32
    %993 = vector.broadcast %cst_373 : f32 to vector<32x1xf32>
    %994 = arith.divf %992, %993 : vector<32x1xf32>
    %995 = vector.broadcast %994 : vector<32x1xf32> to vector<32x60xf32>
    %996 = arith.subf %990, %995 : vector<32x60xf32>
    %997 = arith.mulf %996, %996 : vector<32x60xf32>
    %cst_374 = arith.constant dense<0.000000e+00> : vector<32xf32>
    %998 = vector.multi_reduction <add>, %997, %cst_374 [1] : vector<32x60xf32> to vector<32xf32>
    %999 = vector.shape_cast %998 : vector<32xf32> to vector<32x1xf32>
    %cst_375 = arith.constant 6.000000e+01 : f32
    %1000 = vector.broadcast %cst_375 : f32 to vector<32x1xf32>
    %1001 = arith.divf %999, %1000 : vector<32x1xf32>
    %1002 = vector.broadcast %994 : vector<32x1xf32> to vector<32x60xf32>
    %1003 = arith.subf %990, %1002 : vector<32x60xf32>
    %cst_376 = arith.constant 9.99999974E-6 : f32
    %1004 = vector.broadcast %cst_376 : f32 to vector<32x1xf32>
    %1005 = arith.addf %1001, %1004 : vector<32x1xf32>
    %1006 = math.rsqrt %1005 : vector<32x1xf32>
    %1007 = vector.broadcast %1006 : vector<32x1xf32> to vector<32x60xf32>
    %1008 = arith.mulf %1003, %1007 : vector<32x60xf32>
    %1009 = vector.broadcast %19 : vector<32x1xf32> to vector<32x60xf32>
    %1010 = arith.mulf %1008, %1009 : vector<32x60xf32>
    %1011 = vector.broadcast %20 : vector<32x1xf32> to vector<32x60xf32>
    %1012 = arith.addf %1010, %1011 : vector<32x60xf32>
    %1013 = tpu.concatenate %1012, %21 in 1 : vector<32x60xf32>, vector<32x4xf32> -> vector<32x64xf32>
    %1014 = vector.extract_strided_slice %1013 {offsets = [0, 0], sizes = [1, 64], strides = [1, 1]} : vector<32x64xf32> to vector<1x64xf32>
    %c5 = arith.constant 5 : index
    %c0_377 = arith.constant 0 : index
    %1015 = vector.load %arg9[%c5, %c0_377] : memref<8x2048xf32, #tpu.memory_space<vmem>>, vector<1x64xf32>
    tpu.vector_store %arg9[%c5, %c0_377], %1014 {strides = array<i32>} : memref<8x2048xf32, #tpu.memory_space<vmem>>, vector<1x64xf32>,
    %1016 = vector.extract_strided_slice %1013 {offsets = [1, 0], sizes = [1, 64], strides = [1, 1]} : vector<32x64xf32> to vector<1x64xf32>
    %c5_378 = arith.constant 5 : index
    %c64_379 = arith.constant 64 : index
    %1017 = vector.load %arg9[%c5_378, %c64_379] : memref<8x2048xf32, #tpu.memory_space<vmem>>, vector<1x64xf32>
    tpu.vector_store %arg9[%c5_378, %c64_379], %1016 {strides = array<i32>} : memref<8x2048xf32, #tpu.memory_space<vmem>>, vector<1x64xf32>,
    %1018 = vector.extract_strided_slice %1013 {offsets = [2, 0], sizes = [1, 64], strides = [1, 1]} : vector<32x64xf32> to vector<1x64xf32>
    %c5_380 = arith.constant 5 : index
    %c128_381 = arith.constant 128 : index
    %1019 = vector.load %arg9[%c5_380, %c128_381] : memref<8x2048xf32, #tpu.memory_space<vmem>>, vector<1x64xf32>
    tpu.vector_store %arg9[%c5_380, %c128_381], %1018 {strides = array<i32>} : memref<8x2048xf32, #tpu.memory_space<vmem>>, vector<1x64xf32>,
    %1020 = vector.extract_strided_slice %1013 {offsets = [3, 0], sizes = [1, 64], strides = [1, 1]} : vector<32x64xf32> to vector<1x64xf32>
    %c5_382 = arith.constant 5 : index
    %c192_383 = arith.constant 192 : index
    %1021 = vector.load %arg9[%c5_382, %c192_383] : memref<8x2048xf32, #tpu.memory_space<vmem>>, vector<1x64xf32>
    tpu.vector_store %arg9[%c5_382, %c192_383], %1020 {strides = array<i32>} : memref<8x2048xf32, #tpu.memory_space<vmem>>, vector<1x64xf32>,
    %1022 = vector.extract_strided_slice %1013 {offsets = [4, 0], sizes = [1, 64], strides = [1, 1]} : vector<32x64xf32> to vector<1x64xf32>
    %c5_384 = arith.constant 5 : index
    %c256_385 = arith.constant 256 : index
    %1023 = vector.load %arg9[%c5_384, %c256_385] : memref<8x2048xf32, #tpu.memory_space<vmem>>, vector<1x64xf32>
    tpu.vector_store %arg9[%c5_384, %c256_385], %1022 {strides = array<i32>} : memref<8x2048xf32, #tpu.memory_space<vmem>>, vector<1x64xf32>,
    %1024 = vector.extract_strided_slice %1013 {offsets = [5, 0], sizes = [1, 64], strides = [1, 1]} : vector<32x64xf32> to vector<1x64xf32>
    %c5_386 = arith.constant 5 : index
    %c320_387 = arith.constant 320 : index
    %1025 = vector.load %arg9[%c5_386, %c320_387] : memref<8x2048xf32, #tpu.memory_space<vmem>>, vector<1x64xf32>
    tpu.vector_store %arg9[%c5_386, %c320_387], %1024 {strides = array<i32>} : memref<8x2048xf32, #tpu.memory_space<vmem>>, vector<1x64xf32>,
    %1026 = vector.extract_strided_slice %1013 {offsets = [6, 0], sizes = [1, 64], strides = [1, 1]} : vector<32x64xf32> to vector<1x64xf32>
    %c5_388 = arith.constant 5 : index
    %c384_389 = arith.constant 384 : index
    %1027 = vector.load %arg9[%c5_388, %c384_389] : memref<8x2048xf32, #tpu.memory_space<vmem>>, vector<1x64xf32>
    tpu.vector_store %arg9[%c5_388, %c384_389], %1026 {strides = array<i32>} : memref<8x2048xf32, #tpu.memory_space<vmem>>, vector<1x64xf32>,
    %1028 = vector.extract_strided_slice %1013 {offsets = [7, 0], sizes = [1, 64], strides = [1, 1]} : vector<32x64xf32> to vector<1x64xf32>
    %c5_390 = arith.constant 5 : index
    %c448_391 = arith.constant 448 : index
    %1029 = vector.load %arg9[%c5_390, %c448_391] : memref<8x2048xf32, #tpu.memory_space<vmem>>, vector<1x64xf32>
    tpu.vector_store %arg9[%c5_390, %c448_391], %1028 {strides = array<i32>} : memref<8x2048xf32, #tpu.memory_space<vmem>>, vector<1x64xf32>,
    %1030 = vector.extract_strided_slice %1013 {offsets = [8, 0], sizes = [1, 64], strides = [1, 1]} : vector<32x64xf32> to vector<1x64xf32>
    %c5_392 = arith.constant 5 : index
    %c512_393 = arith.constant 512 : index
    %1031 = vector.load %arg9[%c5_392, %c512_393] : memref<8x2048xf32, #tpu.memory_space<vmem>>, vector<1x64xf32>
    tpu.vector_store %arg9[%c5_392, %c512_393], %1030 {strides = array<i32>} : memref<8x2048xf32, #tpu.memory_space<vmem>>, vector<1x64xf32>,
    %1032 = vector.extract_strided_slice %1013 {offsets = [9, 0], sizes = [1, 64], strides = [1, 1]} : vector<32x64xf32> to vector<1x64xf32>
    %c5_394 = arith.constant 5 : index
    %c576_395 = arith.constant 576 : index
    %1033 = vector.load %arg9[%c5_394, %c576_395] : memref<8x2048xf32, #tpu.memory_space<vmem>>, vector<1x64xf32>
    tpu.vector_store %arg9[%c5_394, %c576_395], %1032 {strides = array<i32>} : memref<8x2048xf32, #tpu.memory_space<vmem>>, vector<1x64xf32>,
    %1034 = vector.extract_strided_slice %1013 {offsets = [10, 0], sizes = [1, 64], strides = [1, 1]} : vector<32x64xf32> to vector<1x64xf32>
    %c5_396 = arith.constant 5 : index
    %c640_397 = arith.constant 640 : index
    %1035 = vector.load %arg9[%c5_396, %c640_397] : memref<8x2048xf32, #tpu.memory_space<vmem>>, vector<1x64xf32>
    tpu.vector_store %arg9[%c5_396, %c640_397], %1034 {strides = array<i32>} : memref<8x2048xf32, #tpu.memory_space<vmem>>, vector<1x64xf32>,
    %1036 = vector.extract_strided_slice %1013 {offsets = [11, 0], sizes = [1, 64], strides = [1, 1]} : vector<32x64xf32> to vector<1x64xf32>
    %c5_398 = arith.constant 5 : index
    %c704_399 = arith.constant 704 : index
    %1037 = vector.load %arg9[%c5_398, %c704_399] : memref<8x2048xf32, #tpu.memory_space<vmem>>, vector<1x64xf32>
    tpu.vector_store %arg9[%c5_398, %c704_399], %1036 {strides = array<i32>} : memref<8x2048xf32, #tpu.memory_space<vmem>>, vector<1x64xf32>,
    %1038 = vector.extract_strided_slice %1013 {offsets = [12, 0], sizes = [1, 64], strides = [1, 1]} : vector<32x64xf32> to vector<1x64xf32>
    %c5_400 = arith.constant 5 : index
    %c768_401 = arith.constant 768 : index
    %1039 = vector.load %arg9[%c5_400, %c768_401] : memref<8x2048xf32, #tpu.memory_space<vmem>>, vector<1x64xf32>
    tpu.vector_store %arg9[%c5_400, %c768_401], %1038 {strides = array<i32>} : memref<8x2048xf32, #tpu.memory_space<vmem>>, vector<1x64xf32>,
    %1040 = vector.extract_strided_slice %1013 {offsets = [13, 0], sizes = [1, 64], strides = [1, 1]} : vector<32x64xf32> to vector<1x64xf32>
    %c5_402 = arith.constant 5 : index
    %c832_403 = arith.constant 832 : index
    %1041 = vector.load %arg9[%c5_402, %c832_403] : memref<8x2048xf32, #tpu.memory_space<vmem>>, vector<1x64xf32>
    tpu.vector_store %arg9[%c5_402, %c832_403], %1040 {strides = array<i32>} : memref<8x2048xf32, #tpu.memory_space<vmem>>, vector<1x64xf32>,
    %1042 = vector.extract_strided_slice %1013 {offsets = [14, 0], sizes = [1, 64], strides = [1, 1]} : vector<32x64xf32> to vector<1x64xf32>
    %c5_404 = arith.constant 5 : index
    %c896_405 = arith.constant 896 : index
    %1043 = vector.load %arg9[%c5_404, %c896_405] : memref<8x2048xf32, #tpu.memory_space<vmem>>, vector<1x64xf32>
    tpu.vector_store %arg9[%c5_404, %c896_405], %1042 {strides = array<i32>} : memref<8x2048xf32, #tpu.memory_space<vmem>>, vector<1x64xf32>,
    %1044 = vector.extract_strided_slice %1013 {offsets = [15, 0], sizes = [1, 64], strides = [1, 1]} : vector<32x64xf32> to vector<1x64xf32>
    %c5_406 = arith.constant 5 : index
    %c960_407 = arith.constant 960 : index
    %1045 = vector.load %arg9[%c5_406, %c960_407] : memref<8x2048xf32, #tpu.memory_space<vmem>>, vector<1x64xf32>
    tpu.vector_store %arg9[%c5_406, %c960_407], %1044 {strides = array<i32>} : memref<8x2048xf32, #tpu.memory_space<vmem>>, vector<1x64xf32>,
    %1046 = vector.extract_strided_slice %1013 {offsets = [16, 0], sizes = [1, 64], strides = [1, 1]} : vector<32x64xf32> to vector<1x64xf32>
    %c5_408 = arith.constant 5 : index
    %c1024_409 = arith.constant 1024 : index
    %1047 = vector.load %arg9[%c5_408, %c1024_409] : memref<8x2048xf32, #tpu.memory_space<vmem>>, vector<1x64xf32>
    tpu.vector_store %arg9[%c5_408, %c1024_409], %1046 {strides = array<i32>} : memref<8x2048xf32, #tpu.memory_space<vmem>>, vector<1x64xf32>,
    %1048 = vector.extract_strided_slice %1013 {offsets = [17, 0], sizes = [1, 64], strides = [1, 1]} : vector<32x64xf32> to vector<1x64xf32>
    %c5_410 = arith.constant 5 : index
    %c1088_411 = arith.constant 1088 : index
    %1049 = vector.load %arg9[%c5_410, %c1088_411] : memref<8x2048xf32, #tpu.memory_space<vmem>>, vector<1x64xf32>
    tpu.vector_store %arg9[%c5_410, %c1088_411], %1048 {strides = array<i32>} : memref<8x2048xf32, #tpu.memory_space<vmem>>, vector<1x64xf32>,
    %1050 = vector.extract_strided_slice %1013 {offsets = [18, 0], sizes = [1, 64], strides = [1, 1]} : vector<32x64xf32> to vector<1x64xf32>
    %c5_412 = arith.constant 5 : index
    %c1152_413 = arith.constant 1152 : index
    %1051 = vector.load %arg9[%c5_412, %c1152_413] : memref<8x2048xf32, #tpu.memory_space<vmem>>, vector<1x64xf32>
    tpu.vector_store %arg9[%c5_412, %c1152_413], %1050 {strides = array<i32>} : memref<8x2048xf32, #tpu.memory_space<vmem>>, vector<1x64xf32>,
    %1052 = vector.extract_strided_slice %1013 {offsets = [19, 0], sizes = [1, 64], strides = [1, 1]} : vector<32x64xf32> to vector<1x64xf32>
    %c5_414 = arith.constant 5 : index
    %c1216_415 = arith.constant 1216 : index
    %1053 = vector.load %arg9[%c5_414, %c1216_415] : memref<8x2048xf32, #tpu.memory_space<vmem>>, vector<1x64xf32>
    tpu.vector_store %arg9[%c5_414, %c1216_415], %1052 {strides = array<i32>} : memref<8x2048xf32, #tpu.memory_space<vmem>>, vector<1x64xf32>,
    %1054 = vector.extract_strided_slice %1013 {offsets = [20, 0], sizes = [1, 64], strides = [1, 1]} : vector<32x64xf32> to vector<1x64xf32>
    %c5_416 = arith.constant 5 : index
    %c1280_417 = arith.constant 1280 : index
    %1055 = vector.load %arg9[%c5_416, %c1280_417] : memref<8x2048xf32, #tpu.memory_space<vmem>>, vector<1x64xf32>
    tpu.vector_store %arg9[%c5_416, %c1280_417], %1054 {strides = array<i32>} : memref<8x2048xf32, #tpu.memory_space<vmem>>, vector<1x64xf32>,
    %1056 = vector.extract_strided_slice %1013 {offsets = [21, 0], sizes = [1, 64], strides = [1, 1]} : vector<32x64xf32> to vector<1x64xf32>
    %c5_418 = arith.constant 5 : index
    %c1344_419 = arith.constant 1344 : index
    %1057 = vector.load %arg9[%c5_418, %c1344_419] : memref<8x2048xf32, #tpu.memory_space<vmem>>, vector<1x64xf32>
    tpu.vector_store %arg9[%c5_418, %c1344_419], %1056 {strides = array<i32>} : memref<8x2048xf32, #tpu.memory_space<vmem>>, vector<1x64xf32>,
    %1058 = vector.extract_strided_slice %1013 {offsets = [22, 0], sizes = [1, 64], strides = [1, 1]} : vector<32x64xf32> to vector<1x64xf32>
    %c5_420 = arith.constant 5 : index
    %c1408_421 = arith.constant 1408 : index
    %1059 = vector.load %arg9[%c5_420, %c1408_421] : memref<8x2048xf32, #tpu.memory_space<vmem>>, vector<1x64xf32>
    tpu.vector_store %arg9[%c5_420, %c1408_421], %1058 {strides = array<i32>} : memref<8x2048xf32, #tpu.memory_space<vmem>>, vector<1x64xf32>,
    %1060 = vector.extract_strided_slice %1013 {offsets = [23, 0], sizes = [1, 64], strides = [1, 1]} : vector<32x64xf32> to vector<1x64xf32>
    %c5_422 = arith.constant 5 : index
    %c1472_423 = arith.constant 1472 : index
    %1061 = vector.load %arg9[%c5_422, %c1472_423] : memref<8x2048xf32, #tpu.memory_space<vmem>>, vector<1x64xf32>
    tpu.vector_store %arg9[%c5_422, %c1472_423], %1060 {strides = array<i32>} : memref<8x2048xf32, #tpu.memory_space<vmem>>, vector<1x64xf32>,
    %1062 = vector.extract_strided_slice %1013 {offsets = [24, 0], sizes = [1, 64], strides = [1, 1]} : vector<32x64xf32> to vector<1x64xf32>
    %c5_424 = arith.constant 5 : index
    %c1536_425 = arith.constant 1536 : index
    %1063 = vector.load %arg9[%c5_424, %c1536_425] : memref<8x2048xf32, #tpu.memory_space<vmem>>, vector<1x64xf32>
    tpu.vector_store %arg9[%c5_424, %c1536_425], %1062 {strides = array<i32>} : memref<8x2048xf32, #tpu.memory_space<vmem>>, vector<1x64xf32>,
    %1064 = vector.extract_strided_slice %1013 {offsets = [25, 0], sizes = [1, 64], strides = [1, 1]} : vector<32x64xf32> to vector<1x64xf32>
    %c5_426 = arith.constant 5 : index
    %c1600_427 = arith.constant 1600 : index
    %1065 = vector.load %arg9[%c5_426, %c1600_427] : memref<8x2048xf32, #tpu.memory_space<vmem>>, vector<1x64xf32>
    tpu.vector_store %arg9[%c5_426, %c1600_427], %1064 {strides = array<i32>} : memref<8x2048xf32, #tpu.memory_space<vmem>>, vector<1x64xf32>,
    %1066 = vector.extract_strided_slice %1013 {offsets = [26, 0], sizes = [1, 64], strides = [1, 1]} : vector<32x64xf32> to vector<1x64xf32>
    %c5_428 = arith.constant 5 : index
    %c1664_429 = arith.constant 1664 : index
    %1067 = vector.load %arg9[%c5_428, %c1664_429] : memref<8x2048xf32, #tpu.memory_space<vmem>>, vector<1x64xf32>
    tpu.vector_store %arg9[%c5_428, %c1664_429], %1066 {strides = array<i32>} : memref<8x2048xf32, #tpu.memory_space<vmem>>, vector<1x64xf32>,
    %1068 = vector.extract_strided_slice %1013 {offsets = [27, 0], sizes = [1, 64], strides = [1, 1]} : vector<32x64xf32> to vector<1x64xf32>
    %c5_430 = arith.constant 5 : index
    %c1728_431 = arith.constant 1728 : index
    %1069 = vector.load %arg9[%c5_430, %c1728_431] : memref<8x2048xf32, #tpu.memory_space<vmem>>, vector<1x64xf32>
    tpu.vector_store %arg9[%c5_430, %c1728_431], %1068 {strides = array<i32>} : memref<8x2048xf32, #tpu.memory_space<vmem>>, vector<1x64xf32>,
    %1070 = vector.extract_strided_slice %1013 {offsets = [28, 0], sizes = [1, 64], strides = [1, 1]} : vector<32x64xf32> to vector<1x64xf32>
    %c5_432 = arith.constant 5 : index
    %c1792_433 = arith.constant 1792 : index
    %1071 = vector.load %arg9[%c5_432, %c1792_433] : memref<8x2048xf32, #tpu.memory_space<vmem>>, vector<1x64xf32>
    tpu.vector_store %arg9[%c5_432, %c1792_433], %1070 {strides = array<i32>} : memref<8x2048xf32, #tpu.memory_space<vmem>>, vector<1x64xf32>,
    %1072 = vector.extract_strided_slice %1013 {offsets = [29, 0], sizes = [1, 64], strides = [1, 1]} : vector<32x64xf32> to vector<1x64xf32>
    %c5_434 = arith.constant 5 : index
    %c1856_435 = arith.constant 1856 : index
    %1073 = vector.load %arg9[%c5_434, %c1856_435] : memref<8x2048xf32, #tpu.memory_space<vmem>>, vector<1x64xf32>
    tpu.vector_store %arg9[%c5_434, %c1856_435], %1072 {strides = array<i32>} : memref<8x2048xf32, #tpu.memory_space<vmem>>, vector<1x64xf32>,
    %1074 = vector.extract_strided_slice %1013 {offsets = [30, 0], sizes = [1, 64], strides = [1, 1]} : vector<32x64xf32> to vector<1x64xf32>
    %c5_436 = arith.constant 5 : index
    %c1920_437 = arith.constant 1920 : index
    %1075 = vector.load %arg9[%c5_436, %c1920_437] : memref<8x2048xf32, #tpu.memory_space<vmem>>, vector<1x64xf32>
    tpu.vector_store %arg9[%c5_436, %c1920_437], %1074 {strides = array<i32>} : memref<8x2048xf32, #tpu.memory_space<vmem>>, vector<1x64xf32>,
    %1076 = vector.extract_strided_slice %1013 {offsets = [31, 0], sizes = [1, 64], strides = [1, 1]} : vector<32x64xf32> to vector<1x64xf32>
    %c5_438 = arith.constant 5 : index
    %c1984_439 = arith.constant 1984 : index
    %1077 = vector.load %arg9[%c5_438, %c1984_439] : memref<8x2048xf32, #tpu.memory_space<vmem>>, vector<1x64xf32>
    tpu.vector_store %arg9[%c5_438, %c1984_439], %1076 {strides = array<i32>} : memref<8x2048xf32, #tpu.memory_space<vmem>>, vector<1x64xf32>,
    %1078 = vector.extract_strided_slice %8 {offsets = [6, 0], sizes = [1, 64], strides = [1, 1]} : vector<8x64xf32> to vector<1x64xf32>
    %1079 = vector.extract_strided_slice %1078 {offsets = [0, 0], sizes = [1, 63], strides = [1, 1]} : vector<1x64xf32> to vector<1x63xf32>
    %1080 = vector.broadcast %9 : vector<4x1xf32> to vector<4x63xf32>
    %1081 = vector.broadcast %1079 : vector<1x63xf32> to vector<4x63xf32>
    %1082 = arith.mulf %1080, %1081 : vector<4x63xf32>
    %1083 = vector.extract_strided_slice %1078 {offsets = [0, 1], sizes = [1, 63], strides = [1, 1]} : vector<1x64xf32> to vector<1x63xf32>
    %1084 = vector.broadcast %10 : vector<4x1xf32> to vector<4x63xf32>
    %1085 = vector.broadcast %1083 : vector<1x63xf32> to vector<4x63xf32>
    %1086 = arith.mulf %1084, %1085 : vector<4x63xf32>
    %1087 = arith.addf %1082, %1086 : vector<4x63xf32>
    %1088 = vector.broadcast %11 : vector<4x1xf32> to vector<4x63xf32>
    %1089 = arith.addf %1087, %1088 : vector<4x63xf32>
    %cst_440 = arith.constant 0.00999999977 : f32
    %1090 = vector.broadcast %cst_440 : f32 to vector<4x63xf32>
    %1091 = arith.mulf %1090, %1089 : vector<4x63xf32>
    %1092 = arith.maximumf %1089, %1091 : vector<4x63xf32>
    %1093 = vector.extract_strided_slice %1092 {offsets = [0, 0], sizes = [4, 62], strides = [1, 1]} : vector<4x63xf32> to vector<4x62xf32>
    %1094 = vector.extract_strided_slice %1092 {offsets = [0, 1], sizes = [4, 62], strides = [1, 1]} : vector<4x63xf32> to vector<4x62xf32>
    %cst_441 = arith.constant 0.000000e+00 : f32
    %1095 = vector.broadcast %cst_441 : f32 to vector<8x62xf32>
    %1096 = vector.extract_strided_slice %12 {offsets = [0, 0], sizes = [8, 1], strides = [1, 1]} : vector<8x4xf32> to vector<8x1xf32>
    %1097 = vector.extract_strided_slice %1093 {offsets = [0, 0], sizes = [1, 62], strides = [1, 1]} : vector<4x62xf32> to vector<1x62xf32>
    %1098 = vector.broadcast %1096 : vector<8x1xf32> to vector<8x62xf32>
    %1099 = vector.broadcast %1097 : vector<1x62xf32> to vector<8x62xf32>
    %1100 = arith.mulf %1098, %1099 : vector<8x62xf32>
    %1101 = arith.addf %1095, %1100 : vector<8x62xf32>
    %1102 = vector.extract_strided_slice %13 {offsets = [0, 0], sizes = [8, 1], strides = [1, 1]} : vector<8x4xf32> to vector<8x1xf32>
    %1103 = vector.extract_strided_slice %1094 {offsets = [0, 0], sizes = [1, 62], strides = [1, 1]} : vector<4x62xf32> to vector<1x62xf32>
    %1104 = vector.broadcast %1102 : vector<8x1xf32> to vector<8x62xf32>
    %1105 = vector.broadcast %1103 : vector<1x62xf32> to vector<8x62xf32>
    %1106 = arith.mulf %1104, %1105 : vector<8x62xf32>
    %1107 = arith.addf %1101, %1106 : vector<8x62xf32>
    %1108 = vector.extract_strided_slice %12 {offsets = [0, 1], sizes = [8, 1], strides = [1, 1]} : vector<8x4xf32> to vector<8x1xf32>
    %1109 = vector.extract_strided_slice %1093 {offsets = [1, 0], sizes = [1, 62], strides = [1, 1]} : vector<4x62xf32> to vector<1x62xf32>
    %1110 = vector.broadcast %1108 : vector<8x1xf32> to vector<8x62xf32>
    %1111 = vector.broadcast %1109 : vector<1x62xf32> to vector<8x62xf32>
    %1112 = arith.mulf %1110, %1111 : vector<8x62xf32>
    %1113 = arith.addf %1107, %1112 : vector<8x62xf32>
    %1114 = vector.extract_strided_slice %13 {offsets = [0, 1], sizes = [8, 1], strides = [1, 1]} : vector<8x4xf32> to vector<8x1xf32>
    %1115 = vector.extract_strided_slice %1094 {offsets = [1, 0], sizes = [1, 62], strides = [1, 1]} : vector<4x62xf32> to vector<1x62xf32>
    %1116 = vector.broadcast %1114 : vector<8x1xf32> to vector<8x62xf32>
    %1117 = vector.broadcast %1115 : vector<1x62xf32> to vector<8x62xf32>
    %1118 = arith.mulf %1116, %1117 : vector<8x62xf32>
    %1119 = arith.addf %1113, %1118 : vector<8x62xf32>
    %1120 = vector.extract_strided_slice %12 {offsets = [0, 2], sizes = [8, 1], strides = [1, 1]} : vector<8x4xf32> to vector<8x1xf32>
    %1121 = vector.extract_strided_slice %1093 {offsets = [2, 0], sizes = [1, 62], strides = [1, 1]} : vector<4x62xf32> to vector<1x62xf32>
    %1122 = vector.broadcast %1120 : vector<8x1xf32> to vector<8x62xf32>
    %1123 = vector.broadcast %1121 : vector<1x62xf32> to vector<8x62xf32>
    %1124 = arith.mulf %1122, %1123 : vector<8x62xf32>
    %1125 = arith.addf %1119, %1124 : vector<8x62xf32>
    %1126 = vector.extract_strided_slice %13 {offsets = [0, 2], sizes = [8, 1], strides = [1, 1]} : vector<8x4xf32> to vector<8x1xf32>
    %1127 = vector.extract_strided_slice %1094 {offsets = [2, 0], sizes = [1, 62], strides = [1, 1]} : vector<4x62xf32> to vector<1x62xf32>
    %1128 = vector.broadcast %1126 : vector<8x1xf32> to vector<8x62xf32>
    %1129 = vector.broadcast %1127 : vector<1x62xf32> to vector<8x62xf32>
    %1130 = arith.mulf %1128, %1129 : vector<8x62xf32>
    %1131 = arith.addf %1125, %1130 : vector<8x62xf32>
    %1132 = vector.extract_strided_slice %12 {offsets = [0, 3], sizes = [8, 1], strides = [1, 1]} : vector<8x4xf32> to vector<8x1xf32>
    %1133 = vector.extract_strided_slice %1093 {offsets = [3, 0], sizes = [1, 62], strides = [1, 1]} : vector<4x62xf32> to vector<1x62xf32>
    %1134 = vector.broadcast %1132 : vector<8x1xf32> to vector<8x62xf32>
    %1135 = vector.broadcast %1133 : vector<1x62xf32> to vector<8x62xf32>
    %1136 = arith.mulf %1134, %1135 : vector<8x62xf32>
    %1137 = arith.addf %1131, %1136 : vector<8x62xf32>
    %1138 = vector.extract_strided_slice %13 {offsets = [0, 3], sizes = [8, 1], strides = [1, 1]} : vector<8x4xf32> to vector<8x1xf32>
    %1139 = vector.extract_strided_slice %1094 {offsets = [3, 0], sizes = [1, 62], strides = [1, 1]} : vector<4x62xf32> to vector<1x62xf32>
    %1140 = vector.broadcast %1138 : vector<8x1xf32> to vector<8x62xf32>
    %1141 = vector.broadcast %1139 : vector<1x62xf32> to vector<8x62xf32>
    %1142 = arith.mulf %1140, %1141 : vector<8x62xf32>
    %1143 = arith.addf %1137, %1142 : vector<8x62xf32>
    %1144 = vector.broadcast %14 : vector<8x1xf32> to vector<8x62xf32>
    %1145 = arith.addf %1143, %1144 : vector<8x62xf32>
    %cst_442 = arith.constant 0.00999999977 : f32
    %1146 = vector.broadcast %cst_442 : f32 to vector<8x62xf32>
    %1147 = arith.mulf %1146, %1145 : vector<8x62xf32>
    %1148 = arith.maximumf %1145, %1147 : vector<8x62xf32>
    %1149 = vector.extract_strided_slice %1148 {offsets = [0, 0], sizes = [8, 61], strides = [1, 1]} : vector<8x62xf32> to vector<8x61xf32>
    %1150 = vector.extract_strided_slice %1148 {offsets = [0, 1], sizes = [8, 61], strides = [1, 1]} : vector<8x62xf32> to vector<8x61xf32>
    %1151 = tpu.concatenate %1149, %1150 in 0 : vector<8x61xf32>, vector<8x61xf32> -> vector<16x61xf32>
    %cst_443 = arith.constant dense<0.000000e+00> : vector<16x61xf32>
    %1152 = tpu.matmul %15, %1151, %cst_443 {dimension_numbers = #tpu.dot_dimension_numbers<[1], [0], [0], [1], [0, 0, 1, 1], [], []>} : vector<16x16xf32>, vector<16x61xf32>, vector<16x61xf32> -> vector<16x61xf32>
    %1153 = vector.broadcast %16 : vector<16x1xf32> to vector<16x61xf32>
    %1154 = arith.addf %1152, %1153 : vector<16x61xf32>
    %cst_444 = arith.constant 0.00999999977 : f32
    %1155 = vector.broadcast %cst_444 : f32 to vector<16x61xf32>
    %1156 = arith.mulf %1155, %1154 : vector<16x61xf32>
    %1157 = arith.maximumf %1154, %1156 : vector<16x61xf32>
    %1158 = vector.extract_strided_slice %1157 {offsets = [0, 0], sizes = [16, 60], strides = [1, 1]} : vector<16x61xf32> to vector<16x60xf32>
    %1159 = vector.extract_strided_slice %1157 {offsets = [0, 1], sizes = [16, 60], strides = [1, 1]} : vector<16x61xf32> to vector<16x60xf32>
    %1160 = tpu.concatenate %1158, %1159 in 0 : vector<16x60xf32>, vector<16x60xf32> -> vector<32x60xf32>
    %cst_445 = arith.constant dense<0.000000e+00> : vector<32x60xf32>
    %1161 = tpu.matmul %17, %1160, %cst_445 {dimension_numbers = #tpu.dot_dimension_numbers<[1], [0], [0], [1], [0, 0, 1, 1], [], []>} : vector<32x32xf32>, vector<32x60xf32>, vector<32x60xf32> -> vector<32x60xf32>
    %1162 = vector.broadcast %18 : vector<32x1xf32> to vector<32x60xf32>
    %1163 = arith.addf %1161, %1162 : vector<32x60xf32>
    %cst_446 = arith.constant 0.00999999977 : f32
    %1164 = vector.broadcast %cst_446 : f32 to vector<32x60xf32>
    %1165 = arith.mulf %1164, %1163 : vector<32x60xf32>
    %1166 = arith.maximumf %1163, %1165 : vector<32x60xf32>
    %cst_447 = arith.constant dense<0.000000e+00> : vector<32xf32>
    %1167 = vector.multi_reduction <add>, %1166, %cst_447 [1] : vector<32x60xf32> to vector<32xf32>
    %1168 = vector.shape_cast %1167 : vector<32xf32> to vector<32x1xf32>
    %cst_448 = arith.constant 6.000000e+01 : f32
    %1169 = vector.broadcast %cst_448 : f32 to vector<32x1xf32>
    %1170 = arith.divf %1168, %1169 : vector<32x1xf32>
    %1171 = vector.broadcast %1170 : vector<32x1xf32> to vector<32x60xf32>
    %1172 = arith.subf %1166, %1171 : vector<32x60xf32>
    %1173 = arith.mulf %1172, %1172 : vector<32x60xf32>
    %cst_449 = arith.constant dense<0.000000e+00> : vector<32xf32>
    %1174 = vector.multi_reduction <add>, %1173, %cst_449 [1] : vector<32x60xf32> to vector<32xf32>
    %1175 = vector.shape_cast %1174 : vector<32xf32> to vector<32x1xf32>
    %cst_450 = arith.constant 6.000000e+01 : f32
    %1176 = vector.broadcast %cst_450 : f32 to vector<32x1xf32>
    %1177 = arith.divf %1175, %1176 : vector<32x1xf32>
    %1178 = vector.broadcast %1170 : vector<32x1xf32> to vector<32x60xf32>
    %1179 = arith.subf %1166, %1178 : vector<32x60xf32>
    %cst_451 = arith.constant 9.99999974E-6 : f32
    %1180 = vector.broadcast %cst_451 : f32 to vector<32x1xf32>
    %1181 = arith.addf %1177, %1180 : vector<32x1xf32>
    %1182 = math.rsqrt %1181 : vector<32x1xf32>
    %1183 = vector.broadcast %1182 : vector<32x1xf32> to vector<32x60xf32>
    %1184 = arith.mulf %1179, %1183 : vector<32x60xf32>
    %1185 = vector.broadcast %19 : vector<32x1xf32> to vector<32x60xf32>
    %1186 = arith.mulf %1184, %1185 : vector<32x60xf32>
    %1187 = vector.broadcast %20 : vector<32x1xf32> to vector<32x60xf32>
    %1188 = arith.addf %1186, %1187 : vector<32x60xf32>
    %1189 = tpu.concatenate %1188, %21 in 1 : vector<32x60xf32>, vector<32x4xf32> -> vector<32x64xf32>
    %1190 = vector.extract_strided_slice %1189 {offsets = [0, 0], sizes = [1, 64], strides = [1, 1]} : vector<32x64xf32> to vector<1x64xf32>
    %c6 = arith.constant 6 : index
    %c0_452 = arith.constant 0 : index
    %1191 = vector.load %arg9[%c6, %c0_452] : memref<8x2048xf32, #tpu.memory_space<vmem>>, vector<1x64xf32>
    tpu.vector_store %arg9[%c6, %c0_452], %1190 {strides = array<i32>} : memref<8x2048xf32, #tpu.memory_space<vmem>>, vector<1x64xf32>,
    %1192 = vector.extract_strided_slice %1189 {offsets = [1, 0], sizes = [1, 64], strides = [1, 1]} : vector<32x64xf32> to vector<1x64xf32>
    %c6_453 = arith.constant 6 : index
    %c64_454 = arith.constant 64 : index
    %1193 = vector.load %arg9[%c6_453, %c64_454] : memref<8x2048xf32, #tpu.memory_space<vmem>>, vector<1x64xf32>
    tpu.vector_store %arg9[%c6_453, %c64_454], %1192 {strides = array<i32>} : memref<8x2048xf32, #tpu.memory_space<vmem>>, vector<1x64xf32>,
    %1194 = vector.extract_strided_slice %1189 {offsets = [2, 0], sizes = [1, 64], strides = [1, 1]} : vector<32x64xf32> to vector<1x64xf32>
    %c6_455 = arith.constant 6 : index
    %c128_456 = arith.constant 128 : index
    %1195 = vector.load %arg9[%c6_455, %c128_456] : memref<8x2048xf32, #tpu.memory_space<vmem>>, vector<1x64xf32>
    tpu.vector_store %arg9[%c6_455, %c128_456], %1194 {strides = array<i32>} : memref<8x2048xf32, #tpu.memory_space<vmem>>, vector<1x64xf32>,
    %1196 = vector.extract_strided_slice %1189 {offsets = [3, 0], sizes = [1, 64], strides = [1, 1]} : vector<32x64xf32> to vector<1x64xf32>
    %c6_457 = arith.constant 6 : index
    %c192_458 = arith.constant 192 : index
    %1197 = vector.load %arg9[%c6_457, %c192_458] : memref<8x2048xf32, #tpu.memory_space<vmem>>, vector<1x64xf32>
    tpu.vector_store %arg9[%c6_457, %c192_458], %1196 {strides = array<i32>} : memref<8x2048xf32, #tpu.memory_space<vmem>>, vector<1x64xf32>,
    %1198 = vector.extract_strided_slice %1189 {offsets = [4, 0], sizes = [1, 64], strides = [1, 1]} : vector<32x64xf32> to vector<1x64xf32>
    %c6_459 = arith.constant 6 : index
    %c256_460 = arith.constant 256 : index
    %1199 = vector.load %arg9[%c6_459, %c256_460] : memref<8x2048xf32, #tpu.memory_space<vmem>>, vector<1x64xf32>
    tpu.vector_store %arg9[%c6_459, %c256_460], %1198 {strides = array<i32>} : memref<8x2048xf32, #tpu.memory_space<vmem>>, vector<1x64xf32>,
    %1200 = vector.extract_strided_slice %1189 {offsets = [5, 0], sizes = [1, 64], strides = [1, 1]} : vector<32x64xf32> to vector<1x64xf32>
    %c6_461 = arith.constant 6 : index
    %c320_462 = arith.constant 320 : index
    %1201 = vector.load %arg9[%c6_461, %c320_462] : memref<8x2048xf32, #tpu.memory_space<vmem>>, vector<1x64xf32>
    tpu.vector_store %arg9[%c6_461, %c320_462], %1200 {strides = array<i32>} : memref<8x2048xf32, #tpu.memory_space<vmem>>, vector<1x64xf32>,
    %1202 = vector.extract_strided_slice %1189 {offsets = [6, 0], sizes = [1, 64], strides = [1, 1]} : vector<32x64xf32> to vector<1x64xf32>
    %c6_463 = arith.constant 6 : index
    %c384_464 = arith.constant 384 : index
    %1203 = vector.load %arg9[%c6_463, %c384_464] : memref<8x2048xf32, #tpu.memory_space<vmem>>, vector<1x64xf32>
    tpu.vector_store %arg9[%c6_463, %c384_464], %1202 {strides = array<i32>} : memref<8x2048xf32, #tpu.memory_space<vmem>>, vector<1x64xf32>,
    %1204 = vector.extract_strided_slice %1189 {offsets = [7, 0], sizes = [1, 64], strides = [1, 1]} : vector<32x64xf32> to vector<1x64xf32>
    %c6_465 = arith.constant 6 : index
    %c448_466 = arith.constant 448 : index
    %1205 = vector.load %arg9[%c6_465, %c448_466] : memref<8x2048xf32, #tpu.memory_space<vmem>>, vector<1x64xf32>
    tpu.vector_store %arg9[%c6_465, %c448_466], %1204 {strides = array<i32>} : memref<8x2048xf32, #tpu.memory_space<vmem>>, vector<1x64xf32>,
    %1206 = vector.extract_strided_slice %1189 {offsets = [8, 0], sizes = [1, 64], strides = [1, 1]} : vector<32x64xf32> to vector<1x64xf32>
    %c6_467 = arith.constant 6 : index
    %c512_468 = arith.constant 512 : index
    %1207 = vector.load %arg9[%c6_467, %c512_468] : memref<8x2048xf32, #tpu.memory_space<vmem>>, vector<1x64xf32>
    tpu.vector_store %arg9[%c6_467, %c512_468], %1206 {strides = array<i32>} : memref<8x2048xf32, #tpu.memory_space<vmem>>, vector<1x64xf32>,
    %1208 = vector.extract_strided_slice %1189 {offsets = [9, 0], sizes = [1, 64], strides = [1, 1]} : vector<32x64xf32> to vector<1x64xf32>
    %c6_469 = arith.constant 6 : index
    %c576_470 = arith.constant 576 : index
    %1209 = vector.load %arg9[%c6_469, %c576_470] : memref<8x2048xf32, #tpu.memory_space<vmem>>, vector<1x64xf32>
    tpu.vector_store %arg9[%c6_469, %c576_470], %1208 {strides = array<i32>} : memref<8x2048xf32, #tpu.memory_space<vmem>>, vector<1x64xf32>,
    %1210 = vector.extract_strided_slice %1189 {offsets = [10, 0], sizes = [1, 64], strides = [1, 1]} : vector<32x64xf32> to vector<1x64xf32>
    %c6_471 = arith.constant 6 : index
    %c640_472 = arith.constant 640 : index
    %1211 = vector.load %arg9[%c6_471, %c640_472] : memref<8x2048xf32, #tpu.memory_space<vmem>>, vector<1x64xf32>
    tpu.vector_store %arg9[%c6_471, %c640_472], %1210 {strides = array<i32>} : memref<8x2048xf32, #tpu.memory_space<vmem>>, vector<1x64xf32>,
    %1212 = vector.extract_strided_slice %1189 {offsets = [11, 0], sizes = [1, 64], strides = [1, 1]} : vector<32x64xf32> to vector<1x64xf32>
    %c6_473 = arith.constant 6 : index
    %c704_474 = arith.constant 704 : index
    %1213 = vector.load %arg9[%c6_473, %c704_474] : memref<8x2048xf32, #tpu.memory_space<vmem>>, vector<1x64xf32>
    tpu.vector_store %arg9[%c6_473, %c704_474], %1212 {strides = array<i32>} : memref<8x2048xf32, #tpu.memory_space<vmem>>, vector<1x64xf32>,
    %1214 = vector.extract_strided_slice %1189 {offsets = [12, 0], sizes = [1, 64], strides = [1, 1]} : vector<32x64xf32> to vector<1x64xf32>
    %c6_475 = arith.constant 6 : index
    %c768_476 = arith.constant 768 : index
    %1215 = vector.load %arg9[%c6_475, %c768_476] : memref<8x2048xf32, #tpu.memory_space<vmem>>, vector<1x64xf32>
    tpu.vector_store %arg9[%c6_475, %c768_476], %1214 {strides = array<i32>} : memref<8x2048xf32, #tpu.memory_space<vmem>>, vector<1x64xf32>,
    %1216 = vector.extract_strided_slice %1189 {offsets = [13, 0], sizes = [1, 64], strides = [1, 1]} : vector<32x64xf32> to vector<1x64xf32>
    %c6_477 = arith.constant 6 : index
    %c832_478 = arith.constant 832 : index
    %1217 = vector.load %arg9[%c6_477, %c832_478] : memref<8x2048xf32, #tpu.memory_space<vmem>>, vector<1x64xf32>
    tpu.vector_store %arg9[%c6_477, %c832_478], %1216 {strides = array<i32>} : memref<8x2048xf32, #tpu.memory_space<vmem>>, vector<1x64xf32>,
    %1218 = vector.extract_strided_slice %1189 {offsets = [14, 0], sizes = [1, 64], strides = [1, 1]} : vector<32x64xf32> to vector<1x64xf32>
    %c6_479 = arith.constant 6 : index
    %c896_480 = arith.constant 896 : index
    %1219 = vector.load %arg9[%c6_479, %c896_480] : memref<8x2048xf32, #tpu.memory_space<vmem>>, vector<1x64xf32>
    tpu.vector_store %arg9[%c6_479, %c896_480], %1218 {strides = array<i32>} : memref<8x2048xf32, #tpu.memory_space<vmem>>, vector<1x64xf32>,
    %1220 = vector.extract_strided_slice %1189 {offsets = [15, 0], sizes = [1, 64], strides = [1, 1]} : vector<32x64xf32> to vector<1x64xf32>
    %c6_481 = arith.constant 6 : index
    %c960_482 = arith.constant 960 : index
    %1221 = vector.load %arg9[%c6_481, %c960_482] : memref<8x2048xf32, #tpu.memory_space<vmem>>, vector<1x64xf32>
    tpu.vector_store %arg9[%c6_481, %c960_482], %1220 {strides = array<i32>} : memref<8x2048xf32, #tpu.memory_space<vmem>>, vector<1x64xf32>,
    %1222 = vector.extract_strided_slice %1189 {offsets = [16, 0], sizes = [1, 64], strides = [1, 1]} : vector<32x64xf32> to vector<1x64xf32>
    %c6_483 = arith.constant 6 : index
    %c1024_484 = arith.constant 1024 : index
    %1223 = vector.load %arg9[%c6_483, %c1024_484] : memref<8x2048xf32, #tpu.memory_space<vmem>>, vector<1x64xf32>
    tpu.vector_store %arg9[%c6_483, %c1024_484], %1222 {strides = array<i32>} : memref<8x2048xf32, #tpu.memory_space<vmem>>, vector<1x64xf32>,
    %1224 = vector.extract_strided_slice %1189 {offsets = [17, 0], sizes = [1, 64], strides = [1, 1]} : vector<32x64xf32> to vector<1x64xf32>
    %c6_485 = arith.constant 6 : index
    %c1088_486 = arith.constant 1088 : index
    %1225 = vector.load %arg9[%c6_485, %c1088_486] : memref<8x2048xf32, #tpu.memory_space<vmem>>, vector<1x64xf32>
    tpu.vector_store %arg9[%c6_485, %c1088_486], %1224 {strides = array<i32>} : memref<8x2048xf32, #tpu.memory_space<vmem>>, vector<1x64xf32>,
    %1226 = vector.extract_strided_slice %1189 {offsets = [18, 0], sizes = [1, 64], strides = [1, 1]} : vector<32x64xf32> to vector<1x64xf32>
    %c6_487 = arith.constant 6 : index
    %c1152_488 = arith.constant 1152 : index
    %1227 = vector.load %arg9[%c6_487, %c1152_488] : memref<8x2048xf32, #tpu.memory_space<vmem>>, vector<1x64xf32>
    tpu.vector_store %arg9[%c6_487, %c1152_488], %1226 {strides = array<i32>} : memref<8x2048xf32, #tpu.memory_space<vmem>>, vector<1x64xf32>,
    %1228 = vector.extract_strided_slice %1189 {offsets = [19, 0], sizes = [1, 64], strides = [1, 1]} : vector<32x64xf32> to vector<1x64xf32>
    %c6_489 = arith.constant 6 : index
    %c1216_490 = arith.constant 1216 : index
    %1229 = vector.load %arg9[%c6_489, %c1216_490] : memref<8x2048xf32, #tpu.memory_space<vmem>>, vector<1x64xf32>
    tpu.vector_store %arg9[%c6_489, %c1216_490], %1228 {strides = array<i32>} : memref<8x2048xf32, #tpu.memory_space<vmem>>, vector<1x64xf32>,
    %1230 = vector.extract_strided_slice %1189 {offsets = [20, 0], sizes = [1, 64], strides = [1, 1]} : vector<32x64xf32> to vector<1x64xf32>
    %c6_491 = arith.constant 6 : index
    %c1280_492 = arith.constant 1280 : index
    %1231 = vector.load %arg9[%c6_491, %c1280_492] : memref<8x2048xf32, #tpu.memory_space<vmem>>, vector<1x64xf32>
    tpu.vector_store %arg9[%c6_491, %c1280_492], %1230 {strides = array<i32>} : memref<8x2048xf32, #tpu.memory_space<vmem>>, vector<1x64xf32>,
    %1232 = vector.extract_strided_slice %1189 {offsets = [21, 0], sizes = [1, 64], strides = [1, 1]} : vector<32x64xf32> to vector<1x64xf32>
    %c6_493 = arith.constant 6 : index
    %c1344_494 = arith.constant 1344 : index
    %1233 = vector.load %arg9[%c6_493, %c1344_494] : memref<8x2048xf32, #tpu.memory_space<vmem>>, vector<1x64xf32>
    tpu.vector_store %arg9[%c6_493, %c1344_494], %1232 {strides = array<i32>} : memref<8x2048xf32, #tpu.memory_space<vmem>>, vector<1x64xf32>,
    %1234 = vector.extract_strided_slice %1189 {offsets = [22, 0], sizes = [1, 64], strides = [1, 1]} : vector<32x64xf32> to vector<1x64xf32>
    %c6_495 = arith.constant 6 : index
    %c1408_496 = arith.constant 1408 : index
    %1235 = vector.load %arg9[%c6_495, %c1408_496] : memref<8x2048xf32, #tpu.memory_space<vmem>>, vector<1x64xf32>
    tpu.vector_store %arg9[%c6_495, %c1408_496], %1234 {strides = array<i32>} : memref<8x2048xf32, #tpu.memory_space<vmem>>, vector<1x64xf32>,
    %1236 = vector.extract_strided_slice %1189 {offsets = [23, 0], sizes = [1, 64], strides = [1, 1]} : vector<32x64xf32> to vector<1x64xf32>
    %c6_497 = arith.constant 6 : index
    %c1472_498 = arith.constant 1472 : index
    %1237 = vector.load %arg9[%c6_497, %c1472_498] : memref<8x2048xf32, #tpu.memory_space<vmem>>, vector<1x64xf32>
    tpu.vector_store %arg9[%c6_497, %c1472_498], %1236 {strides = array<i32>} : memref<8x2048xf32, #tpu.memory_space<vmem>>, vector<1x64xf32>,
    %1238 = vector.extract_strided_slice %1189 {offsets = [24, 0], sizes = [1, 64], strides = [1, 1]} : vector<32x64xf32> to vector<1x64xf32>
    %c6_499 = arith.constant 6 : index
    %c1536_500 = arith.constant 1536 : index
    %1239 = vector.load %arg9[%c6_499, %c1536_500] : memref<8x2048xf32, #tpu.memory_space<vmem>>, vector<1x64xf32>
    tpu.vector_store %arg9[%c6_499, %c1536_500], %1238 {strides = array<i32>} : memref<8x2048xf32, #tpu.memory_space<vmem>>, vector<1x64xf32>,
    %1240 = vector.extract_strided_slice %1189 {offsets = [25, 0], sizes = [1, 64], strides = [1, 1]} : vector<32x64xf32> to vector<1x64xf32>
    %c6_501 = arith.constant 6 : index
    %c1600_502 = arith.constant 1600 : index
    %1241 = vector.load %arg9[%c6_501, %c1600_502] : memref<8x2048xf32, #tpu.memory_space<vmem>>, vector<1x64xf32>
    tpu.vector_store %arg9[%c6_501, %c1600_502], %1240 {strides = array<i32>} : memref<8x2048xf32, #tpu.memory_space<vmem>>, vector<1x64xf32>,
    %1242 = vector.extract_strided_slice %1189 {offsets = [26, 0], sizes = [1, 64], strides = [1, 1]} : vector<32x64xf32> to vector<1x64xf32>
    %c6_503 = arith.constant 6 : index
    %c1664_504 = arith.constant 1664 : index
    %1243 = vector.load %arg9[%c6_503, %c1664_504] : memref<8x2048xf32, #tpu.memory_space<vmem>>, vector<1x64xf32>
    tpu.vector_store %arg9[%c6_503, %c1664_504], %1242 {strides = array<i32>} : memref<8x2048xf32, #tpu.memory_space<vmem>>, vector<1x64xf32>,
    %1244 = vector.extract_strided_slice %1189 {offsets = [27, 0], sizes = [1, 64], strides = [1, 1]} : vector<32x64xf32> to vector<1x64xf32>
    %c6_505 = arith.constant 6 : index
    %c1728_506 = arith.constant 1728 : index
    %1245 = vector.load %arg9[%c6_505, %c1728_506] : memref<8x2048xf32, #tpu.memory_space<vmem>>, vector<1x64xf32>
    tpu.vector_store %arg9[%c6_505, %c1728_506], %1244 {strides = array<i32>} : memref<8x2048xf32, #tpu.memory_space<vmem>>, vector<1x64xf32>,
    %1246 = vector.extract_strided_slice %1189 {offsets = [28, 0], sizes = [1, 64], strides = [1, 1]} : vector<32x64xf32> to vector<1x64xf32>
    %c6_507 = arith.constant 6 : index
    %c1792_508 = arith.constant 1792 : index
    %1247 = vector.load %arg9[%c6_507, %c1792_508] : memref<8x2048xf32, #tpu.memory_space<vmem>>, vector<1x64xf32>
    tpu.vector_store %arg9[%c6_507, %c1792_508], %1246 {strides = array<i32>} : memref<8x2048xf32, #tpu.memory_space<vmem>>, vector<1x64xf32>,
    %1248 = vector.extract_strided_slice %1189 {offsets = [29, 0], sizes = [1, 64], strides = [1, 1]} : vector<32x64xf32> to vector<1x64xf32>
    %c6_509 = arith.constant 6 : index
    %c1856_510 = arith.constant 1856 : index
    %1249 = vector.load %arg9[%c6_509, %c1856_510] : memref<8x2048xf32, #tpu.memory_space<vmem>>, vector<1x64xf32>
    tpu.vector_store %arg9[%c6_509, %c1856_510], %1248 {strides = array<i32>} : memref<8x2048xf32, #tpu.memory_space<vmem>>, vector<1x64xf32>,
    %1250 = vector.extract_strided_slice %1189 {offsets = [30, 0], sizes = [1, 64], strides = [1, 1]} : vector<32x64xf32> to vector<1x64xf32>
    %c6_511 = arith.constant 6 : index
    %c1920_512 = arith.constant 1920 : index
    %1251 = vector.load %arg9[%c6_511, %c1920_512] : memref<8x2048xf32, #tpu.memory_space<vmem>>, vector<1x64xf32>
    tpu.vector_store %arg9[%c6_511, %c1920_512], %1250 {strides = array<i32>} : memref<8x2048xf32, #tpu.memory_space<vmem>>, vector<1x64xf32>,
    %1252 = vector.extract_strided_slice %1189 {offsets = [31, 0], sizes = [1, 64], strides = [1, 1]} : vector<32x64xf32> to vector<1x64xf32>
    %c6_513 = arith.constant 6 : index
    %c1984_514 = arith.constant 1984 : index
    %1253 = vector.load %arg9[%c6_513, %c1984_514] : memref<8x2048xf32, #tpu.memory_space<vmem>>, vector<1x64xf32>
    tpu.vector_store %arg9[%c6_513, %c1984_514], %1252 {strides = array<i32>} : memref<8x2048xf32, #tpu.memory_space<vmem>>, vector<1x64xf32>,
    %1254 = vector.extract_strided_slice %8 {offsets = [7, 0], sizes = [1, 64], strides = [1, 1]} : vector<8x64xf32> to vector<1x64xf32>
    %1255 = vector.extract_strided_slice %1254 {offsets = [0, 0], sizes = [1, 63], strides = [1, 1]} : vector<1x64xf32> to vector<1x63xf32>
    %1256 = vector.broadcast %9 : vector<4x1xf32> to vector<4x63xf32>
    %1257 = vector.broadcast %1255 : vector<1x63xf32> to vector<4x63xf32>
    %1258 = arith.mulf %1256, %1257 : vector<4x63xf32>
    %1259 = vector.extract_strided_slice %1254 {offsets = [0, 1], sizes = [1, 63], strides = [1, 1]} : vector<1x64xf32> to vector<1x63xf32>
    %1260 = vector.broadcast %10 : vector<4x1xf32> to vector<4x63xf32>
    %1261 = vector.broadcast %1259 : vector<1x63xf32> to vector<4x63xf32>
    %1262 = arith.mulf %1260, %1261 : vector<4x63xf32>
    %1263 = arith.addf %1258, %1262 : vector<4x63xf32>
    %1264 = vector.broadcast %11 : vector<4x1xf32> to vector<4x63xf32>
    %1265 = arith.addf %1263, %1264 : vector<4x63xf32>
    %cst_515 = arith.constant 0.00999999977 : f32
    %1266 = vector.broadcast %cst_515 : f32 to vector<4x63xf32>
    %1267 = arith.mulf %1266, %1265 : vector<4x63xf32>
    %1268 = arith.maximumf %1265, %1267 : vector<4x63xf32>
    %1269 = vector.extract_strided_slice %1268 {offsets = [0, 0], sizes = [4, 62], strides = [1, 1]} : vector<4x63xf32> to vector<4x62xf32>
    %1270 = vector.extract_strided_slice %1268 {offsets = [0, 1], sizes = [4, 62], strides = [1, 1]} : vector<4x63xf32> to vector<4x62xf32>
    %cst_516 = arith.constant 0.000000e+00 : f32
    %1271 = vector.broadcast %cst_516 : f32 to vector<8x62xf32>
    %1272 = vector.extract_strided_slice %12 {offsets = [0, 0], sizes = [8, 1], strides = [1, 1]} : vector<8x4xf32> to vector<8x1xf32>
    %1273 = vector.extract_strided_slice %1269 {offsets = [0, 0], sizes = [1, 62], strides = [1, 1]} : vector<4x62xf32> to vector<1x62xf32>
    %1274 = vector.broadcast %1272 : vector<8x1xf32> to vector<8x62xf32>
    %1275 = vector.broadcast %1273 : vector<1x62xf32> to vector<8x62xf32>
    %1276 = arith.mulf %1274, %1275 : vector<8x62xf32>
    %1277 = arith.addf %1271, %1276 : vector<8x62xf32>
    %1278 = vector.extract_strided_slice %13 {offsets = [0, 0], sizes = [8, 1], strides = [1, 1]} : vector<8x4xf32> to vector<8x1xf32>
    %1279 = vector.extract_strided_slice %1270 {offsets = [0, 0], sizes = [1, 62], strides = [1, 1]} : vector<4x62xf32> to vector<1x62xf32>
    %1280 = vector.broadcast %1278 : vector<8x1xf32> to vector<8x62xf32>
    %1281 = vector.broadcast %1279 : vector<1x62xf32> to vector<8x62xf32>
    %1282 = arith.mulf %1280, %1281 : vector<8x62xf32>
    %1283 = arith.addf %1277, %1282 : vector<8x62xf32>
    %1284 = vector.extract_strided_slice %12 {offsets = [0, 1], sizes = [8, 1], strides = [1, 1]} : vector<8x4xf32> to vector<8x1xf32>
    %1285 = vector.extract_strided_slice %1269 {offsets = [1, 0], sizes = [1, 62], strides = [1, 1]} : vector<4x62xf32> to vector<1x62xf32>
    %1286 = vector.broadcast %1284 : vector<8x1xf32> to vector<8x62xf32>
    %1287 = vector.broadcast %1285 : vector<1x62xf32> to vector<8x62xf32>
    %1288 = arith.mulf %1286, %1287 : vector<8x62xf32>
    %1289 = arith.addf %1283, %1288 : vector<8x62xf32>
    %1290 = vector.extract_strided_slice %13 {offsets = [0, 1], sizes = [8, 1], strides = [1, 1]} : vector<8x4xf32> to vector<8x1xf32>
    %1291 = vector.extract_strided_slice %1270 {offsets = [1, 0], sizes = [1, 62], strides = [1, 1]} : vector<4x62xf32> to vector<1x62xf32>
    %1292 = vector.broadcast %1290 : vector<8x1xf32> to vector<8x62xf32>
    %1293 = vector.broadcast %1291 : vector<1x62xf32> to vector<8x62xf32>
    %1294 = arith.mulf %1292, %1293 : vector<8x62xf32>
    %1295 = arith.addf %1289, %1294 : vector<8x62xf32>
    %1296 = vector.extract_strided_slice %12 {offsets = [0, 2], sizes = [8, 1], strides = [1, 1]} : vector<8x4xf32> to vector<8x1xf32>
    %1297 = vector.extract_strided_slice %1269 {offsets = [2, 0], sizes = [1, 62], strides = [1, 1]} : vector<4x62xf32> to vector<1x62xf32>
    %1298 = vector.broadcast %1296 : vector<8x1xf32> to vector<8x62xf32>
    %1299 = vector.broadcast %1297 : vector<1x62xf32> to vector<8x62xf32>
    %1300 = arith.mulf %1298, %1299 : vector<8x62xf32>
    %1301 = arith.addf %1295, %1300 : vector<8x62xf32>
    %1302 = vector.extract_strided_slice %13 {offsets = [0, 2], sizes = [8, 1], strides = [1, 1]} : vector<8x4xf32> to vector<8x1xf32>
    %1303 = vector.extract_strided_slice %1270 {offsets = [2, 0], sizes = [1, 62], strides = [1, 1]} : vector<4x62xf32> to vector<1x62xf32>
    %1304 = vector.broadcast %1302 : vector<8x1xf32> to vector<8x62xf32>
    %1305 = vector.broadcast %1303 : vector<1x62xf32> to vector<8x62xf32>
    %1306 = arith.mulf %1304, %1305 : vector<8x62xf32>
    %1307 = arith.addf %1301, %1306 : vector<8x62xf32>
    %1308 = vector.extract_strided_slice %12 {offsets = [0, 3], sizes = [8, 1], strides = [1, 1]} : vector<8x4xf32> to vector<8x1xf32>
    %1309 = vector.extract_strided_slice %1269 {offsets = [3, 0], sizes = [1, 62], strides = [1, 1]} : vector<4x62xf32> to vector<1x62xf32>
    %1310 = vector.broadcast %1308 : vector<8x1xf32> to vector<8x62xf32>
    %1311 = vector.broadcast %1309 : vector<1x62xf32> to vector<8x62xf32>
    %1312 = arith.mulf %1310, %1311 : vector<8x62xf32>
    %1313 = arith.addf %1307, %1312 : vector<8x62xf32>
    %1314 = vector.extract_strided_slice %13 {offsets = [0, 3], sizes = [8, 1], strides = [1, 1]} : vector<8x4xf32> to vector<8x1xf32>
    %1315 = vector.extract_strided_slice %1270 {offsets = [3, 0], sizes = [1, 62], strides = [1, 1]} : vector<4x62xf32> to vector<1x62xf32>
    %1316 = vector.broadcast %1314 : vector<8x1xf32> to vector<8x62xf32>
    %1317 = vector.broadcast %1315 : vector<1x62xf32> to vector<8x62xf32>
    %1318 = arith.mulf %1316, %1317 : vector<8x62xf32>
    %1319 = arith.addf %1313, %1318 : vector<8x62xf32>
    %1320 = vector.broadcast %14 : vector<8x1xf32> to vector<8x62xf32>
    %1321 = arith.addf %1319, %1320 : vector<8x62xf32>
    %cst_517 = arith.constant 0.00999999977 : f32
    %1322 = vector.broadcast %cst_517 : f32 to vector<8x62xf32>
    %1323 = arith.mulf %1322, %1321 : vector<8x62xf32>
    %1324 = arith.maximumf %1321, %1323 : vector<8x62xf32>
    %1325 = vector.extract_strided_slice %1324 {offsets = [0, 0], sizes = [8, 61], strides = [1, 1]} : vector<8x62xf32> to vector<8x61xf32>
    %1326 = vector.extract_strided_slice %1324 {offsets = [0, 1], sizes = [8, 61], strides = [1, 1]} : vector<8x62xf32> to vector<8x61xf32>
    %1327 = tpu.concatenate %1325, %1326 in 0 : vector<8x61xf32>, vector<8x61xf32> -> vector<16x61xf32>
    %cst_518 = arith.constant dense<0.000000e+00> : vector<16x61xf32>
    %1328 = tpu.matmul %15, %1327, %cst_518 {dimension_numbers = #tpu.dot_dimension_numbers<[1], [0], [0], [1], [0, 0, 1, 1], [], []>} : vector<16x16xf32>, vector<16x61xf32>, vector<16x61xf32> -> vector<16x61xf32>
    %1329 = vector.broadcast %16 : vector<16x1xf32> to vector<16x61xf32>
    %1330 = arith.addf %1328, %1329 : vector<16x61xf32>
    %cst_519 = arith.constant 0.00999999977 : f32
    %1331 = vector.broadcast %cst_519 : f32 to vector<16x61xf32>
    %1332 = arith.mulf %1331, %1330 : vector<16x61xf32>
    %1333 = arith.maximumf %1330, %1332 : vector<16x61xf32>
    %1334 = vector.extract_strided_slice %1333 {offsets = [0, 0], sizes = [16, 60], strides = [1, 1]} : vector<16x61xf32> to vector<16x60xf32>
    %1335 = vector.extract_strided_slice %1333 {offsets = [0, 1], sizes = [16, 60], strides = [1, 1]} : vector<16x61xf32> to vector<16x60xf32>
    %1336 = tpu.concatenate %1334, %1335 in 0 : vector<16x60xf32>, vector<16x60xf32> -> vector<32x60xf32>
    %cst_520 = arith.constant dense<0.000000e+00> : vector<32x60xf32>
    %1337 = tpu.matmul %17, %1336, %cst_520 {dimension_numbers = #tpu.dot_dimension_numbers<[1], [0], [0], [1], [0, 0, 1, 1], [], []>} : vector<32x32xf32>, vector<32x60xf32>, vector<32x60xf32> -> vector<32x60xf32>
    %1338 = vector.broadcast %18 : vector<32x1xf32> to vector<32x60xf32>
    %1339 = arith.addf %1337, %1338 : vector<32x60xf32>
    %cst_521 = arith.constant 0.00999999977 : f32
    %1340 = vector.broadcast %cst_521 : f32 to vector<32x60xf32>
    %1341 = arith.mulf %1340, %1339 : vector<32x60xf32>
    %1342 = arith.maximumf %1339, %1341 : vector<32x60xf32>
    %cst_522 = arith.constant dense<0.000000e+00> : vector<32xf32>
    %1343 = vector.multi_reduction <add>, %1342, %cst_522 [1] : vector<32x60xf32> to vector<32xf32>
    %1344 = vector.shape_cast %1343 : vector<32xf32> to vector<32x1xf32>
    %cst_523 = arith.constant 6.000000e+01 : f32
    %1345 = vector.broadcast %cst_523 : f32 to vector<32x1xf32>
    %1346 = arith.divf %1344, %1345 : vector<32x1xf32>
    %1347 = vector.broadcast %1346 : vector<32x1xf32> to vector<32x60xf32>
    %1348 = arith.subf %1342, %1347 : vector<32x60xf32>
    %1349 = arith.mulf %1348, %1348 : vector<32x60xf32>
    %cst_524 = arith.constant dense<0.000000e+00> : vector<32xf32>
    %1350 = vector.multi_reduction <add>, %1349, %cst_524 [1] : vector<32x60xf32> to vector<32xf32>
    %1351 = vector.shape_cast %1350 : vector<32xf32> to vector<32x1xf32>
    %cst_525 = arith.constant 6.000000e+01 : f32
    %1352 = vector.broadcast %cst_525 : f32 to vector<32x1xf32>
    %1353 = arith.divf %1351, %1352 : vector<32x1xf32>
    %1354 = vector.broadcast %1346 : vector<32x1xf32> to vector<32x60xf32>
    %1355 = arith.subf %1342, %1354 : vector<32x60xf32>
    %cst_526 = arith.constant 9.99999974E-6 : f32
    %1356 = vector.broadcast %cst_526 : f32 to vector<32x1xf32>
    %1357 = arith.addf %1353, %1356 : vector<32x1xf32>
    %1358 = math.rsqrt %1357 : vector<32x1xf32>
    %1359 = vector.broadcast %1358 : vector<32x1xf32> to vector<32x60xf32>
    %1360 = arith.mulf %1355, %1359 : vector<32x60xf32>
    %1361 = vector.broadcast %19 : vector<32x1xf32> to vector<32x60xf32>
    %1362 = arith.mulf %1360, %1361 : vector<32x60xf32>
    %1363 = vector.broadcast %20 : vector<32x1xf32> to vector<32x60xf32>
    %1364 = arith.addf %1362, %1363 : vector<32x60xf32>
    %1365 = tpu.concatenate %1364, %21 in 1 : vector<32x60xf32>, vector<32x4xf32> -> vector<32x64xf32>
    %1366 = vector.extract_strided_slice %1365 {offsets = [0, 0], sizes = [1, 64], strides = [1, 1]} : vector<32x64xf32> to vector<1x64xf32>
    %c7 = arith.constant 7 : index
    %c0_527 = arith.constant 0 : index
    %1367 = vector.load %arg9[%c7, %c0_527] : memref<8x2048xf32, #tpu.memory_space<vmem>>, vector<1x64xf32>
    tpu.vector_store %arg9[%c7, %c0_527], %1366 {strides = array<i32>} : memref<8x2048xf32, #tpu.memory_space<vmem>>, vector<1x64xf32>,
    %1368 = vector.extract_strided_slice %1365 {offsets = [1, 0], sizes = [1, 64], strides = [1, 1]} : vector<32x64xf32> to vector<1x64xf32>
    %c7_528 = arith.constant 7 : index
    %c64_529 = arith.constant 64 : index
    %1369 = vector.load %arg9[%c7_528, %c64_529] : memref<8x2048xf32, #tpu.memory_space<vmem>>, vector<1x64xf32>
    tpu.vector_store %arg9[%c7_528, %c64_529], %1368 {strides = array<i32>} : memref<8x2048xf32, #tpu.memory_space<vmem>>, vector<1x64xf32>,
    %1370 = vector.extract_strided_slice %1365 {offsets = [2, 0], sizes = [1, 64], strides = [1, 1]} : vector<32x64xf32> to vector<1x64xf32>
    %c7_530 = arith.constant 7 : index
    %c128_531 = arith.constant 128 : index
    %1371 = vector.load %arg9[%c7_530, %c128_531] : memref<8x2048xf32, #tpu.memory_space<vmem>>, vector<1x64xf32>
    tpu.vector_store %arg9[%c7_530, %c128_531], %1370 {strides = array<i32>} : memref<8x2048xf32, #tpu.memory_space<vmem>>, vector<1x64xf32>,
    %1372 = vector.extract_strided_slice %1365 {offsets = [3, 0], sizes = [1, 64], strides = [1, 1]} : vector<32x64xf32> to vector<1x64xf32>
    %c7_532 = arith.constant 7 : index
    %c192_533 = arith.constant 192 : index
    %1373 = vector.load %arg9[%c7_532, %c192_533] : memref<8x2048xf32, #tpu.memory_space<vmem>>, vector<1x64xf32>
    tpu.vector_store %arg9[%c7_532, %c192_533], %1372 {strides = array<i32>} : memref<8x2048xf32, #tpu.memory_space<vmem>>, vector<1x64xf32>,
    %1374 = vector.extract_strided_slice %1365 {offsets = [4, 0], sizes = [1, 64], strides = [1, 1]} : vector<32x64xf32> to vector<1x64xf32>
    %c7_534 = arith.constant 7 : index
    %c256_535 = arith.constant 256 : index
    %1375 = vector.load %arg9[%c7_534, %c256_535] : memref<8x2048xf32, #tpu.memory_space<vmem>>, vector<1x64xf32>
    tpu.vector_store %arg9[%c7_534, %c256_535], %1374 {strides = array<i32>} : memref<8x2048xf32, #tpu.memory_space<vmem>>, vector<1x64xf32>,
    %1376 = vector.extract_strided_slice %1365 {offsets = [5, 0], sizes = [1, 64], strides = [1, 1]} : vector<32x64xf32> to vector<1x64xf32>
    %c7_536 = arith.constant 7 : index
    %c320_537 = arith.constant 320 : index
    %1377 = vector.load %arg9[%c7_536, %c320_537] : memref<8x2048xf32, #tpu.memory_space<vmem>>, vector<1x64xf32>
    tpu.vector_store %arg9[%c7_536, %c320_537], %1376 {strides = array<i32>} : memref<8x2048xf32, #tpu.memory_space<vmem>>, vector<1x64xf32>,
    %1378 = vector.extract_strided_slice %1365 {offsets = [6, 0], sizes = [1, 64], strides = [1, 1]} : vector<32x64xf32> to vector<1x64xf32>
    %c7_538 = arith.constant 7 : index
    %c384_539 = arith.constant 384 : index
    %1379 = vector.load %arg9[%c7_538, %c384_539] : memref<8x2048xf32, #tpu.memory_space<vmem>>, vector<1x64xf32>
    tpu.vector_store %arg9[%c7_538, %c384_539], %1378 {strides = array<i32>} : memref<8x2048xf32, #tpu.memory_space<vmem>>, vector<1x64xf32>,
    %1380 = vector.extract_strided_slice %1365 {offsets = [7, 0], sizes = [1, 64], strides = [1, 1]} : vector<32x64xf32> to vector<1x64xf32>
    %c7_540 = arith.constant 7 : index
    %c448_541 = arith.constant 448 : index
    %1381 = vector.load %arg9[%c7_540, %c448_541] : memref<8x2048xf32, #tpu.memory_space<vmem>>, vector<1x64xf32>
    tpu.vector_store %arg9[%c7_540, %c448_541], %1380 {strides = array<i32>} : memref<8x2048xf32, #tpu.memory_space<vmem>>, vector<1x64xf32>,
    %1382 = vector.extract_strided_slice %1365 {offsets = [8, 0], sizes = [1, 64], strides = [1, 1]} : vector<32x64xf32> to vector<1x64xf32>
    %c7_542 = arith.constant 7 : index
    %c512_543 = arith.constant 512 : index
    %1383 = vector.load %arg9[%c7_542, %c512_543] : memref<8x2048xf32, #tpu.memory_space<vmem>>, vector<1x64xf32>
    tpu.vector_store %arg9[%c7_542, %c512_543], %1382 {strides = array<i32>} : memref<8x2048xf32, #tpu.memory_space<vmem>>, vector<1x64xf32>,
    %1384 = vector.extract_strided_slice %1365 {offsets = [9, 0], sizes = [1, 64], strides = [1, 1]} : vector<32x64xf32> to vector<1x64xf32>
    %c7_544 = arith.constant 7 : index
    %c576_545 = arith.constant 576 : index
    %1385 = vector.load %arg9[%c7_544, %c576_545] : memref<8x2048xf32, #tpu.memory_space<vmem>>, vector<1x64xf32>
    tpu.vector_store %arg9[%c7_544, %c576_545], %1384 {strides = array<i32>} : memref<8x2048xf32, #tpu.memory_space<vmem>>, vector<1x64xf32>,
    %1386 = vector.extract_strided_slice %1365 {offsets = [10, 0], sizes = [1, 64], strides = [1, 1]} : vector<32x64xf32> to vector<1x64xf32>
    %c7_546 = arith.constant 7 : index
    %c640_547 = arith.constant 640 : index
    %1387 = vector.load %arg9[%c7_546, %c640_547] : memref<8x2048xf32, #tpu.memory_space<vmem>>, vector<1x64xf32>
    tpu.vector_store %arg9[%c7_546, %c640_547], %1386 {strides = array<i32>} : memref<8x2048xf32, #tpu.memory_space<vmem>>, vector<1x64xf32>,
    %1388 = vector.extract_strided_slice %1365 {offsets = [11, 0], sizes = [1, 64], strides = [1, 1]} : vector<32x64xf32> to vector<1x64xf32>
    %c7_548 = arith.constant 7 : index
    %c704_549 = arith.constant 704 : index
    %1389 = vector.load %arg9[%c7_548, %c704_549] : memref<8x2048xf32, #tpu.memory_space<vmem>>, vector<1x64xf32>
    tpu.vector_store %arg9[%c7_548, %c704_549], %1388 {strides = array<i32>} : memref<8x2048xf32, #tpu.memory_space<vmem>>, vector<1x64xf32>,
    %1390 = vector.extract_strided_slice %1365 {offsets = [12, 0], sizes = [1, 64], strides = [1, 1]} : vector<32x64xf32> to vector<1x64xf32>
    %c7_550 = arith.constant 7 : index
    %c768_551 = arith.constant 768 : index
    %1391 = vector.load %arg9[%c7_550, %c768_551] : memref<8x2048xf32, #tpu.memory_space<vmem>>, vector<1x64xf32>
    tpu.vector_store %arg9[%c7_550, %c768_551], %1390 {strides = array<i32>} : memref<8x2048xf32, #tpu.memory_space<vmem>>, vector<1x64xf32>,
    %1392 = vector.extract_strided_slice %1365 {offsets = [13, 0], sizes = [1, 64], strides = [1, 1]} : vector<32x64xf32> to vector<1x64xf32>
    %c7_552 = arith.constant 7 : index
    %c832_553 = arith.constant 832 : index
    %1393 = vector.load %arg9[%c7_552, %c832_553] : memref<8x2048xf32, #tpu.memory_space<vmem>>, vector<1x64xf32>
    tpu.vector_store %arg9[%c7_552, %c832_553], %1392 {strides = array<i32>} : memref<8x2048xf32, #tpu.memory_space<vmem>>, vector<1x64xf32>,
    %1394 = vector.extract_strided_slice %1365 {offsets = [14, 0], sizes = [1, 64], strides = [1, 1]} : vector<32x64xf32> to vector<1x64xf32>
    %c7_554 = arith.constant 7 : index
    %c896_555 = arith.constant 896 : index
    %1395 = vector.load %arg9[%c7_554, %c896_555] : memref<8x2048xf32, #tpu.memory_space<vmem>>, vector<1x64xf32>
    tpu.vector_store %arg9[%c7_554, %c896_555], %1394 {strides = array<i32>} : memref<8x2048xf32, #tpu.memory_space<vmem>>, vector<1x64xf32>,
    %1396 = vector.extract_strided_slice %1365 {offsets = [15, 0], sizes = [1, 64], strides = [1, 1]} : vector<32x64xf32> to vector<1x64xf32>
    %c7_556 = arith.constant 7 : index
    %c960_557 = arith.constant 960 : index
    %1397 = vector.load %arg9[%c7_556, %c960_557] : memref<8x2048xf32, #tpu.memory_space<vmem>>, vector<1x64xf32>
    tpu.vector_store %arg9[%c7_556, %c960_557], %1396 {strides = array<i32>} : memref<8x2048xf32, #tpu.memory_space<vmem>>, vector<1x64xf32>,
    %1398 = vector.extract_strided_slice %1365 {offsets = [16, 0], sizes = [1, 64], strides = [1, 1]} : vector<32x64xf32> to vector<1x64xf32>
    %c7_558 = arith.constant 7 : index
    %c1024_559 = arith.constant 1024 : index
    %1399 = vector.load %arg9[%c7_558, %c1024_559] : memref<8x2048xf32, #tpu.memory_space<vmem>>, vector<1x64xf32>
    tpu.vector_store %arg9[%c7_558, %c1024_559], %1398 {strides = array<i32>} : memref<8x2048xf32, #tpu.memory_space<vmem>>, vector<1x64xf32>,
    %1400 = vector.extract_strided_slice %1365 {offsets = [17, 0], sizes = [1, 64], strides = [1, 1]} : vector<32x64xf32> to vector<1x64xf32>
    %c7_560 = arith.constant 7 : index
    %c1088_561 = arith.constant 1088 : index
    %1401 = vector.load %arg9[%c7_560, %c1088_561] : memref<8x2048xf32, #tpu.memory_space<vmem>>, vector<1x64xf32>
    tpu.vector_store %arg9[%c7_560, %c1088_561], %1400 {strides = array<i32>} : memref<8x2048xf32, #tpu.memory_space<vmem>>, vector<1x64xf32>,
    %1402 = vector.extract_strided_slice %1365 {offsets = [18, 0], sizes = [1, 64], strides = [1, 1]} : vector<32x64xf32> to vector<1x64xf32>
    %c7_562 = arith.constant 7 : index
    %c1152_563 = arith.constant 1152 : index
    %1403 = vector.load %arg9[%c7_562, %c1152_563] : memref<8x2048xf32, #tpu.memory_space<vmem>>, vector<1x64xf32>
    tpu.vector_store %arg9[%c7_562, %c1152_563], %1402 {strides = array<i32>} : memref<8x2048xf32, #tpu.memory_space<vmem>>, vector<1x64xf32>,
    %1404 = vector.extract_strided_slice %1365 {offsets = [19, 0], sizes = [1, 64], strides = [1, 1]} : vector<32x64xf32> to vector<1x64xf32>
    %c7_564 = arith.constant 7 : index
    %c1216_565 = arith.constant 1216 : index
    %1405 = vector.load %arg9[%c7_564, %c1216_565] : memref<8x2048xf32, #tpu.memory_space<vmem>>, vector<1x64xf32>
    tpu.vector_store %arg9[%c7_564, %c1216_565], %1404 {strides = array<i32>} : memref<8x2048xf32, #tpu.memory_space<vmem>>, vector<1x64xf32>,
    %1406 = vector.extract_strided_slice %1365 {offsets = [20, 0], sizes = [1, 64], strides = [1, 1]} : vector<32x64xf32> to vector<1x64xf32>
    %c7_566 = arith.constant 7 : index
    %c1280_567 = arith.constant 1280 : index
    %1407 = vector.load %arg9[%c7_566, %c1280_567] : memref<8x2048xf32, #tpu.memory_space<vmem>>, vector<1x64xf32>
    tpu.vector_store %arg9[%c7_566, %c1280_567], %1406 {strides = array<i32>} : memref<8x2048xf32, #tpu.memory_space<vmem>>, vector<1x64xf32>,
    %1408 = vector.extract_strided_slice %1365 {offsets = [21, 0], sizes = [1, 64], strides = [1, 1]} : vector<32x64xf32> to vector<1x64xf32>
    %c7_568 = arith.constant 7 : index
    %c1344_569 = arith.constant 1344 : index
    %1409 = vector.load %arg9[%c7_568, %c1344_569] : memref<8x2048xf32, #tpu.memory_space<vmem>>, vector<1x64xf32>
    tpu.vector_store %arg9[%c7_568, %c1344_569], %1408 {strides = array<i32>} : memref<8x2048xf32, #tpu.memory_space<vmem>>, vector<1x64xf32>,
    %1410 = vector.extract_strided_slice %1365 {offsets = [22, 0], sizes = [1, 64], strides = [1, 1]} : vector<32x64xf32> to vector<1x64xf32>
    %c7_570 = arith.constant 7 : index
    %c1408_571 = arith.constant 1408 : index
    %1411 = vector.load %arg9[%c7_570, %c1408_571] : memref<8x2048xf32, #tpu.memory_space<vmem>>, vector<1x64xf32>
    tpu.vector_store %arg9[%c7_570, %c1408_571], %1410 {strides = array<i32>} : memref<8x2048xf32, #tpu.memory_space<vmem>>, vector<1x64xf32>,
    %1412 = vector.extract_strided_slice %1365 {offsets = [23, 0], sizes = [1, 64], strides = [1, 1]} : vector<32x64xf32> to vector<1x64xf32>
    %c7_572 = arith.constant 7 : index
    %c1472_573 = arith.constant 1472 : index
    %1413 = vector.load %arg9[%c7_572, %c1472_573] : memref<8x2048xf32, #tpu.memory_space<vmem>>, vector<1x64xf32>
    tpu.vector_store %arg9[%c7_572, %c1472_573], %1412 {strides = array<i32>} : memref<8x2048xf32, #tpu.memory_space<vmem>>, vector<1x64xf32>,
    %1414 = vector.extract_strided_slice %1365 {offsets = [24, 0], sizes = [1, 64], strides = [1, 1]} : vector<32x64xf32> to vector<1x64xf32>
    %c7_574 = arith.constant 7 : index
    %c1536_575 = arith.constant 1536 : index
    %1415 = vector.load %arg9[%c7_574, %c1536_575] : memref<8x2048xf32, #tpu.memory_space<vmem>>, vector<1x64xf32>
    tpu.vector_store %arg9[%c7_574, %c1536_575], %1414 {strides = array<i32>} : memref<8x2048xf32, #tpu.memory_space<vmem>>, vector<1x64xf32>,
    %1416 = vector.extract_strided_slice %1365 {offsets = [25, 0], sizes = [1, 64], strides = [1, 1]} : vector<32x64xf32> to vector<1x64xf32>
    %c7_576 = arith.constant 7 : index
    %c1600_577 = arith.constant 1600 : index
    %1417 = vector.load %arg9[%c7_576, %c1600_577] : memref<8x2048xf32, #tpu.memory_space<vmem>>, vector<1x64xf32>
    tpu.vector_store %arg9[%c7_576, %c1600_577], %1416 {strides = array<i32>} : memref<8x2048xf32, #tpu.memory_space<vmem>>, vector<1x64xf32>,
    %1418 = vector.extract_strided_slice %1365 {offsets = [26, 0], sizes = [1, 64], strides = [1, 1]} : vector<32x64xf32> to vector<1x64xf32>
    %c7_578 = arith.constant 7 : index
    %c1664_579 = arith.constant 1664 : index
    %1419 = vector.load %arg9[%c7_578, %c1664_579] : memref<8x2048xf32, #tpu.memory_space<vmem>>, vector<1x64xf32>
    tpu.vector_store %arg9[%c7_578, %c1664_579], %1418 {strides = array<i32>} : memref<8x2048xf32, #tpu.memory_space<vmem>>, vector<1x64xf32>,
    %1420 = vector.extract_strided_slice %1365 {offsets = [27, 0], sizes = [1, 64], strides = [1, 1]} : vector<32x64xf32> to vector<1x64xf32>
    %c7_580 = arith.constant 7 : index
    %c1728_581 = arith.constant 1728 : index
    %1421 = vector.load %arg9[%c7_580, %c1728_581] : memref<8x2048xf32, #tpu.memory_space<vmem>>, vector<1x64xf32>
    tpu.vector_store %arg9[%c7_580, %c1728_581], %1420 {strides = array<i32>} : memref<8x2048xf32, #tpu.memory_space<vmem>>, vector<1x64xf32>,
    %1422 = vector.extract_strided_slice %1365 {offsets = [28, 0], sizes = [1, 64], strides = [1, 1]} : vector<32x64xf32> to vector<1x64xf32>
    %c7_582 = arith.constant 7 : index
    %c1792_583 = arith.constant 1792 : index
    %1423 = vector.load %arg9[%c7_582, %c1792_583] : memref<8x2048xf32, #tpu.memory_space<vmem>>, vector<1x64xf32>
    tpu.vector_store %arg9[%c7_582, %c1792_583], %1422 {strides = array<i32>} : memref<8x2048xf32, #tpu.memory_space<vmem>>, vector<1x64xf32>,
    %1424 = vector.extract_strided_slice %1365 {offsets = [29, 0], sizes = [1, 64], strides = [1, 1]} : vector<32x64xf32> to vector<1x64xf32>
    %c7_584 = arith.constant 7 : index
    %c1856_585 = arith.constant 1856 : index
    %1425 = vector.load %arg9[%c7_584, %c1856_585] : memref<8x2048xf32, #tpu.memory_space<vmem>>, vector<1x64xf32>
    tpu.vector_store %arg9[%c7_584, %c1856_585], %1424 {strides = array<i32>} : memref<8x2048xf32, #tpu.memory_space<vmem>>, vector<1x64xf32>,
    %1426 = vector.extract_strided_slice %1365 {offsets = [30, 0], sizes = [1, 64], strides = [1, 1]} : vector<32x64xf32> to vector<1x64xf32>
    %c7_586 = arith.constant 7 : index
    %c1920_587 = arith.constant 1920 : index
    %1427 = vector.load %arg9[%c7_586, %c1920_587] : memref<8x2048xf32, #tpu.memory_space<vmem>>, vector<1x64xf32>
    tpu.vector_store %arg9[%c7_586, %c1920_587], %1426 {strides = array<i32>} : memref<8x2048xf32, #tpu.memory_space<vmem>>, vector<1x64xf32>,
    %1428 = vector.extract_strided_slice %1365 {offsets = [31, 0], sizes = [1, 64], strides = [1, 1]} : vector<32x64xf32> to vector<1x64xf32>
    %c7_588 = arith.constant 7 : index
    %c1984_589 = arith.constant 1984 : index
    %1429 = vector.load %arg9[%c7_588, %c1984_589] : memref<8x2048xf32, #tpu.memory_space<vmem>>, vector<1x64xf32>
    tpu.vector_store %arg9[%c7_588, %c1984_589], %1428 {strides = array<i32>} : memref<8x2048xf32, #tpu.memory_space<vmem>>, vector<1x64xf32>,
    %c0_590 = arith.constant 0 : index
    %c0_591 = arith.constant 0 : index
    %1430 = vector.load %arg9[%c0_590, %c0_591] : memref<8x2048xf32, #tpu.memory_space<vmem>>, vector<8x2048xf32>
    %c0_592 = arith.constant 0 : index
    %c0_593 = arith.constant 0 : index
    %1431 = vector.load %arg5[%c0_592, %c0_593] : memref<2048x64xf32, #tpu.memory_space<vmem>>, vector<2048x64xf32>
    %cst_594 = arith.constant dense<0.000000e+00> : vector<8x64xf32>
    %1432 = tpu.matmul %1430, %1431, %cst_594 {dimension_numbers = #tpu.dot_dimension_numbers<[1], [0], [0], [1], [0, 0, 1, 1], [], []>} : vector<8x2048xf32>, vector<2048x64xf32>, vector<8x64xf32> -> vector<8x64xf32>
    %c1_595 = arith.constant 1 : index
    %c0_596 = arith.constant 0 : index
    %1433 = vector.load %arg3[%c1_595, %c0_596] : memref<4x128xf32, #tpu.memory_space<vmem>>, vector<1x64xf32>
    %1434 = vector.broadcast %1433 : vector<1x64xf32> to vector<8x64xf32>
    %1435 = arith.addf %1432, %1434 : vector<8x64xf32>
    %cst_597 = arith.constant 0.00999999977 : f32
    %1436 = vector.broadcast %cst_597 : f32 to vector<8x64xf32>
    %1437 = arith.mulf %1436, %1435 : vector<8x64xf32>
    %1438 = arith.maximumf %1435, %1437 : vector<8x64xf32>
    %c0_598 = arith.constant 0 : index
    %c0_599 = arith.constant 0 : index
    %1439 = vector.load %arg6[%c0_598, %c0_599] : memref<64x32xf32, #tpu.memory_space<vmem>>, vector<64x32xf32>
    %cst_600 = arith.constant dense<0.000000e+00> : vector<8x32xf32>
    %1440 = tpu.matmul %1438, %1439, %cst_600 {dimension_numbers = #tpu.dot_dimension_numbers<[1], [0], [0], [1], [0, 0, 1, 1], [], []>} : vector<8x64xf32>, vector<64x32xf32>, vector<8x32xf32> -> vector<8x32xf32>
    %c2_601 = arith.constant 2 : index
    %c0_602 = arith.constant 0 : index
    %1441 = vector.load %arg3[%c2_601, %c0_602] : memref<4x128xf32, #tpu.memory_space<vmem>>, vector<1x32xf32>
    %1442 = vector.broadcast %1441 : vector<1x32xf32> to vector<8x32xf32>
    %1443 = arith.addf %1440, %1442 : vector<8x32xf32>
    %cst_603 = arith.constant 0.00999999977 : f32
    %1444 = vector.broadcast %cst_603 : f32 to vector<8x32xf32>
    %1445 = arith.mulf %1444, %1443 : vector<8x32xf32>
    %1446 = arith.maximumf %1443, %1445 : vector<8x32xf32>
    %c0_604 = arith.constant 0 : index
    %c0_605 = arith.constant 0 : index
    %1447 = vector.load %arg7[%c0_604, %c0_605] : memref<32x128xf32, #tpu.memory_space<vmem>>, vector<32x128xf32>
    %cst_606 = arith.constant dense<0.000000e+00> : vector<8x128xf32>
    %1448 = tpu.matmul %1446, %1447, %cst_606 {dimension_numbers = #tpu.dot_dimension_numbers<[1], [0], [0], [1], [0, 0, 1, 1], [], []>} : vector<8x32xf32>, vector<32x128xf32>, vector<8x128xf32> -> vector<8x128xf32>
    %c3_607 = arith.constant 3 : index
    %c0_608 = arith.constant 0 : index
    %1449 = vector.load %arg3[%c3_607, %c0_608] : memref<4x128xf32, #tpu.memory_space<vmem>>, vector<1x128xf32>
    %1450 = vector.broadcast %1449 : vector<1x128xf32> to vector<8x128xf32>
    %1451 = arith.addf %1448, %1450 : vector<8x128xf32>
    %cst_609 = arith.constant 0.00999999977 : f32
    %1452 = vector.broadcast %cst_609 : f32 to vector<8x128xf32>
    %1453 = arith.mulf %1452, %1451 : vector<8x128xf32>
    %1454 = arith.maximumf %1451, %1453 : vector<8x128xf32>
    %c0_610 = arith.constant 0 : index
    %c0_611 = arith.constant 0 : index
    %1455 = vector.load %arg8[%c0_610, %c0_611] : memref<8x128xf32, #tpu.memory_space<vmem>>, vector<8x128xf32>
    tpu.vector_store %arg8[%c0_610, %c0_611], %1454 {strides = array<i32>} : memref<8x128xf32, #tpu.memory_space<vmem>>, vector<8x128xf32>,
    return
  }
  func.func @transform_0(%arg0: i32) -> (i32, i32) {
    %c0_i32 = arith.constant 0 : i32
    %c0_i32_0 = arith.constant 0 : i32
    return %arg0, %c0_i32 : i32, i32
  }
  func.func @transform_1(%arg0: i32) -> (i32, i32) {
    %c0_i32 = arith.constant 0 : i32
    %c0_i32_0 = arith.constant 0 : i32
    %c0_i32_1 = arith.constant 0 : i32
    return %c0_i32, %c0_i32_0 : i32, i32
  }
  func.func @transform_2(%arg0: i32) -> (i32, i32) {
    %c0_i32 = arith.constant 0 : i32
    %c0_i32_0 = arith.constant 0 : i32
    %c0_i32_1 = arith.constant 0 : i32
    return %c0_i32, %c0_i32_0 : i32, i32
  }
  func.func @transform_3(%arg0: i32) -> (i32, i32) {
    %c0_i32 = arith.constant 0 : i32
    %c0_i32_0 = arith.constant 0 : i32
    %c0_i32_1 = arith.constant 0 : i32
    return %c0_i32, %c0_i32_0 : i32, i32
  }
  func.func @transform_4(%arg0: i32) -> (i32, i32) {
    %c0_i32 = arith.constant 0 : i32
    %c0_i32_0 = arith.constant 0 : i32
    %c0_i32_1 = arith.constant 0 : i32
    return %c0_i32, %c0_i32_0 : i32, i32
  }
  func.func @transform_5(%arg0: i32) -> (i32, i32) {
    %c0_i32 = arith.constant 0 : i32
    %c0_i32_0 = arith.constant 0 : i32
    %c0_i32_1 = arith.constant 0 : i32
    return %c0_i32, %c0_i32_0 : i32, i32
  }
  func.func @transform_6(%arg0: i32) -> (i32, i32) {
    %c0_i32 = arith.constant 0 : i32
    %c0_i32_0 = arith.constant 0 : i32
    %c0_i32_1 = arith.constant 0 : i32
    return %c0_i32, %c0_i32_0 : i32, i32
  }
  func.func @transform_7(%arg0: i32) -> (i32, i32) {
    %c0_i32 = arith.constant 0 : i32
    %c0_i32_0 = arith.constant 0 : i32
    return %arg0, %c0_i32 : i32, i32
  }
}

</mosaic_0001>

<bundles_post_ra>
// kernel: util_func_forward.1
= control target key start
LH: loop header
LB: loop body
LE: loop exit
PB: predicated region body
PF: predicated region fallthrough
CT: control target
= control target key end

     0   :  { %s6318_s24 = smov 0   ;;  %s9000_s0 = inlined_call_operand.vmem [shape: f32[16,16], index: 0, kind: input, shape index: {}]   ;;  %s9001_s1 = inlined_call_operand.vmem [shape: f32[16,64], index: 1, kind: input, shape index: {}]   ;;  %s9002_s2 = inlined_call_operand.vmem [shape: f32[4,128], index: 2, kind: input, shape index: {}]   ;;  %s9003_s3 = inlined_call_operand.vmem [shape: f32[32,64], index: 3, kind: input, shape index: {}]   ;;  %s9004_s4 = inlined_call_operand.vmem [shape: f32[2048,64], index: 4, kind: input, shape index: {}]   ;;  %s9005_s5 = inlined_call_operand.vmem [shape: f32[64,32], index: 5, kind: input, shape index: {}]   ;;  %s9006_s6 = inlined_call_operand.vmem [shape: f32[32,128], index: 6, kind: input, shape index: {}]   ;;  %s9007_s7 = inlined_call_operand.vmem [shape: f32[16,128], index: 7, kind: output, shape index: {}]  }
   0x1 LB: > { %s5055_s25 = sadd.s32 4294967295, %s6254_s24   ;;  %p5059_p0 = scmp.ge.s32.totalorder %s6254_s24, 1  ;;  %s6254_s24 = sphi %s6318_s24, %s17_s24  }
   0x2   : > { %p236_p1 = scmp.lt.s32.totalorder %s6254_s24, 3 }
   0x4   : > { %p237_p2 = pnand %p5059_p0, %p236_p1 }
   0x5   : > { %v275_v0 = vld [vmem:[%s9001_s1] sm:$0xff] (!%p237_p2)  ;;  %v276_v1 = vld [vmem:[%s9001_s1 + $0x8] sm:$0xff] (!%p237_p2)  ;;  %p266_p3 = scmp.lt.s32.totalorder (!%p237_p2), %s5055_s25, 1  ;;  %v9010_v2 = vmov (!%p237_p2), 0.0|0.0   ;;  %vm6257_vm0 = vmmov (!%p237_p2), 0   ;;  %v9008_v4 = vmov (!%p237_p2), 0.0   ;;  %v368_v14 = vlaneseq (!%p237_p2) }
   0x6   : > { %240 = sbr.rel (%p237_p2) target bundleno = 4102 (0x1006), region = 48  ;;  %5717 = vmatprep.subr.bf16.mxu0 (!%p237_p2), %v9010_v2  ;;  %v5718_v3 = vpack.c.bf16 (!%p237_p2), %v276_v1, %v275_v0  ;;  %5516 = vmatprep.mubr.msk.f32.mxu0 (!%p237_p2), %vm6257_vm0, %v9008_v4  ;;  %v358_v5 = vld [vmem:[%s9003_s3] sm:$0xf] (!%p237_p2)  ;;  %v6259_v6 = vmov (!%p237_p2), 63   ;;  %vm282_vm1 = vcmask (!%p237_p2), 130048   ;;  %v6260_v7 = vmov (!%p237_p2), 61  }
   0x7   : > { %6120 = vset.pattern.permute.xlu0 (!%p237_p2), %v6259_v6  ;;  %6122 = vset.pattern.permute.xlu1 (!%p237_p2), %v6260_v7  ;;  %v6261_v9 = vmov (!%p237_p2), 62   ;;  %v6262_v10 = vmov (!%p237_p2), 53   ;;  %v6350_v11 = vld [vmem:[%s9003_s3] sm:$0xff] (!%p237_p2)  ;;  %v6263_v12 = vmov (!%p237_p2), 48   ;;  %v6264_v13 = vmov (!%p237_p2), 52   ;;  %s6265_s17 = smov (!%p237_p2), 127  }
   0x8   : > { %5719 = vmatpush3.bf16.msra.mxu0 (!%p237_p2), %v5718_v3  ;;  %374 = vperm.xlu0 (!%p237_p2), %6120, %v358_v5   ;;  %v5062_v15 = vld [vmem:[%s9002_s2] ss:$0 sm:$0xff] (!%p237_p2)  ;;  %v369_v16 = vshrl.u32 (!%p237_p2), %v368_v14, 7  ;;  %v6266_v34 = vmov (!%p237_p2), 54   ;;  %v6267_v35 = vmov (!%p237_p2), 55   ;;  %v6268_v36 = vmov (!%p237_p2), 49  }
   0x9   : > { %384 = vperm.xlu1 (!%p237_p2), %6122, %v358_v5   ;;  %v6269_v37 = vmov (!%p237_p2), 50   ;;  %v6270_v38 = vmov (!%p237_p2), 51   ;;  %v6271_v39 = vmov (!%p237_p2), 60   ;;  %s6272_s18 = smov (!%p237_p2), 96   ;;  %v6273_v1 = vmov (!%p237_p2), 59   ;;  %s6277_s13 = smov (!%p237_p2), 64  }
   0xa   : > { %v6357_v21 = vsub.s32 (!%p237_p2), 0, %v369_v16  ;;  %v2243_v22 = vsub.s32 (!%p237_p2), 4, %v369_v16  ;;  %v2680_v23 = vsub.s32 (!%p237_p2), 5, %v369_v16  ;;  %v3554_v24 = vsub.s32 (!%p237_p2), 7, %v369_v16 }
   0xb   : > { %v3117_v25 = vsub.s32 (!%p237_p2), 6, %v369_v16  ;;  %v6393_v49 = vsub.s32 (!%p237_p2), 1, %v369_v16  ;;  %v6405_v56 = vsub.s32 (!%p237_p2), 2, %v369_v16  ;;  %v6409_v58 = vsub.s32 (!%p237_p2), 3, %v369_v16 }
   0xc   : > { %6121 = vset.pattern.permute.xlu0 (!%p237_p2), %v6261_v9  ;;  %vm604_vm2 = vcmask (!%p237_p2), 261120   ;;  %vm706_vm3 = vcmask (!%p237_p2), 490496   ;;  %vm804_vm4 = vcmask (!%p237_p2), 516096   ;;  %vm811_vm5 = vcmask (!%p237_p2), 1040896  }
   0xd   : > { %s9015_s25 = smov (!%p266_p3, %s5055_s25), 1  ;;  %365 = vperm.xlu0 %6121, %v358_v5   ;;  %6123 = vset.pattern.permute.xlu1 %v6264_v13  ;;  %vm4841_vm6 = vcmask 523264  }
   0xe   : > { %s5060_s9 = sshll.u32 %s9015_s25, 3 }
   0xf   : > { %s269_s12 = scalar_lea.vmem %s9000_s0, %s5060_s9  ;;  %s273_s30 = scalar_lea.vmem %s9007_s7, %s5060_s9 }
  0x10   : > { %v274_v8 = vld [vmem:[%s269_s12] sm:$0xff] }
  0x11   : > { %5517 = vmatmul.mubr.msk.f32.vlgmr.msra.gmra.mrb[0].mxu0 %vm282_vm1, %v274_v8  ;;  %6124 = vset.pattern.permute.xlu0 %v6262_v10 }
  0x12   : > { %422 = vperm.xlu0 %6124, %v6350_v11   ;;  %5534 = vmatprep.mubr.msk.f32.mxu0 %vm604_vm2, %v6350_v11 }
  0x16   : > { %6127 = vset.pattern.permute.xlu0 %v6263_v12 }
  0x17   : > { %392 = vperm.xlu0 %6127, %v6350_v11  }
  0x1b   : > { %6133 = vset.pattern.permute.xlu0 %v6273_v1 }
  0x87   : > { %v6363_v28 = vpop.permute.xlu0 %374 }
  0x88   : > { %v6386_v40 = vpop.permute.xlu1 %384 }
  0x8c   : > { %v6388_v41 = vpop.permute.xlu0 %365 }
  0x91   : > { %v6400_v53 = vpop.permute.xlu0 %422 }
  0x96   : > { %v6428_v6 = vpop.permute.xlu0 %392 }
  0xe4   : > { %v352_v17 = vpop.f32.mrb[0].mxu0 }
  0xe5   : > { %v353_v18 = vadd.f32 %v5062_v15, %v352_v17  ;;  %v5518_v19 = vpop.f32.mrb[1].mxu0 }
  0xe7   : > { %v356_v20 = vmul.f32 0.01, %v353_v18 }
  0xe9   : > { %v6359_v26 = vmax.f32 %v353_v18, %v356_v20 }
  0xeb   : > { %v371_v27 = vrot.slane %v6359_v26, %v6357_v21  ;;  %v6366_v29 = vrot.slane %v6359_v26, %v2243_v22  ;;  %v6369_v30 = vrot.slane %v6359_v26, %v2680_v23  ;;  %v6372_v31 = vrot.slane %v6359_v26, %v3554_v24 }
  0xec   : > { %v6375_v32 = vrot.slane %v6359_v26, %v3117_v25  ;;  %v933_v63 = vrot.slane %v6359_v26, %v6393_v49 }
  0xed   : > { %v377_v33 = vmul.f32 %v6363_v28, %v371_v27  ;;  %v372_v42 = vmul.f32 %v371_v27, %v6388_v41 }
  0xee   : > { %v935_v0 = vmul.f32 %v933_v63, %v6363_v28 }
  0xef   : > { %379 = vrot.lane.b32.xlu1 %v377_v33, %s6265_s17 }
  0xf3   : > { %402 = vperm.xlu1 %6123, %v6350_v11  }
  0xf7   : > { %6125 = vset.pattern.permute.xlu1 %v6266_v34 }
  0xf8   : > { %442 = vperm.xlu1 %6125, %v6350_v11  }
  0xfc   : > { %6126 = vset.pattern.permute.xlu1 %v6267_v35  ;;  %v934_v35 = vmul.f32 %v933_v63, %v6388_v41 }
  0xfd   : > { %462 = vperm.xlu1 %6126, %v6350_v11  }
 0x101   : > { %6128 = vset.pattern.permute.xlu1 %v6268_v36 }
 0x102   : > { %412 = vperm.xlu1 %6128, %v6350_v11  }
 0x106   : > { %6129 = vset.pattern.permute.xlu1 %v6269_v37 }
 0x107   : > { %432 = vperm.xlu1 %6129, %v6350_v11  }
 0x10b   : > { %6130 = vset.pattern.permute.xlu1 %v6270_v38 }
 0x10c   : > { %452 = vperm.xlu1 %6130, %v6350_v11  }
 0x110   : > { %6131 = vset.pattern.permute.xlu1 %v6271_v39 }
 0x111   : > { %472 = vperm.xlu1 %6131, %v6350_v11  }
 0x115   : > { %6132 = vset.pattern.permute.xlu1 %v6273_v1 }
 0x161   : > { %v380_v43 = vpop.permute.xlu1 %379 }
 0x162   : > { %v382_v44 = vadd.f32 %v380_v43, %v372_v42  ;;  %v6449_v42 = vld [vmem:[%s9003_s3 + $0x8] sm:$0xff] }
 0x164   : > { %v387_v45 = vadd.f32 %v6386_v40, %v382_v44  ;;  %v1370_v44 = vrot.slane %v6359_v26, %v6405_v56 }
 0x166   : > { %v388_v46 = vmul.f32 0.01, %v387_v45  ;;  %v1371_v1 = vmul.f32 %v1370_v44, %v6388_v41 }
 0x168   : > { %v389_v47 = vmax.f32 %v387_v45, %v388_v46  ;;  %v1372_v46 = vmul.f32 %v1370_v44, %v6363_v28 }
 0x16a   : > { %v398_v48 = vrot.slane %v389_v47, %v6357_v21  ;;  %v418_v52 = vrot.slane %v389_v47, %v6393_v49  ;;  %v438_v57 = vrot.slane %v389_v47, %v6405_v56  ;;  %v458_v60 = vrot.slane %v389_v47, %v6409_v58 }
 0x16c   : > { %v425_v55 = vmul.f32 %v6400_v53, %v418_v52  ;;  %v399_v7 = vmul.f32 %v398_v48, %v6428_v6 }
 0x172   : > { %v6395_v50 = vpop.permute.xlu1 %402 }
 0x173   : > { %v405_v51 = vmul.f32 %v6395_v50, %v398_v48 }
 0x175   : > { %407 = vrot.lane.b32.xlu0 %v405_v51, %s6265_s17 }
 0x177   : > { %v6402_v54 = vpop.permute.xlu1 %442 }
 0x178   : > { %v445_v59 = vmul.f32 %v6402_v54, %v438_v57 }
 0x179   : > { %427 = vrot.lane.b32.xlu0 %v425_v55, %s6265_s17 }
 0x17c   : > { %v6413_v61 = vpop.permute.xlu1 %462 }
 0x17d   : > { %447 = vrot.lane.b32.xlu0 %v445_v59, %s6265_s17  ;;  %v465_v62 = vmul.f32 %v6413_v61, %v458_v60 }
 0x17f   : > { %467 = vrot.lane.b32.xlu1 %v465_v62, %s6265_s17 }
 0x181   : > { %v6424_v3 = vpop.permute.xlu1 %412 }
 0x182   : > { %v419_v12 = vmul.f32 %v418_v52, %v6424_v3 }
 0x183   : > { %491 = vrot.lane.b32.xlu1 %v6350_v11, %s6272_s18 }
 0x186   : > { %v6426_v5 = vpop.permute.xlu1 %432 }
 0x187   : > { %937 = vrot.lane.b32.xlu1 %v935_v0, %s6265_s17  ;;  %v439_v17 = vmul.f32 %v438_v57, %v6426_v5 }
 0x18b   : > { %v6431_v8 = vpop.permute.xlu1 %452 }
 0x18c   : > { %v459_v22 = vmul.f32 %v458_v60, %v6431_v8 }
 0x190   : > { %v6434_v15 = vpop.permute.xlu1 %472 }
 0x1e7   : > { %v408_v9 = vpop.permute.xlu0 %407 }
 0x1e8   : > { %v410_v10 = vadd.f32 %v408_v9, %v399_v7 }
 0x1ea   : > { %v420_v13 = vadd.f32 %v419_v12, %v410_v10 }
 0x1eb   : > { %v428_v14 = vpop.permute.xlu0 %427 }
 0x1ec   : > { %v430_v16 = vadd.f32 %v428_v14, %v420_v13 }
 0x1ee   : > { %v440_v18 = vadd.f32 %v439_v17, %v430_v16 }
 0x1ef   : > { %v448_v19 = vpop.permute.xlu0 %447 }
 0x1f0   : > { %v450_v20 = vadd.f32 %v448_v19, %v440_v18 }
 0x1f1   : > { %v468_v23 = vpop.permute.xlu1 %467 }
 0x1f2   : > { %v460_v24 = vadd.f32 %v459_v22, %v450_v20 }
 0x1f4   : > { %v470_v25 = vadd.f32 %v468_v23, %v460_v24 }
 0x1f5   : > { %v6438_v27 = vpop.permute.xlu1 %491 }
 0x1f6   : > { %v475_v33 = vadd.f32 %v6434_v15, %v470_v25  ;;  %5523 = vmatprep.mubr.msk.f32.mxu1 %vm282_vm1, %v6438_v27 }
 0x1f8   : > { %v476_v34 = vmul.f32 0.01, %v475_v33 }
 0x1f9   : > { %v938_v36 = vpop.permute.xlu1 %937 }
 0x1fa   : > { %v940_v37 = vadd.f32 %v938_v36, %v934_v35  ;;  %v477_v38 = vmax.f32 %v475_v33, %v476_v34 }
 0x1fc   : > { %v941_v39 = vadd.f32 %v940_v37, %v6386_v40  ;;  %479 = vrot.lane.b32.xlu0 %v477_v38, %s6265_s17 }
 0x1fe   : > { %v942_v43 = vmul.f32 0.01, %v941_v39 }
 0x200   : > { %v943_v45 = vmax.f32 %v941_v39, %v942_v43  ;;  %493 = vrot.lane.b32.xlu0 %v6449_v42, %s6272_s18 }
 0x202   : > { %v947_v47 = vrot.slane %v943_v45, %v6357_v21  ;;  %v959_v48 = vrot.slane %v943_v45, %v6393_v49  ;;  %v971_v55 = vrot.slane %v943_v45, %v6405_v56  ;;  %v983_v57 = vrot.slane %v943_v45, %v6409_v58 }
 0x204   : > { %1374 = vrot.lane.b32.xlu0 %v1372_v46, %s6265_s17  ;;  %v950_v51 = vmul.f32 %v947_v47, %v6395_v50  ;;  %v962_v52 = vmul.f32 %v959_v48, %v6400_v53  ;;  %v974_v59 = vmul.f32 %v971_v55, %v6402_v54  ;;  %v986_v60 = vmul.f32 %v983_v57, %v6413_v61 }
 0x205   : > { %v948_v10 = vmul.f32 %v947_v47, %v6428_v6  ;;  %v960_v16 = vmul.f32 %v959_v48, %v6424_v3  ;;  %v972_v23 = vmul.f32 %v971_v55, %v6426_v5  ;;  %v984_v47 = vmul.f32 %v983_v57, %v6431_v8 }
 0x206   : > { %952 = vrot.lane.b32.xlu1 %v950_v51, %s6265_s17 }
 0x208   : > { %964 = vrot.lane.b32.xlu0 %v962_v52, %s6265_s17 }
 0x20a   : > { %483 = vperm.xlu1 %6132, %v6350_v11  }
 0x20c   : > { %488 = vperm.xlu0 %6133, %v6449_v42  }
 0x20e   : > { %976 = vrot.lane.b32.xlu1 %v974_v59, %s6265_s17 }
 0x210   : > { %988 = vrot.lane.b32.xlu0 %v986_v60, %s6265_s17 }
 0x26e   : > { %v480_v62 = vpop.permute.xlu0 %479 }
 0x26f   : > { %v5720_v63 = vpack.c.bf16 %v480_v62, %v477_v38  ;;  %v1807_v62 = vrot.slane %v6359_v26, %v6409_v58 }
 0x271   : > { %5721 = vmatprep.subr.bf16.mxu1 %v5720_v63 }
 0x272   : > { %5723 = vmatpush3.bf16.msra.mxu1 %v5720_v63  ;;  %v6471_v0 = vpop.permute.xlu0 %493  ;;  %v1809_v63 = vmul.f32 %v1807_v62, %v6363_v28 }
 0x275   : > { %5524 = vmatmul.mubr.msk.f32.vlgmr.msra.gmra.mrb[0].mxu1 %vm282_vm1, %v6471_v0 }
 0x276   : > { %5544 = vmatprep.mubr.msk.f32.mxu1 %vm282_vm1, %v6438_v27  ;;  %v1375_v7 = vpop.permute.xlu0 %1374 }
 0x277   : > { %v1377_v9 = vadd.f32 %v1375_v7, %v1371_v1 }
 0x278   : > { %v953_v12 = vpop.permute.xlu1 %952 }
 0x279   : > { %v1378_v13 = vadd.f32 %v1377_v9, %v6386_v40  ;;  %v955_v14 = vadd.f32 %v953_v12, %v948_v10 }
 0x27a   : > { %v965_v19 = vpop.permute.xlu0 %964 }
 0x27b   : > { %v1379_v17 = vmul.f32 0.01, %v1378_v13  ;;  %v961_v18 = vadd.f32 %v960_v16, %v955_v14 }
 0x27d   : > { %v1380_v20 = vmax.f32 %v1378_v13, %v1379_v17  ;;  %v967_v22 = vadd.f32 %v965_v19, %v961_v18 }
 0x27f   : > { %v1408_v24 = vrot.slane %v1380_v20, %v6405_v56  ;;  %v1384_v25 = vrot.slane %v1380_v20, %v6357_v21  ;;  %v973_v33 = vadd.f32 %v972_v23, %v967_v22  ;;  %v1396_v36 = vrot.slane %v1380_v20, %v6393_v49 }
 0x280   : > { %v1420_v38 = vrot.slane %v1380_v20, %v6409_v58 }
 0x281   : > { %v1411_v34 = vmul.f32 %v1408_v24, %v6402_v54  ;;  %v1387_v35 = vmul.f32 %v1384_v25, %v6395_v50  ;;  %v1399_v37 = vmul.f32 %v1396_v36, %v6400_v53  ;;  %v1385_v1 = vmul.f32 %v1384_v25, %v6428_v6 }
 0x282   : > { %v1423_v43 = vmul.f32 %v1420_v38, %v6413_v61  ;;  %v1397_v9 = vmul.f32 %v1396_v36, %v6424_v3  ;;  %v1409_v13 = vmul.f32 %v1408_v24, %v6426_v5  ;;  %v1421_v26 = vmul.f32 %v1420_v38, %v6431_v8 }
 0x283   : > { %1413 = vrot.lane.b32.xlu0 %v1411_v34, %s6265_s17  ;;  %1389 = vrot.lane.b32.xlu1 %v1387_v35, %s6265_s17  ;;  %v1808_v25 = vmul.f32 %v1807_v62, %v6388_v41 }
 0x287   : > { %1401 = vrot.lane.b32.xlu1 %v1399_v37, %s6265_s17 }
 0x289   : > { %v6492_v39 = vpop.permute.xlu1 %483 }
 0x28b   : > { %1425 = vrot.lane.b32.xlu1 %v1423_v43, %s6265_s17  ;;  %v6496_v44 = vpop.permute.xlu0 %488 }
 0x28d   : > { %v977_v45 = vpop.permute.xlu1 %976 }
 0x28e   : > { %v979_v46 = vadd.f32 %v977_v45, %v973_v33 }
 0x28f   : > { %v989_v51 = vpop.permute.xlu0 %988 }
 0x290   : > { %v985_v48 = vadd.f32 %v984_v47, %v979_v46 }
 0x292   : > { %v991_v52 = vadd.f32 %v989_v51, %v985_v48 }
 0x294   : > { %v992_v55 = vadd.f32 %v991_v52, %v6434_v15 }
 0x296   : > { %v993_v59 = vmul.f32 0.01, %v992_v55 }
 0x298   : > { %v994_v60 = vmax.f32 %v992_v55, %v993_v59 }
 0x29a   : > { %996 = vrot.lane.b32.xlu1 %v994_v60, %s6265_s17 }
 0x29e   : > { %1811 = vrot.lane.b32.xlu1 %v1809_v63, %s6265_s17 }
 0x2f5   : > { %v1390_v7 = vpop.permute.xlu1 %1389  ;;  %v1414_v17 = vpop.permute.xlu0 %1413 }
 0x2f6   : > { %v1392_v57 = vadd.f32 %v1390_v7, %v1385_v1 }
 0x2f8   : > { %v1398_v10 = vadd.f32 %v1397_v9, %v1392_v57 }
 0x2f9   : > { %v1402_v12 = vpop.permute.xlu1 %1401 }
 0x2fa   : > { %v1404_v14 = vadd.f32 %v1402_v12, %v1398_v10 }
 0x2fc   : > { %v1410_v16 = vadd.f32 %v1409_v13, %v1404_v14  ;;  %v2246_v13 = vmul.f32 %v6366_v29, %v6363_v28 }
 0x2fd   : > { %v1426_v20 = vpop.permute.xlu1 %1425 }
 0x2fe   : > { %v1416_v18 = vadd.f32 %v1414_v17, %v1410_v16 }
 0x300   : > { %v1422_v19 = vadd.f32 %v1421_v26, %v1416_v18 }
 0x302   : > { %v1428_v48 = vadd.f32 %v1426_v20, %v1422_v19 }
 0x304   : > { %v1429_v62 = vadd.f32 %v1428_v48, %v6434_v15 }
 0x306   : > { %v1430_v57 = vmul.f32 0.01, %v1429_v62 }
 0x308   : > { %v1431_v12 = vmax.f32 %v1429_v62, %v1430_v57 }
 0x30c   : > { %v997_v22 = vpop.permute.xlu1 %996 }
 0x30d   : > { %v5732_v23 = vpack.c.bf16 %v997_v22, %v994_v60 }
 0x30f   : > { %5733 = vmatprep.subr.bf16.mxu1 %v5732_v23 }
 0x310   : > { %5735 = vmatpush3.bf16.msra.mxu1 %v5732_v23  ;;  %v1812_v33 = vpop.permute.xlu1 %1811 }
 0x311   : > { %v1814_v34 = vadd.f32 %v1812_v33, %v1808_v25 }
 0x313   : > { %v1815_v35 = vadd.f32 %v1814_v34, %v6386_v40  ;;  %5545 = vmatmul.mubr.msk.f32.vlgmr.msra.gmra.mrb[2].mxu1 %vm282_vm1, %v6471_v0 }
 0x314   : > { %5555 = vmatprep.mubr.msk.f32.mxu1 %vm604_vm2, %v6350_v11 }
 0x315   : > { %v1816_v24 = vmul.f32 0.01, %v1815_v35 }
 0x317   : > { %v1817_v36 = vmax.f32 %v1815_v35, %v1816_v24  ;;  %v2245_v24 = vmul.f32 %v6366_v29, %v6388_v41 }
 0x319   : > { %v1821_v37 = vrot.slane %v1817_v36, %v6357_v21  ;;  %v1845_v43 = vrot.slane %v1817_v36, %v6405_v56  ;;  %v1857_v46 = vrot.slane %v1817_v36, %v6409_v58  ;;  %v1833_v14 = vrot.slane %v1817_v36, %v6393_v49  ;;  %v6544_v36 = vld [vmem:[%s9003_s3 + $0x10] sm:$0xff] }
 0x31b   : > { %v1824_v38 = vmul.f32 %v1821_v37, %v6395_v50  ;;  %v1848_v45 = vmul.f32 %v1845_v43, %v6402_v54  ;;  %v1860_v47 = vmul.f32 %v1857_v46, %v6413_v61  ;;  %v1836_v16 = vmul.f32 %v1833_v14, %v6400_v53 }
 0x31c   : > { %v1822_v17 = vmul.f32 %v1821_v37, %v6428_v6  ;;  %v1834_v19 = vmul.f32 %v1833_v14, %v6424_v3  ;;  %v1858_v62 = vmul.f32 %v1857_v46, %v6431_v8 }
 0x31d   : > { %1826 = vrot.lane.b32.xlu1 %v1824_v38, %s6265_s17 }
 0x321   : > { %1850 = vrot.lane.b32.xlu1 %v1848_v45, %s6265_s17  ;;  %v6553_v45 = vld [vmem:[%s9003_s3 + $0x18] sm:$0xff] }
 0x325   : > { %1862 = vrot.lane.b32.xlu1 %v1860_v47, %s6265_s17 }
 0x348   : > { %v5525_v51 = vpop.f32.mrb[0].mxu1 }
 0x349   : > { %v571_v52 = vadd.f32 %v5525_v51, %v6496_v44  ;;  %v565_v55 = vpop.f32.mrb[1].mxu1  ;;  %v1846_v51 = vmul.f32 %v1845_v43, %v6426_v5 }
 0x34a   : > { %v566_v59 = vadd.f32 %v565_v55, %v6492_v39 }
 0x34b   : > { %v575_v60 = vmul.f32 0.01, %v571_v52 }
 0x34c   : > { %v574_v63 = vmul.f32 0.01, %v566_v59 }
 0x34d   : > { %v577_v1 = vmax.f32 %v571_v52, %v575_v60 }
 0x34e   : > { %v576_v7 = vmax.f32 %v566_v59, %v574_v63 }
 0x350   : > { %v6134_v9 = vpack.i.bf16 %v577_v1, %v576_v7  ;;  %v5724_v10 = vpack.c.bf16 %v577_v1, %v576_v7 }
 0x352   : > { %6135 = vrot.lane.b32.xlu0 %v6134_v9, %s6265_s17  ;;  %5725 = vmatprep.subr.bf16.mxu0 %v5724_v10 }
 0x353   : > { %5727 = vmatpush3.bf16.msra.mxu0 %v5724_v10 }
 0x356   : > { %1433 = vrot.lane.b32.xlu0 %v1431_v12, %s6265_s17 }
 0x35a   : > { %2248 = vrot.lane.b32.xlu0 %v2246_v13, %s6265_s17 }
 0x35e   : > { %1838 = vrot.lane.b32.xlu0 %v1836_v16, %s6265_s17 }
 0x38f   : > { %v1827_v26 = vpop.permute.xlu1 %1826 }
 0x390   : > { %v1829_v18 = vadd.f32 %v1827_v26, %v1822_v17 }
 0x392   : > { %v1835_v20 = vadd.f32 %v1834_v19, %v1829_v18 }
 0x393   : > { %v1851_v60 = vpop.permute.xlu1 %1850 }
 0x397   : > { %v1863_v14 = vpop.permute.xlu1 %1862 }
 0x3c4   : > { %v6136_v22 = vpop.permute.xlu0 %6135 }
 0x3c5   : > { %v6138_v23 = vunpack.i.h.bf16 %v6136_v22  ;;  %v6137_v25 = vunpack.i.l.bf16 %v6136_v22 }
 0x3c7   : > { %v5728_v33 = vpack.c.bf16 %v6138_v23, %v6137_v25 }
 0x3c8   : > { %v1434_v34 = vpop.permute.xlu0 %1433 }
 0x3c9   : > { %v5744_v35 = vpack.c.bf16 %v1434_v34, %v1431_v12  ;;  %5729 = vmatprep.subr.bf16.mxu0 %v5728_v33 }
 0x3ca   : > { %5731 = vmatpush3.bf16.msra.mxu0 %v5728_v33 }
 0x3cb   : > { %5745 = vmatprep.subr.bf16.mxu0 %v5744_v35 }
 0x3cc   : > { %v2249_v37 = vpop.permute.xlu0 %2248 }
 0x3cd   : > { %v2251_v38 = vadd.f32 %v2249_v37, %v2245_v24  ;;  %5535 = vmatmul.mubr.msk.f32.vlgmr.msra.gmra.mrb[2].mxu0 %vm604_vm2, %v6449_v42 }
 0x3ce   : > { %5747 = vmatpush3.bf16.msra.mxu0 %v5744_v35  ;;  %5537 = vmatprep.mubr.msk.f32.mxu0 %vm604_vm2, %v6544_v36 }
 0x3cf   : > { %v2252_v29 = vadd.f32 %v2251_v38, %v6386_v40  ;;  %v2683_v38 = vmul.f32 %v6369_v30, %v6363_v28 }
 0x3d0   : > { %v1839_v47 = vpop.permute.xlu0 %1838 }
 0x3d1   : > { %v2253_v48 = vmul.f32 0.01, %v2252_v29  ;;  %v1841_v52 = vadd.f32 %v1839_v47, %v1835_v20  ;;  %5538 = vmatmul.mubr.msk.f32.gmra.mrb[4].mxu0 %vm604_vm2, %v6553_v45 }
 0x3d2   : > { %5565 = vmatprep.mubr.msk.f32.mxu0 %vm282_vm1, %v6438_v27 }
 0x3d3   : > { %v2254_v55 = vmax.f32 %v2252_v29, %v2253_v48  ;;  %v1847_v59 = vadd.f32 %v1846_v51, %v1841_v52  ;;  %v3557_v29 = vmul.f32 %v6372_v31, %v6363_v28 }
 0x3d5   : > { %v1853_v63 = vadd.f32 %v1851_v60, %v1847_v59  ;;  %5566 = vmatmul.mubr.msk.f32.vlgmr.msra.gmra.mrb[6].mxu0 %vm282_vm1, %v6471_v0  ;;  %v2282_v1 = vrot.slane %v2254_v55, %v6405_v56  ;;  %v2258_v43 = vrot.slane %v2254_v55, %v6357_v21  ;;  %v2270_v10 = vrot.slane %v2254_v55, %v6393_v49 }
 0x3d6   : > { %5586 = vmatprep.mubr.msk.f32.mxu0 %vm282_vm1, %v6438_v27  ;;  %v2294_v12 = vrot.slane %v2254_v55, %v6409_v58 }
 0x3d7   : > { %v1859_v7 = vadd.f32 %v1858_v62, %v1853_v63  ;;  %v2285_v57 = vmul.f32 %v2282_v1, %v6402_v54  ;;  %v2261_v9 = vmul.f32 %v2258_v43, %v6395_v50  ;;  %v2273_v46 = vmul.f32 %v2270_v10, %v6400_v53 }
 0x3d8   : > { %v2297_v13 = vmul.f32 %v2294_v12, %v6413_v61  ;;  %v2259_v47 = vmul.f32 %v2258_v43, %v6428_v6  ;;  %v2271_v52 = vmul.f32 %v2270_v10, %v6424_v3  ;;  %v2283_v60 = vmul.f32 %v2282_v1, %v6426_v5 }
 0x3d9   : > { %2287 = vrot.lane.b32.xlu1 %v2285_v57, %s6265_s17  ;;  %2263 = vrot.lane.b32.xlu0 %v2261_v9, %s6265_s17  ;;  %v1865_v17 = vadd.f32 %v1863_v14, %v1859_v7  ;;  %v2295_v9 = vmul.f32 %v2294_v12, %v6431_v8  ;;  %v2682_v10 = vmul.f32 %v6369_v30, %v6388_v41 }
 0x3db   : > { %v1866_v23 = vadd.f32 %v1865_v17, %v6434_v15 }
 0x3dd   : > { %2275 = vrot.lane.b32.xlu0 %v2273_v46, %s6265_s17  ;;  %v1867_v24 = vmul.f32 0.01, %v1866_v23 }
 0x3df   : > { %v1868_v37 = vmax.f32 %v1866_v23, %v1867_v24 }
 0x3e1   : > { %2299 = vrot.lane.b32.xlu0 %v2297_v13, %s6265_s17 }
 0x3e6   : > { %v5546_v16 = vpop.f32.mrb[2].mxu1 }
 0x3e7   : > { %v1071_v26 = vadd.f32 %v5546_v16, %v6496_v44  ;;  %v1065_v18 = vpop.f32.mrb[3].mxu1 }
 0x3e8   : > { %v1066_v19 = vadd.f32 %v1065_v18, %v6492_v39 }
 0x3e9   : > { %v1075_v20 = vmul.f32 0.01, %v1071_v26 }
 0x3ea   : > { %v1074_v22 = vmul.f32 0.01, %v1066_v19 }
 0x3eb   : > { %v1077_v25 = vmax.f32 %v1071_v26, %v1075_v20 }
 0x3ec   : > { %v1076_v33 = vmax.f32 %v1066_v19, %v1074_v22  ;;  %v3556_v19 = vmul.f32 %v6372_v31, %v6388_v41 }
 0x3ee   : > { %v5736_v34 = vpack.c.bf16 %v1077_v25, %v1076_v33  ;;  %v6139_v35 = vpack.i.bf16 %v1077_v25, %v1076_v33 }
 0x3f0   : > { %5737 = vmatprep.subr.bf16.mxu1 %v5736_v34  ;;  %6140 = vrot.lane.b32.xlu1 %v6139_v35, %s6265_s17 }
 0x3f1   : > { %5739 = vmatpush3.bf16.msra.mxu1 %v5736_v34 }
 0x3f4   : > { %1870 = vrot.lane.b32.xlu1 %v1868_v37, %s6265_s17 }
 0x3f8   : > { %2685 = vrot.lane.b32.xlu1 %v2683_v38, %s6265_s17 }
 0x3fc   : > { %3559 = vrot.lane.b32.xlu1 %v3557_v29, %s6265_s17 }
 0x44b   : > { %v2264_v48 = vpop.permute.xlu0 %2263  ;;  %v2288_v7 = vpop.permute.xlu1 %2287 }
 0x44c   : > { %v2266_v51 = vadd.f32 %v2264_v48, %v2259_v47 }
 0x44e   : > { %v2272_v55 = vadd.f32 %v2271_v52, %v2266_v51 }
 0x44f   : > { %v2276_v59 = vpop.permute.xlu0 %2275 }
 0x450   : > { %v2278_v62 = vadd.f32 %v2276_v59, %v2272_v55 }
 0x452   : > { %v2284_v63 = vadd.f32 %v2283_v60, %v2278_v62 }
 0x453   : > { %v2300_v52 = vpop.permute.xlu0 %2299 }
 0x454   : > { %v2290_v57 = vadd.f32 %v2288_v7, %v2284_v63 }
 0x456   : > { %v2296_v46 = vadd.f32 %v2295_v9, %v2290_v57 }
 0x458   : > { %v2302_v55 = vadd.f32 %v2300_v52, %v2296_v46 }
 0x45a   : > { %v2303_v57 = vadd.f32 %v2302_v55, %v6434_v15 }
 0x462   : > { %v6141_v13 = vpop.permute.xlu1 %6140 }
 0x463   : > { %v6143_v14 = vunpack.i.h.bf16 %v6141_v13  ;;  %v6142_v16 = vunpack.i.l.bf16 %v6141_v13 }
 0x465   : > { %v5740_v17 = vpack.c.bf16 %v6143_v14, %v6142_v16  ;;  %v2304_v16 = vmul.f32 0.01, %v2303_v57 }
 0x466   : > { %v1871_v43 = vpop.permute.xlu1 %1870 }
 0x467   : > { %v5756_v26 = vpack.c.bf16 %v1871_v43, %v1868_v37  ;;  %5741 = vmatprep.subr.bf16.mxu1 %v5740_v17  ;;  %v2305_v46 = vmax.f32 %v2303_v57, %v2304_v16 }
 0x468   : > { %5743 = vmatpush3.bf16.msra.mxu1 %v5740_v17 }
 0x469   : > { %5757 = vmatprep.subr.bf16.mxu0 %v5756_v26 }
 0x46a   : > { %v2686_v1 = vpop.permute.xlu1 %2685  ;;  %5759 = vmatpush3.bf16.msra.mxu0 %v5756_v26  ;;  %v3120_v26 = vmul.f32 %v6375_v32, %v6363_v28 }
 0x46b   : > { %v2688_v18 = vadd.f32 %v2686_v1, %v2682_v10  ;;  %5556 = vmatmul.mubr.msk.f32.vlgmr.msra.gmra.mrb[4].mxu1 %vm604_vm2, %v6449_v42 }
 0x46c   : > { %5558 = vmatprep.mubr.msk.f32.mxu1 %vm604_vm2, %v6544_v36 }
 0x46d   : > { %v2689_v12 = vadd.f32 %v2688_v18, %v6386_v40  ;;  %5587 = vmatmul.mubr.msk.f32.vlgmr.msra.gmra.mrb[8].mxu0 %vm282_vm1, %v6471_v0 }
 0x46e   : > { %v3560_v20 = vpop.permute.xlu1 %3559  ;;  %5597 = vmatprep.mubr.msk.f32.mxu0 %vm604_vm2, %v6350_v11 }
 0x46f   : > { %v2690_v30 = vmul.f32 0.01, %v2689_v12  ;;  %v3562_v22 = vadd.f32 %v3560_v20, %v3556_v19  ;;  %5559 = vmatmul.mubr.msk.f32.gmra.mrb[6].mxu1 %vm604_vm2, %v6553_v45 }
 0x470   : > { %5576 = vmatprep.mubr.msk.f32.mxu1 %vm604_vm2, %v6350_v11 }
 0x471   : > { %v6610_v23 = vmax.f32 %v2689_v12, %v2690_v30  ;;  %v3563_v25 = vadd.f32 %v3562_v22, %v6386_v40 }
 0x473   : > { %v3564_v33 = vmul.f32 0.01, %v3563_v25  ;;  %v6615_v31 = vrot.slane %v6610_v23, %v6393_v49  ;;  %v6623_v24 = vrot.slane %v6610_v23, %v6405_v56  ;;  %v2695_v10 = vrot.slane %v6610_v23, %v6357_v21 }
 0x475   : > { %v6617_v34 = vmax.f32 %v3563_v25, %v3564_v33  ;;  %v2710_v35 = vmul.f32 %v6615_v31, %v6400_v53  ;;  %v2722_v11 = vmul.f32 %v6623_v24, %v6402_v54  ;;  %v2698_v1 = vmul.f32 %v2695_v10, %v6395_v50 }
 0x477   : > { %2712 = vrot.lane.b32.xlu1 %v2710_v35, %s6265_s17  ;;  %v3569_v37 = vrot.slane %v6617_v34, %v6357_v21  ;;  %v3581_v19 = vrot.slane %v6617_v34, %v6393_v49 }
 0x479   : > { %v3572_v38 = vmul.f32 %v3569_v37, %v6395_v50  ;;  %v3570_v20 = vmul.f32 %v3569_v37, %v6428_v6  ;;  %v3582_v28 = vmul.f32 %v3581_v19, %v6424_v3 }
 0x47b   : > { %2724 = vrot.lane.b32.xlu1 %v2722_v11, %s6265_s17 }
 0x47f   : > { %3574 = vrot.lane.b32.xlu1 %v3572_v38, %s6265_s17 }
 0x4a0   : > { %v6633_v29 = vpop.f32.mrb[2].mxu0 }
 0x4a1   : > { %v6635_v47 = vpop.f32.mrb[3].mxu0 }
 0x4a4   : > { %v6637_v48 = vpop.f32.mrb[4].mxu0 }
 0x4a5   : > { %v6639_v51 = vpop.f32.mrb[5].mxu0 }
 0x4a8   : > { %v5567_v59 = vpop.f32.mrb[6].mxu0 }
 0x4a9   : > { %v1508_v60 = vadd.f32 %v5567_v59, %v6496_v44  ;;  %v1502_v62 = vpop.f32.mrb[7].mxu0  ;;  %v3119_v59 = vmul.f32 %v6375_v32, %v6388_v41 }
 0x4aa   : > { %v1503_v63 = vadd.f32 %v1502_v62, %v6492_v39 }
 0x4ab   : > { %v1512_v7 = vmul.f32 0.01, %v1508_v60 }
 0x4ac   : > { %v1511_v9 = vmul.f32 0.01, %v1503_v63 }
 0x4ad   : > { %v1514_v13 = vmax.f32 %v1508_v60, %v1512_v7 }
 0x4ae   : > { %v1513_v14 = vmax.f32 %v1503_v63, %v1511_v9  ;;  %v2696_v63 = vmul.f32 %v2695_v10, %v6428_v6  ;;  %v2708_v9 = vmul.f32 %v6615_v31, %v6424_v3  ;;  %v2720_v31 = vmul.f32 %v6623_v24, %v6426_v5 }
 0x4af   : > { %v6691_v24 = vrot.slane %v6617_v34, %v6409_v58 }
 0x4b0   : > { %v6144_v17 = vpack.i.bf16 %v1514_v13, %v1513_v14  ;;  %v5748_v43 = vpack.c.bf16 %v1514_v13, %v1513_v14 }
 0x4b2   : > { %6145 = vrot.lane.b32.xlu0 %v6144_v17, %s6265_s17  ;;  %5749 = vmatprep.subr.bf16.mxu1 %v5748_v43  ;;  %v2731_v17 = vrot.slane %v6610_v23, %v6409_v58 }
 0x4b3   : > { %5751 = vmatpush3.bf16.msra.mxu1 %v5748_v43 }
 0x4b6   : > { %2307 = vrot.lane.b32.xlu0 %v2305_v46, %s6265_s17 }
 0x4ba   : > { %3122 = vrot.lane.b32.xlu0 %v3120_v26, %s6265_s17 }
 0x4be   : > { %2700 = vrot.lane.b32.xlu0 %v2698_v1, %s6265_s17 }
 0x4e9   : > { %v2713_v18 = vpop.permute.xlu1 %2712 }
 0x4ed   : > { %v2725_v12 = vpop.permute.xlu1 %2724 }
 0x4f1   : > { %v3575_v30 = vpop.permute.xlu1 %3574 }
 0x4f2   : > { %v3577_v22 = vadd.f32 %v3575_v30, %v3570_v20  ;;  %v3608_v20 = vmul.f32 %v6691_v24, %v6413_v61  ;;  %v2734_v30 = vmul.f32 %v2731_v17, %v6413_v61 }
 0x4f4   : > { %v6657_v25 = vadd.f32 %v3582_v28, %v3577_v22 }
 0x524   : > { %v6146_v33 = vpop.permute.xlu0 %6145 }
 0x525   : > { %v6148_v35 = vunpack.i.h.bf16 %v6146_v33  ;;  %v6147_v11 = vunpack.i.l.bf16 %v6146_v33 }
 0x527   : > { %v5752_v38 = vpack.c.bf16 %v6148_v35, %v6147_v11  ;;  %v3584_v35 = vmul.f32 %v3581_v19, %v6400_v53  ;;  %v3593_v11 = vrot.slane %v6617_v34, %v6405_v56 }
 0x528   : > { %v2308_v52 = vpop.permute.xlu0 %2307 }
 0x529   : > { %v5768_v55 = vpack.c.bf16 %v2308_v52, %v2305_v46  ;;  %5753 = vmatprep.subr.bf16.mxu1 %v5752_v38 }
 0x52a   : > { %5755 = vmatpush3.bf16.msra.mxu1 %v5752_v38 }
 0x52b   : > { %5769 = vmatprep.subr.bf16.mxu1 %v5768_v55 }
 0x52c   : > { %v3123_v60 = vpop.permute.xlu0 %3122 }
 0x52d   : > { %v3125_v37 = vadd.f32 %v3123_v60, %v3119_v59  ;;  %5577 = vmatmul.mubr.msk.f32.vlgmr.msra.gmra.mrb[8].mxu1 %vm604_vm2, %v6449_v42 }
 0x52e   : > { %5771 = vmatpush3.bf16.msra.mxu1 %v5768_v55  ;;  %5579 = vmatprep.mubr.msk.f32.mxu1 %vm604_vm2, %v6544_v36  ;;  %v3596_v55 = vmul.f32 %v3593_v11, %v6402_v54 }
 0x52f   : > { %v3126_v62 = vadd.f32 %v3125_v37, %v6386_v40  ;;  %v6274_v37 = vmov 56  }
 0x530   : > { %v2701_v7 = vpop.permute.xlu0 %2700  ;;  %6160 = vset.pattern.permute.xlu1 %v6274_v37  ;;  %6154 = vset.pattern.permute.xlu0 %v6274_v37 }
 0x531   : > { %v3127_v57 = vmul.f32 0.01, %v3126_v62  ;;  %v2703_v13 = vadd.f32 %v2701_v7, %v2696_v63  ;;  %5580 = vmatmul.mubr.msk.f32.gmra.mrb[10].mxu1 %vm604_vm2, %v6553_v45 }
 0x532   : > { %5607 = vmatprep.mubr.msk.f32.mxu1 %vm282_vm1, %v6438_v27 }
 0x533   : > { %v3128_v32 = vmax.f32 %v3126_v62, %v3127_v57  ;;  %v2709_v41 = vadd.f32 %v2708_v9, %v2703_v13 }
 0x535   : > { %v2715_v14 = vadd.f32 %v2713_v18, %v2709_v41  ;;  %5608 = vmatmul.mubr.msk.f32.vlgmr.msra.gmra.mrb[12].mxu1 %vm282_vm1, %v6471_v0  ;;  %v3156_v40 = vrot.slane %v3128_v32, %v6405_v56  ;;  %v3132_v16 = vrot.slane %v3128_v32, %v6357_v21  ;;  %v3168_v26 = vrot.slane %v3128_v32, %v6409_v58 }
 0x536   : > { %5628 = vmatprep.mubr.msk.f32.mxu1 %vm282_vm1, %v6438_v27  ;;  %v3144_v10 = vrot.slane %v3128_v32, %v6393_v49 }
 0x537   : > { %v3159_v43 = vmul.f32 %v3156_v40, %v6402_v54  ;;  %v3135_v46 = vmul.f32 %v3132_v16, %v6395_v50  ;;  %v2721_v21 = vadd.f32 %v2720_v31, %v2715_v14  ;;  %v3171_v1 = vmul.f32 %v3168_v26, %v6413_v61 }
 0x538   : > { %v3147_v23 = vmul.f32 %v3144_v10, %v6400_v53  ;;  %v2732_v50 = vmul.f32 %v2731_v17, %v6431_v8  ;;  %v3133_v54 = vmul.f32 %v3132_v16, %v6428_v6  ;;  %v3145_v7 = vmul.f32 %v3144_v10, %v6424_v3 }
 0x539   : > { %3161 = vrot.lane.b32.xlu1 %v3159_v43, %s6265_s17  ;;  %3137 = vrot.lane.b32.xlu0 %v3135_v46, %s6265_s17  ;;  %v2727_v18 = vadd.f32 %v2725_v12, %v2721_v21  ;;  %v3157_v13 = vmul.f32 %v3156_v40, %v6426_v5  ;;  %v3169_v17 = vmul.f32 %v3168_v26, %v6431_v8 }
 0x53a   : > { %v3594_v10 = vmul.f32 %v3593_v11, %v6426_v5  ;;  %v3606_v26 = vmul.f32 %v6691_v24, %v6431_v8 }
 0x53b   : > { %v2733_v49 = vadd.f32 %v2732_v50, %v2727_v18 }
 0x53d   : > { %3173 = vrot.lane.b32.xlu1 %v3171_v1, %s6265_s17  ;;  %3149 = vrot.lane.b32.xlu0 %v3147_v23, %s6265_s17 }
 0x53e   : > { %v6711_v53 = vpop.f32.mrb[4].mxu1 }
 0x53f   : > { %v6714_v56 = vpop.f32.mrb[5].mxu1 }
 0x540   : > { %v5588_v22 = vpop.f32.mrb[8].mxu0 }
 0x541   : > { %v1945_v58 = vadd.f32 %v5588_v22, %v6496_v44  ;;  %v1939_v28 = vpop.f32.mrb[9].mxu0  ;;  %3610 = vrot.lane.b32.xlu1 %v3608_v20, %s6265_s17  ;;  %2736 = vrot.lane.b32.xlu0 %v2734_v30, %s6265_s17 }
 0x542   : > { %v1940_v12 = vadd.f32 %v1939_v28, %v6492_v39  ;;  %v6716_v34 = vpop.f32.mrb[6].mxu1 }
 0x543   : > { %v1949_v33 = vmul.f32 0.01, %v1945_v58  ;;  %v6718_v19 = vpop.f32.mrb[7].mxu1 }
 0x544   : > { %v1948_v38 = vmul.f32 0.01, %v1940_v12 }
 0x545   : > { %v1951_v52 = vmax.f32 %v1945_v58, %v1949_v33  ;;  %3586 = vrot.lane.b32.xlu0 %v3584_v35, %s6265_s17 }
 0x546   : > { %v1950_v61 = vmax.f32 %v1940_v12, %v1948_v38 }
 0x548   : > { %v5760_v59 = vpack.c.bf16 %v1951_v52, %v1950_v61  ;;  %v6149_v60 = vpack.i.bf16 %v1951_v52, %v1950_v61  ;;  %v6744_v52 = vld [vmem:[%s9003_s3] sm:$0xff] }
 0x549   : > { %3598 = vrot.lane.b32.xlu0 %v3596_v55, %s6265_s17 }
 0x54a   : > { %5761 = vmatprep.subr.bf16.mxu0 %v5760_v59 }
 0x54b   : > { %5763 = vmatpush3.bf16.msra.mxu0 %v5760_v59 }
 0x54d   : > { %6150 = vrot.lane.b32.xlu0 %v6149_v60, %s6265_s17 }
 0x5ab   : > { %v3138_v62 = vpop.permute.xlu0 %3137  ;;  %v3162_v41 = vpop.permute.xlu1 %3161 }
 0x5ac   : > { %v3140_v63 = vadd.f32 %v3138_v62, %v3133_v54 }
 0x5ae   : > { %v3146_v57 = vadd.f32 %v3145_v7, %v3140_v63 }
 0x5af   : > { %v3150_v9 = vpop.permute.xlu0 %3149  ;;  %v3174_v6 = vpop.permute.xlu1 %3173 }
 0x5b0   : > { %v3152_v32 = vadd.f32 %v3150_v9, %v3146_v57 }
 0x5b2   : > { %v3158_v14 = vadd.f32 %v3157_v13, %v3152_v32 }
 0x5b3   : > { %v2737_v31 = vpop.permute.xlu0 %2736  ;;  %v3611_v12 = vpop.permute.xlu1 %3610 }
 0x5b4   : > { %v3164_v43 = vadd.f32 %v3162_v41, %v3158_v14  ;;  %v2739_v46 = vadd.f32 %v2737_v31, %v2733_v49 }
 0x5b6   : > { %v3170_v21 = vadd.f32 %v3169_v17, %v3164_v43  ;;  %v2740_v1 = vadd.f32 %v2739_v46, %v6434_v15 }
 0x5b7   : > { %v3587_v16 = vpop.permute.xlu0 %3586 }
 0x5b8   : > { %v2741_v23 = vmul.f32 0.01, %v2740_v1  ;;  %v3589_v3 = vadd.f32 %v3587_v16, %v6657_v25  ;;  %v3176_v18 = vadd.f32 %v3174_v6, %v3170_v21 }
 0x5ba   : > { %v3595_v40 = vadd.f32 %v3594_v10, %v3589_v3  ;;  %v2742_v50 = vmax.f32 %v2740_v1, %v2741_v23  ;;  %v3177_v20 = vadd.f32 %v3176_v18, %v6434_v15 }
 0x5bb   : > { %v3599_v30 = vpop.permute.xlu0 %3598 }
 0x5bc   : > { %v3601_v49 = vadd.f32 %v3599_v30, %v3595_v40  ;;  %2744 = vrot.lane.b32.xlu0 %v2742_v50, %s6265_s17  ;;  %v3178_v22 = vmul.f32 0.01, %v3177_v20 }
 0x5be   : > { %v3607_v58 = vadd.f32 %v3606_v26, %v3601_v49  ;;  %v6731_v28 = vmax.f32 %v3177_v20, %v3178_v22 }
 0x5bf   : > { %v6151_v25 = vpop.permute.xlu0 %6150 }
 0x5c0   : > { %v3613_v33 = vadd.f32 %v3611_v12, %v3607_v58  ;;  %v6153_v5 = vunpack.i.h.bf16 %v6151_v25  ;;  %v6152_v35 = vunpack.i.l.bf16 %v6151_v25  ;;  %3181 = vrot.lane.b32.xlu1 %v6731_v28, %s6265_s17 }
 0x5c2   : > { %v5764_v11 = vpack.c.bf16 %v6153_v5, %v6152_v35  ;;  %v3614_v38 = vadd.f32 %v3613_v33, %v6434_v15 }
 0x5c4   : > { %5765 = vmatprep.subr.bf16.mxu0 %v5764_v11  ;;  %v3615_v8 = vmul.f32 0.01, %v3614_v38 }
 0x5c5   : > { %5767 = vmatpush3.bf16.msra.mxu0 %v5764_v11 }
 0x5c6   : > { %v3616_v24 = vmax.f32 %v3614_v38, %v3615_v8 }
 0x5c8   : > { %3618 = vrot.lane.b32.xlu0 %v3616_v24, %s6265_s17  ;;  %5598 = vmatmul.mubr.msk.f32.vlgmr.msra.gmra.mrb[10].mxu0 %vm604_vm2, %v6449_v42 }
 0x5c9   : > { %5600 = vmatprep.mubr.msk.f32.mxu0 %vm604_vm2, %v6544_v36 }
 0x5cc   : > { %587 = vperm.xlu0 %6154, %v6744_v52   ;;  %5601 = vmatmul.mubr.msk.f32.gmra.mrb[12].mxu0 %vm604_vm2, %v6553_v45 }
 0x5cd   : > { %5618 = vmatprep.mubr.msk.f32.mxu0 %vm604_vm2, %v6744_v52 }
 0x600   : > { %v6751_v15 = vpop.f32.mrb[8].mxu1 }
 0x601   : > { %v1589_v61 = vpop.f32.mrb[9].mxu1 }
 0x604   : > { %v6753_v55 = vpop.f32.mrb[10].mxu1 }
 0x605   : > { %v6755_v59 = vpop.f32.mrb[11].mxu1 }
 0x608   : > { %v5609_v60 = vpop.f32.mrb[12].mxu1 }
 0x609   : > { %v2382_v37 = vadd.f32 %v5609_v60, %v6496_v44  ;;  %v2376_v54 = vpop.f32.mrb[13].mxu1 }
 0x60a   : > { %v2377_v62 = vadd.f32 %v2376_v54, %v6492_v39 }
 0x60b   : > { %v2386_v63 = vmul.f32 0.01, %v2382_v37 }
 0x60c   : > { %v2385_v7 = vmul.f32 0.01, %v2377_v62 }
 0x60d   : > { %v2388_v57 = vmax.f32 %v2382_v37, %v2386_v63 }
 0x60e   : > { %v2387_v9 = vmax.f32 %v2377_v62, %v2385_v7 }
 0x610   : > { %v6155_v13 = vpack.i.bf16 %v2388_v57, %v2387_v9  ;;  %v5772_v32 = vpack.c.bf16 %v2388_v57, %v2387_v9 }
 0x612   : > { %6156 = vrot.lane.b32.xlu1 %v6155_v13, %s6265_s17  ;;  %5773 = vmatprep.subr.bf16.mxu0 %v5772_v32 }
 0x613   : > { %5775 = vmatpush3.bf16.msra.mxu0 %v5772_v32 }
 0x62e   : > { %v2745_v41 = vpop.permute.xlu0 %2744 }
 0x62f   : > { %v5780_v14 = vpack.c.bf16 %v2745_v41, %v2742_v50 }
 0x631   : > { %5781 = vmatprep.subr.bf16.mxu1 %v5780_v14 }
 0x632   : > { %5783 = vmatpush3.bf16.msra.mxu1 %v5780_v14 }
 0x635   : > { %5629 = vmatmul.mubr.msk.f32.vlgmr.msra.gmra.mrb[14].mxu1 %vm282_vm1, %v6471_v0 }
 0x636   : > { %5639 = vmatprep.mubr.msk.f32.mxu1 %vm604_vm2, %v6744_v52 }
 0x63a   : > { %v3619_v31 = vpop.permute.xlu0 %3618 }
 0x63b   : > { %v5804_v22 = vpack.c.bf16 %v3619_v31, %v3616_v24 }
 0x64b   : > { %v6764_v17 = vpop.permute.xlu0 %587 }
 0x64c   : > { %v680_v43 = vadd.f32 %v6635_v47, %v6764_v17  ;;  %v1153_v46 = vadd.f32 %v6714_v56, %v6764_v17  ;;  %v1590_v21 = vadd.f32 %v1589_v61, %v6764_v17  ;;  %v3182_v56 = vpop.permute.xlu1 %3181 }
 0x64d   : > { %v5792_v49 = vpack.c.bf16 %v3182_v56, %v6731_v28 }
 0x64e   : > { %v698_v1 = vmul.f32 0.01, %v680_v43  ;;  %v1171_v6 = vmul.f32 0.01, %v1153_v46  ;;  %v1608_v16 = vmul.f32 0.01, %v1590_v21 }
 0x650   : > { %v702_v23 = vmax.f32 %v680_v43, %v698_v1  ;;  %v6771_v3 = vmax.f32 %v1153_v46, %v1171_v6  ;;  %v6776_v40 = vmax.f32 %v1590_v21, %v1608_v16 }
 0x652   : > { %v707_v10 = vsel %vm706_vm3, %v702_v23, 0.0  ;;  %v1179_v18 = vsel %vm706_vm3, %v6771_v3, 0.0  ;;  %v1616_v47 = vsel %vm706_vm3, %v6776_v40, 0.0 }
 0x653   : > { %708 = vadd.xlane.f32.xlu0 %v707_v10  ;;  %1180 = vadd.xlane.f32.xlu1 %v1179_v18 }
 0x657   : > { %1617 = vadd.xlane.f32.xlu0 %v1616_v47 }
 0x664   : > { %591 = vperm.xlu1 %6160, %v6449_v42  }
 0x668   : > { %596 = vperm.xlu1 %6160, %v6544_v36  }
 0x66c   : > { %601 = vperm.xlu1 %6160, %v6553_v45  }
 0x684   : > { %v6157_v50 = vpop.permute.xlu1 %6156 }
 0x685   : > { %v6159_v20 = vunpack.i.h.bf16 %v6157_v50  ;;  %v6158_v30 = vunpack.i.l.bf16 %v6157_v50 }
 0x687   : > { %v5776_v26 = vpack.c.bf16 %v6159_v20, %v6158_v30 }
 0x689   : > { %5777 = vmatprep.subr.bf16.mxu0 %v5776_v26 }
 0x68a   : > { %5779 = vmatpush3.bf16.msra.mxu0 %v5776_v26 }
 0x68b   : > { %5793 = vmatprep.subr.bf16.mxu0 %v5792_v49 }
 0x68d   : > { %5619 = vmatmul.mubr.msk.f32.vlgmr.msra.gmra.mrb[14].mxu0 %vm604_vm2, %v6449_v42 }
 0x68e   : > { %5795 = vmatpush3.bf16.msra.mxu0 %v5792_v49  ;;  %5621 = vmatprep.mubr.msk.f32.mxu0 %vm604_vm2, %v6544_v36 }
 0x68f   : > { %5805 = vmatprep.subr.bf16.mxu0 %v5804_v22 }
 0x691   : > { %5622 = vmatmul.mubr.msk.f32.gmra.mrb[16].mxu0 %vm604_vm2, %v6553_v45 }
 0x692   : > { %5649 = vmatprep.mubr.msk.f32.mxu0 %vm282_vm1, %v6438_v27 }
 0x695   : > { %5650 = vmatmul.mubr.msk.f32.vlgmr.msra.gmra.mrb[18].mxu0 %vm282_vm1, %v6471_v0 }
 0x696   : > { %5807 = vmatpush3.bf16.msra.mxu0 %v5804_v22  ;;  %5670 = vmatprep.mubr.msk.f32.mxu0 %vm282_vm1, %v6438_v27 }
 0x699   : > { %5671 = vmatmul.mubr.msk.f32.vlgmr.msra.gmra.mrb[20].mxu0 %vm282_vm1, %v6471_v0 }
 0x69a   : > { %5681 = vmatprep.mubr.msk.f32.mxu0 %vm604_vm2, %v6744_v52 }
 0x69b   : > { %v5599_v42 = vpop.f32.mrb[10].mxu0 }
 0x69c   : > { %v2026_v36 = vpop.f32.mrb[11].mxu0 }
 0x69d   : > { %v2027_v45 = vadd.f32 %v2026_v36, %v6764_v17 }
 0x69f   : > { %v2045_v58 = vmul.f32 0.01, %v2027_v45  ;;  %v6801_v28 = vpop.f32.mrb[12].mxu0 }
 0x6a0   : > { %v6803_v12 = vpop.f32.mrb[13].mxu0 }
 0x6a1   : > { %v6805_v25 = vmax.f32 %v2027_v45, %v2045_v58 }
 0x6a3   : > { %v2053_v27 = vsel %vm706_vm3, %v6805_v25, 0.0 }
 0x6a4   : > { %2054 = vadd.xlane.f32.xlu0 %v2053_v27 }
 0x6e0   : > { %v709_v33 = vpop.xlane.xlu0 %708  ;;  %v1181_v0 = vpop.xlane.xlu1 %1180 }
 0x6e1   : > { %v720_v5 = vmul.f32 0.016666668, %v709_v33  ;;  %v1191_v56 = vmul.f32 0.016666668, %v1181_v0 }
 0x6e3   : > { %v6809_v35 = vsub.f32 %v702_v23, %v720_v5 }
 0x6e4   : > { %v6811_v11 = vpop.permute.xlu1 %591 }
 0x6e5   : > { %v728_v38 = vmul.f32 %v6809_v35, %v6809_v35  ;;  %v685_v8 = vadd.f32 %v6633_v29, %v6811_v11  ;;  %v1158_v24 = vadd.f32 %v6711_v53, %v6811_v11  ;;  %v1595_v54 = vadd.f32 %v6751_v15, %v6811_v11 }
 0x6e6   : > { %v2032_v7 = vadd.f32 %v5599_v42, %v6811_v11 }
 0x6e7   : > { %v732_v61 = vsel %vm706_vm3, %v728_v38, 0.0  ;;  %v699_v60 = vmul.f32 0.01, %v685_v8  ;;  %v1172_v37 = vmul.f32 0.01, %v1158_v24 }
 0x6e8   : > { %733 = vadd.xlane.f32.xlu1 %v732_v61  ;;  %v6822_v62 = vpop.permute.xlu1 %596  ;;  %v1609_v53 = vmul.f32 0.01, %v1595_v54  ;;  %v2046_v32 = vmul.f32 0.01, %v2032_v7 }
 0x6e9   : > { %v6824_v63 = vmax.f32 %v685_v8, %v699_v60  ;;  %v6829_v57 = vmax.f32 %v1158_v24, %v1172_v37  ;;  %v690_v41 = vadd.f32 %v6639_v51, %v6822_v62  ;;  %v1600_v23 = vadd.f32 %v6755_v59, %v6822_v62 }
 0x6ea   : > { %v6841_v43 = vmax.f32 %v1595_v54, %v1609_v53  ;;  %v6845_v1 = vmax.f32 %v2032_v7, %v2046_v32  ;;  %v6868_v59 = vsub.f32 %v6771_v3, %v1191_v56 }
 0x6eb   : > { %v710_v29 = vsel %vm706_vm3, %v6824_v63, 0.0  ;;  %v1182_v14 = vsel %vm706_vm3, %v6829_v57, 0.0  ;;  %v700_v16 = vmul.f32 0.01, %v690_v41  ;;  %v1610_v30 = vmul.f32 0.01, %v1600_v23 }
 0x6ec   : > { %v6831_v9 = vpop.permute.xlu1 %601  ;;  %711 = vadd.xlane.f32.xlu0 %v710_v29  ;;  %v1619_v51 = vsel %vm706_vm3, %v6841_v43, 0.0  ;;  %v1199_v36 = vmul.f32 %v6868_v59, %v6868_v59 }
 0x6ed   : > { %v695_v13 = vadd.f32 %v6637_v48, %v6831_v9  ;;  %v1605_v15 = vadd.f32 %v6753_v55, %v6831_v9  ;;  %v1163_v48 = vadd.f32 %v6718_v19, %v6822_v62  ;;  %v2056_v19 = vsel %vm706_vm3, %v6845_v1, 0.0 }
 0x6ee   : > { %v6861_v18 = vmax.f32 %v690_v41, %v700_v16  ;;  %v6872_v49 = vmax.f32 %v1600_v23, %v1610_v30  ;;  %v1168_v22 = vadd.f32 %v6716_v34, %v6831_v9  ;;  %v1203_v3 = vsel %vm706_vm3, %v1199_v36, 0.0 }
 0x6ef   : > { %v701_v31 = vmul.f32 0.01, %v695_v13  ;;  %v1611_v46 = vmul.f32 0.01, %v1605_v15  ;;  %v1173_v47 = vmul.f32 0.01, %v1163_v48 }
 0x6f0   : > { %1183 = vadd.xlane.f32.xlu0 %v1182_v14  ;;  %v713_v50 = vsel %vm706_vm3, %v6861_v18, 0.0  ;;  %v1622_v42 = vsel %vm706_vm3, %v6872_v49, 0.0  ;;  %v1174_v45 = vmul.f32 0.01, %v1168_v22 }
 0x6f1   : > { %v6843_v21 = vmax.f32 %v695_v13, %v701_v31  ;;  %v6853_v6 = vmax.f32 %v1605_v15, %v1611_v46  ;;  %v6865_v20 = vmax.f32 %v1163_v48, %v1173_v47 }
 0x6f2   : > { %v6881_v58 = vmax.f32 %v1168_v22, %v1174_v45 }
 0x6f3   : > { %v716_v55 = vsel %vm706_vm3, %v6843_v21, 0.0  ;;  %v1625_v10 = vsel %vm706_vm3, %v6853_v6, 0.0  ;;  %v1185_v26 = vsel %vm706_vm3, %v6865_v20, 0.0 }
 0x6f4   : > { %717 = vadd.xlane.f32.xlu1 %v716_v55  ;;  %1620 = vadd.xlane.f32.xlu0 %v1619_v51  ;;  %v1188_v38 = vsel %vm706_vm3, %v6881_v58, 0.0 }
 0x6f8   : > { %1626 = vadd.xlane.f32.xlu1 %v1625_v10  ;;  %2057 = vadd.xlane.f32.xlu0 %v2056_v19 }
 0x6fc   : > { %714 = vadd.xlane.f32.xlu0 %v713_v50  ;;  %v1618_v50 = vpop.xlane.xlu0 %1617 }
 0x700   : > { %1186 = vadd.xlane.f32.xlu0 %v1185_v26 }
 0x704   : > { %1623 = vadd.xlane.f32.xlu0 %v1622_v42 }
 0x708   : > { %v5630_v27 = vpop.f32.mrb[14].mxu1  ;;  %1204 = vadd.xlane.f32.xlu0 %v1203_v3  ;;  %v2042_v3 = vadd.f32 %v6801_v28, %v6831_v9 }
 0x709   : > { %v2819_v33 = vadd.f32 %v5630_v27, %v6496_v44  ;;  %v2813_v0 = vpop.f32.mrb[15].mxu1 }
 0x70a   : > { %v2814_v34 = vadd.f32 %v2813_v0, %v6492_v39 }
 0x70b   : > { %v2823_v5 = vmul.f32 0.01, %v2819_v33 }
 0x70c   : > { %v2822_v8 = vmul.f32 0.01, %v2814_v34  ;;  %1189 = vadd.xlane.f32.xlu0 %v1188_v38  ;;  %v2048_v38 = vmul.f32 0.01, %v2042_v3 }
 0x70d   : > { %v6887_v24 = vmax.f32 %v2819_v33, %v2823_v5 }
 0x70e   : > { %v6889_v61 = vmax.f32 %v2814_v34, %v2822_v8  ;;  %v2037_v8 = vadd.f32 %v6803_v12, %v6822_v62 }
 0x710   : > { %v5784_v60 = vpack.c.bf16 %v6887_v24, %v6889_v61  ;;  %v6161_v37 = vpack.i.bf16 %v6887_v24, %v6889_v61 }
 0x712   : > { %5785 = vmatprep.subr.bf16.mxu1 %v5784_v60 }
 0x713   : > { %5787 = vmatpush3.bf16.msra.mxu1 %v5784_v60 }
 0x731   : > { %v2055_v22 = vpop.xlane.xlu0 %2054 }
 0x732   : > { %v2065_v28 = vmul.f32 0.016666668, %v2055_v22  ;;  %v1628_v22 = vmul.f32 0.016666668, %v1618_v50 }
 0x760   : > { %v6895_v54 = vpop.f32.mrb[14].mxu0 }
 0x761   : > { %v6897_v7 = vpop.f32.mrb[15].mxu0 }
 0x762   : > { %v2464_v50 = vadd.f32 %v6897_v7, %v6764_v17 }
 0x764   : > { %v6899_v29 = vpop.f32.mrb[16].mxu0 }
 0x765   : > { %v6901_v53 = vpop.f32.mrb[17].mxu0 }
 0x768   : > { %v5651_v13 = vpop.f32.mrb[18].mxu0 }
 0x769   : > { %v3256_v15 = vadd.f32 %v5651_v13, %v6496_v44  ;;  %v3250_v32 = vpop.f32.mrb[19].mxu0 }
 0x76a   : > { %v3251_v41 = vadd.f32 %v3250_v32, %v6492_v39  ;;  %v2047_v32 = vmul.f32 0.01, %v2037_v8 }
 0x76b   : > { %v3260_v14 = vmul.f32 0.01, %v3256_v15 }
 0x76c   : > { %v3259_v31 = vmul.f32 0.01, %v3251_v41  ;;  %v5672_v46 = vpop.f32.mrb[20].mxu0  ;;  %v6948_v12 = vmax.f32 %v2037_v8, %v2047_v32 }
 0x76d   : > { %v6905_v48 = vmax.f32 %v3256_v15, %v3260_v14  ;;  %v3693_v55 = vadd.f32 %v5672_v46, %v6496_v44  ;;  %v3687_v51 = vpop.f32.mrb[21].mxu0  ;;  %v6941_v15 = vmax.f32 %v2042_v3, %v2048_v38  ;;  %v2479_v38 = vadd.f32 %v6899_v29, %v6831_v9 }
 0x76e   : > { %v6908_v16 = vmax.f32 %v3251_v41, %v3259_v31  ;;  %v3688_v23 = vadd.f32 %v3687_v51, %v6492_v39  ;;  %v6944_v41 = vsub.f32 %v6805_v25, %v2065_v28  ;;  %v2059_v51 = vsel %vm706_vm3, %v6948_v12, 0.0 }
 0x76f   : > { %v3697_v10 = vmul.f32 0.01, %v3693_v55  ;;  %v2062_v14 = vsel %vm706_vm3, %v6941_v15, 0.0  ;;  %v2485_v28 = vmul.f32 0.01, %v2479_v38 }
 0x770   : > { %v6166_v19 = vpack.i.bf16 %v6905_v48, %v6908_v16  ;;  %v3696_v47 = vmul.f32 0.01, %v3688_v23  ;;  %v6915_v56 = vpack.c.bf16 %v6905_v48, %v6908_v16 }
 0x771   : > { %v6917_v30 = vmax.f32 %v3693_v55, %v3697_v10  ;;  %v6998_v32 = vmax.f32 %v2479_v38, %v2485_v28 }
 0x772   : > { %v6919_v26 = vmax.f32 %v3688_v23, %v3696_v47  ;;  %v2073_v23 = vmul.f32 %v6944_v41, %v6944_v41 }
 0x774   : > { %v6174_v44 = vpack.i.bf16 %v6917_v30, %v6919_v26  ;;  %v5808_v39 = vpack.c.bf16 %v6917_v30, %v6919_v26  ;;  %v2077_v10 = vsel %vm706_vm3, %v2073_v23, 0.0 }
 0x775   : > { %v7012_v23 = vpop.xlane.xlu1 %733 }
 0x776   : > { %5809 = vmatprep.subr.bf16.mxu0 %v5808_v39 }
 0x777   : > { %5811 = vmatpush3.bf16.msra.mxu0 %v5808_v39 }
 0x779   : > { %v712_v42 = vpop.xlane.xlu0 %711 }
 0x77a   : > { %v721_v36 = vmul.f32 0.016666668, %v712_v42 }
 0x77c   : > { %v6926_v45 = vsub.f32 %v6824_v63, %v721_v36  ;;  %v6970_v36 = vsub.f32 %v6776_v40, %v1628_v22 }
 0x77d   : > { %v1184_v27 = vpop.xlane.xlu0 %1183 }
 0x77e   : > { %v1192_v33 = vmul.f32 0.016666668, %v1184_v27  ;;  %v729_v0 = vmul.f32 %v6926_v45, %v6926_v45 }
 0x780   : > { %v6933_v34 = vsub.f32 %v6829_v57, %v1192_v33  ;;  %v735_v5 = vsel %vm706_vm3, %v729_v0, 0.0  ;;  %v2469_v33 = vadd.f32 %v6895_v54, %v6811_v11 }
 0x781   : > { %736 = vadd.xlane.f32.xlu1 %v735_v5  ;;  %v1621_v63 = vpop.xlane.xlu0 %1620  ;;  %v2482_v5 = vmul.f32 0.01, %v2464_v50 }
 0x782   : > { %v1200_v60 = vmul.f32 %v6933_v34, %v6933_v34  ;;  %v1629_v39 = vmul.f32 0.016666668, %v1621_v63  ;;  %v2483_v40 = vmul.f32 0.01, %v2469_v33 }
 0x784   : > { %v1206_v13 = vsel %vm706_vm3, %v1200_v60, 0.0  ;;  %v6967_v42 = vsub.f32 %v6841_v43, %v1629_v39  ;;  %v6994_v60 = vmax.f32 %v2464_v50, %v2482_v5 }
 0x785   : > { %1207 = vadd.xlane.f32.xlu0 %v1206_v13  ;;  %v2058_v57 = vpop.xlane.xlu0 %2057 }
 0x786   : > { %v2066_v3 = vmul.f32 0.016666668, %v2058_v57  ;;  %v1637_v27 = vmul.f32 %v6967_v42, %v6967_v42  ;;  %v2490_v29 = vsel %vm706_vm3, %v6994_v60, 0.0 }
 0x788   : > { %v6977_v24 = vsub.f32 %v6845_v1, %v2066_v3  ;;  %v1643_v61 = vsel %vm706_vm3, %v1637_v27, 0.0  ;;  %v6989_v1 = vmax.f32 %v2469_v33, %v2483_v40 }
 0x789   : > { %2063 = vadd.xlane.f32.xlu0 %v2062_v14  ;;  %v715_v31 = vpop.xlane.xlu0 %714  ;;  %v2499_v14 = vsel %vm706_vm3, %v6998_v32, 0.0 }
 0x78a   : > { %v722_v46 = vmul.f32 0.016666668, %v715_v31  ;;  %v2074_v54 = vmul.f32 %v6977_v24, %v6977_v24  ;;  %v2493_v13 = vsel %vm706_vm3, %v6989_v1, 0.0 }
 0x78c   : > { %v6951_v55 = vsub.f32 %v6861_v18, %v722_v46  ;;  %v6275_v18 = vmov 58   ;;  %v2080_v8 = vsel %vm706_vm3, %v2074_v54, 0.0 }
 0x78d   : > { %2060 = vadd.xlane.f32.xlu0 %v2059_v51  ;;  %6172 = vset.pattern.permute.xlu1 %v6275_v18  ;;  %v6982_v43 = vpop.xlane.xlu0 %1186 }
 0x78e   : > { %v730_v25 = vmul.f32 %v6951_v55, %v6951_v55 }
 0x790   : > { %v738_v47 = vsel %vm706_vm3, %v730_v25, 0.0  ;;  %v718_v25 = vpop.xlane.xlu1 %717 }
 0x791   : > { %2078 = vadd.xlane.f32.xlu0 %v2077_v10  ;;  %739 = vadd.xlane.f32.xlu1 %v738_v47  ;;  %v1624_v63 = vpop.xlane.xlu0 %1623  ;;  %v6276_v10 = vmov 57  }
 0x792   : > { %v1630_v7 = vmul.f32 0.016666668, %v1624_v63  ;;  %6171 = vset.pattern.permute.xlu0 %v6276_v10  ;;  %v7049_v63 = vld [vmem:[%s9003_s3 + $0x18] sm:$0xff] }
 0x794   : > { %v7001_v57 = vsub.f32 %v6872_v49, %v1630_v7  ;;  %v7018_v39 = vpop.xlane.xlu1 %1626 }
 0x795   : > { %v7010_v51 = vpop.xlane.xlu0 %1204  ;;  %v1631_v16 = vmul.f32 0.016666668, %v7018_v39 }
 0x796   : > { %v1638_v31 = vmul.f32 %v7001_v57, %v7001_v57 }
 0x798   : > { %v1646_v46 = vsel %vm706_vm3, %v1638_v31, 0.0 }
 0x799   : > { %v7014_v49 = vpop.xlane.xlu0 %1189 }
 0x79a   : > { %v1194_v48 = vmul.f32 0.016666668, %v7014_v49 }
 0x7a2   : > { %6162 = vrot.lane.b32.xlu1 %v6161_v37, %s6265_s17  ;;  %v1636_v37 = vmul.f32 %v6970_v36, %v6970_v36 }
 0x7a4   : > { %v1640_v0 = vsel %vm706_vm3, %v1636_v37, 0.0 }
 0x7c6   : > { %1644 = vadd.xlane.f32.xlu1 %v1643_v61 }
 0x7ca   : > { %1641 = vadd.xlane.f32.xlu1 %v1640_v0 }
 0x7ce   : > { %2081 = vadd.xlane.f32.xlu1 %v2080_v8  ;;  %v7042_v8 = vld [vmem:[%s9003_s3 + $0x10] sm:$0xff] }
 0x7d2   : > { %2494 = vadd.xlane.f32.xlu1 %v2493_v13 }
 0x7d6   : > { %2491 = vadd.xlane.f32.xlu1 %v2490_v29 }
 0x7da   : > { %2500 = vadd.xlane.f32.xlu1 %v2499_v14 }
 0x7de   : > { %1647 = vadd.xlane.f32.xlu1 %v1646_v46 }
 0x80e   : > { %v7020_v3 = vpop.xlane.xlu1 %736 }
 0x812   : > { %v7016_v47 = vpop.xlane.xlu0 %1207 }
 0x816   : > { %v2064_v22 = vpop.xlane.xlu0 %2063 }
 0x817   : > { %v2068_v29 = vmul.f32 0.016666668, %v2064_v22 }
 0x819   : > { %v7068_v14 = vsub.f32 %v6941_v15, %v2068_v29  ;;  %v2474_v29 = vadd.f32 %v6901_v53, %v6822_v62 }
 0x81a   : > { %v2061_v27 = vpop.xlane.xlu0 %2060 }
 0x81b   : > { %v2067_v33 = vmul.f32 0.016666668, %v2061_v27  ;;  %v2076_v31 = vmul.f32 %v7068_v14, %v7068_v14 }
 0x81d   : > { %v7023_v61 = vsub.f32 %v6948_v12, %v2067_v33  ;;  %v7034_v12 = vld [vmem:[%s9003_s3 + $0x8] sm:$0xff] }
 0x81e   : > { %v7025_v37 = vpop.xlane.xlu1 %739 }
 0x81f   : > { %v2075_v40 = vmul.f32 %v7023_v61, %v7023_v61 }
 0x821   : > { %v2083_v50 = vsel %vm706_vm3, %v2075_v40, 0.0 }
 0x822   : > { %v6163_v0 = vpop.permute.xlu1 %6162  ;;  %2084 = vadd.xlane.f32.xlu1 %v2083_v50 }
 0x823   : > { %v6165_v54 = vunpack.i.h.bf16 %v6163_v0  ;;  %v6164_v5 = vunpack.i.l.bf16 %v6163_v0 }
 0x825   : > { %v5788_v38 = vpack.c.bf16 %v6165_v54, %v6164_v5 }
 0x827   : > { %5789 = vmatprep.subr.bf16.mxu1 %v5788_v38 }
 0x828   : > { %5791 = vmatpush3.bf16.msra.mxu1 %v5788_v38 }
 0x829   : > { %5797 = vmatprep.subr.bf16.mxu1 %v6915_v56 }
 0x82b   : > { %5640 = vmatmul.mubr.msk.f32.vlgmr.msra.gmra.mrb[16].mxu1 %vm604_vm2, %v7034_v12 }
 0x82c   : > { %5799 = vmatpush3.bf16.msra.mxu1 %v6915_v56  ;;  %5642 = vmatprep.mubr.msk.f32.mxu1 %vm604_vm2, %v7042_v8  ;;  %v723_v56 = vmul.f32 0.016666668, %v718_v25 }
 0x82e   : > { %v7058_v28 = vsub.f32 %v6843_v21, %v723_v56  ;;  %v2086_v21 = vsel %vm706_vm3, %v2076_v31, 0.0 }
 0x82f   : > { %5643 = vmatmul.mubr.msk.f32.gmra.mrb[18].mxu1 %vm604_vm2, %v7049_v63 }
 0x830   : > { %5660 = vmatprep.mubr.msk.f32.mxu1 %vm604_vm2, %v6744_v52  ;;  %v731_v7 = vmul.f32 %v7058_v28, %v7058_v28 }
 0x832   : > { %v741_v13 = vsel %vm706_vm3, %v731_v7, 0.0 }
 0x833   : > { %785 = vperm.xlu1 %6172, %v7034_v12  }
 0x837   : > { %789 = vperm.xlu1 %6172, %v7042_v8  }
 0x83b   : > { %6179 = vset.pattern.permute.xlu1 %v6276_v10 }
 0x853   : > { %v7074_v46 = vpop.xlane.xlu1 %1644 }
 0x857   : > { %v7076_v25 = vpop.xlane.xlu1 %1641 }
 0x85b   : > { %742 = vadd.xlane.f32.xlu1 %v741_v13  ;;  %v7078_v10 = vpop.xlane.xlu1 %2081 }
 0x85f   : > { %v7080_v30 = vpop.xlane.xlu1 %2494 }
 0x863   : > { %v7082_v26 = vpop.xlane.xlu1 %2491 }
 0x86c   : > { %6175 = vrot.lane.b32.xlu1 %v6174_v44, %s6265_s17  ;;  %v7084_v44 = vpop.xlane.xlu1 %2500 }
 0x870   : > { %v7086_v15 = vpop.xlane.xlu1 %1647 }
 0x890   : > { %2087 = vadd.xlane.f32.xlu1 %v2086_v21 }
 0x8a1   : > { %761 = vperm.xlu1 %6179, %v6744_v52  }
 0x8af   : > { %v7088_v22 = vpop.xlane.xlu1 %2084 }
 0x8b3   : > { %v7090_v27 = vpop.permute.xlu1 %785 }
 0x8b7   : > { %v7092_v33 = vpop.permute.xlu1 %789 }
 0x8e8   : > { %v7094_v40 = vpop.xlane.xlu1 %742 }
 0x8ec   : > { %v6176_v50 = vpop.permute.xlu1 %6175 }
 0x8ed   : > { %v6178_v0 = vunpack.i.h.bf16 %v6176_v50  ;;  %v6177_v54 = vunpack.i.l.bf16 %v6176_v50 }
 0x8ef   : > { %v5812_v5 = vpack.c.bf16 %v6178_v0, %v6177_v54 }
 0x8f1   : > { %5813 = vmatprep.subr.bf16.mxu0 %v5812_v5 }
 0x8f2   : > { %5815 = vmatpush3.bf16.msra.mxu0 %v5812_v5  ;;  %v2484_v5 = vmul.f32 0.01, %v2474_v29 }
 0x8f5   : > { %5682 = vmatmul.mubr.msk.f32.vlgmr.msra.gmra.mrb[22].mxu0 %vm604_vm2, %v7034_v12 }
 0x8f6   : > { %5684 = vmatprep.mubr.msk.f32.mxu0 %vm604_vm2, %v7042_v8 }
 0x8f9   : > { %5685 = vmatmul.mubr.msk.f32.gmra.mrb[24].mxu0 %vm604_vm2, %v7049_v63 }
 0x8fe   : > { %v5641_v38 = vpop.f32.mrb[16].mxu1 }
 0x8ff   : > { %v2906_v56 = vadd.f32 %v5641_v38, %v6811_v11  ;;  %v2900_v7 = vpop.f32.mrb[17].mxu1  ;;  %v7112_v38 = vmax.f32 %v2474_v29, %v2484_v5 }
 0x900   : > { %v2901_v13 = vadd.f32 %v2900_v7, %v6764_v17 }
 0x901   : > { %v2920_v31 = vmul.f32 0.01, %v2906_v56  ;;  %v2496_v53 = vsel %vm706_vm3, %v7112_v38, 0.0 }
 0x902   : > { %v2919_v21 = vmul.f32 0.01, %v2901_v13  ;;  %v5644_v50 = vpop.f32.mrb[18].mxu1 }
 0x903   : > { %v7106_v0 = vmax.f32 %v2906_v56, %v2920_v31  ;;  %v2910_v54 = vpop.f32.mrb[19].mxu1  ;;  %v1193_v56 = vmul.f32 0.016666668, %v6982_v43  ;;  %v2916_v43 = vadd.f32 %v5644_v50, %v6831_v9 }
 0x904   : > { %v7108_v4 = vmax.f32 %v2901_v13, %v2919_v21 }
 0x905   : > { %v2930_v2 = vsel %vm706_vm3, %v7106_v0, 0.0  ;;  %v7124_v13 = vsub.f32 %v6865_v20, %v1193_v56  ;;  %v7136_v20 = vsub.f32 %v6881_v58, %v1194_v48  ;;  %v2922_v21 = vmul.f32 0.01, %v2916_v43 }
 0x906   : > { %2931 = vadd.xlane.f32.xlu0 %v2930_v2  ;;  %v2927_v7 = vsel %vm706_vm3, %v7108_v4, 0.0 }
 0x907   : > { %v1201_v2 = vmul.f32 %v7124_v13, %v7124_v13  ;;  %v1202_v31 = vmul.f32 %v7136_v20, %v7136_v20  ;;  %v7148_v39 = vmax.f32 %v2916_v43, %v2922_v21  ;;  %v1216_v21 = vmul.f32 0.016666668, %v7016_v47 }
 0x909   : > { %v1209_v29 = vsel %vm706_vm3, %v1201_v2, 0.0  ;;  %v2936_v50 = vsel %vm706_vm3, %v7148_v39, 0.0 }
 0x90a   : > { %2928 = vadd.xlane.f32.xlu0 %v2927_v7  ;;  %v2079_v7 = vpop.xlane.xlu0 %2078 }
 0x90e   : > { %2497 = vadd.xlane.f32.xlu0 %v2496_v53 }
 0x924   : > { %6167 = vrot.lane.b32.xlu0 %v6166_v19, %s6265_s17  ;;  %v7139_v19 = vsub.f32 %v6853_v6, %v1631_v16 }
 0x926   : > { %v1639_v49 = vmul.f32 %v7139_v19, %v7139_v19 }
 0x928   : > { %v1649_v6 = vsel %vm706_vm3, %v1639_v49, 0.0 }
 0x943   : > { %1210 = vadd.xlane.f32.xlu0 %v1209_v29 }
 0x959   : > { %765 = vperm.xlu0 %6171, %v7034_v12  }
 0x95d   : > { %769 = vperm.xlu0 %6171, %v7042_v8  }
 0x961   : > { %6173 = vset.pattern.permute.xlu0 %v6275_v18  ;;  %v2911_v18 = vadd.f32 %v2910_v54, %v6822_v62 }
 0x962   : > { %781 = vperm.xlu0 %6173, %v6744_v52   ;;  %v1212_v52 = vsel %vm706_vm3, %v1202_v31, 0.0  ;;  %v745_v31 = vmul.f32 0.016666668, %v7020_v3  ;;  %v1652_v3 = vmul.f32 0.016666668, %v7076_v25 }
 0x963   : > { %v2921_v58 = vmul.f32 0.01, %v2911_v18  ;;  %v2091_v25 = vmul.f32 0.016666668, %v7088_v22 }
 0x964   : > { %v749_v49 = vadd.f32 1e-05, %v745_v31  ;;  %v1654_v31 = vmul.f32 0.016666668, %v7086_v15 }
 0x965   : > { %v7151_v5 = vmax.f32 %v2911_v18, %v2921_v58  ;;  %v1653_v18 = vmul.f32 0.016666668, %v7074_v46  ;;  %v1220_v58 = vadd.f32 1e-05, %v1216_v21  ;;  %v2089_v46 = vmul.f32 0.016666668, %v2079_v7 }
 0x966   : > { %6180 = vrsqrt.f32 %v749_v49 }
 0x967   : > { %v2933_v54 = vsel %vm706_vm3, %v7151_v5, 0.0  ;;  %6182 = vrsqrt.f32 %v1220_v58 }
 0x981   : > { %1213 = vadd.xlane.f32.xlu0 %v1212_v52  ;;  %v2090_v52 = vmul.f32 0.016666668, %v7078_v10 }
 0x985   : > { %1650 = vadd.xlane.f32.xlu0 %v1649_v6  ;;  %v1657_v6 = vadd.f32 1e-05, %v1653_v18  ;;  %v6181_v18 = vpop.eup %6180 }
 0x987   : > { %6184 = vrsqrt.f32 %v1657_v6  ;;  %v1658_v6 = vadd.f32 1e-05, %v1654_v31 }
 0x989   : > { %2937 = vadd.xlane.f32.xlu0 %v2936_v50  ;;  %v2094_v50 = vadd.f32 1e-05, %v2090_v52  ;;  %v6183_v52 = vpop.eup %6182 }
 0x98a   : > { %v1228_v15 = vmul.f32 %v6183_v52, %v6933_v34 }
 0x98b   : > { %6186 = vrsqrt.f32 %v2094_v50 }
 0x98d   : > { %2934 = vadd.xlane.f32.xlu0 %v2933_v54 }
 0x991   : > { %v6185_v58 = vpop.eup %6184 }
 0x992   : > { %v1665_v22 = vmul.f32 %v6185_v58, %v6967_v42 }
 0x993   : > { %v7157_v53 = vpop.xlane.xlu0 %2931 }
 0x997   : > { %v7159_v56 = vpop.xlane.xlu0 %2928 }
 0x99b   : > { %v7161_v2 = vpop.xlane.xlu0 %2497 }
 0x99f   : > { %v6168_v29 = vpop.permute.xlu0 %6167 }
 0x9a0   : > { %v6170_v48 = vunpack.i.h.bf16 %v6168_v29  ;;  %v6169_v16 = vunpack.i.l.bf16 %v6168_v29 }
 0x9a2   : > { %v5800_v43 = vpack.c.bf16 %v6170_v48, %v6169_v16  ;;  %v1656_v16 = vadd.f32 1e-05, %v1652_v3 }
 0x9a4   : > { %5801 = vmatprep.subr.bf16.mxu1 %v5800_v43 }
 0x9a5   : > { %5803 = vmatpush3.bf16.msra.mxu1 %v5800_v43 }
 0x9a8   : > { %5661 = vmatmul.mubr.msk.f32.vlgmr.msra.gmra.mrb[20].mxu1 %vm604_vm2, %v7034_v12  ;;  %v744_v12 = vmul.f32 0.016666668, %v7012_v23  ;;  %v746_v23 = vmul.f32 0.016666668, %v7025_v37  ;;  %v757_v37 = vmul.f32 %v6181_v18, %v6926_v45 }
 0x9a9   : > { %5663 = vmatprep.mubr.msk.f32.mxu1 %vm604_vm2, %v7042_v8  ;;  %v1215_v8 = vmul.f32 0.016666668, %v7010_v51  ;;  %v2093_v51 = vadd.f32 1e-05, %v2089_v46  ;;  %v7191_v46 = vpop.xlane.xlu1 %2087 }
 0x9aa   : > { %v748_v10 = vadd.f32 1e-05, %v744_v12  ;;  %v750_v49 = vadd.f32 1e-05, %v746_v23  ;;  %v6187_v12 = vpop.eup %6186 }
 0x9ab   : > { %v1219_v29 = vadd.f32 1e-05, %v1215_v8  ;;  %v2095_v8 = vadd.f32 1e-05, %v2091_v25  ;;  %v2102_v3 = vmul.f32 %v6187_v12, %v6977_v24 }
 0x9ac   : > { %5664 = vmatmul.mubr.msk.f32.gmra.mrb[22].mxu1 %vm604_vm2, %v7049_v63  ;;  %6188 = vrsqrt.f32 %v748_v10 }
 0x9ad   : > { %6190 = vrsqrt.f32 %v1219_v29 }
 0x9ae   : > { %6192 = vrsqrt.f32 %v1656_v16 }
 0x9af   : > { %6194 = vrsqrt.f32 %v2093_v51 }
 0x9b6   : > { %v6189_v29 = vpop.eup %6188 }
 0x9b7   : > { %v6191_v34 = vpop.eup %6190  ;;  %v756_v52 = vmul.f32 %v6189_v29, %v6809_v35 }
 0x9b8   : > { %v6193_v42 = vpop.eup %6192 }
 0x9b9   : > { %v6195_v18 = vpop.eup %6194 }
 0x9ba   : > { %v2101_v35 = vmul.f32 %v6195_v18, %v6944_v41 }
 0x9c8   : > { %v7175_v54 = vpop.f32.mrb[22].mxu0 }
 0x9c9   : > { %v7178_v47 = vpop.f32.mrb[23].mxu0 }
 0x9cc   : > { %v7180_v48 = vpop.f32.mrb[24].mxu0 }
 0x9cd   : > { %v7182_v43 = vpop.f32.mrb[25].mxu0 }
 0x9d0   : > { %v1211_v21 = vpop.xlane.xlu0 %1210 }
 0x9d1   : > { %v1217_v7 = vmul.f32 0.016666668, %v1211_v21 }
 0x9d3   : > { %v1221_v50 = vadd.f32 1e-05, %v1217_v7 }
 0x9d5   : > { %6196 = vrsqrt.f32 %v1221_v50  ;;  %v1664_v50 = vmul.f32 %v6193_v42, %v6970_v36 }
 0x9d6   : > { %6198 = vrsqrt.f32 %v750_v49  ;;  %v7206_v49 = vpop.permute.xlu1 %761 }
 0x9d7   : > { %6200 = vrsqrt.f32 %v1658_v6  ;;  %v1227_v6 = vmul.f32 %v6191_v34, %v6868_v59  ;;  %v776_v36 = vmul.f32 %v7206_v49, %v756_v52  ;;  %v2105_v29 = vmul.f32 %v2101_v35, %v7206_v49 }
 0x9d8   : > { %6202 = vrsqrt.f32 %v2095_v8  ;;  %v7193_v10 = vpop.permute.xlu0 %765 }
 0x9d9   : > { %v777_v16 = vmul.f32 %v7193_v10, %v757_v37  ;;  %v1232_v23 = vmul.f32 %v1228_v15, %v7193_v10  ;;  %v1669_v45 = vmul.f32 %v1665_v22, %v7193_v10  ;;  %v2106_v51 = vmul.f32 %v2102_v3, %v7193_v10 }
 0x9da   : > { %v1231_v22 = vmul.f32 %v1227_v6, %v7206_v49  ;;  %v1668_v3 = vmul.f32 %v1664_v50, %v7206_v49 }
 0x9db   : > { %v797_v24 = vadd.f32 %v7090_v27, %v777_v16  ;;  %v1673_v31 = vadd.f32 %v1669_v45, %v7090_v27  ;;  %v1236_v25 = vadd.f32 %v1232_v23, %v7090_v27  ;;  %v2110_v21 = vadd.f32 %v2106_v51, %v7090_v27 }
 0x9dc   : > { %v7203_v7 = vpop.permute.xlu0 %769 }
 0x9dd   : > { %v7209_v58 = vsel %vm706_vm3, %v797_v24, 0.0  ;;  %v7214_v12 = vsel %vm706_vm3, %v1673_v31, 0.0  ;;  %v7217_v8 = vsel %vm706_vm3, %v1236_v25, 0.0  ;;  %v7223_v15 = vsel %vm706_vm3, %v2110_v21, 0.0 }
 0x9de   : > { %837 = vst.msk [vmem:[#allocation2 + $0x20] sm:$0x1] %vm804_vm4, %v7209_v58  ;;  %1274 = vst.msk [vmem:[#allocation2 + $0x21] sm:$0x1] %vm804_vm4, %v7217_v8  ;;  %v844_v31 = vrot.slane %v7209_v58, 2  ;;  %v1718_v25 = vrot.slane %v7214_v12, 2 }
 0x9df   : > { %v6197_v37 = vpop.eup %6196  ;;  %1711 = vst.msk [vmem:[#allocation2 + $0x22] sm:$0x1] %vm804_vm4, %v7214_v12  ;;  %2148 = vst.msk [vmem:[#allocation2 + $0x23] sm:$0x1] %vm804_vm4, %v7223_v15  ;;  %v1281_v21 = vrot.slane %v7217_v8, 2  ;;  %v2155_v6 = vrot.slane %v7223_v15, 2 }
 0x9e0   : > { %v6199_v59 = vpop.eup %6198  ;;  %v1229_v45 = vmul.f32 %v6197_v37, %v7124_v13  ;;  %846 = vst.msk [vmem:[#allocation2 + $0x28] sm:$0x1] %vm804_vm4, %v844_v31  ;;  %1720 = vst.msk [vmem:[#allocation2 + $0x2a] sm:$0x1] %vm804_vm4, %v1718_v25 }
 0x9e1   : > { %v6201_v41 = vpop.eup %6200  ;;  %v7235_v16 = vpop.permute.xlu0 %781  ;;  %v758_v50 = vmul.f32 %v6199_v59, %v6951_v55  ;;  %1283 = vst.msk [vmem:[#allocation2 + $0x29] sm:$0x1] %vm804_vm4, %v1281_v21  ;;  %2157 = vst.msk [vmem:[#allocation2 + $0x2b] sm:$0x1] %vm804_vm4, %v2155_v6 }
 0x9e2   : > { %v6203_v23 = vpop.eup %6202  ;;  %v796_v51 = vadd.f32 %v7235_v16, %v776_v36  ;;  %v1235_v34 = vadd.f32 %v1231_v22, %v7235_v16  ;;  %v1672_v42 = vadd.f32 %v1668_v3, %v7235_v16  ;;  %v2109_v24 = vadd.f32 %v2105_v29, %v7235_v16 }
 0x9e3   : > { %v1666_v55 = vmul.f32 %v6201_v41, %v7001_v57  ;;  %v2103_v59 = vmul.f32 %v6203_v23, %v7023_v61  ;;  %v778_v22 = vmul.f32 %v7203_v7, %v758_v50  ;;  %v1233_v3 = vmul.f32 %v1229_v45, %v7203_v7 }
 0x9e4   : > { %v7246_v18 = vsel %vm706_vm3, %v796_v51, 0.0  ;;  %v7249_v52 = vsel %vm706_vm3, %v1235_v34, 0.0  ;;  %v7252_v13 = vsel %vm706_vm3, %v1672_v42, 0.0  ;;  %v7259_v36 = vsel %vm706_vm3, %v2109_v24, 0.0 }
 0x9e5   : > { %v816_v37 = vrot.slane %v7246_v18, 3  ;;  %v1253_v35 = vrot.slane %v7249_v52, 3  ;;  %805 = vst.msk [vmem:[#allocation2] sm:$0x1] %vm804_vm4, %v7246_v18  ;;  %1243 = vst.msk [vmem:[#allocation2 + $0x1] sm:$0x1] %vm804_vm4, %v7249_v52  ;;  %v1670_v29 = vmul.f32 %v1666_v55, %v7203_v7  ;;  %v2107_v57 = vmul.f32 %v2103_v59, %v7203_v7 }
 0x9e6   : > { %1680 = vst.msk [vmem:[#allocation2 + $0x2] sm:$0x1] %vm804_vm4, %v7252_v13  ;;  %2117 = vst.msk [vmem:[#allocation2 + $0x3] sm:$0x1] %vm804_vm4, %v7259_v36  ;;  %v1690_v61 = vrot.slane %v7252_v13, 3  ;;  %v2127_v41 = vrot.slane %v7259_v36, 3 }
 0x9e7   : > { %817 = vrot.lane.b32.xlu0 %v816_v37, %s6277_s13  ;;  %1254 = vrot.lane.b32.xlu1 %v1253_v35, %s6277_s13  ;;  %v1250_v23 = vrot.slane %v7249_v52, 2  ;;  %v813_v51 = vrot.slane %v7246_v18, 2  ;;  %v1687_v34 = vrot.slane %v7252_v13, 2  ;;  %v2124_v42 = vrot.slane %v7259_v36, 2 }
 0x9e8   : > { %v829_v24 = vrot.slane %v7246_v18, 6  ;;  %v1266_v45 = vrot.slane %v7249_v52, 6  ;;  %v1703_v31 = vrot.slane %v7252_v13, 6  ;;  %v2140_v25 = vrot.slane %v7259_v36, 6 }
 0x9e9   : > { %1252 = vst.msk [vmem:[#allocation2 + $0x9] sm:$0x1] %vm804_vm4, %v1250_v23  ;;  %815 = vst.msk [vmem:[#allocation2 + $0x8] sm:$0x1] %vm804_vm4, %v813_v51  ;;  %v821_v21 = vrot.slane %v7246_v18, 4  ;;  %v1258_v6 = vrot.slane %v7249_v52, 4  ;;  %v1237_v51 = vadd.f32 %v1233_v3, %v7092_v33 }
 0x9ea   : > { %1689 = vst.msk [vmem:[#allocation2 + $0xa] sm:$0x1] %vm804_vm4, %v1687_v34  ;;  %v1695_v50 = vrot.slane %v7252_v13, 4  ;;  %2126 = vst.msk [vmem:[#allocation2 + $0xb] sm:$0x1] %vm804_vm4, %v2124_v42  ;;  %v2132_v37 = vrot.slane %v7259_v36, 4  ;;  %v2111_v34 = vadd.f32 %v2107_v57, %v7092_v33  ;;  %v798_v42 = vadd.f32 %v7092_v33, %v778_v22 }
 0x9eb   : > { %2128 = vrot.lane.b32.xlu0 %v2127_v41, %s6277_s13  ;;  %1691 = vrot.lane.b32.xlu1 %v1690_v61, %s6277_s13  ;;  %831 = vst.msk [vmem:[#allocation2 + $0x18] sm:$0x1] %vm804_vm4, %v829_v24  ;;  %1268 = vst.msk [vmem:[#allocation2 + $0x19] sm:$0x1] %vm804_vm4, %v1266_v45  ;;  %v860_v35 = vrot.slane %v7209_v58, 6  ;;  %v1734_v55 = vrot.slane %v7214_v12, 6  ;;  %v1674_v24 = vadd.f32 %v1670_v29, %v7092_v33 }
 0x9ec   : > { %1705 = vst.msk [vmem:[#allocation2 + $0x1a] sm:$0x1] %vm804_vm4, %v1703_v31  ;;  %v1297_v59 = vrot.slane %v7217_v8, 6  ;;  %v807_v61 = vrot.slane %v7246_v18, 1  ;;  %v1245_v41 = vrot.slane %v7249_v52, 1  ;;  %v2171_v23 = vrot.slane %v7223_v15, 6 }
 0x9ed   : > { %2142 = vst.msk [vmem:[#allocation2 + $0x1b] sm:$0x1] %vm804_vm4, %v2140_v25  ;;  %823 = vst.msk [vmem:[#allocation2 + $0x10] sm:$0x1] %vm804_vm4, %v821_v21  ;;  %v852_v45 = vrot.slane %v7209_v58, 4  ;;  %v1289_v31 = vrot.slane %v7217_v8, 4 }
 0x9ee   : > { %1260 = vst.msk [vmem:[#allocation2 + $0x11] sm:$0x1] %vm804_vm4, %v1258_v6  ;;  %1697 = vst.msk [vmem:[#allocation2 + $0x12] sm:$0x1] %vm804_vm4, %v1695_v50  ;;  %v2163_v25 = vrot.slane %v7223_v15, 4  ;;  %v7329_v3 = vsel %vm706_vm3, %v1237_v51, 0.0 }
 0x9ef   : > { %2134 = vst.msk [vmem:[#allocation2 + $0x13] sm:$0x1] %vm804_vm4, %v2132_v37  ;;  %862 = vst.msk [vmem:[#allocation2 + $0x38] sm:$0x1] %vm804_vm4, %v860_v35  ;;  %808 = vrot.lane.b32.xlu1 %v807_v61, %s6277_s13  ;;  %1246 = vrot.lane.b32.xlu0 %v1245_v41, %s6277_s13  ;;  %v7332_v57 = vsel %vm706_vm3, %v2111_v34, 0.0  ;;  %v7335_v22 = vsel %vm706_vm3, %v798_v42, 0.0 }
 0x9f0   : > { %1736 = vst.msk [vmem:[#allocation2 + $0x3a] sm:$0x1] %vm804_vm4, %v1734_v55  ;;  %1299 = vst.msk [vmem:[#allocation2 + $0x39] sm:$0x1] %vm804_vm4, %v1297_v59  ;;  %v1726_v21 = vrot.slane %v7214_v12, 4  ;;  %v1682_v6 = vrot.slane %v7252_v13, 1 }
 0x9f1   : > { %2173 = vst.msk [vmem:[#allocation2 + $0x3b] sm:$0x1] %vm804_vm4, %v2171_v23  ;;  %v2119_v29 = vrot.slane %v7259_v36, 1  ;;  %1305 = vst.msk [vmem:[#allocation2 + $0x41] sm:$0x1] %vm804_vm4, %v7329_v3  ;;  %v7350_v50 = vsel %vm706_vm3, %v1674_v24, 0.0 }
 0x9f2   : > { %2179 = vst.msk [vmem:[#allocation2 + $0x43] sm:$0x1] %vm804_vm4, %v7332_v57  ;;  %868 = vst.msk [vmem:[#allocation2 + $0x40] sm:$0x1] %vm804_vm4, %v7335_v22  ;;  %v832_v37 = vrot.slane %v7246_v18, 7  ;;  %v1269_v35 = vrot.slane %v7249_v52, 7 }
 0x9f3   : > { %854 = vst.msk [vmem:[#allocation2 + $0x30] sm:$0x1] %vm804_vm4, %v852_v45  ;;  %1291 = vst.msk [vmem:[#allocation2 + $0x31] sm:$0x1] %vm804_vm4, %v1289_v31  ;;  %1683 = vrot.lane.b32.xlu1 %v1682_v6, %s6277_s13  ;;  %2120 = vrot.lane.b32.xlu0 %v2119_v29, %s6277_s13  ;;  %v1312_v55 = vrot.slane %v7329_v3, 2  ;;  %v875_v59 = vrot.slane %v7335_v22, 2 }
 0x9f4   : > { %2165 = vst.msk [vmem:[#allocation2 + $0x33] sm:$0x1] %vm804_vm4, %v2163_v25  ;;  %1728 = vst.msk [vmem:[#allocation2 + $0x32] sm:$0x1] %vm804_vm4, %v1726_v21  ;;  %v2186_v61 = vrot.slane %v7332_v57, 2  ;;  %v1749_v41 = vrot.slane %v7350_v50, 2 }
 0x9f5   : > { %1742 = vst.msk [vmem:[#allocation2 + $0x42] sm:$0x1] %vm804_vm4, %v7350_v50  ;;  %v1328_v23 = vrot.slane %v7329_v3, 6  ;;  %v891_v51 = vrot.slane %v7335_v22, 6  ;;  %v2202_v34 = vrot.slane %v7332_v57, 6  ;;  %v1765_v42 = vrot.slane %v7350_v50, 6 }
 0x9f6   : > { %1314 = vst.msk [vmem:[#allocation2 + $0x49] sm:$0x1] %vm804_vm4, %v1312_v55  ;;  %877 = vst.msk [vmem:[#allocation2 + $0x48] sm:$0x1] %vm804_vm4, %v875_v59  ;;  %v883_v24 = vrot.slane %v7335_v22, 4  ;;  %v1757_v45 = vrot.slane %v7350_v50, 4 }
 0x9f7   : > { %2188 = vst.msk [vmem:[#allocation2 + $0x4b] sm:$0x1] %vm804_vm4, %v2186_v61  ;;  %833 = vrot.lane.b32.xlu1 %v832_v37, %s6277_s13  ;;  %1270 = vrot.lane.b32.xlu0 %v1269_v35, %s6277_s13  ;;  %1751 = vst.msk [vmem:[#allocation2 + $0x4a] sm:$0x1] %vm804_vm4, %v1749_v41  ;;  %v1320_v31 = vrot.slane %v7329_v3, 4  ;;  %v2194_v25 = vrot.slane %v7332_v57, 4 }
 0x9f8   : > { %1330 = vst.msk [vmem:[#allocation2 + $0x59] sm:$0x1] %vm804_vm4, %v1328_v23  ;;  %893 = vst.msk [vmem:[#allocation2 + $0x58] sm:$0x1] %vm804_vm4, %v891_v51  ;;  %v1706_v21 = vrot.slane %v7252_v13, 7  ;;  %v2143_v6 = vrot.slane %v7259_v36, 7 }
 0x9f9   : > { %2204 = vst.msk [vmem:[#allocation2 + $0x5b] sm:$0x1] %vm804_vm4, %v2202_v34  ;;  %1767 = vst.msk [vmem:[#allocation2 + $0x5a] sm:$0x1] %vm804_vm4, %v1765_v42  ;;  %v824_v29 = vrot.slane %v7246_v18, 5  ;;  %v1261_v37 = vrot.slane %v7249_v52, 5 }
 0x9fa   : > { %885 = vst.msk [vmem:[#allocation2 + $0x50] sm:$0x1] %vm804_vm4, %v883_v24  ;;  %1759 = vst.msk [vmem:[#allocation2 + $0x52] sm:$0x1] %vm804_vm4, %v1757_v45  ;;  %v1698_v35 = vrot.slane %v7252_v13, 5  ;;  %v2135_v55 = vrot.slane %v7259_v36, 5 }
 0x9fb   : > { %1322 = vst.msk [vmem:[#allocation2 + $0x51] sm:$0x1] %vm804_vm4, %v1320_v31  ;;  %2196 = vst.msk [vmem:[#allocation2 + $0x53] sm:$0x1] %vm804_vm4, %v2194_v25  ;;  %1707 = vrot.lane.b32.xlu1 %v1706_v21, %s6277_s13  ;;  %2144 = vrot.lane.b32.xlu0 %v2143_v6, %s6277_s13  ;;  %v847_v18 = vrot.slane %v7209_v58, 3  ;;  %v1721_v52 = vrot.slane %v7214_v12, 3 }
 0x9fc   : > { %v1284_v13 = vrot.slane %v7217_v8, 3  ;;  %v839_v36 = vrot.slane %v7209_v58, 1  ;;  %v2158_v59 = vrot.slane %v7223_v15, 3  ;;  %v1276_v61 = vrot.slane %v7217_v8, 1 }
 0x9fd   : > { %v863_v41 = vrot.slane %v7209_v58, 7  ;;  %v2150_v23 = vrot.slane %v7223_v15, 1  ;;  %v1737_v51 = vrot.slane %v7214_v12, 7  ;;  %v1300_v34 = vrot.slane %v7217_v8, 7 }
 0x9fe   : > { %v2174_v42 = vrot.slane %v7223_v15, 7  ;;  %v2505_v24 = vmul.f32 0.016666668, %v7084_v44  ;;  %v2939_v31 = vmul.f32 0.016666668, %v7159_v56 }
 0x9ff   : > { %825 = vrot.lane.b32.xlu1 %v824_v29, %s6277_s13  ;;  %1262 = vrot.lane.b32.xlu0 %v1261_v37, %s6277_s13  ;;  %v2503_v44 = vmul.f32 0.016666668, %v7080_v30 }
 0xa00   : > { %v7425_v45 = vsub.f32 %v6998_v32, %v2505_v24  ;;  %v7429_v25 = vsub.f32 %v7108_v4, %v2939_v31  ;;  %v2502_v4 = vmul.f32 0.016666668, %v7082_v26 }
 0xa01   : > { %v7441_v56 = vsub.f32 %v6989_v1, %v2503_v44 }
 0xa02   : > { %v2513_v21 = vmul.f32 %v7425_v45, %v7425_v45  ;;  %v2947_v37 = vmul.f32 %v7429_v25, %v7429_v25 }
 0xa03   : > { %1699 = vrot.lane.b32.xlu1 %v1698_v35, %s6277_s13  ;;  %2136 = vrot.lane.b32.xlu0 %v2135_v55, %s6277_s13  ;;  %v7445_v55 = vsub.f32 %v6994_v60, %v2502_v4 }
 0xa04   : > { %v2523_v29 = vsel %vm706_vm3, %v2513_v21, 0.0  ;;  %v2951_v32 = vsel %vm706_vm3, %v2947_v37, 0.0 }
 0xa05   : > { %v2510_v26 = vmul.f32 %v7445_v55, %v7445_v55 }
 0xa07   : > { %773 = vperm.xlu1 %6179, %v7049_v63   ;;  %793 = vperm.xlu0 %6173, %v7049_v63   ;;  %v1713_v63 = vrot.slane %v7214_v12, 1 }
 0xa0b   : > { %848 = vrot.lane.b32.xlu1 %v847_v18, %s6277_s13  ;;  %1722 = vrot.lane.b32.xlu0 %v1721_v52, %s6277_s13  ;;  %v2940_v18 = vmul.f32 0.016666668, %v7157_v53  ;;  %v2511_v52 = vmul.f32 %v7441_v56, %v7441_v56  ;;  %v2514_v53 = vsel %vm706_vm3, %v2510_v26, 0.0  ;;  %v2092_v26 = vmul.f32 0.016666668, %v7191_v46 }
 0xa0d   : > { %v7451_v30 = vsub.f32 %v7106_v0, %v2940_v18  ;;  %v2517_v1 = vsel %vm706_vm3, %v2511_v52, 0.0 }
 0xa0e   : > { %v7433_v6 = vpop.xlane.xlu0 %1213 }
 0xa0f   : > { %1285 = vrot.lane.b32.xlu1 %v1284_v13, %s6277_s13  ;;  %840 = vrot.lane.b32.xlu0 %v839_v36, %s6277_s13  ;;  %v2504_v36 = vmul.f32 0.016666668, %v7161_v2 }
 0xa11   : > { %v7458_v60 = vsub.f32 %v7112_v38, %v2504_v36 }
 0xa12   : > { %v1651_v35 = vpop.xlane.xlu0 %1650 }
 0xa13   : > { %2159 = vrot.lane.b32.xlu1 %v2158_v59, %s6277_s13  ;;  %1714 = vrot.lane.b32.xlu0 %v1713_v63, %s6277_s13  ;;  %v2948_v63 = vmul.f32 %v7451_v30, %v7451_v30 }
 0xa16   : > { %v2938_v13 = vpop.xlane.xlu0 %2937 }
 0xa17   : > { %1277 = vrot.lane.b32.xlu1 %v1276_v61, %s6277_s13  ;;  %864 = vrot.lane.b32.xlu0 %v863_v41, %s6277_s13  ;;  %v2942_v59 = vmul.f32 0.016666668, %v2938_v13  ;;  %v2954_v41 = vsel %vm706_vm3, %v2948_v63, 0.0  ;;  %v747_v13 = vmul.f32 0.016666668, %v7094_v40 }
 0xa19   : > { %v7464_v0 = vsub.f32 %v7148_v39, %v2942_v59  ;;  %v1218_v59 = vmul.f32 0.016666668, %v7433_v6  ;;  %v751_v63 = vadd.f32 1e-05, %v747_v13 }
 0xa1a   : > { %v2935_v61 = vpop.xlane.xlu0 %2934 }
 0xa1b   : > { %2151 = vrot.lane.b32.xlu1 %v2150_v23, %s6277_s13  ;;  %1738 = vrot.lane.b32.xlu0 %v1737_v51, %s6277_s13  ;;  %v2941_v2 = vmul.f32 0.016666668, %v2935_v61  ;;  %v2512_v23 = vmul.f32 %v7458_v60, %v7458_v60  ;;  %v1222_v40 = vadd.f32 1e-05, %v1218_v59  ;;  %6204 = vrsqrt.f32 %v751_v63 }
 0xa1d   : > { %v7470_v38 = vsub.f32 %v7151_v5, %v2941_v2  ;;  %v2520_v51 = vsel %vm706_vm3, %v2512_v23, 0.0 }
 0xa1f   : > { %1301 = vrot.lane.b32.xlu1 %v1300_v34, %s6277_s13  ;;  %v2950_v34 = vmul.f32 %v7464_v0, %v7464_v0  ;;  %v2949_v39 = vmul.f32 %v7470_v38, %v7470_v38 }
 0xa21   : > { %v2957_v5 = vsel %vm706_vm3, %v2949_v39, 0.0 }
 0xa23   : > { %2175 = vrot.lane.b32.xlu1 %v2174_v42, %s6277_s13  ;;  %v2960_v42 = vsel %vm706_vm3, %v2950_v34, 0.0 }
 0xa25   : > { %v6205_v34 = vpop.eup %6204 }
 0xa3a   : > { %2524 = vadd.xlane.f32.xlu0 %v2523_v29 }
 0xa3e   : > { %2952 = vadd.xlane.f32.xlu0 %v2951_v32 }
 0xa47   : > { %2518 = vadd.xlane.f32.xlu1 %v2517_v1 }
 0xa4b   : > { %2515 = vadd.xlane.f32.xlu1 %v2514_v53  ;;  %v1655_v53 = vmul.f32 0.016666668, %v1651_v35 }
 0xa4d   : > { %v1659_v23 = vadd.f32 1e-05, %v1655_v53 }
 0xa4f   : > { %2955 = vadd.xlane.f32.xlu1 %v2954_v41  ;;  %v2096_v41 = vadd.f32 1e-05, %v2092_v26 }
 0xa51   : > { %6206 = vrsqrt.f32 %v2096_v41 }
 0xa52   : > { %6208 = vrsqrt.f32 %v1222_v40 }
 0xa53   : > { %2521 = vadd.xlane.f32.xlu1 %v2520_v51  ;;  %6210 = vrsqrt.f32 %v1659_v23 }
 0xa57   : > { %2961 = vadd.xlane.f32.xlu1 %v2960_v42 }
 0xa59   : > { %v1255_v24 = vpop.permute.xlu1 %1254  ;;  %v818_v31 = vpop.permute.xlu0 %817 }
 0xa5a   : > { %1257 = vst.msk [vmem:[#allocation2 + $0x9] sm:$0x1] %vm811_vm5, %v1255_v24  ;;  %820 = vst.msk [vmem:[#allocation2 + $0x8] sm:$0x1] %vm811_vm5, %v818_v31 }
 0xa5b   : > { %2958 = vadd.xlane.f32.xlu1 %v2957_v5  ;;  %v6207_v39 = vpop.eup %6206 }
 0xa5c   : > { %v6209_v31 = vpop.eup %6208 }
 0xa5d   : > { %v1692_v21 = vpop.permute.xlu1 %1691  ;;  %v2129_v29 = vpop.permute.xlu0 %2128 }
 0xa5e   : > { %1694 = vst.msk [vmem:[#allocation2 + $0xa] sm:$0x1] %vm811_vm5, %v1692_v21  ;;  %2131 = vst.msk [vmem:[#allocation2 + $0xb] sm:$0x1] %vm811_vm5, %v2129_v29  ;;  %v6211_v5 = vpop.eup %6210  ;;  %v759_v21 = vmul.f32 %v6205_v34, %v7058_v28  ;;  %v2104_v29 = vmul.f32 %v6207_v39, %v7068_v14 }
 0xa61   : > { %v809_v37 = vpop.permute.xlu1 %808  ;;  %v1247_v44 = vpop.permute.xlu0 %1246 }
 0xa62   : > { %812 = vst.msk [vmem:[#allocation2] sm:$0x1] %vm811_vm5, %v809_v37  ;;  %1249 = vst.msk [vmem:[#allocation2 + $0x1] sm:$0x1] %vm811_vm5, %v1247_v44  ;;  %v1230_v37 = vmul.f32 %v6209_v31, %v7136_v20  ;;  %v1667_v44 = vmul.f32 %v6211_v5, %v7139_v19 }
 0xa65   : > { %v1684_v32 = vpop.permute.xlu1 %1683  ;;  %v2121_v4 = vpop.permute.xlu0 %2120 }
 0xa66   : > { %1686 = vst.msk [vmem:[#allocation2 + $0x2] sm:$0x1] %vm811_vm5, %v1684_v32  ;;  %2123 = vst.msk [vmem:[#allocation2 + $0x3] sm:$0x1] %vm811_vm5, %v2121_v4 }
 0xa69   : > { %v834_v18 = vpop.permute.xlu1 %833  ;;  %v1271_v52 = vpop.permute.xlu0 %1270 }
 0xa6a   : > { %836 = vst.msk [vmem:[#allocation2 + $0x18] sm:$0x1] %vm811_vm5, %v834_v18  ;;  %1273 = vst.msk [vmem:[#allocation2 + $0x19] sm:$0x1] %vm811_vm5, %v1271_v52 }
 0xa6d   : > { %v1708_v36 = vpop.permute.xlu1 %1707  ;;  %v2145_v1 = vpop.permute.xlu0 %2144 }
 0xa6e   : > { %1710 = vst.msk [vmem:[#allocation2 + $0x1a] sm:$0x1] %vm811_vm5, %v1708_v36  ;;  %2147 = vst.msk [vmem:[#allocation2 + $0x1b] sm:$0x1] %vm811_vm5, %v2145_v1 }
 0xa71   : > { %v826_v61 = vpop.permute.xlu1 %825  ;;  %v1263_v2 = vpop.permute.xlu0 %1262 }
 0xa72   : > { %828 = vst.msk [vmem:[#allocation2 + $0x10] sm:$0x1] %vm811_vm5, %v826_v61  ;;  %1265 = vst.msk [vmem:[#allocation2 + $0x11] sm:$0x1] %vm811_vm5, %v1263_v2 }
 0xa75   : > { %v1700_v51 = vpop.permute.xlu1 %1699  ;;  %v2137_v46 = vpop.permute.xlu0 %2136 }
 0xa76   : > { %1702 = vst.msk [vmem:[#allocation2 + $0x12] sm:$0x1] %vm811_vm5, %v1700_v51  ;;  %2139 = vst.msk [vmem:[#allocation2 + $0x13] sm:$0x1] %vm811_vm5, %v2137_v46 }
 0xa7b   : > { %v7498_v6 = vpop.f32.mrb[20].mxu1 }
 0xa7c   : > { %v7500_v35 = vpop.f32.mrb[21].mxu1 }
 0xa7f   : > { %v7502_v42 = vpop.f32.mrb[22].mxu1 }
 0xa80   : > { %v7504_v24 = vpop.f32.mrb[23].mxu1 }
 0xa86   : > { %v7510_v32 = vpop.permute.xlu1 %773  ;;  %v7512_v4 = vpop.permute.xlu0 %793 }
 0xa87   : > { %v779_v18 = vmul.f32 %v7510_v32, %v759_v21  ;;  %v1234_v52 = vmul.f32 %v1230_v37, %v7510_v32  ;;  %v1671_v13 = vmul.f32 %v1667_v44, %v7510_v32  ;;  %v2108_v36 = vmul.f32 %v2104_v29, %v7510_v32 }
 0xa89   : > { %v799_v28 = vadd.f32 %v7512_v4, %v779_v18  ;;  %v1238_v14 = vadd.f32 %v1234_v52, %v7512_v4  ;;  %v1675_v20 = vadd.f32 %v1671_v13, %v7512_v4  ;;  %v2112_v19 = vadd.f32 %v2108_v36, %v7512_v4 }
 0xa8a   : > { %v849_v1 = vpop.permute.xlu1 %848  ;;  %v1723_v26 = vpop.permute.xlu0 %1722 }
 0xa8b   : > { %851 = vst.msk [vmem:[#allocation2 + $0x28] sm:$0x1] %vm811_vm5, %v849_v1  ;;  %1725 = vst.msk [vmem:[#allocation2 + $0x2a] sm:$0x1] %vm811_vm5, %v1723_v26  ;;  %v7525_v59 = vsel %vm706_vm3, %v799_v28, 0.0  ;;  %v7528_v53 = vsel %vm706_vm3, %v1675_v20, 0.0 }
 0xa8c   : > { %v7531_v63 = vsel %vm706_vm3, %v1238_v14, 0.0  ;;  %v7534_v61 = vsel %vm706_vm3, %v2112_v19, 0.0  ;;  %899 = vst.msk [vmem:[#allocation2 + $0x60] sm:$0x1] %vm804_vm4, %v7525_v59  ;;  %1773 = vst.msk [vmem:[#allocation2 + $0x62] sm:$0x1] %vm804_vm4, %v7528_v53 }
 0xa8d   : > { %1336 = vst.msk [vmem:[#allocation2 + $0x61] sm:$0x1] %vm804_vm4, %v7531_v63  ;;  %2210 = vst.msk [vmem:[#allocation2 + $0x63] sm:$0x1] %vm804_vm4, %v7534_v61  ;;  %v906_v40 = vrot.slane %v7525_v59, 2  ;;  %v1780_v23 = vrot.slane %v7528_v53, 2 }
 0xa8e   : > { %v1286_v2 = vpop.permute.xlu1 %1285  ;;  %v841_v41 = vpop.permute.xlu0 %840  ;;  %v1343_v51 = vrot.slane %v7531_v63, 2  ;;  %v2217_v46 = vrot.slane %v7534_v61, 2  ;;  %v922_v34 = vrot.slane %v7525_v59, 6  ;;  %v1796_v39 = vrot.slane %v7528_v53, 6 }
 0xa8f   : > { %1288 = vst.msk [vmem:[#allocation2 + $0x29] sm:$0x1] %vm811_vm5, %v1286_v2  ;;  %843 = vst.msk [vmem:[#allocation2 + $0x20] sm:$0x1] %vm811_vm5, %v841_v41  ;;  %v1359_v31 = vrot.slane %v7531_v63, 6  ;;  %v914_v5 = vrot.slane %v7525_v59, 4 }
 0xa90   : > { %908 = vst.msk [vmem:[#allocation2 + $0x68] sm:$0x1] %vm804_vm4, %v906_v40  ;;  %1782 = vst.msk [vmem:[#allocation2 + $0x6a] sm:$0x1] %vm804_vm4, %v1780_v23  ;;  %v2233_v37 = vrot.slane %v7534_v61, 6  ;;  %v1788_v44 = vrot.slane %v7528_v53, 4 }
 0xa91   : > { %1345 = vst.msk [vmem:[#allocation2 + $0x69] sm:$0x1] %vm804_vm4, %v1343_v51  ;;  %2219 = vst.msk [vmem:[#allocation2 + $0x6b] sm:$0x1] %vm804_vm4, %v2217_v46  ;;  %v1351_v18 = vrot.slane %v7531_v63, 4  ;;  %v2225_v52 = vrot.slane %v7534_v61, 4 }
 0xa92   : > { %v2160_v21 = vpop.permute.xlu1 %2159  ;;  %v1715_v29 = vpop.permute.xlu0 %1714  ;;  %924 = vst.msk [vmem:[#allocation2 + $0x78] sm:$0x1] %vm804_vm4, %v922_v34  ;;  %1798 = vst.msk [vmem:[#allocation2 + $0x7a] sm:$0x1] %vm804_vm4, %v1796_v39 }
 0xa93   : > { %2162 = vst.msk [vmem:[#allocation2 + $0x2b] sm:$0x1] %vm811_vm5, %v2160_v21  ;;  %1717 = vst.msk [vmem:[#allocation2 + $0x22] sm:$0x1] %vm811_vm5, %v1715_v29 }
 0xa94   : > { %1361 = vst.msk [vmem:[#allocation2 + $0x79] sm:$0x1] %vm804_vm4, %v1359_v31  ;;  %916 = vst.msk [vmem:[#allocation2 + $0x70] sm:$0x1] %vm804_vm4, %v914_v5 }
 0xa95   : > { %2235 = vst.msk [vmem:[#allocation2 + $0x7b] sm:$0x1] %vm804_vm4, %v2233_v37  ;;  %1790 = vst.msk [vmem:[#allocation2 + $0x72] sm:$0x1] %vm804_vm4, %v1788_v44 }
 0xa96   : > { %1353 = vst.msk [vmem:[#allocation2 + $0x71] sm:$0x1] %vm804_vm4, %v1351_v18  ;;  %2227 = vst.msk [vmem:[#allocation2 + $0x73] sm:$0x1] %vm804_vm4, %v2225_v52  ;;  %v1278_v13 = vpop.permute.xlu1 %1277  ;;  %v865_v36 = vpop.permute.xlu0 %864 }
 0xa97   : > { %1280 = vst.msk [vmem:[#allocation2 + $0x21] sm:$0x1] %vm811_vm5, %v1278_v13  ;;  %867 = vst.msk [vmem:[#allocation2 + $0x38] sm:$0x1] %vm811_vm5, %v865_v36 }
 0xa9a   : > { %v2152_v28 = vpop.permute.xlu1 %2151  ;;  %v1739_v14 = vpop.permute.xlu0 %1738 }
 0xa9b   : > { %2154 = vst.msk [vmem:[#allocation2 + $0x23] sm:$0x1] %vm811_vm5, %v2152_v28  ;;  %1741 = vst.msk [vmem:[#allocation2 + $0x3a] sm:$0x1] %vm811_vm5, %v1739_v14 }
 0xa9e   : > { %v1302_v20 = vpop.permute.xlu1 %1301 }
 0xa9f   : > { %1304 = vst.msk [vmem:[#allocation2 + $0x39] sm:$0x1] %vm811_vm5, %v1302_v20 }
 0xaa2   : > { %v2176_v19 = vpop.permute.xlu1 %2175 }
 0xaa3   : > { %2178 = vst.msk [vmem:[#allocation2 + $0x3b] sm:$0x1] %vm811_vm5, %v2176_v19 }
 0xac7   : > { %v2525_v1 = vpop.xlane.xlu0 %2524 }
 0xac8   : > { %v2529_v26 = vmul.f32 0.016666668, %v2525_v1 }
 0xaca   : > { %v2533_v2 = vadd.f32 1e-05, %v2529_v26 }
 0xacb   : > { %v2953_v41 = vpop.xlane.xlu0 %2952 }
 0xacc   : > { %6212 = vrsqrt.f32 %v2533_v2  ;;  %v2963_v40 = vmul.f32 0.016666668, %v2953_v41 }
 0xace   : > { %v2967_v23 = vadd.f32 1e-05, %v2963_v40 }
 0xad0   : > { %6214 = vrsqrt.f32 %v2967_v23 }
 0xad4   : > { %v2519_v51 = vpop.xlane.xlu1 %2518 }
 0xad5   : > { %v2527_v46 = vmul.f32 0.016666668, %v2519_v51 }
 0xad6   : > { %v6213_v34 = vpop.eup %6212 }
 0xad7   : > { %v2541_v39 = vmul.f32 %v6213_v34, %v7425_v45  ;;  %v2531_v31 = vadd.f32 1e-05, %v2527_v46 }
 0xad8   : > { %v2516_v5 = vpop.xlane.xlu1 %2515 }
 0xad9   : > { %v2545_v21 = vmul.f32 %v2541_v39, %v7510_v32  ;;  %6216 = vrsqrt.f32 %v2531_v31  ;;  %v2526_v29 = vmul.f32 0.016666668, %v2516_v5 }
 0xada   : > { %v6215_v37 = vpop.eup %6214 }
 0xadb   : > { %v2549_v44 = vadd.f32 %v2545_v21, %v7512_v4  ;;  %v2975_v18 = vmul.f32 %v6215_v37, %v7429_v25  ;;  %v2530_v52 = vadd.f32 1e-05, %v2526_v29 }
 0xadc   : > { %v2956_v13 = vpop.xlane.xlu1 %2955 }
 0xadd   : > { %v7583_v36 = vsel %vm706_vm3, %v2549_v44, 0.0  ;;  %v2979_v28 = vmul.f32 %v2975_v18, %v7206_v49  ;;  %6218 = vrsqrt.f32 %v2530_v52  ;;  %v2964_v45 = vmul.f32 0.016666668, %v2956_v13 }
 0xade   : > { %2647 = vst.msk [vmem:[#allocation2 + $0x64] sm:$0x1] %vm804_vm4, %v7583_v36  ;;  %v2654_v19 = vrot.slane %v7583_v36, 2  ;;  %v2670_v1 = vrot.slane %v7583_v36, 6  ;;  %v2662_v26 = vrot.slane %v7583_v36, 4 }
 0xadf   : > { %v2983_v14 = vadd.f32 %v2979_v28, %v7235_v16  ;;  %v2968_v20 = vadd.f32 1e-05, %v2964_v45 }
 0xae0   : > { %v2522_v25 = vpop.xlane.xlu1 %2521  ;;  %2656 = vst.msk [vmem:[#allocation2 + $0x6c] sm:$0x1] %vm804_vm4, %v2654_v19  ;;  %2672 = vst.msk [vmem:[#allocation2 + $0x7c] sm:$0x1] %vm804_vm4, %v2670_v1 }
 0xae1   : > { %v7593_v2 = vsel %vm706_vm3, %v2983_v14, 0.0  ;;  %6220 = vrsqrt.f32 %v2968_v20  ;;  %v2528_v41 = vmul.f32 0.016666668, %v2522_v25  ;;  %2664 = vst.msk [vmem:[#allocation2 + $0x74] sm:$0x1] %vm804_vm4, %v2662_v26 }
 0xae2   : > { %2991 = vst.msk [vmem:[#allocation2 + $0x5] sm:$0x1] %vm804_vm4, %v7593_v2  ;;  %v2998_v51 = vrot.slane %v7593_v2, 2  ;;  %v3014_v46 = vrot.slane %v7593_v2, 6  ;;  %v3006_v34 = vrot.slane %v7593_v2, 4 }
 0xae3   : > { %v6217_v40 = vpop.eup %6216  ;;  %v2532_v23 = vadd.f32 1e-05, %v2528_v41 }
 0xae4   : > { %v2539_v39 = vmul.f32 %v6217_v40, %v7441_v56  ;;  %v2962_v31 = vpop.xlane.xlu1 %2961  ;;  %3000 = vst.msk [vmem:[#allocation2 + $0xd] sm:$0x1] %vm804_vm4, %v2998_v51  ;;  %3016 = vst.msk [vmem:[#allocation2 + $0x1d] sm:$0x1] %vm804_vm4, %v3014_v46 }
 0xae5   : > { %6222 = vrsqrt.f32 %v2532_v23  ;;  %v2966_v5 = vmul.f32 0.016666668, %v2962_v31  ;;  %3008 = vst.msk [vmem:[#allocation2 + $0x15] sm:$0x1] %vm804_vm4, %v3006_v34 }
 0xae6   : > { %v2543_v21 = vmul.f32 %v2539_v39, %v7193_v10 }
 0xae7   : > { %v6219_v29 = vpop.eup %6218  ;;  %v2970_v37 = vadd.f32 1e-05, %v2966_v5 }
 0xae8   : > { %v2547_v44 = vadd.f32 %v2543_v21, %v7090_v27  ;;  %v2538_v18 = vmul.f32 %v6219_v29, %v7445_v55  ;;  %v2959_v52 = vpop.xlane.xlu1 %2958 }
 0xae9   : > { %6224 = vrsqrt.f32 %v2970_v37  ;;  %v2965_v56 = vmul.f32 0.016666668, %v2959_v52 }
 0xaea   : > { %v7611_v13 = vsel %vm706_vm3, %v2547_v44, 0.0  ;;  %v2542_v28 = vmul.f32 %v2538_v18, %v7206_v49  ;;  %v3001_v44 = vrot.slane %v7593_v2, 3 }
 0xaeb   : > { %v6221_v45 = vpop.eup %6220  ;;  %2585 = vst.msk [vmem:[#allocation2 + $0x24] sm:$0x1] %vm804_vm4, %v7611_v13  ;;  %v2969_v14 = vadd.f32 1e-05, %v2965_v56  ;;  %v2595_v20 = vrot.slane %v7611_v13, 3  ;;  %v2592_v55 = vrot.slane %v7611_v13, 2 }
 0xaec   : > { %v2546_v19 = vadd.f32 %v2542_v28, %v7235_v16  ;;  %v2976_v1 = vmul.f32 %v6221_v45, %v7451_v30  ;;  %v2608_v25 = vrot.slane %v7611_v13, 6  ;;  %v2600_v26 = vrot.slane %v7611_v13, 4 }
 0xaed   : > { %6226 = vrsqrt.f32 %v2969_v14  ;;  %2596 = vrot.lane.b32.xlu0 %v2595_v20, %s6277_s13  ;;  %2594 = vst.msk [vmem:[#allocation2 + $0x2c] sm:$0x1] %vm804_vm4, %v2592_v55  ;;  %v2587_v30 = vrot.slane %v7611_v13, 1 }
 0xaee   : > { %v2550_v41 = vsel %vm706_vm3, %v2546_v19, 0.0  ;;  %v2980_v40 = vmul.f32 %v2976_v1, %v7193_v10  ;;  %2610 = vst.msk [vmem:[#allocation2 + $0x3c] sm:$0x1] %vm804_vm4, %v2608_v25  ;;  %2602 = vst.msk [vmem:[#allocation2 + $0x34] sm:$0x1] %vm804_vm4, %v2600_v26  ;;  %v2993_v1 = vrot.slane %v7593_v2, 1 }
 0xaef   : > { %v6223_v23 = vpop.eup %6222  ;;  %2554 = vst.msk [vmem:[#allocation2 + $0x4] sm:$0x1] %vm804_vm4, %v2550_v41  ;;  %v2564_v51 = vrot.slane %v2550_v41, 3  ;;  %v2561_v39 = vrot.slane %v2550_v41, 2  ;;  %v2577_v31 = vrot.slane %v2550_v41, 6  ;;  %v2569_v5 = vrot.slane %v2550_v41, 4 }
 0xaf0   : > { %v2984_v46 = vadd.f32 %v2980_v40, %v7090_v27  ;;  %v2540_v34 = vmul.f32 %v6223_v23, %v7458_v60  ;;  %v2556_v60 = vrot.slane %v2550_v41, 1 }
 0xaf1   : > { %2588 = vrot.lane.b32.xlu0 %v2587_v30, %s6277_s13  ;;  %2565 = vrot.lane.b32.xlu1 %v2564_v51, %s6277_s13  ;;  %2563 = vst.msk [vmem:[#allocation2 + $0xc] sm:$0x1] %vm804_vm4, %v2561_v39  ;;  %2579 = vst.msk [vmem:[#allocation2 + $0x1c] sm:$0x1] %vm804_vm4, %v2577_v31 }
 0xaf2   : > { %v7635_v21 = vsel %vm706_vm3, %v2984_v46, 0.0  ;;  %v2544_v29 = vmul.f32 %v2540_v34, %v7203_v7  ;;  %2571 = vst.msk [vmem:[#allocation2 + $0x14] sm:$0x1] %vm804_vm4, %v2569_v5  ;;  %v3017_v46 = vrot.slane %v7593_v2, 7 }
 0xaf3   : > { %v6225_v37 = vpop.eup %6224  ;;  %3022 = vst.msk [vmem:[#allocation2 + $0x25] sm:$0x1] %vm804_vm4, %v7635_v21  ;;  %v3029_v18 = vrot.slane %v7635_v21, 2  ;;  %v3045_v28 = vrot.slane %v7635_v21, 6  ;;  %v3037_v45 = vrot.slane %v7635_v21, 4 }
 0xaf4   : > { %v2548_v52 = vadd.f32 %v2544_v29, %v7092_v33  ;;  %v2978_v56 = vmul.f32 %v6225_v37, %v7464_v0  ;;  %v2580_v0 = vrot.slane %v2550_v41, 7  ;;  %v3009_v37 = vrot.slane %v7593_v2, 5 }
 0xaf5   : > { %2557 = vrot.lane.b32.xlu1 %v2556_v60, %s6277_s13  ;;  %3002 = vrot.lane.b32.xlu0 %v3001_v44, %s6277_s13  ;;  %3031 = vst.msk [vmem:[#allocation2 + $0x2d] sm:$0x1] %vm804_vm4, %v3029_v18  ;;  %3047 = vst.msk [vmem:[#allocation2 + $0x3d] sm:$0x1] %vm804_vm4, %v3045_v28  ;;  %v3343_v2 = vadd.f32 %v7498_v6, %v6811_v11 }
 0xaf6   : > { %v7653_v14 = vsel %vm706_vm3, %v2548_v52, 0.0  ;;  %v2982_v20 = vmul.f32 %v2978_v56, %v7510_v32  ;;  %3039 = vst.msk [vmem:[#allocation2 + $0x35] sm:$0x1] %vm804_vm4, %v3037_v45  ;;  %v3024_v52 = vrot.slane %v7635_v21, 1  ;;  %v3780_v56 = vadd.f32 %v7175_v54, %v6811_v11 }
 0xaf7   : > { %v6227_v19 = vpop.eup %6226  ;;  %2616 = vst.msk [vmem:[#allocation2 + $0x44] sm:$0x1] %vm804_vm4, %v7653_v14  ;;  %v2623_v55 = vrot.slane %v7653_v14, 2  ;;  %v2639_v40 = vrot.slane %v7653_v14, 6  ;;  %v2631_v23 = vrot.slane %v7653_v14, 4  ;;  %v3353_v11 = vadd.f32 %v7502_v42, %v6831_v9 }
 0xaf8   : > { %v2986_v25 = vadd.f32 %v2982_v20, %v7512_v4  ;;  %v2977_v26 = vmul.f32 %v6227_v19, %v7470_v38  ;;  %v2572_v38 = vrot.slane %v2550_v41, 5  ;;  %v3032_v41 = vrot.slane %v7635_v21, 3 }
 0xaf9   : > { %2581 = vrot.lane.b32.xlu1 %v2580_v0, %s6277_s13  ;;  %2994 = vrot.lane.b32.xlu0 %v2993_v1, %s6277_s13  ;;  %2625 = vst.msk [vmem:[#allocation2 + $0x4c] sm:$0x1] %vm804_vm4, %v2623_v55  ;;  %2641 = vst.msk [vmem:[#allocation2 + $0x5c] sm:$0x1] %vm804_vm4, %v2639_v40  ;;  %v3357_v28 = vmul.f32 0.01, %v3343_v2  ;;  %v3775_v20 = vadd.f32 %v7178_v47, %v6764_v17  ;;  %v3338_v0 = vadd.f32 %v7500_v35, %v6764_v17 }
 0xafa   : > { %v7670_v30 = vsel %vm706_vm3, %v2986_v25, 0.0  ;;  %v2981_v51 = vmul.f32 %v2977_v26, %v7203_v7  ;;  %2633 = vst.msk [vmem:[#allocation2 + $0x54] sm:$0x1] %vm804_vm4, %v2631_v23  ;;  %v3794_v45 = vmul.f32 0.01, %v3780_v56 }
 0xafb   : > { %3084 = vst.msk [vmem:[#allocation2 + $0x65] sm:$0x1] %vm804_vm4, %v7670_v30  ;;  %v3091_v39 = vrot.slane %v7670_v30, 2  ;;  %v3107_v31 = vrot.slane %v7670_v30, 6  ;;  %v3099_v5 = vrot.slane %v7670_v30, 4  ;;  %v7710_v19 = vmax.f32 %v3343_v2, %v3357_v28 }
 0xafc   : > { %v2985_v34 = vadd.f32 %v2981_v51, %v7092_v33  ;;  %v7714_v1 = vmax.f32 %v3780_v56, %v3794_v45  ;;  %v3793_v55 = vmul.f32 0.01, %v3775_v20  ;;  %v3356_v6 = vmul.f32 0.01, %v3338_v0 }
 0xafd   : > { %2573 = vrot.lane.b32.xlu1 %v2572_v38, %s6277_s13  ;;  %3018 = vrot.lane.b32.xlu0 %v3017_v46, %s6277_s13  ;;  %3093 = vst.msk [vmem:[#allocation2 + $0x6d] sm:$0x1] %vm804_vm4, %v3091_v39  ;;  %3109 = vst.msk [vmem:[#allocation2 + $0x7d] sm:$0x1] %vm804_vm4, %v3107_v31  ;;  %v3367_v25 = vsel %vm706_vm3, %v7710_v19, 0.0  ;;  %v2611_v51 = vrot.slane %v7611_v13, 7  ;;  %v3790_v46 = vadd.f32 %v7180_v48, %v6831_v9 }
 0xafe   : > { %v7685_v29 = vsel %vm706_vm3, %v2985_v34, 0.0  ;;  %3101 = vst.msk [vmem:[#allocation2 + $0x75] sm:$0x1] %vm804_vm4, %v3099_v5  ;;  %v7720_v54 = vmax.f32 %v3775_v20, %v3793_v55  ;;  %v3804_v47 = vsel %vm706_vm3, %v7714_v1, 0.0  ;;  %v7724_v26 = vmax.f32 %v3338_v0, %v3356_v6 }
 0xaff   : > { %3053 = vst.msk [vmem:[#allocation2 + $0x45] sm:$0x1] %vm804_vm4, %v7685_v29  ;;  %v3060_v60 = vrot.slane %v7685_v29, 2  ;;  %v3076_v44 = vrot.slane %v7685_v29, 6  ;;  %v3068_v18 = vrot.slane %v7685_v29, 4  ;;  %v3048_v38 = vrot.slane %v7635_v21, 7 }
 0xb00   : > { %v3359_v40 = vmul.f32 0.01, %v3353_v11  ;;  %v3801_v17 = vsel %vm706_vm3, %v7720_v54, 0.0  ;;  %v3364_v23 = vsel %vm706_vm3, %v7724_v26, 0.0  ;;  %v3796_v34 = vmul.f32 0.01, %v3790_v46 }
 0xb01   : > { %3033 = vrot.lane.b32.xlu1 %v3032_v41, %s6277_s13  ;;  %3010 = vrot.lane.b32.xlu0 %v3009_v37, %s6277_s13  ;;  %3062 = vst.msk [vmem:[#allocation2 + $0x4d] sm:$0x1] %vm804_vm4, %v3060_v60  ;;  %3078 = vst.msk [vmem:[#allocation2 + $0x5d] sm:$0x1] %vm804_vm4, %v3076_v44  ;;  %v3785_v39 = vadd.f32 %v7182_v43, %v6822_v62  ;;  %v3348_v31 = vadd.f32 %v7504_v24, %v6822_v62  ;;  %v1292_v0 = vrot.slane %v7217_v8, 5 }
 0xb02   : > { %3070 = vst.msk [vmem:[#allocation2 + $0x55] sm:$0x1] %vm804_vm4, %v3068_v18  ;;  %v7728_v35 = vmax.f32 %v3353_v11, %v3359_v40  ;;  %v7744_v5 = vmax.f32 %v3790_v46, %v3796_v34  ;;  %v855_v6 = vrot.slane %v7209_v58, 5 }
 0xb03   : > { %v3795_v41 = vmul.f32 0.01, %v3785_v39  ;;  %v3358_v37 = vmul.f32 0.01, %v3348_v31 }
 0xb04   : > { %v3373_v42 = vsel %vm706_vm3, %v7728_v35, 0.0  ;;  %v3810_v44 = vsel %vm706_vm3, %v7744_v5, 0.0 }
 0xb05   : > { %3025 = vrot.lane.b32.xlu1 %v3024_v52, %s6277_s13  ;;  %v7746_v60 = vmax.f32 %v3785_v39, %v3795_v41  ;;  %v7750_v18 = vmax.f32 %v3348_v31, %v3358_v37 }
 0xb07   : > { %v3807_v48 = vsel %vm706_vm3, %v7746_v60, 0.0  ;;  %v3370_v62 = vsel %vm706_vm3, %v7750_v18, 0.0 }
 0xb20   : > { %3368 = vadd.xlane.f32.xlu0 %v3367_v25 }
 0xb24   : > { %3805 = vadd.xlane.f32.xlu0 %v3804_v47 }
 0xb28   : > { %3802 = vadd.xlane.f32.xlu0 %v3801_v17 }
 0xb29   : > { %3365 = vadd.xlane.f32.xlu1 %v3364_v23 }
 0xb2d   : > { %3374 = vadd.xlane.f32.xlu1 %v3373_v42 }
 0xb3e   : > { %2612 = vrot.lane.b32.xlu0 %v2611_v51, %s6277_s13  ;;  %3049 = vrot.lane.b32.xlu1 %v3048_v38, %s6277_s13 }
 0xb5d   : > { %3811 = vadd.xlane.f32.xlu0 %v3810_v44 }
 0xb5f   : > { %v2597_v9 = vpop.permute.xlu0 %2596 }
 0xb60   : > { %2599 = vst.msk [vmem:[#allocation2 + $0x2c] sm:$0x1] %vm811_vm5, %v2597_v9 }
 0xb61   : > { %3808 = vadd.xlane.f32.xlu0 %v3807_v48 }
 0xb62   : > { %3371 = vadd.xlane.f32.xlu1 %v3370_v62 }
 0xb63   : > { %v2566_v43 = vpop.permute.xlu1 %2565  ;;  %v2589_v24 = vpop.permute.xlu0 %2588 }
 0xb64   : > { %2568 = vst.msk [vmem:[#allocation2 + $0xc] sm:$0x1] %vm811_vm5, %v2566_v43  ;;  %2591 = vst.msk [vmem:[#allocation2 + $0x24] sm:$0x1] %vm811_vm5, %v2589_v24 }
 0xb67   : > { %v2558_v52 = vpop.permute.xlu1 %2557  ;;  %v3003_v2 = vpop.permute.xlu0 %3002 }
 0xb68   : > { %2560 = vst.msk [vmem:[#allocation2 + $0x4] sm:$0x1] %vm811_vm5, %v2558_v52  ;;  %3005 = vst.msk [vmem:[#allocation2 + $0xd] sm:$0x1] %vm811_vm5, %v3003_v2  ;;  %v2166_v2 = vrot.slane %v7223_v15, 5  ;;  %v3063_v15 = vrot.slane %v7685_v29, 3 }
 0xb6b   : > { %v2582_v56 = vpop.permute.xlu1 %2581  ;;  %v2995_v28 = vpop.permute.xlu0 %2994 }
 0xb6c   : > { %2584 = vst.msk [vmem:[#allocation2 + $0x1c] sm:$0x1] %vm811_vm5, %v2582_v56  ;;  %2997 = vst.msk [vmem:[#allocation2 + $0x5] sm:$0x1] %vm811_vm5, %v2995_v28  ;;  %v3040_v56 = vrot.slane %v7635_v21, 5  ;;  %v1315_v28 = vrot.slane %v7329_v3, 3 }
 0xb6d   : > { %v878_v21 = vrot.slane %v7335_v22, 3 }
 0xb6f   : > { %v2574_v45 = vpop.permute.xlu1 %2573  ;;  %v3019_v20 = vpop.permute.xlu0 %3018 }
 0xb70   : > { %2576 = vst.msk [vmem:[#allocation2 + $0x14] sm:$0x1] %vm811_vm5, %v2574_v45  ;;  %3021 = vst.msk [vmem:[#allocation2 + $0x1d] sm:$0x1] %vm811_vm5, %v3019_v20  ;;  %v1729_v45 = vrot.slane %v7214_v12, 5  ;;  %v2189_v20 = vrot.slane %v7332_v57, 3 }
 0xb71   : > { %v1307_v12 = vrot.slane %v7329_v3, 1 }
 0xb73   : > { %v3034_v55 = vpop.permute.xlu1 %3033  ;;  %v3011_v25 = vpop.permute.xlu0 %3010  ;;  %1293 = vrot.lane.b32.xlu1 %v1292_v0, %s6277_s13  ;;  %v2603_v0 = vrot.slane %v7611_v13, 5  ;;  %v2181_v13 = vrot.slane %v7332_v57, 1 }
 0xb74   : > { %3036 = vst.msk [vmem:[#allocation2 + $0x2d] sm:$0x1] %vm811_vm5, %v3034_v55  ;;  %3013 = vst.msk [vmem:[#allocation2 + $0x15] sm:$0x1] %vm811_vm5, %v3011_v25  ;;  %v1752_v55 = vrot.slane %v7350_v50, 3 }
 0xb77   : > { %v3026_v11 = vpop.permute.xlu1 %3025  ;;  %856 = vrot.lane.b32.xlu0 %v855_v6, %s6277_s13  ;;  %v2626_v6 = vrot.slane %v7653_v14, 3 }
 0xb78   : > { %3028 = vst.msk [vmem:[#allocation2 + $0x25] sm:$0x1] %vm811_vm5, %v3026_v11  ;;  %v3055_v11 = vrot.slane %v7685_v29, 1 }
 0xbad   : > { %v3369_v47 = vpop.xlane.xlu0 %3368 }
 0xbae   : > { %v3377_v40 = vmul.f32 0.016666668, %v3369_v47 }
 0xbb0   : > { %v7773_v17 = vsub.f32 %v7710_v19, %v3377_v40  ;;  %v870_v40 = vrot.slane %v7335_v22, 1 }
 0xbb1   : > { %v3806_v8 = vpop.xlane.xlu0 %3805 }
 0xbb2   : > { %v3385_v23 = vmul.f32 %v7773_v17, %v7773_v17  ;;  %v3814_v51 = vmul.f32 0.016666668, %v3806_v8 }
 0xbb4   : > { %v3391_v42 = vsel %vm706_vm3, %v3385_v23, 0.0  ;;  %v7779_v34 = vsub.f32 %v7714_v1, %v3814_v51  ;;  %v1331_v23 = vrot.slane %v7329_v3, 7  ;;  %v1744_v51 = vrot.slane %v7350_v50, 1 }
 0xbb5   : > { %v3803_v38 = vpop.xlane.xlu0 %3802  ;;  %3392 = vadd.xlane.f32.xlu1 %v3391_v42 }
 0xbb6   : > { %v3366_v58 = vpop.xlane.xlu1 %3365  ;;  %v3813_v39 = vmul.f32 0.016666668, %v3803_v38 }
 0xbb7   : > { %v3376_v46 = vmul.f32 0.016666668, %v3366_v58  ;;  %v2205_v58 = vrot.slane %v7332_v57, 7 }
 0xbb8   : > { %v7788_v9 = vsub.f32 %v7720_v54, %v3813_v39  ;;  %v894_v39 = vrot.slane %v7335_v22, 7 }
 0xbb9   : > { %v7782_v31 = vsub.f32 %v7724_v26, %v3376_v46  ;;  %v2613_v19 = vpop.permute.xlu0 %2612  ;;  %v3822_v26 = vmul.f32 %v7779_v34, %v7779_v34  ;;  %v2618_v46 = vrot.slane %v7653_v14, 1 }
 0xbba   : > { %2615 = vst.msk [vmem:[#allocation2 + $0x3c] sm:$0x1] %vm811_vm5, %v2613_v19  ;;  %v3375_v41 = vpop.xlane.xlu1 %3374  ;;  %v1768_v19 = vrot.slane %v7350_v50, 7 }
 0xbbb   : > { %v3379_v37 = vmul.f32 0.016666668, %v3375_v41  ;;  %v3384_v44 = vmul.f32 %v7782_v31, %v7782_v31  ;;  %v3828_v24 = vsel %vm706_vm3, %v3822_v26, 0.0 }
 0xbbd   : > { %v7791_v48 = vsub.f32 %v7728_v35, %v3379_v37  ;;  %v3388_v1 = vsel %vm706_vm3, %v3384_v44, 0.0  ;;  %v3821_v35 = vmul.f32 %v7788_v9, %v7788_v9 }
 0xbbe   : > { %3389 = vadd.xlane.f32.xlu1 %v3388_v1  ;;  %v3050_v62 = vpop.permute.xlu1 %3049 }
 0xbbf   : > { %3052 = vst.msk [vmem:[#allocation2 + $0x3d] sm:$0x1] %vm811_vm5, %v3050_v62  ;;  %v3387_v43 = vmul.f32 %v7791_v48, %v7791_v48  ;;  %v3825_v52 = vsel %vm706_vm3, %v3821_v35, 0.0 }
 0xbc1   : > { %v3397_v54 = vsel %vm706_vm3, %v3387_v43, 0.0 }
 0xbc2   : > { %3829 = vadd.xlane.f32.xlu1 %v3828_v24  ;;  %3398 = vadd.xlane.f32.xlu0 %v3397_v54 }
 0xbc6   : > { %3826 = vadd.xlane.f32.xlu0 %v3825_v52 }
 0xbd3   : > { %2167 = vrot.lane.b32.xlu1 %v2166_v2, %s6277_s13 }
 0xbd7   : > { %3041 = vrot.lane.b32.xlu1 %v3040_v56, %s6277_s13 }
 0xbdb   : > { %1316 = vrot.lane.b32.xlu1 %v1315_v28, %s6277_s13  ;;  %v4022_v28 = vld [vmem:[%s9004_s4 + $0x88] sm:$0xff] }
 0xbdc   : > { %1730 = vrot.lane.b32.xlu0 %v1729_v45, %s6277_s13  ;;  %v4005_v45 = vld [vmem:[%s9004_s4] sm:$0xff] }
 0xbdf   : > { %2190 = vrot.lane.b32.xlu1 %v2189_v20, %s6277_s13 }
 0xbe0   : > { %2604 = vrot.lane.b32.xlu0 %v2603_v0, %s6277_s13  ;;  %v4006_v0 = vld [vmem:[%s9004_s4 + $0x8] sm:$0xff] }
 0xbe3   : > { %3064 = vrot.lane.b32.xlu1 %v3063_v15, %s6277_s13 }
 0xbe4   : > { %879 = vrot.lane.b32.xlu0 %v878_v21, %s6277_s13  ;;  %v5818_v21 = vpack.c.bf16 %v4006_v0, %v4005_v45  ;;  %v4027_v0 = vld [vmem:[%s9004_s4 + $0xb0] sm:$0xff] }
 0xbe7   : > { %1308 = vrot.lane.b32.xlu1 %v1307_v12, %s6277_s13 }
 0xbe8   : > { %1753 = vrot.lane.b32.xlu0 %v1752_v55, %s6277_s13 }
 0xbea   : > { %v3812_v25 = vpop.xlane.xlu0 %3811 }
 0xbeb   : > { %2182 = vrot.lane.b32.xlu1 %v2181_v13, %s6277_s13  ;;  %v3816_v37 = vmul.f32 0.016666668, %v3812_v25  ;;  %v4023_v13 = vld [vmem:[%s9004_s4 + $0x90] sm:$0xff]  ;;  %v4024_v25 = vld [vmem:[%s9004_s4 + $0x98] sm:$0xff] }
 0xbec   : > { %2627 = vrot.lane.b32.xlu0 %v2626_v6, %s6277_s13  ;;  %v4007_v6 = vld [vmem:[%s9004_s4 + $0x10] sm:$0xff] }
 0xbed   : > { %v7850_v1 = vsub.f32 %v7744_v5, %v3816_v37 }
 0xbee   : > { %v3809_v47 = vpop.xlane.xlu0 %3808 }
 0xbef   : > { %3056 = vrot.lane.b32.xlu1 %v3055_v11, %s6277_s13  ;;  %v3372_v8 = vpop.xlane.xlu1 %3371  ;;  %v3815_v26 = vmul.f32 0.016666668, %v3809_v47  ;;  %v3824_v54 = vmul.f32 %v7850_v1, %v7850_v1 }
 0xbf0   : > { %871 = vrot.lane.b32.xlu0 %v870_v40, %s6277_s13  ;;  %v3378_v41 = vmul.f32 0.016666668, %v3372_v8  ;;  %v5820_v40 = vpack.c.bf16 %v4024_v25, %v4023_v13  ;;  %v4008_v8 = vld [vmem:[%s9004_s4 + $0x18] sm:$0xff] }
 0xbf1   : > { %v7855_v43 = vsub.f32 %v7746_v60, %v3815_v26  ;;  %v3834_v35 = vsel %vm706_vm3, %v3824_v54, 0.0  ;;  %v4021_v60 = vld [vmem:[%s9004_s4 + $0x80] sm:$0xff]  ;;  %v4056_v25 = vld [vmem:[%s9004_s4 + $0x198] sm:$0xff] }
 0xbf2   : > { %v857_v42 = vpop.permute.xlu0 %856  ;;  %v7847_v44 = vsub.f32 %v7750_v18, %v3378_v41  ;;  %v5816_v20 = vpack.c.bf16 %v4022_v28, %v4021_v60  ;;  %v4026_v41 = vld [vmem:[%s9004_s4 + $0xa8] sm:$0xff]  ;;  %v4009_v54 = vld [vmem:[%s9004_s4 + $0x20] sm:$0xff] }
 0xbf3   : > { %859 = vst.msk [vmem:[#allocation2 + $0x30] sm:$0x1] %vm811_vm5, %v857_v42  ;;  %1332 = vrot.lane.b32.xlu1 %v1331_v23, %s6277_s13  ;;  %v1294_v38 = vpop.permute.xlu1 %1293  ;;  %v3823_v18 = vmul.f32 %v7855_v43, %v7855_v43 }
 0xbf4   : > { %1296 = vst.msk [vmem:[#allocation2 + $0x31] sm:$0x1] %vm811_vm5, %v1294_v38  ;;  %1745 = vrot.lane.b32.xlu0 %v1744_v51, %s6277_s13  ;;  %v3386_v62 = vmul.f32 %v7847_v44, %v7847_v44  ;;  %5817 = vmatprep.subr.bf16.mxu1 %v5816_v20  ;;  %v5822_v51 = vpack.c.bf16 %v4008_v8, %v4007_v6  ;;  %v4011_v6 = vld [vmem:[%s9004_s4 + $0x30] sm:$0xff] }
 0xbf5   : > { %v3831_v5 = vsel %vm706_vm3, %v3823_v18, 0.0  ;;  %5819 = vmatpush3.bf16.msra.mxu1 %v5818_v21  ;;  %v4055_v21 = vld [vmem:[%s9004_s4 + $0x190] sm:$0xff] }
 0xbf6   : > { %v3394_v24 = vsel %vm706_vm3, %v3386_v62, 0.0  ;;  %5821 = vmatprep.subr.bf16.mxu1 %v5820_v40  ;;  %v5852_v40 = vpack.c.bf16 %v4056_v25, %v4055_v21 }
 0xbf7   : > { %2206 = vrot.lane.b32.xlu1 %v2205_v58, %s6277_s13 }
 0xbf8   : > { %2619 = vrot.lane.b32.xlu0 %v2618_v46, %s6277_s13 }
 0xbf9   : > { %5823 = vmatpush3.bf16.msra.mxu1 %v5822_v51 }
 0xbfc   : > { %895 = vrot.lane.b32.xlu0 %v894_v39, %s6277_s13 }
 0xc00   : > { %1769 = vrot.lane.b32.xlu0 %v1768_v19, %s6277_s13  ;;  %v4025_v19 = vld [vmem:[%s9004_s4 + $0xa0] sm:$0xff] }
 0xc01   : > { %v5824_v62 = vpack.c.bf16 %v4026_v41, %v4025_v19  ;;  %v4029_v41 = vld [vmem:[%s9004_s4 + $0xc0] sm:$0xff] }
 0xc03   : > { %5825 = vmatprep.subr.bf16.mxu1 %v5824_v62 }
 0xc1b   : > { %3395 = vadd.xlane.f32.xlu1 %v3394_v24  ;;  %v4053_v24 = vld [vmem:[%s9004_s4 + $0x180] sm:$0xff] }
 0xc1f   : > { %3835 = vadd.xlane.f32.xlu1 %v3834_v35 }
 0xc23   : > { %3832 = vadd.xlane.f32.xlu1 %v3831_v5 }
 0xc42   : > { %v3393_v52 = vpop.xlane.xlu1 %3392 }
 0xc43   : > { %v3401_v2 = vmul.f32 0.016666668, %v3393_v52  ;;  %v4010_v52 = vld [vmem:[%s9004_s4 + $0x28] sm:$0xff] }
 0xc44   : > { %v5826_v60 = vpack.c.bf16 %v4010_v52, %v4009_v54 }
 0xc45   : > { %v3405_v56 = vadd.f32 1e-05, %v3401_v2  ;;  %v4037_v2 = vld [vmem:[%s9004_s4 + $0x100] sm:$0xff] }
 0xc46   : > { %5827 = vmatpush3.bf16.msra.mxu1 %v5826_v60 }
 0xc47   : > { %6228 = vrsqrt.f32 %v3405_v56  ;;  %v4038_v56 = vld [vmem:[%s9004_s4 + $0x108] sm:$0xff] }
 0xc48   : > { %v5850_v28 = vpack.c.bf16 %v4038_v56, %v4037_v2  ;;  %v4041_v2 = vld [vmem:[%s9004_s4 + $0x120] sm:$0xff]  ;;  %v4042_v56 = vld [vmem:[%s9004_s4 + $0x128] sm:$0xff] }
 0xc4b   : > { %v3390_v15 = vpop.xlane.xlu1 %3389 }
 0xc4c   : > { %v3400_v12 = vmul.f32 0.016666668, %v3390_v15  ;;  %v4028_v15 = vld [vmem:[%s9004_s4 + $0xb8] sm:$0xff] }
 0xc4d   : > { %v5828_v13 = vpack.c.bf16 %v4028_v15, %v4027_v0  ;;  %v4032_v0 = vld [vmem:[%s9004_s4 + $0xd8] sm:$0xff]  ;;  %v4059_v15 = vld [vmem:[%s9004_s4 + $0x1b0] sm:$0xff] }
 0xc4e   : > { %v3404_v55 = vadd.f32 1e-05, %v3400_v12 }
 0xc4f   : > { %v3399_v11 = vpop.xlane.xlu0 %3398  ;;  %v3830_v47 = vpop.xlane.xlu1 %3829  ;;  %5829 = vmatprep.subr.bf16.mxu1 %v5828_v13 }
 0xc50   : > { %6230 = vrsqrt.f32 %v3404_v55  ;;  %v3403_v23 = vmul.f32 0.016666668, %v3399_v11  ;;  %v3838_v42 = vmul.f32 0.016666668, %v3830_v47  ;;  %v4012_v11 = vld [vmem:[%s9004_s4 + $0x38] sm:$0xff] }
 0xc51   : > { %v6229_v38 = vpop.eup %6228  ;;  %v5830_v8 = vpack.c.bf16 %v4012_v11, %v4011_v6 }
 0xc52   : > { %v3413_v58 = vmul.f32 %v6229_v38, %v7773_v17  ;;  %v3407_v46 = vadd.f32 1e-05, %v3403_v23  ;;  %v3842_v39 = vadd.f32 1e-05, %v3838_v42  ;;  %v4054_v17 = vld [vmem:[%s9004_s4 + $0x188] sm:$0xff]  ;;  %v4039_v23 = vld [vmem:[%s9004_s4 + $0x110] sm:$0xff] }
 0xc53   : > { %v3827_v37 = vpop.xlane.xlu0 %3826  ;;  %v2168_v26 = vpop.permute.xlu1 %2167  ;;  %v5848_v5 = vpack.c.bf16 %v4054_v17, %v4053_v24  ;;  %v4040_v42 = vld [vmem:[%s9004_s4 + $0x118] sm:$0xff]  ;;  %5831 = vmatpush3.bf16.msra.mxu1 %v5830_v8 }
 0xc54   : > { %v3417_v35 = vmul.f32 %v3413_v58, %v7193_v10  ;;  %6232 = vrsqrt.f32 %v3407_v46  ;;  %v3837_v18 = vmul.f32 0.016666668, %v3827_v37  ;;  %2170 = vst.msk [vmem:[#allocation2 + $0x33] sm:$0x1] %vm811_vm5, %v2168_v26  ;;  %v4030_v37 = vld [vmem:[%s9004_s4 + $0xc8] sm:$0xff]  ;;  %v4057_v26 = vld [vmem:[%s9004_s4 + $0x1a0] sm:$0xff] }
 0xc55   : > { %6234 = vrsqrt.f32 %v3842_v39  ;;  %5849 = vmatprep.subr.bf16.mxu0 %v5848_v5  ;;  %v5854_v39 = vpack.c.bf16 %v4040_v42, %v4039_v23  ;;  %v5832_v54 = vpack.c.bf16 %v4030_v37, %v4029_v41  ;;  %v4014_v5 = vld [vmem:[%s9004_s4 + $0x48] sm:$0xff]  ;;  %v4015_v23 = vld [vmem:[%s9004_s4 + $0x50] sm:$0xff]  ;;  %v4016_v42 = vld [vmem:[%s9004_s4 + $0x58] sm:$0xff] }
 0xc56   : > { %v3421_v45 = vadd.f32 %v3417_v35, %v7090_v27  ;;  %v3841_v20 = vadd.f32 1e-05, %v3837_v18  ;;  %5851 = vmatpush3.bf16.msra.mxu0 %v5850_v28  ;;  %v4058_v35 = vld [vmem:[%s9004_s4 + $0x1a8] sm:$0xff]  ;;  %v4013_v18 = vld [vmem:[%s9004_s4 + $0x40] sm:$0xff] }
 0xc57   : > { %v1731_v12 = vpop.permute.xlu0 %1730  ;;  %v3042_v55 = vpop.permute.xlu1 %3041  ;;  %5853 = vmatprep.subr.bf16.mxu0 %v5852_v40  ;;  %v5834_v52 = vpack.c.bf16 %v4014_v5, %v4013_v18  ;;  %5833 = vmatprep.subr.bf16.mxu1 %v5832_v54  ;;  %v4033_v41 = vld [vmem:[%s9004_s4 + $0xe0] sm:$0xff]  ;;  %v4034_v37 = vld [vmem:[%s9004_s4 + $0xe8] sm:$0xff] }
 0xc58   : > { %v7935_v47 = vsel %vm706_vm3, %v3421_v45, 0.0  ;;  %6236 = vrsqrt.f32 %v3841_v20  ;;  %1733 = vst.msk [vmem:[#allocation2 + $0x32] sm:$0x1] %vm811_vm5, %v1731_v12  ;;  %3044 = vst.msk [vmem:[#allocation2 + $0x35] sm:$0x1] %vm811_vm5, %v3042_v55  ;;  %v5858_v45 = vpack.c.bf16 %v4042_v56, %v4041_v2  ;;  %v4031_v20 = vld [vmem:[%s9004_s4 + $0xd0] sm:$0xff] }
 0xc59   : > { %3459 = vst.msk [vmem:[#allocation2 + $0x26] sm:$0x1] %vm804_vm4, %v7935_v47  ;;  %v3469_v51 = vrot.slane %v7935_v47, 3  ;;  %v3466_v58 = vrot.slane %v7935_v47, 2  ;;  %v3482_v46 = vrot.slane %v7935_v47, 6  ;;  %v3474_v19 = vrot.slane %v7935_v47, 4  ;;  %5835 = vmatpush3.bf16.msra.mxu1 %v5834_v52 }
 0xc5a   : > { %v6231_v38 = vpop.eup %6230  ;;  %5855 = vmatpush3.bf16.msra.mxu0 %v5854_v39  ;;  %v3461_v28 = vrot.slane %v7935_v47, 1  ;;  %v5836_v12 = vpack.c.bf16 %v4032_v0, %v4031_v20  ;;  %v4060_v55 = vld [vmem:[%s9004_s4 + $0x1b8] sm:$0xff]  ;;  %v4062_v54 = vld [vmem:[%s9004_s4 + $0x1c8] sm:$0xff]  ;;  %v3477_v52 = vrot.slane %v7935_v47, 5 }
 0xc5b   : > { %v3412_v62 = vmul.f32 %v6231_v38, %v7782_v31  ;;  %v2605_v24 = vpop.permute.xlu0 %2604  ;;  %3470 = vrot.lane.b32.xlu0 %v3469_v51, %s6277_s13  ;;  %v1317_v17 = vpop.permute.xlu1 %1316  ;;  %3468 = vst.msk [vmem:[#allocation2 + $0x2e] sm:$0x1] %vm804_vm4, %v3466_v58  ;;  %3484 = vst.msk [vmem:[#allocation2 + $0x3e] sm:$0x1] %vm804_vm4, %v3482_v46  ;;  %v5856_v31 = vpack.c.bf16 %v4058_v35, %v4057_v26  ;;  %v5860_v8 = vpack.c.bf16 %v4060_v55, %v4059_v15  ;;  %v4043_v51 = vld [vmem:[%s9004_s4 + $0x130] sm:$0xff]  ;;  %v4044_v58 = vld [vmem:[%s9004_s4 + $0x138] sm:$0xff] }
 0xc5c   : > { %2607 = vst.msk [vmem:[#allocation2 + $0x34] sm:$0x1] %vm811_vm5, %v2605_v24  ;;  %1319 = vst.msk [vmem:[#allocation2 + $0x49] sm:$0x1] %vm811_vm5, %v1317_v17  ;;  %5837 = vmatprep.subr.bf16.mxu1 %v5836_v12  ;;  %v5838_v38 = vpack.c.bf16 %v4016_v42, %v4015_v23  ;;  %v4061_v26 = vld [vmem:[%s9004_s4 + $0x1c0] sm:$0xff]  ;;  %v4018_v56 = vld [vmem:[%s9004_s4 + $0x68] sm:$0xff] }
 0xc5d   : > { %3476 = vst.msk [vmem:[#allocation2 + $0x36] sm:$0x1] %vm804_vm4, %v3474_v19  ;;  %v3416_v60 = vmul.f32 %v3412_v62, %v7206_v49  ;;  %5857 = vmatprep.subr.bf16.mxu0 %v5856_v31  ;;  %v3485_v19 = vrot.slane %v7935_v47, 7  ;;  %v5840_v47 = vpack.c.bf16 %v4034_v37, %v4033_v41  ;;  %v4046_v20 = vld [vmem:[%s9004_s4 + $0x148] sm:$0xff]  ;;  %v4035_v12 = vld [vmem:[%s9004_s4 + $0xf0] sm:$0xff]  ;;  %v4036_v55 = vld [vmem:[%s9004_s4 + $0xf8] sm:$0xff] }
 0xc5e   : > { %v6233_v21 = vpop.eup %6232  ;;  %5859 = vmatpush3.bf16.msra.mxu0 %v5858_v45  ;;  %5839 = vmatpush3.bf16.msra.mxu1 %v5838_v38  ;;  %v4045_v45 = vld [vmem:[%s9004_s4 + $0x140] sm:$0xff]  ;;  %v4019_v23 = vld [vmem:[%s9004_s4 + $0x70] sm:$0xff]  ;;  %v4020_v42 = vld [vmem:[%s9004_s4 + $0x78] sm:$0xff] }
 0xc5f   : > { %v6235_v13 = vpop.eup %6234  ;;  %v3420_v25 = vadd.f32 %v3416_v60, %v7235_v16  ;;  %v3415_v6 = vmul.f32 %v6233_v21, %v7791_v48  ;;  %v880_v11 = vpop.permute.xlu0 %879  ;;  %3462 = vrot.lane.b32.xlu0 %v3461_v28, %s6277_s13  ;;  %5861 = vmatprep.subr.bf16.mxu0 %v5860_v8  ;;  %v5864_v28 = vpack.c.bf16 %v4062_v54, %v4061_v26  ;;  %v4065_v41 = vld [vmem:[%s9004_s4 + $0x1e0] sm:$0xff]  ;;  %v4066_v37 = vld [vmem:[%s9004_s4 + $0x1e8] sm:$0xff] }
 0xc60   : > { %v2191_v40 = vpop.permute.xlu1 %2190  ;;  %v3850_v48 = vmul.f32 %v6235_v13, %v7779_v34  ;;  %882 = vst.msk [vmem:[#allocation2 + $0x48] sm:$0x1] %vm811_vm5, %v880_v11  ;;  %v5862_v34 = vpack.c.bf16 %v4044_v58, %v4043_v51  ;;  %v4063_v13 = vld [vmem:[%s9004_s4 + $0x1d0] sm:$0xff]  ;;  %5841 = vmatprep.subr.bf16.mxu1 %v5840_v47  ;;  %v4048_v58 = vld [vmem:[%s9004_s4 + $0x158] sm:$0xff]  ;;  %v4085_v26 = vld [vmem:[%s9004_s4 + $0x280] sm:$0xff] }
 0xc61   : > { %2193 = vst.msk [vmem:[#allocation2 + $0x4b] sm:$0x1] %vm811_vm5, %v2191_v40  ;;  %v8015_v46 = vsel %vm706_vm3, %v3420_v25, 0.0  ;;  %v3419_v39 = vmul.f32 %v3415_v6, %v7510_v32  ;;  %v4064_v6 = vld [vmem:[%s9004_s4 + $0x1d8] sm:$0xff]  ;;  %v4047_v51 = vld [vmem:[%s9004_s4 + $0x150] sm:$0xff]  ;;  %v4086_v54 = vld [vmem:[%s9004_s4 + $0x288] sm:$0xff] }
 0xc62   : > { %v6237_v62 = vpop.eup %6236  ;;  %3428 = vst.msk [vmem:[#allocation2 + $0x6] sm:$0x1] %vm804_vm4, %v8015_v46  ;;  %v3854_v24 = vmul.f32 %v3850_v48, %v7193_v10  ;;  %v3438_v17 = vrot.slane %v8015_v46, 3  ;;  %v3435_v2 = vrot.slane %v8015_v46, 2  ;;  %v4017_v10 = vld [vmem:[%s9004_s4 + $0x60] sm:$0xff]  ;;  %5863 = vmatpush3.bf16.msra.mxu0 %v5862_v34  ;;  %v3443_v15 = vrot.slane %v8015_v46, 4 }
 0xc63   : > { %v3423_v35 = vadd.f32 %v3419_v39, %v7512_v4  ;;  %v3849_v18 = vmul.f32 %v6237_v62, %v7788_v9  ;;  %v1754_v5 = vpop.permute.xlu0 %1753  ;;  %3486 = vrot.lane.b32.xlu0 %v3485_v19, %s6277_s13  ;;  %v3451_v9 = vrot.slane %v8015_v46, 6  ;;  %v5842_v21 = vpack.c.bf16 %v4018_v56, %v4017_v10  ;;  %5865 = vmatprep.subr.bf16.mxu0 %v5864_v28  ;;  %v4049_v10 = vld [vmem:[%s9004_s4 + $0x160] sm:$0xff]  ;;  %v4050_v56 = vld [vmem:[%s9004_s4 + $0x168] sm:$0xff]  ;;  %v4067_v47 = vld [vmem:[%s9004_s4 + $0x1f0] sm:$0xff] }
 0xc64   : > { %v3065_v31 = vpop.permute.xlu1 %3064  ;;  %v3858_v60 = vadd.f32 %v3854_v24, %v7090_v27  ;;  %1756 = vst.msk [vmem:[#allocation2 + $0x4a] sm:$0x1] %vm811_vm5, %v1754_v5  ;;  %3439 = vrot.lane.b32.xlu1 %v3438_v17, %s6277_s13  ;;  %v3430_v25 = vrot.slane %v8015_v46, 1  ;;  %v5844_v48 = vpack.c.bf16 %v4036_v55, %v4035_v12  ;;  %v5868_v38 = vpack.c.bf16 %v4064_v6, %v4063_v13  ;;  %v4068_v28 = vld [vmem:[%s9004_s4 + $0x1f8] sm:$0xff] }
 0xc65   : > { %3067 = vst.msk [vmem:[#allocation2 + $0x4d] sm:$0x1] %vm811_vm5, %v3065_v31  ;;  %v8058_v27 = vsel %vm706_vm3, %v3423_v35, 0.0  ;;  %v3853_v0 = vmul.f32 %v3849_v18, %v7206_v49  ;;  %5843 = vmatpush3.bf16.msra.mxu1 %v5842_v21  ;;  %v5846_v34 = vpack.c.bf16 %v4020_v42, %v4019_v23  ;;  %v3454_v24 = vrot.slane %v8015_v46, 7 }
 0xc66   : > { %3437 = vst.msk [vmem:[#allocation2 + $0xe] sm:$0x1] %vm804_vm4, %v3435_v2  ;;  %3521 = vst.msk [vmem:[#allocation2 + $0x66] sm:$0x1] %vm804_vm4, %v8058_v27  ;;  %v8075_v49 = vsel %vm706_vm3, %v3858_v60, 0.0  ;;  %5845 = vmatprep.subr.bf16.mxu1 %v5844_v48  ;;  %v5870_v17 = vpack.c.bf16 %v4048_v58, %v4047_v51  ;;  %v5880_v2 = vpack.c.bf16 %v4086_v54, %v4085_v26  ;;  %v3446_v21 = vrot.slane %v8015_v46, 5 }
 0xc67   : > { %3453 = vst.msk [vmem:[#allocation2 + $0x1e] sm:$0x1] %vm804_vm4, %v3451_v9  ;;  %3896 = vst.msk [vmem:[#allocation2 + $0x27] sm:$0x1] %vm804_vm4, %v8075_v49  ;;  %v3857_v11 = vadd.f32 %v3853_v0, %v7235_v16  ;;  %v2628_v40 = vpop.permute.xlu0 %2627  ;;  %3478 = vrot.lane.b32.xlu0 %v3477_v52, %s6277_s13  ;;  %v5866_v16 = vpack.c.bf16 %v4046_v20, %v4045_v45  ;;  %v3903_v19 = vrot.slane %v8075_v49, 2  ;;  %v3919_v9 = vrot.slane %v8075_v49, 6 }
 0xc68   : > { %v1309_v8 = vpop.permute.xlu1 %1308  ;;  %3445 = vst.msk [vmem:[#allocation2 + $0x16] sm:$0x1] %vm804_vm4, %v3443_v15  ;;  %3431 = vrot.lane.b32.xlu1 %v3430_v25, %s6277_s13  ;;  %v5872_v52 = vpack.c.bf16 %v4066_v37, %v4065_v41  ;;  %v3911_v45 = vrot.slane %v8075_v49, 4  ;;  %v3528_v20 = vrot.slane %v8058_v27, 2  ;;  %v3544_v0 = vrot.slane %v8058_v27, 6  ;;  %v4052_v46 = vld [vmem:[%s9004_s4 + $0x178] sm:$0xff] }
 0xc69   : > { %2630 = vst.msk [vmem:[#allocation2 + $0x4c] sm:$0x1] %vm811_vm5, %v2628_v40  ;;  %1311 = vst.msk [vmem:[#allocation2 + $0x41] sm:$0x1] %vm811_vm5, %v1309_v8  ;;  %v8103_v39 = vsel %vm706_vm3, %v3857_v11, 0.0  ;;  %5867 = vmatpush3.bf16.msra.mxu0 %v5866_v16  ;;  %5847 = vmatpush3.bf16.msra.mxu1 %v5846_v34  ;;  %v5874_v12 = vpack.c.bf16 %v4050_v56, %v4049_v10  ;;  %v3536_v55 = vrot.slane %v8058_v27, 4 }
 0xc6a   : > { %3865 = vst.msk [vmem:[#allocation2 + $0x7] sm:$0x1] %vm804_vm4, %v8103_v39  ;;  %v3875_v62 = vrot.slane %v8103_v39, 3  ;;  %v3872_v5 = vrot.slane %v8103_v39, 2  ;;  %5869 = vmatprep.subr.bf16.mxu0 %v5868_v38  ;;  %v3888_v31 = vrot.slane %v8103_v39, 6  ;;  %v3880_v60 = vrot.slane %v8103_v39, 4  ;;  %5881 = vmatprep.subr.bf16.mxu1 %v5880_v2 }
 0xc6b   : > { %v872_v35 = vpop.permute.xlu0 %871  ;;  %3905 = vst.msk [vmem:[#allocation2 + $0x2f] sm:$0x1] %vm804_vm4, %v3903_v19  ;;  %v3867_v15 = vrot.slane %v8103_v39, 1  ;;  %3921 = vst.msk [vmem:[#allocation2 + $0x3f] sm:$0x1] %vm804_vm4, %v3919_v9  ;;  %v5876_v6 = vpack.c.bf16 %v4068_v28, %v4067_v47  ;;  %v4051_v11 = vld [vmem:[%s9004_s4 + $0x170] sm:$0xff] }
 0xc6c   : > { %v2183_v18 = vpop.permute.xlu1 %2182  ;;  %874 = vst.msk [vmem:[#allocation2 + $0x40] sm:$0x1] %vm811_vm5, %v872_v35  ;;  %3876 = vrot.lane.b32.xlu0 %v3875_v62, %s6277_s13  ;;  %3455 = vrot.lane.b32.xlu1 %v3454_v24, %s6277_s13  ;;  %v4117_v40 = vld [vmem:[%s9004_s4 + $0x380] sm:$0xff]  ;;  %v4118_v8 = vld [vmem:[%s9004_s4 + $0x388] sm:$0xff]  ;;  %v3891_v23 = vrot.slane %v8103_v39, 7  ;;  %v3906_v42 = vrot.slane %v8075_v49, 3  ;;  %v5878_v51 = vpack.c.bf16 %v4052_v46, %v4051_v11 }
 0xc6d   : > { %2185 = vst.msk [vmem:[#allocation2 + $0x43] sm:$0x1] %vm811_vm5, %v2183_v18  ;;  %5871 = vmatpush3.bf16.msra.mxu0 %v5870_v17  ;;  %v5912_v38 = vpack.c.bf16 %v4118_v8, %v4117_v40  ;;  %v3883_v58 = vrot.slane %v8103_v39, 5  ;;  %v3898_v19 = vrot.slane %v8075_v49, 1  ;;  %v2642_v37 = vrot.slane %v7653_v14, 7 }
 0xc6e   : > { %3874 = vst.msk [vmem:[#allocation2 + $0xf] sm:$0x1] %vm804_vm4, %v3872_v5  ;;  %3890 = vst.msk [vmem:[#allocation2 + $0x1f] sm:$0x1] %vm804_vm4, %v3888_v31  ;;  %5873 = vmatprep.subr.bf16.mxu0 %v5872_v52  ;;  %v3922_v26 = vrot.slane %v8075_v49, 7  ;;  %v886_v39 = vrot.slane %v7335_v22, 5 }
 0xc6f   : > { %3882 = vst.msk [vmem:[#allocation2 + $0x17] sm:$0x1] %vm804_vm4, %v3880_v60  ;;  %v1746_v13 = vpop.permute.xlu0 %1745  ;;  %3913 = vst.msk [vmem:[#allocation2 + $0x37] sm:$0x1] %vm804_vm4, %v3911_v45  ;;  %v3914_v24 = vrot.slane %v8075_v49, 5  ;;  %v1760_v17 = vrot.slane %v7350_v50, 5 }
 0xc70   : > { %v3057_v25 = vpop.permute.xlu1 %3056  ;;  %3530 = vst.msk [vmem:[#allocation2 + $0x6e] sm:$0x1] %vm804_vm4, %v3528_v20  ;;  %3546 = vst.msk [vmem:[#allocation2 + $0x7e] sm:$0x1] %vm804_vm4, %v3544_v0  ;;  %3868 = vrot.lane.b32.xlu0 %v3867_v15, %s6277_s13  ;;  %3447 = vrot.lane.b32.xlu1 %v3446_v21, %s6277_s13  ;;  %v3079_v54 = vrot.slane %v7685_v29, 7  ;;  %v2634_v35 = vrot.slane %v7653_v14, 5 }
 0xc71   : > { %1748 = vst.msk [vmem:[#allocation2 + $0x42] sm:$0x1] %vm811_vm5, %v1746_v13  ;;  %3059 = vst.msk [vmem:[#allocation2 + $0x45] sm:$0x1] %vm811_vm5, %v3057_v25  ;;  %5875 = vmatpush3.bf16.msra.mxu0 %v5874_v12  ;;  %v1323_v18 = vrot.slane %v7329_v3, 5  ;;  %v909_v22 = vrot.slane %v7525_v59, 3 }
 0xc72   : > { %3538 = vst.msk [vmem:[#allocation2 + $0x76] sm:$0x1] %vm804_vm4, %v3536_v55  ;;  %5877 = vmatprep.subr.bf16.mxu0 %v5876_v6  ;;  %v2197_v49 = vrot.slane %v7332_v57, 5  ;;  %v1783_v50 = vrot.slane %v7528_v53, 3  ;;  %v3071_v5 = vrot.slane %v7685_v29, 5  ;;  %v2657_v3 = vrot.slane %v7583_v36, 3 }
 0xc73   : > { %v2620_v16 = vpop.permute.xlu0 %2619  ;;  %v1346_v14 = vrot.slane %v7531_v63, 3  ;;  %v3531_v57 = vrot.slane %v8058_v27, 3  ;;  %v2220_v31 = vrot.slane %v7534_v61, 3  ;;  %v901_v29 = vrot.slane %v7525_v59, 1 }
 0xc74   : > { %v1333_v48 = vpop.permute.xlu1 %1332  ;;  %2622 = vst.msk [vmem:[#allocation2 + $0x44] sm:$0x1] %vm811_vm5, %v2620_v16  ;;  %3892 = vrot.lane.b32.xlu0 %v3891_v23, %s6277_s13  ;;  %3907 = vrot.lane.b32.xlu1 %v3906_v42, %s6277_s13  ;;  %v3094_v52 = vrot.slane %v7670_v30, 3  ;;  %v1775_v2 = vrot.slane %v7528_v53, 1  ;;  %v1338_v10 = vrot.slane %v7531_v63, 1  ;;  %v2649_v56 = vrot.slane %v7583_v36, 1 }
 0xc75   : > { %1335 = vst.msk [vmem:[#allocation2 + $0x59] sm:$0x1] %vm811_vm5, %v1333_v48  ;;  %5879 = vmatpush3.bf16.msra.mxu0 %v5878_v51  ;;  %v2212_v60 = vrot.slane %v7534_v61, 1  ;;  %v3523_v9 = vrot.slane %v8058_v27, 1  ;;  %v3086_v47 = vrot.slane %v7670_v30, 1 }
 0xc76   : > { %5913 = vmatprep.subr.bf16.mxu0 %v5912_v38 }
 0xc77   : > { %v896_v34 = vpop.permute.xlu0 %895 }
 0xc78   : > { %v2207_v41 = vpop.permute.xlu1 %2206  ;;  %898 = vst.msk [vmem:[#allocation2 + $0x58] sm:$0x1] %vm811_vm5, %v896_v34  ;;  %3884 = vrot.lane.b32.xlu0 %v3883_v58, %s6277_s13  ;;  %3899 = vrot.lane.b32.xlu1 %v3898_v19, %s6277_s13 }
 0xc79   : > { %2209 = vst.msk [vmem:[#allocation2 + $0x5b] sm:$0x1] %vm811_vm5, %v2207_v41 }
 0xc7b   : > { %v1770_v62 = vpop.permute.xlu0 %1769 }
 0xc7c   : > { %1772 = vst.msk [vmem:[#allocation2 + $0x5a] sm:$0x1] %vm811_vm5, %v1770_v62  ;;  %2643 = vrot.lane.b32.xlu0 %v2642_v37, %s6277_s13  ;;  %3923 = vrot.lane.b32.xlu1 %v3922_v26, %s6277_s13 }
 0xc80   : > { %887 = vrot.lane.b32.xlu0 %v886_v39, %s6277_s13  ;;  %3915 = vrot.lane.b32.xlu1 %v3914_v24, %s6277_s13 }
 0xc84   : > { %1761 = vrot.lane.b32.xlu0 %v1760_v17, %s6277_s13  ;;  %3080 = vrot.lane.b32.xlu1 %v3079_v54, %s6277_s13 }
 0xc88   : > { %2635 = vrot.lane.b32.xlu0 %v2634_v35, %s6277_s13  ;;  %1324 = vrot.lane.b32.xlu1 %v1323_v18, %s6277_s13 }
 0xc8c   : > { %910 = vrot.lane.b32.xlu0 %v909_v22, %s6277_s13  ;;  %2198 = vrot.lane.b32.xlu1 %v2197_v49, %s6277_s13  ;;  %v925_v22 = vrot.slane %v7525_v59, 7 }
 0xc90   : > { %1784 = vrot.lane.b32.xlu0 %v1783_v50, %s6277_s13  ;;  %3072 = vrot.lane.b32.xlu1 %v3071_v5, %s6277_s13  ;;  %v1799_v5 = vrot.slane %v7528_v53, 7 }
 0xc94   : > { %2658 = vrot.lane.b32.xlu0 %v2657_v3, %s6277_s13  ;;  %1347 = vrot.lane.b32.xlu1 %v1346_v14, %s6277_s13 }
 0xc98   : > { %3532 = vrot.lane.b32.xlu0 %v3531_v57, %s6277_s13  ;;  %2221 = vrot.lane.b32.xlu1 %v2220_v31, %s6277_s13  ;;  %v2673_v31 = vrot.slane %v7583_v36, 7 }
 0xc9c   : > { %902 = vrot.lane.b32.xlu0 %v901_v29, %s6277_s13  ;;  %3095 = vrot.lane.b32.xlu1 %v3094_v52, %s6277_s13 }
 0xca0   : > { %1776 = vrot.lane.b32.xlu0 %v1775_v2, %s6277_s13  ;;  %1339 = vrot.lane.b32.xlu1 %v1338_v10, %s6277_s13  ;;  %v3547_v10 = vrot.slane %v8058_v27, 7 }
 0xca4   : > { %2650 = vrot.lane.b32.xlu0 %v2649_v56, %s6277_s13  ;;  %2213 = vrot.lane.b32.xlu1 %v2212_v60, %s6277_s13  ;;  %v1362_v56 = vrot.slane %v7531_v63, 7 }
 0xca8   : > { %3524 = vrot.lane.b32.xlu0 %v3523_v9, %s6277_s13  ;;  %3087 = vrot.lane.b32.xlu1 %v3086_v47, %s6277_s13  ;;  %v3396_v28 = vpop.xlane.xlu1 %3395  ;;  %v917_v47 = vrot.slane %v7525_v59, 5  ;;  %v4069_v59 = vld [vmem:[%s9004_s4 + $0x200] sm:$0xff] }
 0xca9   : > { %v3402_v45 = vmul.f32 0.016666668, %v3396_v28  ;;  %v2236_v28 = vrot.slane %v7534_v61, 7 }
 0xcab   : > { %v3406_v20 = vadd.f32 1e-05, %v3402_v45 }
 0xcac   : > { %v3836_v0 = vpop.xlane.xlu1 %3835 }
 0xcad   : > { %6238 = vrsqrt.f32 %v3406_v20  ;;  %v3840_v15 = vmul.f32 0.016666668, %v3836_v0  ;;  %v1791_v0 = vrot.slane %v7528_v53, 5  ;;  %v2665_v53 = vrot.slane %v7583_v36, 5  ;;  %v4072_v36 = vld [vmem:[%s9004_s4 + $0x218] sm:$0xff] }
 0xcaf   : > { %v3844_v21 = vadd.f32 1e-05, %v3840_v15  ;;  %v3110_v15 = vrot.slane %v7670_v30, 7 }
 0xcb0   : > { %v3833_v12 = vpop.xlane.xlu1 %3832 }
 0xcb1   : > { %6240 = vrsqrt.f32 %v3844_v21  ;;  %v3839_v55 = vmul.f32 0.016666668, %v3833_v12  ;;  %v4070_v21 = vld [vmem:[%s9004_s4 + $0x208] sm:$0xff] }
 0xcb3   : > { %v3843_v13 = vadd.f32 1e-05, %v3839_v55 }
 0xcb5   : > { %6242 = vrsqrt.f32 %v3843_v13 }
 0xcb7   : > { %v6239_v25 = vpop.eup %6238 }
 0xcb8   : > { %v3414_v6 = vmul.f32 %v6239_v25, %v7847_v44 }
 0xcba   : > { %v3418_v11 = vmul.f32 %v3414_v6, %v7203_v7  ;;  %v4087_v6 = vld [vmem:[%s9004_s4 + $0x290] sm:$0xff] }
 0xcbb   : > { %v6241_v46 = vpop.eup %6240 }
 0xcbc   : > { %v3422_v40 = vadd.f32 %v3418_v11, %v7092_v33  ;;  %v3852_v8 = vmul.f32 %v6241_v46, %v7850_v1  ;;  %v4088_v11 = vld [vmem:[%s9004_s4 + $0x298] sm:$0xff]  ;;  %v5882_v46 = vpack.c.bf16 %v4070_v21, %v4069_v59  ;;  %v4123_v21 = vld [vmem:[%s9004_s4 + $0x3b0] sm:$0xff] }
 0xcbe   : > { %v3426_v23 = vsel %vm706_vm3, %v3422_v40, 0.0  ;;  %v3856_v42 = vmul.f32 %v3852_v8, %v7510_v32  ;;  %v4071_v40 = vld [vmem:[%s9004_s4 + $0x210] sm:$0xff] }
 0xcbf   : > { %v6243_v51 = vpop.eup %6242  ;;  %3490 = vst.msk [vmem:[#allocation2 + $0x46] sm:$0x1] %vm804_vm4, %v3426_v23  ;;  %v3500_v16 = vrot.slane %v3426_v23, 3  ;;  %v3497_v44 = vrot.slane %v3426_v23, 2  ;;  %v3513_v58 = vrot.slane %v3426_v23, 6  ;;  %v3505_v19 = vrot.slane %v3426_v23, 4 }
 0xcc0   : > { %v3860_v48 = vadd.f32 %v3856_v42, %v7512_v4  ;;  %v3851_v38 = vmul.f32 %v6243_v51, %v7855_v43  ;;  %v3492_v32 = vrot.slane %v3426_v23, 1  ;;  %v3516_v62 = vrot.slane %v3426_v23, 7 }
 0xcc1   : > { %3501 = vrot.lane.b32.xlu0 %v3500_v16, %s6277_s13  ;;  %3499 = vst.msk [vmem:[#allocation2 + $0x4e] sm:$0x1] %vm804_vm4, %v3497_v44  ;;  %3515 = vst.msk [vmem:[#allocation2 + $0x5e] sm:$0x1] %vm804_vm4, %v3513_v58  ;;  %v3508_v54 = vrot.slane %v3426_v23, 5  ;;  %v5884_v51 = vpack.c.bf16 %v4088_v11, %v4087_v6  ;;  %v4089_v16 = vld [vmem:[%s9004_s4 + $0x2a0] sm:$0xff]  ;;  %v5886_v58 = vpack.c.bf16 %v4072_v36, %v4071_v40 }
 0xcc2   : > { %v8245_v34 = vsel %vm706_vm3, %v3860_v48, 0.0  ;;  %v3855_v1 = vmul.f32 %v3851_v38, %v7203_v7  ;;  %3507 = vst.msk [vmem:[#allocation2 + $0x56] sm:$0x1] %vm804_vm4, %v3505_v19  ;;  %v4090_v48 = vld [vmem:[%s9004_s4 + $0x2a8] sm:$0xff]  ;;  %v3539_v38 = vrot.slane %v8058_v27, 5  ;;  %v1354_v44 = vrot.slane %v7531_v63, 5 }
 0xcc3   : > { %3958 = vst.msk [vmem:[#allocation2 + $0x67] sm:$0x1] %vm804_vm4, %v8245_v34  ;;  %v3968_v4 = vrot.slane %v8245_v34, 3  ;;  %v3965_v41 = vrot.slane %v8245_v34, 2  ;;  %v3981_v37 = vrot.slane %v8245_v34, 6  ;;  %v3973_v7 = vrot.slane %v8245_v34, 4 }
 0xcc4   : > { %v3859_v43 = vadd.f32 %v3855_v1, %v7092_v33  ;;  %v3960_v33 = vrot.slane %v8245_v34, 1  ;;  %v3984_v25 = vrot.slane %v8245_v34, 7  ;;  %v4073_v19 = vld [vmem:[%s9004_s4 + $0x220] sm:$0xff]  ;;  %v4074_v1 = vld [vmem:[%s9004_s4 + $0x228] sm:$0xff]  ;;  %v5888_v27 = vpack.c.bf16 %v4090_v48, %v4089_v16  ;;  %v4080_v6 = vld [vmem:[%s9004_s4 + $0x258] sm:$0xff] }
 0xcc5   : > { %3493 = vrot.lane.b32.xlu0 %v3492_v32, %s6277_s13  ;;  %3969 = vrot.lane.b32.xlu1 %v3968_v4, %s6277_s13  ;;  %3967 = vst.msk [vmem:[#allocation2 + $0x6f] sm:$0x1] %vm804_vm4, %v3965_v41  ;;  %3983 = vst.msk [vmem:[#allocation2 + $0x7f] sm:$0x1] %vm804_vm4, %v3981_v37  ;;  %v4101_v32 = vld [vmem:[%s9004_s4 + $0x300] sm:$0xff]  ;;  %v4102_v63 = vld [vmem:[%s9004_s4 + $0x308] sm:$0xff] }
 0xcc6   : > { %v3863_v26 = vsel %vm706_vm3, %v3859_v43, 0.0  ;;  %3975 = vst.msk [vmem:[#allocation2 + $0x77] sm:$0x1] %vm804_vm4, %v3973_v7  ;;  %v4091_v4 = vld [vmem:[%s9004_s4 + $0x2b0] sm:$0xff]  ;;  %v4108_v40 = vld [vmem:[%s9004_s4 + $0x338] sm:$0xff]  ;;  %v4097_v36 = vld [vmem:[%s9004_s4 + $0x2e0] sm:$0xff] }
 0xcc7   : > { %3927 = vst.msk [vmem:[#allocation2 + $0x47] sm:$0x1] %vm804_vm4, %v3863_v26  ;;  %v3934_v39 = vrot.slane %v3863_v26, 2  ;;  %v3950_v24 = vrot.slane %v3863_v26, 6  ;;  %v3942_v17 = vrot.slane %v3863_v26, 4  ;;  %v3937_v35 = vrot.slane %v3863_v26, 3 }
 0xcc8   : > { %v3929_v49 = vrot.slane %v3863_v26, 1  ;;  %v3953_v3 = vrot.slane %v3863_v26, 7  ;;  %v3945_v29 = vrot.slane %v3863_v26, 5  ;;  %v4092_v26 = vld [vmem:[%s9004_s4 + $0x2b8] sm:$0xff]  ;;  %v4126_v16 = vld [vmem:[%s9004_s4 + $0x3c8] sm:$0xff] }
 0xcc9   : > { %3517 = vrot.lane.b32.xlu0 %v3516_v62, %s6277_s13  ;;  %3961 = vrot.lane.b32.xlu1 %v3960_v33, %s6277_s13  ;;  %3936 = vst.msk [vmem:[#allocation2 + $0x4f] sm:$0x1] %vm804_vm4, %v3934_v39  ;;  %3952 = vst.msk [vmem:[#allocation2 + $0x5f] sm:$0x1] %vm804_vm4, %v3950_v24  ;;  %v2228_v62 = vrot.slane %v7534_v61, 5  ;;  %v4119_v33 = vld [vmem:[%s9004_s4 + $0x390] sm:$0xff]  ;;  %v5890_v24 = vpack.c.bf16 %v4074_v1, %v4073_v19 }
 0xcca   : > { %3944 = vst.msk [vmem:[#allocation2 + $0x57] sm:$0x1] %vm804_vm4, %v3942_v17  ;;  %v4120_v39 = vld [vmem:[%s9004_s4 + $0x398] sm:$0xff]  ;;  %v5914_v17 = vpack.c.bf16 %v4102_v63, %v4101_v32  ;;  %v4109_v32 = vld [vmem:[%s9004_s4 + $0x340] sm:$0xff]  ;;  %v4099_v63 = vld [vmem:[%s9004_s4 + $0x2f0] sm:$0xff] }
 0xccb   : > { %v4076_v61 = vld [vmem:[%s9004_s4 + $0x238] sm:$0xff] }
 0xccd   : > { %v3471_v18 = vpop.permute.xlu0 %3470  ;;  %3509 = vrot.lane.b32.xlu0 %v3508_v54, %s6277_s13  ;;  %3938 = vrot.lane.b32.xlu1 %v3937_v35, %s6277_s13  ;;  %v4075_v54 = vld [vmem:[%s9004_s4 + $0x230] sm:$0xff]  ;;  %v5892_v35 = vpack.c.bf16 %v4092_v26, %v4091_v4 }
 0xcce   : > { %3473 = vst.msk [vmem:[#allocation2 + $0x2e] sm:$0x1] %vm811_vm5, %v3471_v18  ;;  %v4103_v18 = vld [vmem:[%s9004_s4 + $0x310] sm:$0xff] }
 0xcd1   : > { %v3463_v50 = vpop.permute.xlu0 %3462  ;;  %926 = vrot.lane.b32.xlu0 %v925_v22, %s6277_s13  ;;  %3930 = vrot.lane.b32.xlu1 %v3929_v49, %s6277_s13  ;;  %v4104_v22 = vld [vmem:[%s9004_s4 + $0x318] sm:$0xff] }
 0xcd2   : > { %3465 = vst.msk [vmem:[#allocation2 + $0x26] sm:$0x1] %vm811_vm5, %v3463_v50 }
 0xcd5   : > { %v3487_v14 = vpop.permute.xlu0 %3486  ;;  %1800 = vrot.lane.b32.xlu0 %v1799_v5, %s6277_s13  ;;  %3954 = vrot.lane.b32.xlu1 %v3953_v3, %s6277_s13  ;;  %v5916_v3 = vpack.c.bf16 %v4120_v39, %v4119_v33  ;;  %v4083_v33 = vld [vmem:[%s9004_s4 + $0x270] sm:$0xff]  ;;  %v4084_v39 = vld [vmem:[%s9004_s4 + $0x278] sm:$0xff] }
 0xcd6   : > { %3489 = vst.msk [vmem:[#allocation2 + $0x3e] sm:$0x1] %vm811_vm5, %v3487_v14  ;;  %v3440_v57 = vpop.permute.xlu1 %3439  ;;  %v4093_v14 = vld [vmem:[%s9004_s4 + $0x2c0] sm:$0xff] }
 0xcd7   : > { %3442 = vst.msk [vmem:[#allocation2 + $0xe] sm:$0x1] %vm811_vm5, %v3440_v57  ;;  %v4094_v57 = vld [vmem:[%s9004_s4 + $0x2c8] sm:$0xff] }
 0xcd9   : > { %v3479_v52 = vpop.permute.xlu0 %3478  ;;  %2674 = vrot.lane.b32.xlu0 %v2673_v31, %s6277_s13  ;;  %3946 = vrot.lane.b32.xlu1 %v3945_v29, %s6277_s13  ;;  %v3102_v31 = vrot.slane %v7670_v30, 5  ;;  %v4121_v29 = vld [vmem:[%s9004_s4 + $0x3a0] sm:$0xff]  ;;  %v4078_v30 = vld [vmem:[%s9004_s4 + $0x248] sm:$0xff] }
 0xcda   : > { %3481 = vst.msk [vmem:[#allocation2 + $0x36] sm:$0x1] %vm811_vm5, %v3479_v52  ;;  %v3432_v2 = vpop.permute.xlu1 %3431  ;;  %v4122_v52 = vld [vmem:[%s9004_s4 + $0x3a8] sm:$0xff] }
 0xcdb   : > { %3434 = vst.msk [vmem:[#allocation2 + $0x6] sm:$0x1] %vm811_vm5, %v3432_v2  ;;  %v5894_v2 = vpack.c.bf16 %v4076_v61, %v4075_v54  ;;  %v5920_v59 = vpack.c.bf16 %v4122_v52, %v4121_v29  ;;  %v4111_v54 = vld [vmem:[%s9004_s4 + $0x350] sm:$0xff]  ;;  %v4129_v61 = vld [vmem:[%s9004_s4 + $0x3e0] sm:$0xff] }
 0xcdc   : > { %v4131_v52 = vld [vmem:[%s9004_s4 + $0x3f0] sm:$0xff] }
 0xcdd   : > { %3548 = vrot.lane.b32.xlu0 %v3547_v10, %s6277_s13  ;;  %1363 = vrot.lane.b32.xlu1 %v1362_v56, %s6277_s13  ;;  %v5918_v10 = vpack.c.bf16 %v4104_v22, %v4103_v18  ;;  %v4077_v56 = vld [vmem:[%s9004_s4 + $0x240] sm:$0xff] }
 0xcde   : > { %v3877_v60 = vpop.permute.xlu0 %3876  ;;  %v3456_v9 = vpop.permute.xlu1 %3455 }
 0xcdf   : > { %3879 = vst.msk [vmem:[#allocation2 + $0xf] sm:$0x1] %vm811_vm5, %v3877_v60  ;;  %3458 = vst.msk [vmem:[#allocation2 + $0x1e] sm:$0x1] %vm811_vm5, %v3456_v9  ;;  %v4105_v60 = vld [vmem:[%s9004_s4 + $0x320] sm:$0xff]  ;;  %v5896_v9 = vpack.c.bf16 %v4094_v57, %v4093_v14 }
 0xce0   : > { %v4113_v57 = vld [vmem:[%s9004_s4 + $0x360] sm:$0xff] }
 0xce1   : > { %918 = vrot.lane.b32.xlu0 %v917_v47, %s6277_s13  ;;  %2237 = vrot.lane.b32.xlu1 %v2236_v28, %s6277_s13  ;;  %v4106_v47 = vld [vmem:[%s9004_s4 + $0x328] sm:$0xff]  ;;  %v4095_v28 = vld [vmem:[%s9004_s4 + $0x2d0] sm:$0xff] }
 0xce2   : > { %v3869_v45 = vpop.permute.xlu0 %3868  ;;  %v3448_v20 = vpop.permute.xlu1 %3447 }
 0xce3   : > { %3871 = vst.msk [vmem:[#allocation2 + $0x7] sm:$0x1] %vm811_vm5, %v3869_v45  ;;  %3450 = vst.msk [vmem:[#allocation2 + $0x16] sm:$0x1] %vm811_vm5, %v3448_v20  ;;  %v4096_v45 = vld [vmem:[%s9004_s4 + $0x2d8] sm:$0xff] }
 0xce4   : > { %v5900_v11 = vpack.c.bf16 %v4096_v45, %v4095_v28  ;;  %v4152_v28 = vld [vmem:[%s9004_s4 + $0x498] sm:$0xff] }
 0xce5   : > { %1792 = vrot.lane.b32.xlu0 %v1791_v0, %s6277_s13  ;;  %3111 = vrot.lane.b32.xlu1 %v3110_v15, %s6277_s13 }
 0xce6   : > { %v3893_v12 = vpop.permute.xlu0 %3892  ;;  %v3908_v55 = vpop.permute.xlu1 %3907  ;;  %v3990_v13 = vld [vmem:[#allocation2 + $0x8] sm:$0xff] }
 0xce7   : > { %3895 = vst.msk [vmem:[#allocation2 + $0x1f] sm:$0x1] %vm811_vm5, %v3893_v12  ;;  %3910 = vst.msk [vmem:[#allocation2 + $0x2f] sm:$0x1] %vm811_vm5, %v3908_v55  ;;  %4330 = vmatprep.mubr.f32.mxu1 %v3990_v13  ;;  %v4124_v12 = vld [vmem:[%s9004_s4 + $0x3b8] sm:$0xff]  ;;  %v3976_v55 = vrot.slane %v8245_v34, 5  ;;  %v5898_v13 = vpack.c.bf16 %v4078_v30, %v4077_v56 }
 0xce8   : > { %v4107_v34 = vld [vmem:[%s9004_s4 + $0x330] sm:$0xff]  ;;  %v4134_v56 = vld [vmem:[%s9004_s4 + $0x408] sm:$0xff] }
 0xce9   : > { %2666 = vrot.lane.b32.xlu0 %v2665_v53, %s6277_s13  ;;  %3985 = vrot.lane.b32.xlu1 %v3984_v25, %s6277_s13  ;;  %v5922_v53 = vpack.c.bf16 %v4106_v47, %v4105_v60  ;;  %v4079_v25 = vld [vmem:[%s9004_s4 + $0x250] sm:$0xff] }
 0xcea   : > { %v3885_v8 = vpop.permute.xlu0 %3884  ;;  %v3900_v23 = vpop.permute.xlu1 %3899  ;;  %v3989_v42 = vld [vmem:[#allocation2] sm:$0xff]  ;;  %v5902_v48 = vpack.c.bf16 %v4080_v6, %v4079_v25  ;;  %v4151_v47 = vld [vmem:[%s9004_s4 + $0x490] sm:$0xff] }
 0xceb   : > { %3887 = vst.msk [vmem:[#allocation2 + $0x17] sm:$0x1] %vm811_vm5, %v3885_v8  ;;  %3902 = vst.msk [vmem:[#allocation2 + $0x27] sm:$0x1] %vm811_vm5, %v3900_v23  ;;  %4331 = vmatmul.mubr.f32.vlgmr.msra.gmra.mrb[24].mxu1 %v3989_v42  ;;  %v4098_v42 = vld [vmem:[%s9004_s4 + $0x2e8] sm:$0xff] }
 0xcec   : > { %5883 = vmatpush3.bf16.msra.mxu1 %v5882_v46  ;;  %v5924_v46 = vpack.c.bf16 %v4124_v12, %v4123_v21  ;;  %v5904_v19 = vpack.c.bf16 %v4098_v42, %v4097_v36  ;;  %v5948_v12 = vpack.c.bf16 %v4152_v28, %v4151_v47 }
 0xced   : > { %3540 = vrot.lane.b32.xlu0 %v3539_v38, %s6277_s13  ;;  %1355 = vrot.lane.b32.xlu1 %v1354_v44, %s6277_s13  ;;  %v5926_v38 = vpack.c.bf16 %v4108_v40, %v4107_v34  ;;  %v4081_v44 = vld [vmem:[%s9004_s4 + $0x260] sm:$0xff]  ;;  %v4182_v34 = vld [vmem:[%s9004_s4 + $0x588] sm:$0xff] }
 0xcee   : > { %v2644_v43 = vpop.permute.xlu0 %2643  ;;  %5885 = vmatprep.subr.bf16.mxu1 %v5884_v51  ;;  %v3924_v41 = vpop.permute.xlu1 %3923  ;;  %v3992_v37 = vld [vmem:[#allocation2 + $0x18] sm:$0xff]  ;;  %v3994_v7 = vld [vmem:[#allocation2 + $0x28] sm:$0xff]  ;;  %v4125_v51 = vld [vmem:[%s9004_s4 + $0x3c0] sm:$0xff] }
 0xcef   : > { %2646 = vst.msk [vmem:[#allocation2 + $0x5c] sm:$0x1] %vm811_vm5, %v2644_v43  ;;  %3926 = vst.msk [vmem:[#allocation2 + $0x3f] sm:$0x1] %vm811_vm5, %v3924_v41  ;;  %4400 = vmatprep.mubr.f32.mxu0 %v3992_v37  ;;  %4470 = vmatprep.mubr.f32.mxu1 %v3994_v7  ;;  %v5928_v1 = vpack.c.bf16 %v4126_v16, %v4125_v51  ;;  %v4100_v41 = vld [vmem:[%s9004_s4 + $0x2f8] sm:$0xff]  ;;  %v4127_v37 = vld [vmem:[%s9004_s4 + $0x3d0] sm:$0xff] }
 0xcf0   : > { %5887 = vmatpush3.bf16.msra.mxu1 %v5886_v58  ;;  %v4082_v58 = vld [vmem:[%s9004_s4 + $0x268] sm:$0xff]  ;;  %v4128_v7 = vld [vmem:[%s9004_s4 + $0x3d8] sm:$0xff]  ;;  %v4165_v16 = vld [vmem:[%s9004_s4 + $0x500] sm:$0xff] }
 0xcf1   : > { %2229 = vrot.lane.b32.xlu1 %v2228_v62, %s6277_s13  ;;  %5889 = vmatprep.subr.bf16.mxu1 %v5888_v27  ;;  %v4110_v27 = vld [vmem:[%s9004_s4 + $0x348] sm:$0xff]  ;;  %v5906_v26 = vpack.c.bf16 %v4082_v58, %v4081_v44 }
 0xcf2   : > { %v888_v49 = vpop.permute.xlu0 %887  ;;  %v3916_v50 = vpop.permute.xlu1 %3915  ;;  %v3991_v5 = vld [vmem:[#allocation2 + $0x10] sm:$0xff]  ;;  %v5930_v62 = vpack.c.bf16 %v4110_v27, %v4109_v32  ;;  %v3993_v6 = vld [vmem:[#allocation2 + $0x20] sm:$0xff]  ;;  %v4184_v32 = vld [vmem:[%s9004_s4 + $0x598] sm:$0xff] }
 0xcf3   : > { %890 = vst.msk [vmem:[#allocation2 + $0x50] sm:$0x1] %vm811_vm5, %v888_v49  ;;  %3918 = vst.msk [vmem:[#allocation2 + $0x37] sm:$0x1] %vm811_vm5, %v3916_v50  ;;  %4401 = vmatmul.mubr.f32.vlgmr.msra.gmra.mrb[26].mxu0 %v3991_v5  ;;  %v4130_v49 = vld [vmem:[%s9004_s4 + $0x3e8] sm:$0xff]  ;;  %v4149_v50 = vld [vmem:[%s9004_s4 + $0x480] sm:$0xff] }
 0xcf4   : > { %5891 = vmatpush3.bf16.msra.mxu1 %v5890_v24  ;;  %5915 = vmatpush3.bf16.msra.mxu0 %v5914_v17  ;;  %v5908_v24 = vpack.c.bf16 %v4100_v41, %v4099_v63  ;;  %v5932_v17 = vpack.c.bf16 %v4128_v7, %v4127_v37  ;;  %v4150_v5 = vld [vmem:[%s9004_s4 + $0x488] sm:$0xff]  ;;  %v5936_v29 = vpack.c.bf16 %v4130_v49, %v4129_v61  ;;  %v4167_v41 = vld [vmem:[%s9004_s4 + $0x510] sm:$0xff] }
 0xcf5   : > { %3103 = vrot.lane.b32.xlu1 %v3102_v31, %s6277_s13  ;;  %5893 = vmatprep.subr.bf16.mxu1 %v5892_v35  ;;  %v4112_v35 = vld [vmem:[%s9004_s4 + $0x358] sm:$0xff]  ;;  %v4114_v31 = vld [vmem:[%s9004_s4 + $0x368] sm:$0xff] }
 0xcf6   : > { %v1762_v20 = vpop.permute.xlu0 %1761  ;;  %5917 = vmatprep.subr.bf16.mxu0 %v5916_v3  ;;  %v3081_v0 = vpop.permute.xlu1 %3080  ;;  %v3996_v15 = vld [vmem:[#allocation2 + $0x38] sm:$0xff]  ;;  %v5910_v3 = vpack.c.bf16 %v4084_v39, %v4083_v33  ;;  %v5934_v14 = vpack.c.bf16 %v4112_v35, %v4111_v54  ;;  %v5938_v45 = vpack.c.bf16 %v4114_v31, %v4113_v57  ;;  %v4158_v33 = vld [vmem:[%s9004_s4 + $0x4c8] sm:$0xff]  ;;  %v4185_v54 = vld [vmem:[%s9004_s4 + $0x5a0] sm:$0xff] }
 0xcf7   : > { %1764 = vst.msk [vmem:[#allocation2 + $0x52] sm:$0x1] %vm811_vm5, %v1762_v20  ;;  %3083 = vst.msk [vmem:[#allocation2 + $0x5d] sm:$0x1] %vm811_vm5, %v3081_v0  ;;  %4540 = vmatprep.mubr.f32.mxu0 %v3996_v15  ;;  %v4115_v20 = vld [vmem:[%s9004_s4 + $0x370] sm:$0xff]  ;;  %v4116_v0 = vld [vmem:[%s9004_s4 + $0x378] sm:$0xff] }
 0xcf8   : > { %5895 = vmatpush3.bf16.msra.mxu1 %v5894_v2  ;;  %5919 = vmatpush3.bf16.msra.mxu0 %v5918_v10  ;;  %v5944_v2 = vpack.c.bf16 %v4150_v5, %v4149_v50  ;;  %v4133_v10 = vld [vmem:[%s9004_s4 + $0x400] sm:$0xff]  ;;  %v5942_v40 = vpack.c.bf16 %v4116_v0, %v4115_v20  ;;  %v4186_v35 = vld [vmem:[%s9004_s4 + $0x5a8] sm:$0xff]  ;;  %v4159_v57 = vld [vmem:[%s9004_s4 + $0x4d0] sm:$0xff] }
 0xcf9   : > { %3977 = vrot.lane.b32.xlu1 %v3976_v55, %s6277_s13  ;;  %5897 = vmatprep.subr.bf16.mxu1 %v5896_v9  ;;  %v4132_v9 = vld [vmem:[%s9004_s4 + $0x3f8] sm:$0xff]  ;;  %v5946_v15 = vpack.c.bf16 %v4134_v56, %v4133_v10  ;;  %v4142_v49 = vld [vmem:[%s9004_s4 + $0x448] sm:$0xff]  ;;  %v5984_v5 = vpack.c.bf16 %v4186_v35, %v4185_v54  ;;  %v4161_v0 = vld [vmem:[%s9004_s4 + $0x4e0] sm:$0xff] }
 0xcfa   : > { %v2636_v8 = vpop.permute.xlu0 %2635  ;;  %5921 = vmatprep.subr.bf16.mxu0 %v5920_v59  ;;  %v1325_v23 = vpop.permute.xlu1 %1324  ;;  %v4135_v59 = vld [vmem:[%s9004_s4 + $0x410] sm:$0xff]  ;;  %v5940_v21 = vpack.c.bf16 %v4132_v9, %v4131_v52  ;;  %v4136_v55 = vld [vmem:[%s9004_s4 + $0x418] sm:$0xff] }
 0xcfb   : > { %2638 = vst.msk [vmem:[#allocation2 + $0x54] sm:$0x1] %vm811_vm5, %v2636_v8  ;;  %1327 = vst.msk [vmem:[#allocation2 + $0x51] sm:$0x1] %vm811_vm5, %v1325_v23  ;;  %v5950_v36 = vpack.c.bf16 %v4136_v55, %v4135_v59  ;;  %v4137_v8 = vld [vmem:[%s9004_s4 + $0x420] sm:$0xff]  ;;  %v4138_v23 = vld [vmem:[%s9004_s4 + $0x428] sm:$0xff] }
 0xcfc   : > { %5899 = vmatpush3.bf16.msra.mxu1 %v5898_v13  ;;  %5923 = vmatpush3.bf16.msra.mxu0 %v5922_v53  ;;  %v4153_v13 = vld [vmem:[%s9004_s4 + $0x4a0] sm:$0xff]  ;;  %v4154_v53 = vld [vmem:[%s9004_s4 + $0x4a8] sm:$0xff]  ;;  %v5954_v27 = vpack.c.bf16 %v4138_v23, %v4137_v8  ;;  %v4160_v52 = vld [vmem:[%s9004_s4 + $0x4d8] sm:$0xff] }
 0xcfd   : > { %5901 = vmatprep.subr.bf16.mxu1 %v5900_v11  ;;  %5925 = vmatprep.subr.bf16.mxu0 %v5924_v46  ;;  %v4181_v46 = vld [vmem:[%s9004_s4 + $0x580] sm:$0xff]  ;;  %v5952_v42 = vpack.c.bf16 %v4154_v53, %v4153_v13  ;;  %v4188_v10 = vld [vmem:[%s9004_s4 + $0x5b8] sm:$0xff]  ;;  %v5964_v47 = vpack.c.bf16 %v4160_v52, %v4159_v57  ;;  %v4190_v55 = vld [vmem:[%s9004_s4 + $0x5c8] sm:$0xff] }
 0xcfe   : > { %v911_v4 = vpop.permute.xlu0 %910  ;;  %v2199_v43 = vpop.permute.xlu1 %2198  ;;  %v5976_v51 = vpack.c.bf16 %v4182_v34, %v4181_v46  ;;  %v4144_v9 = vld [vmem:[%s9004_s4 + $0x458] sm:$0xff]  ;;  %v4173_v34 = vld [vmem:[%s9004_s4 + $0x540] sm:$0xff]  ;;  %v4191_v23 = vld [vmem:[%s9004_s4 + $0x5d0] sm:$0xff] }
 0xcff   : > { %913 = vst.msk [vmem:[#allocation2 + $0x68] sm:$0x1] %vm811_vm5, %v911_v4  ;;  %2201 = vst.msk [vmem:[#allocation2 + $0x53] sm:$0x1] %vm811_vm5, %v2199_v43  ;;  %v4139_v4 = vld [vmem:[%s9004_s4 + $0x430] sm:$0xff]  ;;  %v4140_v43 = vld [vmem:[%s9004_s4 + $0x438] sm:$0xff] }
 0xd00   : > { %5903 = vmatpush3.bf16.msra.mxu1 %v5902_v48  ;;  %5927 = vmatpush3.bf16.msra.mxu0 %v5926_v38  ;;  %v4166_v48 = vld [vmem:[%s9004_s4 + $0x508] sm:$0xff]  ;;  %v4155_v38 = vld [vmem:[%s9004_s4 + $0x4b0] sm:$0xff]  ;;  %v5958_v61 = vpack.c.bf16 %v4140_v43, %v4139_v4  ;;  %v4172_v20 = vld [vmem:[%s9004_s4 + $0x538] sm:$0xff] }
 0xd01   : > { %5905 = vmatprep.subr.bf16.mxu1 %v5904_v19  ;;  %5929 = vmatprep.subr.bf16.mxu0 %v5928_v1  ;;  %v4156_v19 = vld [vmem:[%s9004_s4 + $0x4b8] sm:$0xff]  ;;  %v4183_v1 = vld [vmem:[%s9004_s4 + $0x590] sm:$0xff]  ;;  %v5978_v63 = vpack.c.bf16 %v4166_v48, %v4165_v16  ;;  %v4194_v4 = vld [vmem:[%s9004_s4 + $0x5e8] sm:$0xff] }
 0xd02   : > { %v1785_v18 = vpop.permute.xlu0 %1784  ;;  %v3073_v22 = vpop.permute.xlu1 %3072  ;;  %v5956_v37 = vpack.c.bf16 %v4156_v19, %v4155_v38  ;;  %v5980_v7 = vpack.c.bf16 %v4184_v32, %v4183_v1  ;;  %v4164_v8 = vld [vmem:[%s9004_s4 + $0x4f8] sm:$0xff]  ;;  %v4147_v48 = vld [vmem:[%s9004_s4 + $0x470] sm:$0xff]  ;;  %v4213_v32 = vld [vmem:[%s9004_s4 + $0x680] sm:$0xff] }
 0xd03   : > { %1787 = vst.msk [vmem:[#allocation2 + $0x6a] sm:$0x1] %vm811_vm5, %v1785_v18  ;;  %3075 = vst.msk [vmem:[#allocation2 + $0x55] sm:$0x1] %vm811_vm5, %v3073_v22  ;;  %v4141_v22 = vld [vmem:[%s9004_s4 + $0x440] sm:$0xff]  ;;  %v4148_v38 = vld [vmem:[%s9004_s4 + $0x478] sm:$0xff] }
 0xd04   : > { %5907 = vmatpush3.bf16.msra.mxu1 %v5906_v26  ;;  %5931 = vmatpush3.bf16.msra.mxu0 %v5930_v62  ;;  %v4168_v26 = vld [vmem:[%s9004_s4 + $0x518] sm:$0xff]  ;;  %v4157_v62 = vld [vmem:[%s9004_s4 + $0x4c0] sm:$0xff]  ;;  %v5962_v56 = vpack.c.bf16 %v4142_v49, %v4141_v22  ;;  %v4175_v19 = vld [vmem:[%s9004_s4 + $0x550] sm:$0xff]  ;;  %v5974_v43 = vpack.c.bf16 %v4148_v38, %v4147_v48 }
 0xd05   : > { %5909 = vmatprep.subr.bf16.mxu1 %v5908_v24  ;;  %5933 = vmatprep.subr.bf16.mxu0 %v5932_v17  ;;  %v3995_v24 = vld [vmem:[#allocation2 + $0x30] sm:$0xff]  ;;  %v5982_v18 = vpack.c.bf16 %v4168_v26, %v4167_v41  ;;  %v5960_v50 = vpack.c.bf16 %v4158_v33, %v4157_v62  ;;  %v4176_v1 = vld [vmem:[%s9004_s4 + $0x558] sm:$0xff]  ;;  %v4177_v26 = vld [vmem:[%s9004_s4 + $0x560] sm:$0xff] }
 0xd06   : > { %v2659_v30 = vpop.permute.xlu0 %2658  ;;  %v1348_v60 = vpop.permute.xlu1 %1347  ;;  %v5998_v41 = vpack.c.bf16 %v4176_v1, %v4175_v19  ;;  %v4178_v62 = vld [vmem:[%s9004_s4 + $0x568] sm:$0xff]  ;;  %v4195_v33 = vld [vmem:[%s9004_s4 + $0x5f0] sm:$0xff]  ;;  %v4180_v35 = vld [vmem:[%s9004_s4 + $0x578] sm:$0xff] }
 0xd07   : > { %2661 = vst.msk [vmem:[#allocation2 + $0x6c] sm:$0x1] %vm811_vm5, %v2659_v30  ;;  %1350 = vst.msk [vmem:[#allocation2 + $0x69] sm:$0x1] %vm811_vm5, %v1348_v60  ;;  %v4143_v60 = vld [vmem:[%s9004_s4 + $0x450] sm:$0xff]  ;;  %v4248_v48 = vld [vmem:[%s9004_s4 + $0x798] sm:$0xff] }
 0xd08   : > { %5911 = vmatpush3.bf16.msra.mxu1 %v5910_v3  ;;  %5935 = vmatpush3.bf16.msra.mxu0 %v5934_v14  ;;  %v4169_v3 = vld [vmem:[%s9004_s4 + $0x520] sm:$0xff]  ;;  %v4170_v14 = vld [vmem:[%s9004_s4 + $0x528] sm:$0xff]  ;;  %v5966_v13 = vpack.c.bf16 %v4144_v9, %v4143_v60  ;;  %v4179_v54 = vld [vmem:[%s9004_s4 + $0x570] sm:$0xff] }
 0xd09   : > { %5937 = vmatprep.subr.bf16.mxu0 %v5936_v29  ;;  %5945 = vmatprep.subr.bf16.mxu1 %v5944_v2  ;;  %v4187_v2 = vld [vmem:[%s9004_s4 + $0x5b0] sm:$0xff]  ;;  %v5986_v30 = vpack.c.bf16 %v4170_v14, %v4169_v3  ;;  %v6006_v22 = vpack.c.bf16 %v4180_v35, %v4179_v54  ;;  %v4204_v19 = vld [vmem:[%s9004_s4 + $0x638] sm:$0xff] }
 0xd0a   : > { %v3533_v25 = vpop.permute.xlu0 %3532  ;;  %v2222_v11 = vpop.permute.xlu1 %2221  ;;  %v5988_v28 = vpack.c.bf16 %v4188_v10, %v4187_v2  ;;  %v4197_v10 = vld [vmem:[%s9004_s4 + $0x600] sm:$0xff]  ;;  %v4231_v1 = vld [vmem:[%s9004_s4 + $0x710] sm:$0xff] }
 0xd0b   : > { %3535 = vst.msk [vmem:[#allocation2 + $0x6e] sm:$0x1] %vm811_vm5, %v3533_v25  ;;  %4471 = vmatmul.mubr.f32.vlgmr.msra.gmra.mrb[26].mxu1 %v3993_v6  ;;  %2224 = vst.msk [vmem:[#allocation2 + $0x6b] sm:$0x1] %vm811_vm5, %v2222_v11  ;;  %v4145_v25 = vld [vmem:[%s9004_s4 + $0x460] sm:$0xff]  ;;  %v4146_v6 = vld [vmem:[%s9004_s4 + $0x468] sm:$0xff] }
 0xd0c   : > { %5939 = vmatpush3.bf16.msra.mxu0 %v5938_v45  ;;  %5947 = vmatpush3.bf16.msra.mxu1 %v5946_v15  ;;  %v4171_v45 = vld [vmem:[%s9004_s4 + $0x530] sm:$0xff] }
 0xd0d   : > { %5941 = vmatprep.subr.bf16.mxu0 %v5940_v21  ;;  %5949 = vmatprep.subr.bf16.mxu1 %v5948_v12  ;;  %v4162_v21 = vld [vmem:[%s9004_s4 + $0x4e8] sm:$0xff]  ;;  %v4189_v12 = vld [vmem:[%s9004_s4 + $0x5c0] sm:$0xff]  ;;  %v5990_v53 = vpack.c.bf16 %v4172_v20, %v4171_v45 }
 0xd0e   : > { %v903_v44 = vpop.permute.xlu0 %902  ;;  %v3096_v58 = vpop.permute.xlu1 %3095  ;;  %v5968_v11 = vpack.c.bf16 %v4162_v21, %v4161_v0  ;;  %v5992_v46 = vpack.c.bf16 %v4190_v55, %v4189_v12  ;;  %v4199_v0 = vld [vmem:[%s9004_s4 + $0x610] sm:$0xff]  ;;  %v4217_v55 = vld [vmem:[%s9004_s4 + $0x6a0] sm:$0xff] }
 0xd0f   : > { %905 = vst.msk [vmem:[#allocation2 + $0x60] sm:$0x1] %vm811_vm5, %v903_v44  ;;  %3098 = vst.msk [vmem:[#allocation2 + $0x6d] sm:$0x1] %vm811_vm5, %v3096_v58 }
 0xd10   : > { %5943 = vmatpush3.bf16.msra.mxu0 %v5942_v40  ;;  %5951 = vmatpush3.bf16.msra.mxu1 %v5950_v36  ;;  %v4174_v40 = vld [vmem:[%s9004_s4 + $0x548] sm:$0xff]  ;;  %v4163_v36 = vld [vmem:[%s9004_s4 + $0x4f0] sm:$0xff] }
 0xd11   : > { %5953 = vmatprep.subr.bf16.mxu1 %v5952_v42  ;;  %5977 = vmatprep.subr.bf16.mxu0 %v5976_v51  ;;  %v4192_v42 = vld [vmem:[%s9004_s4 + $0x5d8] sm:$0xff]  ;;  %v5970_v51 = vpack.c.bf16 %v4146_v6, %v4145_v25  ;;  %v5994_v16 = vpack.c.bf16 %v4174_v40, %v4173_v34  ;;  %v5972_v44 = vpack.c.bf16 %v4164_v8, %v4163_v36  ;;  %v4201_v6 = vld [vmem:[%s9004_s4 + $0x620] sm:$0xff]  ;;  %v4230_v40 = vld [vmem:[%s9004_s4 + $0x708] sm:$0xff] }
 0xd12   : > { %v1777_v39 = vpop.permute.xlu0 %1776  ;;  %v1340_v17 = vpop.permute.xlu1 %1339  ;;  %v5996_v58 = vpack.c.bf16 %v4192_v42, %v4191_v23  ;;  %v4219_v36 = vld [vmem:[%s9004_s4 + $0x6b0] sm:$0xff]  ;;  %v4220_v8 = vld [vmem:[%s9004_s4 + $0x6b8] sm:$0xff] }
 0xd13   : > { %1779 = vst.msk [vmem:[#allocation2 + $0x62] sm:$0x1] %vm811_vm5, %v1777_v39  ;;  %4541 = vmatmul.mubr.f32.vlgmr.msra.gmra.mrb[28].mxu0 %v3995_v24  ;;  %1342 = vst.msk [vmem:[#allocation2 + $0x61] sm:$0x1] %vm811_vm5, %v1340_v17  ;;  %v4196_v39 = vld [vmem:[%s9004_s4 + $0x5f8] sm:$0xff]  ;;  %v6002_v24 = vpack.c.bf16 %v4178_v62, %v4177_v26  ;;  %v4249_v26 = vld [vmem:[%s9004_s4 + $0x7a0] sm:$0xff] }
 0xd14   : > { %5955 = vmatpush3.bf16.msra.mxu1 %v5954_v27  ;;  %5979 = vmatpush3.bf16.msra.mxu0 %v5978_v63  ;;  %v4214_v27 = vld [vmem:[%s9004_s4 + $0x688] sm:$0xff]  ;;  %v4193_v63 = vld [vmem:[%s9004_s4 + $0x5e0] sm:$0xff]  ;;  %v6004_v17 = vpack.c.bf16 %v4196_v39, %v4195_v33 }
 0xd15   : > { %5957 = vmatprep.subr.bf16.mxu1 %v5956_v37  ;;  %5981 = vmatprep.subr.bf16.mxu0 %v5980_v7  ;;  %v6008_v37 = vpack.c.bf16 %v4214_v27, %v4213_v32  ;;  %v6000_v7 = vpack.c.bf16 %v4194_v4, %v4193_v63  ;;  %v6020_v32 = vpack.c.bf16 %v4220_v8, %v4219_v36  ;;  %v4232_v63 = vld [vmem:[%s9004_s4 + $0x718] sm:$0xff]  ;;  %v4221_v4 = vld [vmem:[%s9004_s4 + $0x6c0] sm:$0xff]  ;;  %v4250_v62 = vld [vmem:[%s9004_s4 + $0x7a8] sm:$0xff] }
 0xd16   : > { %v2651_v31 = vpop.permute.xlu0 %2650  ;;  %v2214_v29 = vpop.permute.xlu1 %2213  ;;  %v6046_v39 = vpack.c.bf16 %v4232_v63, %v4231_v1  ;;  %v6048_v35 = vpack.c.bf16 %v4250_v62, %v4249_v26  ;;  %v4258_v1 = vld [vmem:[%s9004_s4 + $0x7e8] sm:$0xff] }
 0xd17   : > { %2653 = vst.msk [vmem:[#allocation2 + $0x64] sm:$0x1] %vm811_vm5, %v2651_v31  ;;  %2216 = vst.msk [vmem:[#allocation2 + $0x63] sm:$0x1] %vm811_vm5, %v2214_v29 }
 0xd18   : > { %5959 = vmatpush3.bf16.msra.mxu1 %v5958_v61  ;;  %5983 = vmatpush3.bf16.msra.mxu0 %v5982_v18  ;;  %v4245_v61 = vld [vmem:[%s9004_s4 + $0x780] sm:$0xff]  ;;  %v4246_v18 = vld [vmem:[%s9004_s4 + $0x788] sm:$0xff] }
 0xd19   : > { %5961 = vmatprep.subr.bf16.mxu1 %v5960_v50  ;;  %5985 = vmatprep.subr.bf16.mxu0 %v5984_v5  ;;  %v6040_v49 = vpack.c.bf16 %v4246_v18, %v4245_v61  ;;  %v4233_v61 = vld [vmem:[%s9004_s4 + $0x720] sm:$0xff]  ;;  %v4234_v18 = vld [vmem:[%s9004_s4 + $0x728] sm:$0xff] }
 0xd1a   : > { %v3525_v15 = vpop.permute.xlu0 %3524  ;;  %v3088_v59 = vpop.permute.xlu1 %3087 }
 0xd1b   : > { %3527 = vst.msk [vmem:[#allocation2 + $0x66] sm:$0x1] %vm811_vm5, %v3525_v15  ;;  %3090 = vst.msk [vmem:[#allocation2 + $0x65] sm:$0x1] %vm811_vm5, %v3088_v59  ;;  %v4200_v15 = vld [vmem:[%s9004_s4 + $0x618] sm:$0xff] }
 0xd1c   : > { %5963 = vmatpush3.bf16.msra.mxu1 %v5962_v56  ;;  %5987 = vmatpush3.bf16.msra.mxu0 %v5986_v30  ;;  %v4198_v56 = vld [vmem:[%s9004_s4 + $0x608] sm:$0xff]  ;;  %v6014_v25 = vpack.c.bf16 %v4200_v15, %v4199_v0 }
 0xd1d   : > { %5965 = vmatprep.subr.bf16.mxu1 %v5964_v47  ;;  %5989 = vmatprep.subr.bf16.mxu0 %v5988_v28  ;;  %v4215_v47 = vld [vmem:[%s9004_s4 + $0x690] sm:$0xff]  ;;  %v4216_v28 = vld [vmem:[%s9004_s4 + $0x698] sm:$0xff]  ;;  %v6010_v45 = vpack.c.bf16 %v4198_v56, %v4197_v10 }
 0xd1e   : > { %v6012_v20 = vpack.c.bf16 %v4216_v28, %v4215_v47  ;;  %v4235_v56 = vld [vmem:[%s9004_s4 + $0x730] sm:$0xff]  ;;  %v4226_v28 = vld [vmem:[%s9004_s4 + $0x6e8] sm:$0xff] }
 0xd20   : > { %5967 = vmatpush3.bf16.msra.mxu1 %v5966_v13  ;;  %5991 = vmatpush3.bf16.msra.mxu0 %v5990_v53  ;;  %v4218_v13 = vld [vmem:[%s9004_s4 + $0x6a8] sm:$0xff] }
 0xd21   : > { %5969 = vmatprep.subr.bf16.mxu1 %v5968_v11  ;;  %5993 = vmatprep.subr.bf16.mxu0 %v5992_v46  ;;  %v4202_v11 = vld [vmem:[%s9004_s4 + $0x628] sm:$0xff]  ;;  %v4229_v46 = vld [vmem:[%s9004_s4 + $0x700] sm:$0xff]  ;;  %v6016_v34 = vpack.c.bf16 %v4218_v13, %v4217_v55 }
 0xd22   : > { %v6018_v38 = vpack.c.bf16 %v4202_v11, %v4201_v6  ;;  %v4237_v13 = vld [vmem:[%s9004_s4 + $0x740] sm:$0xff] }
 0xd24   : > { %5971 = vmatpush3.bf16.msra.mxu1 %v5970_v51  ;;  %5995 = vmatpush3.bf16.msra.mxu0 %v5994_v16  ;;  %v4247_v16 = vld [vmem:[%s9004_s4 + $0x790] sm:$0xff] }
 0xd25   : > { %5973 = vmatprep.subr.bf16.mxu1 %v5972_v44  ;;  %5997 = vmatprep.subr.bf16.mxu0 %v5996_v58  ;;  %v6042_v44 = vpack.c.bf16 %v4230_v40, %v4229_v46  ;;  %v4203_v58 = vld [vmem:[%s9004_s4 + $0x630] sm:$0xff]  ;;  %v6044_v27 = vpack.c.bf16 %v4248_v48, %v4247_v16  ;;  %v4228_v46 = vld [vmem:[%s9004_s4 + $0x6f8] sm:$0xff] }
 0xd26   : > { %v6022_v33 = vpack.c.bf16 %v4204_v19, %v4203_v58  ;;  %v4256_v40 = vld [vmem:[%s9004_s4 + $0x7d8] sm:$0xff]  ;;  %v4239_v48 = vld [vmem:[%s9004_s4 + $0x750] sm:$0xff]  ;;  %v4257_v19 = vld [vmem:[%s9004_s4 + $0x7e0] sm:$0xff] }
 0xd27   : > { %v6064_v63 = vpack.c.bf16 %v4258_v1, %v4257_v19 }
 0xd28   : > { %5975 = vmatpush3.bf16.msra.mxu1 %v5974_v43  ;;  %5999 = vmatpush3.bf16.msra.mxu0 %v5998_v41  ;;  %v4222_v43 = vld [vmem:[%s9004_s4 + $0x6c8] sm:$0xff] }
 0xd29   : > { %6009 = vmatprep.subr.bf16.mxu1 %v6008_v37  ;;  %6001 = vmatprep.subr.bf16.mxu0 %v6000_v7  ;;  %v6024_v54 = vpack.c.bf16 %v4222_v43, %v4221_v4  ;;  %v4241_v4 = vld [vmem:[%s9004_s4 + $0x760] sm:$0xff]  ;;  %v4242_v43 = vld [vmem:[%s9004_s4 + $0x768] sm:$0xff] }
 0xd2a   : > { %v6066_v26 = vpack.c.bf16 %v4242_v43, %v4241_v4  ;;  %v4919_v4 = vld [vmem:[%s9006_s6 + $0x10] sm:$0xff] }
 0xd2c   : > { %6003 = vmatpush3.bf16.msra.mxu0 %v6002_v24  ;;  %v4205_v24 = vld [vmem:[%s9004_s4 + $0x640] sm:$0xff] }
 0xd2d   : > { %6005 = vmatprep.subr.bf16.mxu0 %v6004_v17  ;;  %v4206_v17 = vld [vmem:[%s9004_s4 + $0x648] sm:$0xff] }
 0xd30   : > { %6007 = vmatpush3.bf16.msra.mxu0 %v6006_v22  ;;  %v4223_v22 = vld [vmem:[%s9004_s4 + $0x6d0] sm:$0xff] }
 0xd31   : > { %6041 = vmatprep.subr.bf16.mxu0 %v6040_v49 }
 0xd33   : > { %v3502_v50 = vpop.permute.xlu0 %3501 }
 0xd34   : > { %3504 = vst.msk [vmem:[#allocation2 + $0x4e] sm:$0x1] %vm811_vm5, %v3502_v50 }
 0xd37   : > { %v3494_v5 = vpop.permute.xlu0 %3493  ;;  %v3970_v3 = vpop.permute.xlu1 %3969 }
 0xd38   : > { %3496 = vst.msk [vmem:[#allocation2 + $0x46] sm:$0x1] %vm811_vm5, %v3494_v5  ;;  %3972 = vst.msk [vmem:[#allocation2 + $0x6f] sm:$0x1] %vm811_vm5, %v3970_v3  ;;  %v4224_v5 = vld [vmem:[%s9004_s4 + $0x6d8] sm:$0xff]  ;;  %v4251_v3 = vld [vmem:[%s9004_s4 + $0x7b0] sm:$0xff] }
 0xd3b   : > { %v3518_v14 = vpop.permute.xlu0 %3517  ;;  %v3962_v57 = vpop.permute.xlu1 %3961 }
 0xd3c   : > { %3520 = vst.msk [vmem:[#allocation2 + $0x5e] sm:$0x1] %vm811_vm5, %v3518_v14  ;;  %3964 = vst.msk [vmem:[#allocation2 + $0x67] sm:$0x1] %vm811_vm5, %v3962_v57  ;;  %v4252_v14 = vld [vmem:[%s9004_s4 + $0x7b8] sm:$0xff]  ;;  %v6026_v57 = vpack.c.bf16 %v4206_v17, %v4205_v24  ;;  %v9012_v24 = vmov 0.0|0.0  }
 0xd3d   : > { %v6052_v10 = vpack.c.bf16 %v4252_v14, %v4251_v3  ;;  %v4829_v3 = vld [vmem:[%s9005_s5 + $0x8] sm:$0xff]  ;;  %v4830_v14 = vld [vmem:[%s9005_s5 + $0x10] sm:$0xff] }
 0xd3f   : > { %v3510_v31 = vpop.permute.xlu0 %3509  ;;  %v3939_v29 = vpop.permute.xlu1 %3938  ;;  %v4002_v53 = vld [vmem:[#allocation2 + $0x68] sm:$0xff] }
 0xd40   : > { %3512 = vst.msk [vmem:[#allocation2 + $0x56] sm:$0x1] %vm811_vm5, %v3510_v31  ;;  %3941 = vst.msk [vmem:[#allocation2 + $0x4f] sm:$0x1] %vm811_vm5, %v3939_v29  ;;  %v6050_v31 = vpack.c.bf16 %v4234_v18, %v4233_v61  ;;  %v4207_v29 = vld [vmem:[%s9004_s4 + $0x650] sm:$0xff]  ;;  %v9013_v61 = vmov 0.0  }
 0xd43   : > { %v927_v52 = vpop.permute.xlu0 %926  ;;  %v3931_v2 = vpop.permute.xlu1 %3930  ;;  %v4001_v17 = vld [vmem:[#allocation2 + $0x60] sm:$0xff] }
 0xd44   : > { %929 = vst.msk [vmem:[#allocation2 + $0x78] sm:$0x1] %vm811_vm5, %v927_v52  ;;  %3933 = vst.msk [vmem:[#allocation2 + $0x47] sm:$0x1] %vm811_vm5, %v3931_v2  ;;  %v4208_v52 = vld [vmem:[%s9004_s4 + $0x658] sm:$0xff]  ;;  %v6028_v2 = vpack.c.bf16 %v4224_v5, %v4223_v22  ;;  %v4828_v5 = vld [vmem:[%s9005_s5] sm:$0xff] }
 0xd45   : > { %v6030_v0 = vpack.c.bf16 %v4208_v52, %v4207_v29  ;;  %v5112_v29 = vld [vmem:[%s9002_s2 + $0x1] ss:$0 sm:$0xff] }
 0xd47   : > { %v1801_v30 = vpop.permute.xlu0 %1800  ;;  %v3955_v60 = vpop.permute.xlu1 %3954  ;;  %v3998_v9 = vld [vmem:[#allocation2 + $0x48] sm:$0xff] }
 0xd48   : > { %1803 = vst.msk [vmem:[#allocation2 + $0x7a] sm:$0x1] %vm811_vm5, %v1801_v30  ;;  %3957 = vst.msk [vmem:[#allocation2 + $0x5f] sm:$0x1] %vm811_vm5, %v3955_v60  ;;  %4610 = vmatprep.mubr.f32.mxu1 %v3998_v9  ;;  %v4236_v30 = vld [vmem:[%s9004_s4 + $0x738] sm:$0xff]  ;;  %v4225_v60 = vld [vmem:[%s9004_s4 + $0x6e0] sm:$0xff] }
 0xd49   : > { %v6054_v15 = vpack.c.bf16 %v4236_v30, %v4235_v56 }
 0xd4b   : > { %v2675_v59 = vpop.permute.xlu0 %2674  ;;  %v3947_v21 = vpop.permute.xlu1 %3946  ;;  %v3997_v12 = vld [vmem:[#allocation2 + $0x40] sm:$0xff] }
 0xd4c   : > { %2677 = vst.msk [vmem:[#allocation2 + $0x7c] sm:$0x1] %vm811_vm5, %v2675_v59  ;;  %3949 = vst.msk [vmem:[#allocation2 + $0x57] sm:$0x1] %vm811_vm5, %v3947_v21  ;;  %4611 = vmatmul.mubr.f32.vlgmr.msra.gmra.mrb[28].mxu1 %v3997_v12  ;;  %v4209_v59 = vld [vmem:[%s9004_s4 + $0x660] sm:$0xff]  ;;  %v4210_v21 = vld [vmem:[%s9004_s4 + $0x668] sm:$0xff]  ;;  %v6032_v12 = vpack.c.bf16 %v4226_v28, %v4225_v60 }
 0xd4d   : > { %6011 = vmatpush3.bf16.msra.mxu1 %v6010_v45  ;;  %4750 = vmatprep.mubr.f32.mxu1 %v4002_v53  ;;  %v4253_v45 = vld [vmem:[%s9004_s4 + $0x7c0] sm:$0xff]  ;;  %v4238_v53 = vld [vmem:[%s9004_s4 + $0x748] sm:$0xff]  ;;  %v6034_v36 = vpack.c.bf16 %v4210_v21, %v4209_v59  ;;  %v4834_v28 = vld [vmem:[%s9005_s5 + $0x30] sm:$0xff] }
 0xd4e   : > { %6013 = vmatprep.subr.bf16.mxu1 %v6012_v20  ;;  %v4254_v20 = vld [vmem:[%s9004_s4 + $0x7c8] sm:$0xff]  ;;  %v6058_v8 = vpack.c.bf16 %v4238_v53, %v4237_v13 }
 0xd4f   : > { %v3549_v23 = vpop.permute.xlu0 %3548  ;;  %v1364_v42 = vpop.permute.xlu1 %1363  ;;  %v4000_v51 = vld [vmem:[#allocation2 + $0x58] sm:$0xff]  ;;  %v6056_v55 = vpack.c.bf16 %v4254_v20, %v4253_v45 }
 0xd50   : > { %3551 = vst.msk [vmem:[#allocation2 + $0x7e] sm:$0x1] %vm811_vm5, %v3549_v23  ;;  %1366 = vst.msk [vmem:[#allocation2 + $0x79] sm:$0x1] %vm811_vm5, %v1364_v42  ;;  %4680 = vmatprep.mubr.f32.mxu0 %v4000_v51  ;;  %v4211_v23 = vld [vmem:[%s9004_s4 + $0x670] sm:$0xff]  ;;  %v4212_v51 = vld [vmem:[%s9004_s4 + $0x678] sm:$0xff] }
 0xd51   : > { %6015 = vmatpush3.bf16.msra.mxu1 %v6014_v25  ;;  %v4227_v25 = vld [vmem:[%s9004_s4 + $0x6f0] sm:$0xff]  ;;  %v4835_v20 = vld [vmem:[%s9005_s5 + $0x38] sm:$0xff] }
 0xd52   : > { %6017 = vmatprep.subr.bf16.mxu1 %v6016_v34  ;;  %v4255_v34 = vld [vmem:[%s9004_s4 + $0x7d0] sm:$0xff]  ;;  %v6036_v42 = vpack.c.bf16 %v4228_v46, %v4227_v25 }
 0xd53   : > { %v919_v41 = vpop.permute.xlu0 %918  ;;  %v2238_v37 = vpop.permute.xlu1 %2237  ;;  %v3999_v7 = vld [vmem:[#allocation2 + $0x50] sm:$0xff]  ;;  %v6060_v16 = vpack.c.bf16 %v4256_v40, %v4255_v34 }
 0xd54   : > { %921 = vst.msk [vmem:[#allocation2 + $0x70] sm:$0x1] %vm811_vm5, %v919_v41  ;;  %2240 = vst.msk [vmem:[#allocation2 + $0x7b] sm:$0x1] %vm811_vm5, %v2238_v37  ;;  %4681 = vmatmul.mubr.f32.vlgmr.msra.gmra.mrb[30].mxu0 %v3999_v7  ;;  %v4259_v37 = vld [vmem:[%s9004_s4 + $0x7f0] sm:$0xff]  ;;  %v4260_v7 = vld [vmem:[%s9004_s4 + $0x7f8] sm:$0xff] }
 0xd55   : > { %6019 = vmatpush3.bf16.msra.mxu1 %v6018_v38  ;;  %6043 = vmatpush3.bf16.msra.mxu0 %v6042_v44  ;;  %v4240_v38 = vld [vmem:[%s9004_s4 + $0x758] sm:$0xff]  ;;  %v6068_v62 = vpack.c.bf16 %v4260_v7, %v4259_v37  ;;  %v5113_v7 = vld [vmem:[%s9002_s2 + $0x2] ss:$0 sm:$0xff] }
 0xd56   : > { %6021 = vmatprep.subr.bf16.mxu1 %v6020_v32  ;;  %6045 = vmatprep.subr.bf16.mxu0 %v6044_v27  ;;  %v6038_v32 = vpack.c.bf16 %v4212_v51, %v4211_v23  ;;  %v6062_v27 = vpack.c.bf16 %v4240_v38, %v4239_v48 }
 0xd57   : > { %v1793_v49 = vpop.permute.xlu0 %1792  ;;  %v3112_v50 = vpop.permute.xlu1 %3111 }
 0xd58   : > { %1795 = vst.msk [vmem:[#allocation2 + $0x72] sm:$0x1] %vm811_vm5, %v1793_v49  ;;  %3114 = vst.msk [vmem:[#allocation2 + $0x7d] sm:$0x1] %vm811_vm5, %v3112_v50 }
 0xd59   : > { %6023 = vmatpush3.bf16.msra.mxu1 %v6022_v33  ;;  %6047 = vmatpush3.bf16.msra.mxu0 %v6046_v39  ;;  %v4243_v33 = vld [vmem:[%s9004_s4 + $0x770] sm:$0xff]  ;;  %v4244_v39 = vld [vmem:[%s9004_s4 + $0x778] sm:$0xff] }
 0xd5a   : > { %6025 = vmatprep.subr.bf16.mxu1 %v6024_v54  ;;  %6049 = vmatprep.subr.bf16.mxu0 %v6048_v35  ;;  %v6070_v35 = vpack.c.bf16 %v4244_v39, %v4243_v33 }
 0xd5b   : > { %v2667_v9 = vpop.permute.xlu0 %2666  ;;  %v3986_v47 = vpop.permute.xlu1 %3985 }
 0xd5c   : > { %2669 = vst.msk [vmem:[#allocation2 + $0x74] sm:$0x1] %vm811_vm5, %v2667_v9  ;;  %3988 = vst.msk [vmem:[#allocation2 + $0x7f] sm:$0x1] %vm811_vm5, %v3986_v47  ;;  %v4832_v9 = vld [vmem:[%s9005_s5 + $0x20] sm:$0xff]  ;;  %v4833_v47 = vld [vmem:[%s9005_s5 + $0x28] sm:$0xff] }
 0xd5d   : > { %6027 = vmatpush3.bf16.msra.mxu1 %v6026_v57  ;;  %6051 = vmatpush3.bf16.msra.mxu0 %v6050_v31  ;;  %v6073_v57 = vpack.c.bf16 %v4829_v3, %v4828_v5  ;;  %v4831_v31 = vld [vmem:[%s9005_s5 + $0x18] sm:$0xff]  ;;  %v6079_v45 = vpack.c.bf16 %v4833_v47, %v4832_v9 }
 0xd5e   : > { %6029 = vmatprep.subr.bf16.mxu1 %v6028_v2  ;;  %6053 = vmatprep.subr.bf16.mxu0 %v6052_v10  ;;  %v6076_v2 = vpack.c.bf16 %v4831_v31, %v4830_v14 }
 0xd5f   : > { %v3541_v6 = vpop.permute.xlu0 %3540  ;;  %v1356_v11 = vpop.permute.xlu1 %1355 }
 0xd60   : > { %3543 = vst.msk [vmem:[#allocation2 + $0x76] sm:$0x1] %vm811_vm5, %v3541_v6  ;;  %1358 = vst.msk [vmem:[#allocation2 + $0x71] sm:$0x1] %vm811_vm5, %v1356_v11 }
 0xd61   : > { %6031 = vmatpush3.bf16.msra.mxu1 %v6030_v0  ;;  %6055 = vmatpush3.bf16.msra.mxu0 %v6054_v15  ;;  %v6082_v0 = vpack.c.bf16 %v4835_v20, %v4834_v28 }
 0xd62   : > { %6033 = vmatprep.subr.bf16.mxu1 %v6032_v12  ;;  %6057 = vmatprep.subr.bf16.mxu0 %v6056_v55 }
 0xd63   : > { %v2230_v44 = vpop.permute.xlu1 %2229  ;;  %v4004_v58 = vld [vmem:[#allocation2 + $0x78] sm:$0xff] }
 0xd64   : > { %2232 = vst.msk [vmem:[#allocation2 + $0x73] sm:$0x1] %vm811_vm5, %v2230_v44  ;;  %4820 = vmatprep.mubr.f32.mxu0 %v4004_v58 }
 0xd65   : > { %6035 = vmatpush3.bf16.msra.mxu1 %v6034_v36  ;;  %6059 = vmatpush3.bf16.msra.mxu0 %v6058_v8 }
 0xd66   : > { %6037 = vmatprep.subr.bf16.mxu1 %v6036_v42  ;;  %6061 = vmatprep.subr.bf16.mxu0 %v6060_v16 }
 0xd67   : > { %v3104_v41 = vpop.permute.xlu1 %3103 }
 0xd68   : > { %3106 = vst.msk [vmem:[#allocation2 + $0x75] sm:$0x1] %vm811_vm5, %v3104_v41  ;;  %v4920_v41 = vld [vmem:[%s9006_s6 + $0x18] sm:$0xff] }
 0xd69   : > { %6039 = vmatpush3.bf16.msra.mxu1 %v6038_v32  ;;  %6063 = vmatpush3.bf16.msra.mxu0 %v6062_v27  ;;  %v4917_v27 = vld [vmem:[%s9006_s6] sm:$0xff]  ;;  %v6088_v37 = vpack.c.bf16 %v4920_v41, %v4919_v4 }
 0xd6a   : > { %6065 = vmatprep.subr.bf16.mxu0 %v6064_v63  ;;  %6072 = vmatprep.subr.bf16.mxu1 %v9012_v24  ;;  %v4918_v63 = vld [vmem:[%s9006_s6 + $0x8] sm:$0xff] }
 0xd6b   : > { %v3978_v54 = vpop.permute.xlu1 %3977  ;;  %v6085_v43 = vpack.c.bf16 %v4918_v63, %v4917_v27 }
 0xd6c   : > { %4751 = vmatmul.mubr.f32.vlgmr.msra.gmra.mrb[30].mxu1 %v4001_v17  ;;  %3980 = vst.msk [vmem:[#allocation2 + $0x77] sm:$0x1] %vm811_vm5, %v3978_v54  ;;  %v5115_v54 = vld [vmem:[%s9002_s2 + $0x3] ss:$0 sm:$0xff] }
 0xd6d   : > { %6067 = vmatpush3.bf16.msra.mxu0 %v6066_v26  ;;  %5703 = vmatprep.mubr.msk.f32.mxu1 %vm6257_vm0, %v9013_v61 }
 0xd6e   : > { %6069 = vmatprep.subr.bf16.mxu0 %v6068_v62  ;;  %6074 = vmatpush3.bf16.msra.mxu1 %v6073_v57 }
 0xd6f   : > { %6075 = vmatprep.subr.bf16.mxu1 %v9012_v24 }
 0xd71   : > { %6071 = vmatpush3.bf16.msra.mxu0 %v6070_v35 }
 0xd72   : > { %6084 = vmatprep.subr.bf16.mxu0 %v9012_v24  ;;  %6077 = vmatpush3.bf16.msra.mxu1 %v6076_v2 }
 0xd73   : > { %v4003_v18 = vld [vmem:[#allocation2 + $0x70] sm:$0xff]  ;;  %6078 = vmatprep.subr.bf16.mxu1 %v9012_v24 }
 0xd74   : > { %4821 = vmatmul.mubr.f32.vlgmr.msra.gmra.mrb[32].mxu0 %v4003_v18 }
 0xd75   : > { %5714 = vmatprep.mubr.msk.f32.mxu0 %vm6257_vm0, %v9013_v61  ;;  %6086 = vmatpush3.bf16.msra.mxu0 %v6085_v43 }
 0xd76   : > { %6080 = vmatpush3.bf16.msra.mxu1 %v6079_v45  ;;  %6087 = vmatprep.subr.bf16.mxu0 %v9012_v24 }
 0xd77   : > { %6081 = vmatprep.subr.bf16.mxu1 %v9012_v24 }
 0xd79   : > { %6089 = vmatpush3.bf16.msra.mxu0 %v6088_v37 }
 0xd7a   : > { %6083 = vmatpush3.bf16.msra.mxu1 %v6082_v0 }
 0xdbe   : > { %v5250_v22 = vpop.f32.mrb[24].mxu1 }
 0xdbf   : > { %v5251_v49 = vpop.f32.mrb[25].mxu1 }
 0xdc0   : > { %v5252_v50 = vadd.f32 %v5251_v49, %v5250_v22 }
 0xdc2   : > { %v4333_v56 = vadd.f32 %v5252_v50, %v5112_v29 }
 0xdc6   : > { %v5285_v52 = vpop.f32.mrb[26].mxu0 }
 0xdc7   : > { %v5286_v10 = vpop.f32.mrb[27].mxu0 }
 0xdc8   : > { %v5287_v30 = vadd.f32 %v5286_v10, %v5285_v52 }
 0xdca   : > { %v4403_v60 = vadd.f32 %v5287_v30, %v4333_v56 }
 0xdde   : > { %v5320_v15 = vpop.f32.mrb[26].mxu1 }
 0xddf   : > { %v5321_v59 = vpop.f32.mrb[27].mxu1 }
 0xde0   : > { %v5322_v21 = vadd.f32 %v5321_v59, %v5320_v15 }
 0xde2   : > { %v4473_v12 = vadd.f32 %v5322_v21, %v4403_v60 }
 0xde6   : > { %v5355_v55 = vpop.f32.mrb[28].mxu0 }
 0xde7   : > { %v5356_v13 = vpop.f32.mrb[29].mxu0 }
 0xde8   : > { %v5357_v53 = vadd.f32 %v5356_v13, %v5355_v55 }
 0xdea   : > { %v4543_v25 = vadd.f32 %v5357_v53, %v4473_v12 }
 0xe1f   : > { %v5390_v6 = vpop.f32.mrb[28].mxu1 }
 0xe20   : > { %v5391_v11 = vpop.f32.mrb[29].mxu1 }
 0xe21   : > { %v5392_v46 = vadd.f32 %v5391_v11, %v5390_v6 }
 0xe23   : > { %v4613_v34 = vadd.f32 %v5392_v46, %v4543_v25 }
 0xe27   : > { %v5425_v40 = vpop.f32.mrb[30].mxu0 }
 0xe28   : > { %v5426_v36 = vpop.f32.mrb[31].mxu0 }
 0xe29   : > { %v5427_v8 = vadd.f32 %v5426_v36, %v5425_v40 }
 0xe2b   : > { %v4683_v23 = vadd.f32 %v5427_v8, %v4613_v34 }
 0xe3f   : > { %v5460_v42 = vpop.f32.mrb[30].mxu1 }
 0xe40   : > { %v5461_v51 = vpop.f32.mrb[31].mxu1 }
 0xe41   : > { %v5462_v16 = vadd.f32 %v5461_v51, %v5460_v42 }
 0xe43   : > { %v4753_v48 = vadd.f32 %v5462_v16, %v4683_v23 }
 0xe47   : > { %v5495_v38 = vpop.f32.mrb[32].mxu0 }
 0xe48   : > { %v5496_v44 = vpop.f32.mrb[33].mxu0 }
 0xe49   : > { %v5497_v58 = vadd.f32 %v5496_v44, %v5495_v38 }
 0xe4b   : > { %v4823_v19 = vadd.f32 %v5497_v58, %v4753_v48 }
 0xe4d   : > { %v4826_v1 = vmul.f32 0.01, %v4823_v19 }
 0xe4f   : > { %v4827_v32 = vmax.f32 %v4823_v19, %v4826_v1 }
 0xe51   : > { %5704 = vmatmul.mubr.msk.f32.vlgmr.msra.gmra.mrb[32].mxu1 %vm4841_vm6, %v4827_v32 }
 0xf24   : > { %v4911_v26 = vpop.f32.mrb[32].mxu1 }
 0xf25   : > { %v4912_v62 = vadd.f32 %v5113_v7, %v4911_v26  ;;  %v5705_v33 = vpop.f32.mrb[33].mxu1 }
 0xf27   : > { %v4915_v39 = vmul.f32 0.01, %v4912_v62 }
 0xf29   : > { %v4916_v17 = vmax.f32 %v4912_v62, %v4915_v39 }
 0xf2b   : > { %5715 = vmatmul.mubr.msk.f32.vlgmr.msra.gmra.mrb[34].mxu0 %vm604_vm2, %v4916_v17 }
 0xffe   : > { %v4995_v35 = vpop.f32.mrb[34].mxu0 }
 0xfff   : > { %v4996_v61 = vadd.f32 %v5115_v54, %v4995_v35  ;;  %v5716_v18 = vpop.f32.mrb[35].mxu0 }
0x1001   : > { %v4999_v24 = vmul.f32 0.01, %v4996_v61 }
0x1003   : > { %v5000_v22 = vmax.f32 %v4996_v61, %v4999_v24 }
0x1005   : > { %5001 = vst [vmem:[%s273_s30] sm:$0xff] %v5000_v22 }
0x1006 PF: > { %s17_s24 = sadd.s32 1, %s6254_s24  }
0x1007   : > { %p14_p4 = scmp.ge.s32.totalorder %s17_s24, 4  }
0x1009   :  { %16 = sbr.rel (!%p14_p4) target bundleno = 1 (0x1), region = 78 }

</bundles_post_ra>
